<compile_context>
chip_gen: v7x
topology: tpu7x:2x2x1
jax: 0.10.0
libtpu: 0.0.40
codegen_flags: <defaults>
</compile_context>

<pallas_src>
import math
import jax
import jax.numpy as jnp
from jax.experimental import pallas as pl
from jax.experimental.pallas import tpu as pltpu


def _round_up(n, m):
    return ((n + m - 1) // m) * m


def moe_kernel(x_ref,
               w0f_ref, gb0_ref, gw1_ref, gb1_ref, gw2_ref, gb2_ref,
               ball_ref, a1p_ref, a2p_ref,
               out_ref):
    f32 = jnp.float32
    bf16 = jnp.bfloat16

    H = gw1_ref.shape[0]           # hidden size
    E = gw2_ref.shape[1]           # num experts (static)
    Opad = out_ref.shape[1]        # padded (lane-dense) output width
    TB = x_ref.shape[0]            # batch tile rows

    def elu(v):
        # PyTorch nn.ELU(alpha=1.0); clamp exp arg so the discarded branch is clean.
        return jnp.where(v > 0.0, v, jnp.exp(jnp.minimum(v, 0.0)) - 1.0)

    x = x_ref[...]                                                        # [TB, F] f32
    x_bf = x.astype(bf16)                                                 # MXU input

    # ---- Fused (gating L0 | packed expert L0) bf16 matmul, f32 accumulation.
    z = jnp.dot(x_bf, w0f_ref[...], preferred_element_type=f32)          # [TB, H+E*H]

    # ---- Gating MLP (elementwise in f32).
    g = elu(z[:, :H] + gb0_ref[...])                                      # [TB, H]
    g = elu(jnp.dot(g.astype(bf16), gw1_ref[...],
                    preferred_element_type=f32) + gb1_ref[...])           # [TB, H]
    logits = (jnp.dot(g, gw2_ref[...], preferred_element_type=f32)
              + gb2_ref[...])                                             # [TB, E] (f32 dot: tiny N)
    logits = logits - jnp.max(logits, axis=-1, keepdims=True)
    p = jnp.exp(logits)
    gwts = p / jnp.sum(p, axis=-1, keepdims=True)                         # [TB, E]

    # ---- One K=E bias-mix matmul for all three layers (replaces 3 tiny dots).
    bmix = jnp.dot(gwts, ball_ref[...], preferred_element_type=f32)       # [TB, 2H+Opad]

    # ---- Hoisted per-expert gate broadcasts, reused by all three mixes.
    BW = max(H, Opad)
    gcols = [jnp.broadcast_to(gwts[:, e:e + 1], (TB, BW)) for e in range(E)]

    def mix(y_packed, n, bias):
        # sum_e gwts[:, e] * y_packed[:, e*n:(e+1)*n] + (gwts @ bias_layer)
        acc = bias
        for e in range(E):                       # static unroll, lane-aligned slices
            acc = acc + gcols[e][:, :n] * y_packed[:, e * n:(e + 1) * n]
        return acc

    # ---- Expert layer 0 (its matmul already lives inside the fused z).
    h1 = elu(mix(z[:, H:], H, bmix[:, :H]))                               # [TB, H]

    # ---- Expert layer 1: one wide bf16 matmul + mix.
    y1 = jnp.dot(h1.astype(bf16), a1p_ref[...], preferred_element_type=f32)   # [TB, E*H]
    h2 = elu(mix(y1, H, bmix[:, H:2 * H]))                                # [TB, H]

    # ---- Expert layer 2 (no activation), lane-dense padded output.
    y2 = jnp.dot(h2.astype(bf16), a2p_ref[...], preferred_element_type=f32)   # [TB, E*Opad]
    out_ref[...] = mix(y2, Opad, bmix[:, 2 * H:])                         # [TB, Opad]


def _vmem_limit_bytes():
    # 3/4 of physical VMEM, capped at 96 MiB: ~96 MiB on v5e/v6e (128 MiB),
    # 48 MiB on v7x (64 MiB). Falls back to 48 MiB (safe everywhere).
    try:
        cap = int(pltpu.get_tpu_info().vmem_capacity_bytes)
    except Exception:
        cap = 64 * 1024 * 1024
    return int(min(96 * 1024 * 1024, (cap * 3) // 4))


def _pick_tiles(B, batch_tile):
    num_tiles = max(1, pl.cdiv(B, batch_tile))
    # v7x megacore: guarantee >=2 grid steps whenever there are enough rows so the
    # "parallel" batch axis is actually sharded across both TensorCores.
    if num_tiles < 2 and B >= 16:
        num_tiles = 2
    TB = _round_up(pl.cdiv(B, num_tiles), 8)     # even tiles -> <=7 rows of padding
    Bp = _round_up(B, TB)
    return TB, Bp


def moe_forward(x, params, *, batch_tile=512):
    B, F = x.shape
    Opad = params["a2p"].shape[1] // params["gw2_t"].shape[1]
    O = params["out_dim"]

    TB, Bp = _pick_tiles(B, batch_tile)
    if Bp != B:
        x = jnp.pad(x, ((0, Bp - B), (0, 0)))
    grid = Bp // TB

    weights = (params["w0f"], params["gb0"],
               params["gw1_t"], params["gb1"],
               params["gw2_t"], params["gb2"],
               params["ball"], params["a1p"], params["a2p"])

    def w_spec(w, pm):
        # Full-array block, constant index_map -> VMEM-resident across grid steps.
        if pm is None:
            return pl.BlockSpec(w.shape, lambda i: (0, 0))
        return pl.BlockSpec(w.shape, lambda i: (0, 0), pipeline_mode=pm)

    def run(single_buffer_weights):
        pm = pl.Buffered(1) if single_buffer_weights else None
        return pl.pallas_call(
            moe_kernel,
            out_shape=jax.ShapeDtypeStruct((Bp, Opad), jnp.float32),
            grid=(grid,),
            in_specs=[pl.BlockSpec((TB, F), lambda i: (i, 0))]
                     + [w_spec(w, pm) for w in weights],
            out_specs=pl.BlockSpec((TB, Opad), lambda i: (i, 0)),
            compiler_params=pltpu.CompilerParams(
                dimension_semantics=("parallel",),       # megacore on v7x; no-op v5e/v6e
                vmem_limit_bytes=_vmem_limit_bytes()),
        )(x, *weights)

    try:
        out = run(True)       # single-buffered resident weights (halves weight VMEM)
    except Exception:
        out = run(False)      # fallback if this JAX build rejects Buffered(1)
    return out[:B, :O]


def make_params(key, feature_size, num_experts, out_frame_size, hidden=512):
    F, E, H, O = feature_size, num_experts, hidden, out_frame_size
    Opad = _round_up(O, 128)
    ks = jax.random.split(key, 16)

    def linear_init(kw, kb, fan_in, fan_out):
        bound = 1.0 / math.sqrt(fan_in)
        w = jax.random.uniform(kw, (fan_out, fan_in), jnp.float32,
                               minval=-bound, maxval=bound)
        b = jax.random.uniform(kb, (fan_out,), jnp.float32,
                               minval=-bound, maxval=bound)
        return w, b

    gw0, gb0 = linear_init(ks[0], ks[1], F, H)
    gw1, gb1 = linear_init(ks[2], ks[3], H, H)
    gw2, gb2 = linear_init(ks[4], ks[5], H, E)

    alpha0 = jax.random.uniform(ks[6], (E, H, F)) * 0.01
    alpha1 = jax.random.uniform(ks[7], (E, H, H)) * 0.01
    alpha2 = jax.random.uniform(ks[8], (E, O, H)) * 0.01
    beta0 = jax.random.uniform(ks[9], (E, H)) * 0.01
    beta1 = jax.random.uniform(ks[10], (E, H)) * 0.01
    beta2 = jax.random.uniform(ks[11], (E, O)) * 0.01

    # Pre-transposed per-expert weights: a*_t[e] is [in, out].
    a0_t = jnp.transpose(alpha0, (0, 2, 1))                    # [E, F, H]
    a1_t = jnp.transpose(alpha1, (0, 2, 1))                    # [E, H, H]
    a2_t = jnp.transpose(alpha2, (0, 2, 1))                    # [E, H, O]

    # Pack experts along the output dim:  x @ a0p[:, e*H:(e+1)*H] == x @ a0_t[e].
    a0p = jnp.transpose(a0_t, (1, 0, 2)).reshape(F, E * H)     # [F, E*H]
    a1p = jnp.transpose(a1_t, (1, 0, 2)).reshape(H, E * H)     # [H, E*H]
    a2_t_pad = jnp.pad(a2_t, ((0, 0), (0, 0), (0, Opad - O)))  # zero-pad output to 128 lanes
    a2p = jnp.transpose(a2_t_pad, (1, 0, 2)).reshape(H, E * Opad)
    b2p = jnp.pad(beta2, ((0, 0), (0, Opad - O)))              # [E, Opad]

    # Fuse gating layer-0 with packed expert layer-0 (shared K = F contraction).
    w0f = jnp.concatenate([gw0.T, a0p], axis=1)                # [F, H + E*H]

    # Concatenated bias slab: one K=E dot covers all three layer biases.
    ball = jnp.concatenate([beta0, beta1, b2p], axis=1)        # [E, 2H + Opad] f32

    def bf32(v):  # bf16-rounded copy kept in f32 (reference rounding points)
        return v.astype(jnp.bfloat16).astype(jnp.float32)

    return {
        # kernel-facing (packed; big matmul operands in bf16, f32 accumulation)
        "w0f": w0f.astype(jnp.bfloat16), "gb0": gb0.reshape(1, -1),
        "gw1_t": gw1.T.astype(jnp.bfloat16), "gb1": gb1.reshape(1, -1),
        "gw2_t": gw2.T, "gb2": gb2.reshape(1, -1),
        "ball": ball,
        "a1p": a1p.astype(jnp.bfloat16),
        "a2p": a2p.astype(jnp.bfloat16),
        "out_dim": O,
        # reference-facing (unpacked, bf16-rounded where the kernel rounds)
        "gw0_t_ref": bf32(gw0.T), "gw1_t_ref": bf32(gw1.T),
        "a0_ref": bf32(alpha0), "a1_ref": bf32(alpha1), "a2_ref": bf32(alpha2),
        "b0": beta0, "b1": beta1, "b2": beta2,
    }


def moe_reference(x, params):
    """Pure-JAX reference mirroring the PyTorch forward (mix weights, then bmm),
    with the same bf16 rounding points as the kernel and f32 (HIGHEST) matmuls."""
    hi = jax.lax.Precision.HIGHEST

    def elu(v):
        return jnp.where(v > 0.0, v, jnp.exp(jnp.minimum(v, 0.0)) - 1.0)

    def bf(v):  # round to bf16, compute onward in f32 (matches kernel cast points)
        return v.astype(jnp.bfloat16).astype(jnp.float32)

    xb = bf(x)
    g = elu(jnp.dot(xb, params["gw0_t_ref"], precision=hi) + params["gb0"])
    g = elu(jnp.dot(bf(g), params["gw1_t_ref"], precision=hi) + params["gb1"])
    logits = jnp.dot(g, params["gw2_t"], precision=hi) + params["gb2"]
    gwts = jax.nn.softmax(logits, axis=1)                                 # [B, E]

    w0 = jnp.einsum("be,ehf->bhf", gwts, params["a0_ref"], precision=hi)
    w1 = jnp.einsum("be,ehk->bhk", gwts, params["a1_ref"], precision=hi)
    w2 = jnp.einsum("be,eoh->boh", gwts, params["a2_ref"], precision=hi)
    b0 = gwts @ params["b0"]
    b1 = gwts @ params["b1"]
    b2 = gwts @ params["b2"]

    h1 = elu(jnp.einsum("bhf,bf->bh", w0, xb, precision=hi) + b0)
    h2 = elu(jnp.einsum("bhk,bk->bh", w1, bf(h1), precision=hi) + b1)
    return jnp.einsum("boh,bh->bo", w2, bf(h2), precision=hi) + b2


if __name__ == "__main__":
    FEATURE_SIZE = 32
    NUM_EXPERTS = 4
    OUT_FRAME_SIZE = 24
    BATCH = 2

    root = jax.random.PRNGKey(0)
    k_param, k_x, k_x2 = jax.random.split(root, 3)
    params = make_params(k_param, FEATURE_SIZE, NUM_EXPERTS, OUT_FRAME_SIZE)

    # Small-batch run (single tile).
    x = jax.random.normal(k_x, (BATCH, FEATURE_SIZE), jnp.float32)
    out = jax.block_until_ready(moe_forward(x, params))
    ref = moe_reference(x, params)
    assert out.shape == (BATCH, OUT_FRAME_SIZE)
    err = float(jnp.max(jnp.abs(out - ref)))
    # Tolerance relaxed vs the f32 version because the MXU operands are bf16.
    assert jnp.allclose(out, ref, atol=2e-3, rtol=2e-3), err

    # Multi-tile / padded-batch path: forces grid > 1 and a remainder pad.
    x2 = jax.random.normal(k_x2, (37, FEATURE_SIZE), jnp.float32)
    out2 = jax.block_until_ready(moe_forward(x2, params, batch_tile=16))
    ref2 = moe_reference(x2, params)
    assert out2.shape == (37, OUT_FRAME_SIZE)
    err2 = float(jnp.max(jnp.abs(out2 - ref2)))
    assert jnp.allclose(out2, ref2, atol=2e-3, rtol=2e-3), err2

    print("KERNEL_OK")
</pallas_src>

<mosaic_0001>
module attributes {stable_mosaic.version = 11 : i64} {
  func.func @moe_kernel(%arg0: i32, %arg1: memref<8x32xf32, #tpu.memory_space<vmem>>, %arg2: memref<32x2560xbf16, #tpu.memory_space<vmem>>, %arg3: memref<1x512xf32, #tpu.memory_space<vmem>>, %arg4: memref<512x512xbf16, #tpu.memory_space<vmem>>, %arg5: memref<1x512xf32, #tpu.memory_space<vmem>>, %arg6: memref<512x4xf32, #tpu.memory_space<vmem>>, %arg7: memref<1x4xf32, #tpu.memory_space<vmem>>, %arg8: memref<4x1152xf32, #tpu.memory_space<vmem>>, %arg9: memref<512x2048xbf16, #tpu.memory_space<vmem>>, %arg10: memref<512x512xbf16, #tpu.memory_space<vmem>>, %arg11: memref<8x128xf32, #tpu.memory_space<vmem>>) attributes {dimension_semantics = [#tpu.dimension_semantics<parallel>], iteration_bounds = array<i64: 1>, scalar_prefetch = 0 : i64, scratch_operands = 0 : i64, tpu.core_type = #tpu.core_type<tc>, window_params = [{transform_indices = @transform_0, window_bounds = array<i64: 8, 32>}, {pipeline_mode = #tpu.pipeline_mode<synchronous>, transform_indices = @transform_1, window_bounds = array<i64: 32, 2560>}, {pipeline_mode = #tpu.pipeline_mode<synchronous>, transform_indices = @transform_2, window_bounds = array<i64: 1, 512>}, {pipeline_mode = #tpu.pipeline_mode<synchronous>, transform_indices = @transform_3, window_bounds = array<i64: 512, 512>}, {pipeline_mode = #tpu.pipeline_mode<synchronous>, transform_indices = @transform_4, window_bounds = array<i64: 1, 512>}, {pipeline_mode = #tpu.pipeline_mode<synchronous>, transform_indices = @transform_5, window_bounds = array<i64: 512, 4>}, {pipeline_mode = #tpu.pipeline_mode<synchronous>, transform_indices = @transform_6, window_bounds = array<i64: 1, 4>}, {pipeline_mode = #tpu.pipeline_mode<synchronous>, transform_indices = @transform_7, window_bounds = array<i64: 4, 1152>}, {pipeline_mode = #tpu.pipeline_mode<synchronous>, transform_indices = @transform_8, window_bounds = array<i64: 512, 2048>}, {pipeline_mode = #tpu.pipeline_mode<synchronous>, transform_indices = @transform_9, window_bounds = array<i64: 512, 512>}, {transform_indices = @transform_10, window_bounds = array<i64: 8, 128>}]} {
    %c0 = arith.constant 0 : index
    %c0_0 = arith.constant 0 : index
    %0 = vector.load %arg1[%c0, %c0_0] : memref<8x32xf32, #tpu.memory_space<vmem>>, vector<8x32xf32>
    %1 = arith.truncf %0 : vector<8x32xf32> to vector<8x32xbf16>
    %c0_1 = arith.constant 0 : index
    %c0_2 = arith.constant 0 : index
    %2 = vector.load %arg2[%c0_1, %c0_2] : memref<32x2560xbf16, #tpu.memory_space<vmem>>, vector<32x2560xbf16>
    %cst = arith.constant dense<0.000000e+00> : vector<8x2560xf32>
    %3 = tpu.matmul %1, %2, %cst {dimension_numbers = #tpu.dot_dimension_numbers<[1], [0], [0], [1], [0, 0, 1, 1], [], []>} : vector<8x32xbf16>, vector<32x2560xbf16>, vector<8x2560xf32> -> vector<8x2560xf32>
    %4 = vector.extract_strided_slice %3 {offsets = [0, 0], sizes = [8, 512], strides = [1, 1]} : vector<8x2560xf32> to vector<8x512xf32>
    %c0_3 = arith.constant 0 : index
    %c0_4 = arith.constant 0 : index
    %5 = vector.load %arg3[%c0_3, %c0_4] : memref<1x512xf32, #tpu.memory_space<vmem>>, vector<1x512xf32>
    %6 = vector.broadcast %5 : vector<1x512xf32> to vector<8x512xf32>
    %7 = arith.addf %4, %6 : vector<8x512xf32>
    %cst_5 = arith.constant 0.000000e+00 : f32
    %8 = vector.broadcast %cst_5 : f32 to vector<8x512xf32>
    %9 = arith.cmpf ogt, %7, %8 : vector<8x512xf32>
    %cst_6 = arith.constant 0.000000e+00 : f32
    %10 = vector.broadcast %cst_6 : f32 to vector<8x512xf32>
    %11 = arith.minimumf %7, %10 : vector<8x512xf32>
    %12 = math.exp %11 : vector<8x512xf32>
    %cst_7 = arith.constant 1.000000e+00 : f32
    %13 = vector.broadcast %cst_7 : f32 to vector<8x512xf32>
    %14 = arith.subf %12, %13 : vector<8x512xf32>
    %15 = arith.select %9, %7, %14 : vector<8x512xi1>, vector<8x512xf32>
    %16 = arith.truncf %15 : vector<8x512xf32> to vector<8x512xbf16>
    %c0_8 = arith.constant 0 : index
    %c0_9 = arith.constant 0 : index
    %17 = vector.load %arg4[%c0_8, %c0_9] : memref<512x512xbf16, #tpu.memory_space<vmem>>, vector<512x512xbf16>
    %cst_10 = arith.constant dense<0.000000e+00> : vector<8x512xf32>
    %18 = tpu.matmul %16, %17, %cst_10 {dimension_numbers = #tpu.dot_dimension_numbers<[1], [0], [0], [1], [0, 0, 1, 1], [], []>} : vector<8x512xbf16>, vector<512x512xbf16>, vector<8x512xf32> -> vector<8x512xf32>
    %c0_11 = arith.constant 0 : index
    %c0_12 = arith.constant 0 : index
    %19 = vector.load %arg5[%c0_11, %c0_12] : memref<1x512xf32, #tpu.memory_space<vmem>>, vector<1x512xf32>
    %20 = vector.broadcast %19 : vector<1x512xf32> to vector<8x512xf32>
    %21 = arith.addf %18, %20 : vector<8x512xf32>
    %cst_13 = arith.constant 0.000000e+00 : f32
    %22 = vector.broadcast %cst_13 : f32 to vector<8x512xf32>
    %23 = arith.cmpf ogt, %21, %22 : vector<8x512xf32>
    %cst_14 = arith.constant 0.000000e+00 : f32
    %24 = vector.broadcast %cst_14 : f32 to vector<8x512xf32>
    %25 = arith.minimumf %21, %24 : vector<8x512xf32>
    %26 = math.exp %25 : vector<8x512xf32>
    %cst_15 = arith.constant 1.000000e+00 : f32
    %27 = vector.broadcast %cst_15 : f32 to vector<8x512xf32>
    %28 = arith.subf %26, %27 : vector<8x512xf32>
    %29 = arith.select %23, %21, %28 : vector<8x512xi1>, vector<8x512xf32>
    %c0_16 = arith.constant 0 : index
    %c0_17 = arith.constant 0 : index
    %30 = vector.load %arg6[%c0_16, %c0_17] : memref<512x4xf32, #tpu.memory_space<vmem>>, vector<512x4xf32>
    %cst_18 = arith.constant dense<0.000000e+00> : vector<8x4xf32>
    %31 = tpu.matmul %29, %30, %cst_18 {dimension_numbers = #tpu.dot_dimension_numbers<[1], [0], [0], [1], [0, 0, 1, 1], [], []>} : vector<8x512xf32>, vector<512x4xf32>, vector<8x4xf32> -> vector<8x4xf32>
    %c0_19 = arith.constant 0 : index
    %c0_20 = arith.constant 0 : index
    %32 = vector.load %arg7[%c0_19, %c0_20] : memref<1x4xf32, #tpu.memory_space<vmem>>, vector<1x4xf32>
    %33 = vector.broadcast %32 : vector<1x4xf32> to vector<8x4xf32>
    %34 = arith.addf %31, %33 : vector<8x4xf32>
    %cst_21 = arith.constant dense<0xFF800000> : vector<8xf32>
    %35 = vector.multi_reduction <maximumf>, %34, %cst_21 [1] : vector<8x4xf32> to vector<8xf32>
    %36 = vector.shape_cast %35 : vector<8xf32> to vector<8x1xf32>
    %37 = vector.broadcast %36 : vector<8x1xf32> to vector<8x4xf32>
    %38 = arith.subf %34, %37 : vector<8x4xf32>
    %39 = math.exp %38 : vector<8x4xf32>
    %cst_22 = arith.constant dense<0.000000e+00> : vector<8xf32>
    %40 = vector.multi_reduction <add>, %39, %cst_22 [1] : vector<8x4xf32> to vector<8xf32>
    %41 = vector.shape_cast %40 : vector<8xf32> to vector<8x1xf32>
    %42 = vector.broadcast %41 : vector<8x1xf32> to vector<8x4xf32>
    %43 = arith.divf %39, %42 : vector<8x4xf32>
    %c0_23 = arith.constant 0 : index
    %c0_24 = arith.constant 0 : index
    %44 = vector.load %arg8[%c0_23, %c0_24] : memref<4x1152xf32, #tpu.memory_space<vmem>>, vector<4x1152xf32>
    %cst_25 = arith.constant dense<0.000000e+00> : vector<8x1152xf32>
    %45 = tpu.matmul %43, %44, %cst_25 {dimension_numbers = #tpu.dot_dimension_numbers<[1], [0], [0], [1], [0, 0, 1, 1], [], []>} : vector<8x4xf32>, vector<4x1152xf32>, vector<8x1152xf32> -> vector<8x1152xf32>
    %46 = vector.extract_strided_slice %43 {offsets = [0, 0], sizes = [8, 1], strides = [1, 1]} : vector<8x4xf32> to vector<8x1xf32>
    %47 = vector.shape_cast %46 : vector<8x1xf32> to vector<8x1xf32>
    %48 = vector.broadcast %47 : vector<8x1xf32> to vector<8x512xf32>
    %49 = vector.extract_strided_slice %43 {offsets = [0, 1], sizes = [8, 1], strides = [1, 1]} : vector<8x4xf32> to vector<8x1xf32>
    %50 = vector.shape_cast %49 : vector<8x1xf32> to vector<8x1xf32>
    %51 = vector.broadcast %50 : vector<8x1xf32> to vector<8x512xf32>
    %52 = vector.extract_strided_slice %43 {offsets = [0, 2], sizes = [8, 1], strides = [1, 1]} : vector<8x4xf32> to vector<8x1xf32>
    %53 = vector.shape_cast %52 : vector<8x1xf32> to vector<8x1xf32>
    %54 = vector.broadcast %53 : vector<8x1xf32> to vector<8x512xf32>
    %55 = vector.extract_strided_slice %43 {offsets = [0, 3], sizes = [8, 1], strides = [1, 1]} : vector<8x4xf32> to vector<8x1xf32>
    %56 = vector.shape_cast %55 : vector<8x1xf32> to vector<8x1xf32>
    %57 = vector.broadcast %56 : vector<8x1xf32> to vector<8x512xf32>
    %58 = vector.extract_strided_slice %3 {offsets = [0, 512], sizes = [8, 2048], strides = [1, 1]} : vector<8x2560xf32> to vector<8x2048xf32>
    %59 = vector.extract_strided_slice %45 {offsets = [0, 0], sizes = [8, 512], strides = [1, 1]} : vector<8x1152xf32> to vector<8x512xf32>
    %60 = vector.extract_strided_slice %58 {offsets = [0, 0], sizes = [8, 512], strides = [1, 1]} : vector<8x2048xf32> to vector<8x512xf32>
    %61 = arith.mulf %48, %60 : vector<8x512xf32>
    %62 = arith.addf %59, %61 : vector<8x512xf32>
    %63 = vector.extract_strided_slice %58 {offsets = [0, 512], sizes = [8, 512], strides = [1, 1]} : vector<8x2048xf32> to vector<8x512xf32>
    %64 = arith.mulf %51, %63 : vector<8x512xf32>
    %65 = arith.addf %62, %64 : vector<8x512xf32>
    %66 = vector.extract_strided_slice %58 {offsets = [0, 1024], sizes = [8, 512], strides = [1, 1]} : vector<8x2048xf32> to vector<8x512xf32>
    %67 = arith.mulf %54, %66 : vector<8x512xf32>
    %68 = arith.addf %65, %67 : vector<8x512xf32>
    %69 = vector.extract_strided_slice %58 {offsets = [0, 1536], sizes = [8, 512], strides = [1, 1]} : vector<8x2048xf32> to vector<8x512xf32>
    %70 = arith.mulf %57, %69 : vector<8x512xf32>
    %71 = arith.addf %68, %70 : vector<8x512xf32>
    %cst_26 = arith.constant 0.000000e+00 : f32
    %72 = vector.broadcast %cst_26 : f32 to vector<8x512xf32>
    %73 = arith.cmpf ogt, %71, %72 : vector<8x512xf32>
    %cst_27 = arith.constant 0.000000e+00 : f32
    %74 = vector.broadcast %cst_27 : f32 to vector<8x512xf32>
    %75 = arith.minimumf %71, %74 : vector<8x512xf32>
    %76 = math.exp %75 : vector<8x512xf32>
    %cst_28 = arith.constant 1.000000e+00 : f32
    %77 = vector.broadcast %cst_28 : f32 to vector<8x512xf32>
    %78 = arith.subf %76, %77 : vector<8x512xf32>
    %79 = arith.select %73, %71, %78 : vector<8x512xi1>, vector<8x512xf32>
    %80 = arith.truncf %79 : vector<8x512xf32> to vector<8x512xbf16>
    %c0_29 = arith.constant 0 : index
    %c0_30 = arith.constant 0 : index
    %81 = vector.load %arg9[%c0_29, %c0_30] : memref<512x2048xbf16, #tpu.memory_space<vmem>>, vector<512x2048xbf16>
    %cst_31 = arith.constant dense<0.000000e+00> : vector<8x2048xf32>
    %82 = tpu.matmul %80, %81, %cst_31 {dimension_numbers = #tpu.dot_dimension_numbers<[1], [0], [0], [1], [0, 0, 1, 1], [], []>} : vector<8x512xbf16>, vector<512x2048xbf16>, vector<8x2048xf32> -> vector<8x2048xf32>
    %83 = vector.extract_strided_slice %45 {offsets = [0, 512], sizes = [8, 512], strides = [1, 1]} : vector<8x1152xf32> to vector<8x512xf32>
    %84 = vector.extract_strided_slice %82 {offsets = [0, 0], sizes = [8, 512], strides = [1, 1]} : vector<8x2048xf32> to vector<8x512xf32>
    %85 = arith.mulf %48, %84 : vector<8x512xf32>
    %86 = arith.addf %83, %85 : vector<8x512xf32>
    %87 = vector.extract_strided_slice %82 {offsets = [0, 512], sizes = [8, 512], strides = [1, 1]} : vector<8x2048xf32> to vector<8x512xf32>
    %88 = arith.mulf %51, %87 : vector<8x512xf32>
    %89 = arith.addf %86, %88 : vector<8x512xf32>
    %90 = vector.extract_strided_slice %82 {offsets = [0, 1024], sizes = [8, 512], strides = [1, 1]} : vector<8x2048xf32> to vector<8x512xf32>
    %91 = arith.mulf %54, %90 : vector<8x512xf32>
    %92 = arith.addf %89, %91 : vector<8x512xf32>
    %93 = vector.extract_strided_slice %82 {offsets = [0, 1536], sizes = [8, 512], strides = [1, 1]} : vector<8x2048xf32> to vector<8x512xf32>
    %94 = arith.mulf %57, %93 : vector<8x512xf32>
    %95 = arith.addf %92, %94 : vector<8x512xf32>
    %cst_32 = arith.constant 0.000000e+00 : f32
    %96 = vector.broadcast %cst_32 : f32 to vector<8x512xf32>
    %97 = arith.cmpf ogt, %95, %96 : vector<8x512xf32>
    %cst_33 = arith.constant 0.000000e+00 : f32
    %98 = vector.broadcast %cst_33 : f32 to vector<8x512xf32>
    %99 = arith.minimumf %95, %98 : vector<8x512xf32>
    %100 = math.exp %99 : vector<8x512xf32>
    %cst_34 = arith.constant 1.000000e+00 : f32
    %101 = vector.broadcast %cst_34 : f32 to vector<8x512xf32>
    %102 = arith.subf %100, %101 : vector<8x512xf32>
    %103 = arith.select %97, %95, %102 : vector<8x512xi1>, vector<8x512xf32>
    %104 = arith.truncf %103 : vector<8x512xf32> to vector<8x512xbf16>
    %c0_35 = arith.constant 0 : index
    %c0_36 = arith.constant 0 : index
    %105 = vector.load %arg10[%c0_35, %c0_36] : memref<512x512xbf16, #tpu.memory_space<vmem>>, vector<512x512xbf16>
    %cst_37 = arith.constant dense<0.000000e+00> : vector<8x512xf32>
    %106 = tpu.matmul %104, %105, %cst_37 {dimension_numbers = #tpu.dot_dimension_numbers<[1], [0], [0], [1], [0, 0, 1, 1], [], []>} : vector<8x512xbf16>, vector<512x512xbf16>, vector<8x512xf32> -> vector<8x512xf32>
    %107 = vector.extract_strided_slice %45 {offsets = [0, 1024], sizes = [8, 128], strides = [1, 1]} : vector<8x1152xf32> to vector<8x128xf32>
    %108 = vector.extract_strided_slice %48 {offsets = [0, 0], sizes = [8, 128], strides = [1, 1]} : vector<8x512xf32> to vector<8x128xf32>
    %109 = vector.extract_strided_slice %106 {offsets = [0, 0], sizes = [8, 128], strides = [1, 1]} : vector<8x512xf32> to vector<8x128xf32>
    %110 = arith.mulf %108, %109 : vector<8x128xf32>
    %111 = arith.addf %107, %110 : vector<8x128xf32>
    %112 = vector.extract_strided_slice %51 {offsets = [0, 0], sizes = [8, 128], strides = [1, 1]} : vector<8x512xf32> to vector<8x128xf32>
    %113 = vector.extract_strided_slice %106 {offsets = [0, 128], sizes = [8, 128], strides = [1, 1]} : vector<8x512xf32> to vector<8x128xf32>
    %114 = arith.mulf %112, %113 : vector<8x128xf32>
    %115 = arith.addf %111, %114 : vector<8x128xf32>
    %116 = vector.extract_strided_slice %54 {offsets = [0, 0], sizes = [8, 128], strides = [1, 1]} : vector<8x512xf32> to vector<8x128xf32>
    %117 = vector.extract_strided_slice %106 {offsets = [0, 256], sizes = [8, 128], strides = [1, 1]} : vector<8x512xf32> to vector<8x128xf32>
    %118 = arith.mulf %116, %117 : vector<8x128xf32>
    %119 = arith.addf %115, %118 : vector<8x128xf32>
    %120 = vector.extract_strided_slice %57 {offsets = [0, 0], sizes = [8, 128], strides = [1, 1]} : vector<8x512xf32> to vector<8x128xf32>
    %121 = vector.extract_strided_slice %106 {offsets = [0, 384], sizes = [8, 128], strides = [1, 1]} : vector<8x512xf32> to vector<8x128xf32>
    %122 = arith.mulf %120, %121 : vector<8x128xf32>
    %123 = arith.addf %119, %122 : vector<8x128xf32>
    %c0_38 = arith.constant 0 : index
    %c0_39 = arith.constant 0 : index
    %124 = vector.load %arg11[%c0_38, %c0_39] : memref<8x128xf32, #tpu.memory_space<vmem>>, vector<8x128xf32>
    tpu.vector_store %arg11[%c0_38, %c0_39], %123 {strides = array<i32>} : memref<8x128xf32, #tpu.memory_space<vmem>>, vector<8x128xf32>,
    return
  }
  func.func @transform_0(%arg0: i32) -> (i32, i32) {
    %c0_i32 = arith.constant 0 : i32
    %c0_i32_0 = arith.constant 0 : i32
    return %arg0, %c0_i32 : i32, i32
  }
  func.func @transform_1(%arg0: i32) -> (i32, i32) {
    %c0_i32 = arith.constant 0 : i32
    %c0_i32_0 = arith.constant 0 : i32
    %c0_i32_1 = arith.constant 0 : i32
    return %c0_i32, %c0_i32_0 : i32, i32
  }
  func.func @transform_2(%arg0: i32) -> (i32, i32) {
    %c0_i32 = arith.constant 0 : i32
    %c0_i32_0 = arith.constant 0 : i32
    %c0_i32_1 = arith.constant 0 : i32
    return %c0_i32, %c0_i32_0 : i32, i32
  }
  func.func @transform_3(%arg0: i32) -> (i32, i32) {
    %c0_i32 = arith.constant 0 : i32
    %c0_i32_0 = arith.constant 0 : i32
    %c0_i32_1 = arith.constant 0 : i32
    return %c0_i32, %c0_i32_0 : i32, i32
  }
  func.func @transform_4(%arg0: i32) -> (i32, i32) {
    %c0_i32 = arith.constant 0 : i32
    %c0_i32_0 = arith.constant 0 : i32
    %c0_i32_1 = arith.constant 0 : i32
    return %c0_i32, %c0_i32_0 : i32, i32
  }
  func.func @transform_5(%arg0: i32) -> (i32, i32) {
    %c0_i32 = arith.constant 0 : i32
    %c0_i32_0 = arith.constant 0 : i32
    %c0_i32_1 = arith.constant 0 : i32
    return %c0_i32, %c0_i32_0 : i32, i32
  }
  func.func @transform_6(%arg0: i32) -> (i32, i32) {
    %c0_i32 = arith.constant 0 : i32
    %c0_i32_0 = arith.constant 0 : i32
    %c0_i32_1 = arith.constant 0 : i32
    return %c0_i32, %c0_i32_0 : i32, i32
  }
  func.func @transform_7(%arg0: i32) -> (i32, i32) {
    %c0_i32 = arith.constant 0 : i32
    %c0_i32_0 = arith.constant 0 : i32
    %c0_i32_1 = arith.constant 0 : i32
    return %c0_i32, %c0_i32_0 : i32, i32
  }
  func.func @transform_8(%arg0: i32) -> (i32, i32) {
    %c0_i32 = arith.constant 0 : i32
    %c0_i32_0 = arith.constant 0 : i32
    %c0_i32_1 = arith.constant 0 : i32
    return %c0_i32, %c0_i32_0 : i32, i32
  }
  func.func @transform_9(%arg0: i32) -> (i32, i32) {
    %c0_i32 = arith.constant 0 : i32
    %c0_i32_0 = arith.constant 0 : i32
    %c0_i32_1 = arith.constant 0 : i32
    return %c0_i32, %c0_i32_0 : i32, i32
  }
  func.func @transform_10(%arg0: i32) -> (i32, i32) {
    %c0_i32 = arith.constant 0 : i32
    %c0_i32_0 = arith.constant 0 : i32
    return %arg0, %c0_i32 : i32, i32
  }
}

module attributes {stable_mosaic.version = 11 : i64} {
  func.func @moe_kernel(%arg0: i32, %arg1: memref<8x32xf32, #tpu.memory_space<vmem>>, %arg2: memref<32x2560xbf16, #tpu.memory_space<vmem>>, %arg3: memref<1x512xf32, #tpu.memory_space<vmem>>, %arg4: memref<512x512xbf16, #tpu.memory_space<vmem>>, %arg5: memref<1x512xf32, #tpu.memory_space<vmem>>, %arg6: memref<512x4xf32, #tpu.memory_space<vmem>>, %arg7: memref<1x4xf32, #tpu.memory_space<vmem>>, %arg8: memref<4x1152xf32, #tpu.memory_space<vmem>>, %arg9: memref<512x2048xbf16, #tpu.memory_space<vmem>>, %arg10: memref<512x512xbf16, #tpu.memory_space<vmem>>, %arg11: memref<8x128xf32, #tpu.memory_space<vmem>>) attributes {dimension_semantics = [#tpu.dimension_semantics<parallel>], iteration_bounds = array<i64: 1>, scalar_prefetch = 0 : i64, scratch_operands = 0 : i64, tpu.core_type = #tpu.core_type<tc>, window_params = [{transform_indices = @transform_0, window_bounds = array<i64: 8, 32>}, {pipeline_mode = #tpu.pipeline_mode<synchronous>, transform_indices = @transform_1, window_bounds = array<i64: 32, 2560>}, {pipeline_mode = #tpu.pipeline_mode<synchronous>, transform_indices = @transform_2, window_bounds = array<i64: 1, 512>}, {pipeline_mode = #tpu.pipeline_mode<synchronous>, transform_indices = @transform_3, window_bounds = array<i64: 512, 512>}, {pipeline_mode = #tpu.pipeline_mode<synchronous>, transform_indices = @transform_4, window_bounds = array<i64: 1, 512>}, {pipeline_mode = #tpu.pipeline_mode<synchronous>, transform_indices = @transform_5, window_bounds = array<i64: 512, 4>}, {pipeline_mode = #tpu.pipeline_mode<synchronous>, transform_indices = @transform_6, window_bounds = array<i64: 1, 4>}, {pipeline_mode = #tpu.pipeline_mode<synchronous>, transform_indices = @transform_7, window_bounds = array<i64: 4, 1152>}, {pipeline_mode = #tpu.pipeline_mode<synchronous>, transform_indices = @transform_8, window_bounds = array<i64: 512, 2048>}, {pipeline_mode = #tpu.pipeline_mode<synchronous>, transform_indices = @transform_9, window_bounds = array<i64: 512, 512>}, {transform_indices = @transform_10, window_bounds = array<i64: 8, 128>}]} {
    %c0 = arith.constant 0 : index
    %c0_0 = arith.constant 0 : index
    %0 = vector.load %arg1[%c0, %c0_0] : memref<8x32xf32, #tpu.memory_space<vmem>>, vector<8x32xf32>
    %1 = arith.truncf %0 : vector<8x32xf32> to vector<8x32xbf16>
    %c0_1 = arith.constant 0 : index
    %c0_2 = arith.constant 0 : index
    %2 = vector.load %arg2[%c0_1, %c0_2] : memref<32x2560xbf16, #tpu.memory_space<vmem>>, vector<32x2560xbf16>
    %cst = arith.constant dense<0.000000e+00> : vector<8x2560xf32>
    %3 = tpu.matmul %1, %2, %cst {dimension_numbers = #tpu.dot_dimension_numbers<[1], [0], [0], [1], [0, 0, 1, 1], [], []>} : vector<8x32xbf16>, vector<32x2560xbf16>, vector<8x2560xf32> -> vector<8x2560xf32>
    %4 = vector.extract_strided_slice %3 {offsets = [0, 0], sizes = [8, 512], strides = [1, 1]} : vector<8x2560xf32> to vector<8x512xf32>
    %c0_3 = arith.constant 0 : index
    %c0_4 = arith.constant 0 : index
    %5 = vector.load %arg3[%c0_3, %c0_4] : memref<1x512xf32, #tpu.memory_space<vmem>>, vector<1x512xf32>
    %6 = vector.broadcast %5 : vector<1x512xf32> to vector<8x512xf32>
    %7 = arith.addf %4, %6 : vector<8x512xf32>
    %cst_5 = arith.constant 0.000000e+00 : f32
    %8 = vector.broadcast %cst_5 : f32 to vector<8x512xf32>
    %9 = arith.cmpf ogt, %7, %8 : vector<8x512xf32>
    %cst_6 = arith.constant 0.000000e+00 : f32
    %10 = vector.broadcast %cst_6 : f32 to vector<8x512xf32>
    %11 = arith.minimumf %7, %10 : vector<8x512xf32>
    %12 = math.exp %11 : vector<8x512xf32>
    %cst_7 = arith.constant 1.000000e+00 : f32
    %13 = vector.broadcast %cst_7 : f32 to vector<8x512xf32>
    %14 = arith.subf %12, %13 : vector<8x512xf32>
    %15 = arith.select %9, %7, %14 : vector<8x512xi1>, vector<8x512xf32>
    %16 = arith.truncf %15 : vector<8x512xf32> to vector<8x512xbf16>
    %c0_8 = arith.constant 0 : index
    %c0_9 = arith.constant 0 : index
    %17 = vector.load %arg4[%c0_8, %c0_9] : memref<512x512xbf16, #tpu.memory_space<vmem>>, vector<512x512xbf16>
    %cst_10 = arith.constant dense<0.000000e+00> : vector<8x512xf32>
    %18 = tpu.matmul %16, %17, %cst_10 {dimension_numbers = #tpu.dot_dimension_numbers<[1], [0], [0], [1], [0, 0, 1, 1], [], []>} : vector<8x512xbf16>, vector<512x512xbf16>, vector<8x512xf32> -> vector<8x512xf32>
    %c0_11 = arith.constant 0 : index
    %c0_12 = arith.constant 0 : index
    %19 = vector.load %arg5[%c0_11, %c0_12] : memref<1x512xf32, #tpu.memory_space<vmem>>, vector<1x512xf32>
    %20 = vector.broadcast %19 : vector<1x512xf32> to vector<8x512xf32>
    %21 = arith.addf %18, %20 : vector<8x512xf32>
    %cst_13 = arith.constant 0.000000e+00 : f32
    %22 = vector.broadcast %cst_13 : f32 to vector<8x512xf32>
    %23 = arith.cmpf ogt, %21, %22 : vector<8x512xf32>
    %cst_14 = arith.constant 0.000000e+00 : f32
    %24 = vector.broadcast %cst_14 : f32 to vector<8x512xf32>
    %25 = arith.minimumf %21, %24 : vector<8x512xf32>
    %26 = math.exp %25 : vector<8x512xf32>
    %cst_15 = arith.constant 1.000000e+00 : f32
    %27 = vector.broadcast %cst_15 : f32 to vector<8x512xf32>
    %28 = arith.subf %26, %27 : vector<8x512xf32>
    %29 = arith.select %23, %21, %28 : vector<8x512xi1>, vector<8x512xf32>
    %c0_16 = arith.constant 0 : index
    %c0_17 = arith.constant 0 : index
    %30 = vector.load %arg6[%c0_16, %c0_17] : memref<512x4xf32, #tpu.memory_space<vmem>>, vector<512x4xf32>
    %cst_18 = arith.constant dense<0.000000e+00> : vector<8x4xf32>
    %31 = tpu.matmul %29, %30, %cst_18 {dimension_numbers = #tpu.dot_dimension_numbers<[1], [0], [0], [1], [0, 0, 1, 1], [], []>} : vector<8x512xf32>, vector<512x4xf32>, vector<8x4xf32> -> vector<8x4xf32>
    %c0_19 = arith.constant 0 : index
    %c0_20 = arith.constant 0 : index
    %32 = vector.load %arg7[%c0_19, %c0_20] : memref<1x4xf32, #tpu.memory_space<vmem>>, vector<1x4xf32>
    %33 = vector.broadcast %32 : vector<1x4xf32> to vector<8x4xf32>
    %34 = arith.addf %31, %33 : vector<8x4xf32>
    %cst_21 = arith.constant dense<0xFF800000> : vector<8xf32>
    %35 = vector.multi_reduction <maximumf>, %34, %cst_21 [1] : vector<8x4xf32> to vector<8xf32>
    %36 = vector.shape_cast %35 : vector<8xf32> to vector<8x1xf32>
    %37 = vector.broadcast %36 : vector<8x1xf32> to vector<8x4xf32>
    %38 = arith.subf %34, %37 : vector<8x4xf32>
    %39 = math.exp %38 : vector<8x4xf32>
    %cst_22 = arith.constant dense<0.000000e+00> : vector<8xf32>
    %40 = vector.multi_reduction <add>, %39, %cst_22 [1] : vector<8x4xf32> to vector<8xf32>
    %41 = vector.shape_cast %40 : vector<8xf32> to vector<8x1xf32>
    %42 = vector.broadcast %41 : vector<8x1xf32> to vector<8x4xf32>
    %43 = arith.divf %39, %42 : vector<8x4xf32>
    %c0_23 = arith.constant 0 : index
    %c0_24 = arith.constant 0 : index
    %44 = vector.load %arg8[%c0_23, %c0_24] : memref<4x1152xf32, #tpu.memory_space<vmem>>, vector<4x1152xf32>
    %cst_25 = arith.constant dense<0.000000e+00> : vector<8x1152xf32>
    %45 = tpu.matmul %43, %44, %cst_25 {dimension_numbers = #tpu.dot_dimension_numbers<[1], [0], [0], [1], [0, 0, 1, 1], [], []>} : vector<8x4xf32>, vector<4x1152xf32>, vector<8x1152xf32> -> vector<8x1152xf32>
    %46 = vector.extract_strided_slice %43 {offsets = [0, 0], sizes = [8, 1], strides = [1, 1]} : vector<8x4xf32> to vector<8x1xf32>
    %47 = vector.shape_cast %46 : vector<8x1xf32> to vector<8x1xf32>
    %48 = vector.broadcast %47 : vector<8x1xf32> to vector<8x512xf32>
    %49 = vector.extract_strided_slice %43 {offsets = [0, 1], sizes = [8, 1], strides = [1, 1]} : vector<8x4xf32> to vector<8x1xf32>
    %50 = vector.shape_cast %49 : vector<8x1xf32> to vector<8x1xf32>
    %51 = vector.broadcast %50 : vector<8x1xf32> to vector<8x512xf32>
    %52 = vector.extract_strided_slice %43 {offsets = [0, 2], sizes = [8, 1], strides = [1, 1]} : vector<8x4xf32> to vector<8x1xf32>
    %53 = vector.shape_cast %52 : vector<8x1xf32> to vector<8x1xf32>
    %54 = vector.broadcast %53 : vector<8x1xf32> to vector<8x512xf32>
    %55 = vector.extract_strided_slice %43 {offsets = [0, 3], sizes = [8, 1], strides = [1, 1]} : vector<8x4xf32> to vector<8x1xf32>
    %56 = vector.shape_cast %55 : vector<8x1xf32> to vector<8x1xf32>
    %57 = vector.broadcast %56 : vector<8x1xf32> to vector<8x512xf32>
    %58 = vector.extract_strided_slice %3 {offsets = [0, 512], sizes = [8, 2048], strides = [1, 1]} : vector<8x2560xf32> to vector<8x2048xf32>
    %59 = vector.extract_strided_slice %45 {offsets = [0, 0], sizes = [8, 512], strides = [1, 1]} : vector<8x1152xf32> to vector<8x512xf32>
    %60 = vector.extract_strided_slice %58 {offsets = [0, 0], sizes = [8, 512], strides = [1, 1]} : vector<8x2048xf32> to vector<8x512xf32>
    %61 = arith.mulf %48, %60 : vector<8x512xf32>
    %62 = arith.addf %59, %61 : vector<8x512xf32>
    %63 = vector.extract_strided_slice %58 {offsets = [0, 512], sizes = [8, 512], strides = [1, 1]} : vector<8x2048xf32> to vector<8x512xf32>
    %64 = arith.mulf %51, %63 : vector<8x512xf32>
    %65 = arith.addf %62, %64 : vector<8x512xf32>
    %66 = vector.extract_strided_slice %58 {offsets = [0, 1024], sizes = [8, 512], strides = [1, 1]} : vector<8x2048xf32> to vector<8x512xf32>
    %67 = arith.mulf %54, %66 : vector<8x512xf32>
    %68 = arith.addf %65, %67 : vector<8x512xf32>
    %69 = vector.extract_strided_slice %58 {offsets = [0, 1536], sizes = [8, 512], strides = [1, 1]} : vector<8x2048xf32> to vector<8x512xf32>
    %70 = arith.mulf %57, %69 : vector<8x512xf32>
    %71 = arith.addf %68, %70 : vector<8x512xf32>
    %cst_26 = arith.constant 0.000000e+00 : f32
    %72 = vector.broadcast %cst_26 : f32 to vector<8x512xf32>
    %73 = arith.cmpf ogt, %71, %72 : vector<8x512xf32>
    %cst_27 = arith.constant 0.000000e+00 : f32
    %74 = vector.broadcast %cst_27 : f32 to vector<8x512xf32>
    %75 = arith.minimumf %71, %74 : vector<8x512xf32>
    %76 = math.exp %75 : vector<8x512xf32>
    %cst_28 = arith.constant 1.000000e+00 : f32
    %77 = vector.broadcast %cst_28 : f32 to vector<8x512xf32>
    %78 = arith.subf %76, %77 : vector<8x512xf32>
    %79 = arith.select %73, %71, %78 : vector<8x512xi1>, vector<8x512xf32>
    %80 = arith.truncf %79 : vector<8x512xf32> to vector<8x512xbf16>
    %c0_29 = arith.constant 0 : index
    %c0_30 = arith.constant 0 : index
    %81 = vector.load %arg9[%c0_29, %c0_30] : memref<512x2048xbf16, #tpu.memory_space<vmem>>, vector<512x2048xbf16>
    %cst_31 = arith.constant dense<0.000000e+00> : vector<8x2048xf32>
    %82 = tpu.matmul %80, %81, %cst_31 {dimension_numbers = #tpu.dot_dimension_numbers<[1], [0], [0], [1], [0, 0, 1, 1], [], []>} : vector<8x512xbf16>, vector<512x2048xbf16>, vector<8x2048xf32> -> vector<8x2048xf32>
    %83 = vector.extract_strided_slice %45 {offsets = [0, 512], sizes = [8, 512], strides = [1, 1]} : vector<8x1152xf32> to vector<8x512xf32>
    %84 = vector.extract_strided_slice %82 {offsets = [0, 0], sizes = [8, 512], strides = [1, 1]} : vector<8x2048xf32> to vector<8x512xf32>
    %85 = arith.mulf %48, %84 : vector<8x512xf32>
    %86 = arith.addf %83, %85 : vector<8x512xf32>
    %87 = vector.extract_strided_slice %82 {offsets = [0, 512], sizes = [8, 512], strides = [1, 1]} : vector<8x2048xf32> to vector<8x512xf32>
    %88 = arith.mulf %51, %87 : vector<8x512xf32>
    %89 = arith.addf %86, %88 : vector<8x512xf32>
    %90 = vector.extract_strided_slice %82 {offsets = [0, 1024], sizes = [8, 512], strides = [1, 1]} : vector<8x2048xf32> to vector<8x512xf32>
    %91 = arith.mulf %54, %90 : vector<8x512xf32>
    %92 = arith.addf %89, %91 : vector<8x512xf32>
    %93 = vector.extract_strided_slice %82 {offsets = [0, 1536], sizes = [8, 512], strides = [1, 1]} : vector<8x2048xf32> to vector<8x512xf32>
    %94 = arith.mulf %57, %93 : vector<8x512xf32>
    %95 = arith.addf %92, %94 : vector<8x512xf32>
    %cst_32 = arith.constant 0.000000e+00 : f32
    %96 = vector.broadcast %cst_32 : f32 to vector<8x512xf32>
    %97 = arith.cmpf ogt, %95, %96 : vector<8x512xf32>
    %cst_33 = arith.constant 0.000000e+00 : f32
    %98 = vector.broadcast %cst_33 : f32 to vector<8x512xf32>
    %99 = arith.minimumf %95, %98 : vector<8x512xf32>
    %100 = math.exp %99 : vector<8x512xf32>
    %cst_34 = arith.constant 1.000000e+00 : f32
    %101 = vector.broadcast %cst_34 : f32 to vector<8x512xf32>
    %102 = arith.subf %100, %101 : vector<8x512xf32>
    %103 = arith.select %97, %95, %102 : vector<8x512xi1>, vector<8x512xf32>
    %104 = arith.truncf %103 : vector<8x512xf32> to vector<8x512xbf16>
    %c0_35 = arith.constant 0 : index
    %c0_36 = arith.constant 0 : index
    %105 = vector.load %arg10[%c0_35, %c0_36] : memref<512x512xbf16, #tpu.memory_space<vmem>>, vector<512x512xbf16>
    %cst_37 = arith.constant dense<0.000000e+00> : vector<8x512xf32>
    %106 = tpu.matmul %104, %105, %cst_37 {dimension_numbers = #tpu.dot_dimension_numbers<[1], [0], [0], [1], [0, 0, 1, 1], [], []>} : vector<8x512xbf16>, vector<512x512xbf16>, vector<8x512xf32> -> vector<8x512xf32>
    %107 = vector.extract_strided_slice %45 {offsets = [0, 1024], sizes = [8, 128], strides = [1, 1]} : vector<8x1152xf32> to vector<8x128xf32>
    %108 = vector.extract_strided_slice %48 {offsets = [0, 0], sizes = [8, 128], strides = [1, 1]} : vector<8x512xf32> to vector<8x128xf32>
    %109 = vector.extract_strided_slice %106 {offsets = [0, 0], sizes = [8, 128], strides = [1, 1]} : vector<8x512xf32> to vector<8x128xf32>
    %110 = arith.mulf %108, %109 : vector<8x128xf32>
    %111 = arith.addf %107, %110 : vector<8x128xf32>
    %112 = vector.extract_strided_slice %51 {offsets = [0, 0], sizes = [8, 128], strides = [1, 1]} : vector<8x512xf32> to vector<8x128xf32>
    %113 = vector.extract_strided_slice %106 {offsets = [0, 128], sizes = [8, 128], strides = [1, 1]} : vector<8x512xf32> to vector<8x128xf32>
    %114 = arith.mulf %112, %113 : vector<8x128xf32>
    %115 = arith.addf %111, %114 : vector<8x128xf32>
    %116 = vector.extract_strided_slice %54 {offsets = [0, 0], sizes = [8, 128], strides = [1, 1]} : vector<8x512xf32> to vector<8x128xf32>
    %117 = vector.extract_strided_slice %106 {offsets = [0, 256], sizes = [8, 128], strides = [1, 1]} : vector<8x512xf32> to vector<8x128xf32>
    %118 = arith.mulf %116, %117 : vector<8x128xf32>
    %119 = arith.addf %115, %118 : vector<8x128xf32>
    %120 = vector.extract_strided_slice %57 {offsets = [0, 0], sizes = [8, 128], strides = [1, 1]} : vector<8x512xf32> to vector<8x128xf32>
    %121 = vector.extract_strided_slice %106 {offsets = [0, 384], sizes = [8, 128], strides = [1, 1]} : vector<8x512xf32> to vector<8x128xf32>
    %122 = arith.mulf %120, %121 : vector<8x128xf32>
    %123 = arith.addf %119, %122 : vector<8x128xf32>
    %c0_38 = arith.constant 0 : index
    %c0_39 = arith.constant 0 : index
    %124 = vector.load %arg11[%c0_38, %c0_39] : memref<8x128xf32, #tpu.memory_space<vmem>>, vector<8x128xf32>
    tpu.vector_store %arg11[%c0_38, %c0_39], %123 {strides = array<i32>} : memref<8x128xf32, #tpu.memory_space<vmem>>, vector<8x128xf32>,
    return
  }
  func.func @transform_0(%arg0: i32) -> (i32, i32) {
    %c0_i32 = arith.constant 0 : i32
    %c0_i32_0 = arith.constant 0 : i32
    return %arg0, %c0_i32 : i32, i32
  }
  func.func @transform_1(%arg0: i32) -> (i32, i32) {
    %c0_i32 = arith.constant 0 : i32
    %c0_i32_0 = arith.constant 0 : i32
    %c0_i32_1 = arith.constant 0 : i32
    return %c0_i32, %c0_i32_0 : i32, i32
  }
  func.func @transform_2(%arg0: i32) -> (i32, i32) {
    %c0_i32 = arith.constant 0 : i32
    %c0_i32_0 = arith.constant 0 : i32
    %c0_i32_1 = arith.constant 0 : i32
    return %c0_i32, %c0_i32_0 : i32, i32
  }
  func.func @transform_3(%arg0: i32) -> (i32, i32) {
    %c0_i32 = arith.constant 0 : i32
    %c0_i32_0 = arith.constant 0 : i32
    %c0_i32_1 = arith.constant 0 : i32
    return %c0_i32, %c0_i32_0 : i32, i32
  }
  func.func @transform_4(%arg0: i32) -> (i32, i32) {
    %c0_i32 = arith.constant 0 : i32
    %c0_i32_0 = arith.constant 0 : i32
    %c0_i32_1 = arith.constant 0 : i32
    return %c0_i32, %c0_i32_0 : i32, i32
  }
  func.func @transform_5(%arg0: i32) -> (i32, i32) {
    %c0_i32 = arith.constant 0 : i32
    %c0_i32_0 = arith.constant 0 : i32
    %c0_i32_1 = arith.constant 0 : i32
    return %c0_i32, %c0_i32_0 : i32, i32
  }
  func.func @transform_6(%arg0: i32) -> (i32, i32) {
    %c0_i32 = arith.constant 0 : i32
    %c0_i32_0 = arith.constant 0 : i32
    %c0_i32_1 = arith.constant 0 : i32
    return %c0_i32, %c0_i32_0 : i32, i32
  }
  func.func @transform_7(%arg0: i32) -> (i32, i32) {
    %c0_i32 = arith.constant 0 : i32
    %c0_i32_0 = arith.constant 0 : i32
    %c0_i32_1 = arith.constant 0 : i32
    return %c0_i32, %c0_i32_0 : i32, i32
  }
  func.func @transform_8(%arg0: i32) -> (i32, i32) {
    %c0_i32 = arith.constant 0 : i32
    %c0_i32_0 = arith.constant 0 : i32
    %c0_i32_1 = arith.constant 0 : i32
    return %c0_i32, %c0_i32_0 : i32, i32
  }
  func.func @transform_9(%arg0: i32) -> (i32, i32) {
    %c0_i32 = arith.constant 0 : i32
    %c0_i32_0 = arith.constant 0 : i32
    %c0_i32_1 = arith.constant 0 : i32
    return %c0_i32, %c0_i32_0 : i32, i32
  }
  func.func @transform_10(%arg0: i32) -> (i32, i32) {
    %c0_i32 = arith.constant 0 : i32
    %c0_i32_0 = arith.constant 0 : i32
    return %arg0, %c0_i32 : i32, i32
  }
}

</mosaic_0001>

<bundles_post_ra>
// kernel: tpu_custom_call.1
= control target key start
LH: loop header
LB: loop body
LE: loop exit
PB: predicated region body
PF: predicated region fallthrough
CT: control target
= control target key end

     0   :  { %15 = vsyncpa [#allocation3], 0  ;;  %s9752_s0 = inlined_call_operand.hbm [shape: f32[8,32], index: 0, kind: input, shape index: {}]   ;;  %s9753_s1 = inlined_call_operand.hbm [shape: bf16[32,2560], index: 1, kind: input, shape index: {}]   ;;  %s9754_s2 = inlined_call_operand.hbm [shape: f32[1,512], index: 2, kind: input, shape index: {}]   ;;  %s9755_s3 = inlined_call_operand.hbm [shape: bf16[512,512], index: 3, kind: input, shape index: {}]   ;;  %s9756_s4 = inlined_call_operand.hbm [shape: f32[1,512], index: 4, kind: input, shape index: {}]   ;;  %s9757_s5 = inlined_call_operand.vmem [shape: f32[512,4], index: 5, kind: input, shape index: {}]   ;;  %s9758_s6 = inlined_call_operand.hbm [shape: f32[1,4], index: 6, kind: input, shape index: {}]   ;;  %s9759_s7 = inlined_call_operand.hbm [shape: f32[4,1152], index: 7, kind: input, shape index: {}]   ;;  %s9760_s8 = inlined_call_operand.hbm [shape: bf16[512,2048], index: 8, kind: input, shape index: {}]   ;;  %s9761_s9 = inlined_call_operand.hbm [shape: bf16[512,512], index: 9, kind: input, shape index: {}]   ;;  %s9762_s10 = inlined_call_operand.hbm [shape: f32[8,128], index: 10, kind: output, shape index: {}]  }
   0x1   :  { %16 = vsyncpa [#allocation6], 0 }
   0x2   :  { %17 = vsyncpa [#allocation9], 0 }
   0x3   :  { %18 = vsyncpa [#allocation12], 0 }
   0x4   :  { %19 = vsyncpa [#allocation15], 0 }
   0x5   :  { %20 = vsyncpa [#allocation4], 0  ;;  %s9059_s13 = smov [#allocation5]   ;;  %s8827_s17 = scalar_lea.hbm %s9753_s1, 5120 }
   0x6   :  { %s36_s14 = sshll.u32 %s9059_s13, 4  ;;  %p8828_p0 = scmp.ne.s32.totalorder %s9753_s1, %s8827_s17  ;;  %s37_s14 = int_to_ptr.vmem [resolvable:$true] %s36_s14 }
   0x7   :  { %p8831_p1 = scmp.lt.u32.totalorder %s8827_s17, %s9753_s1 }
   0x9   :  { %p8833_p2 = pnand %p8831_p1, %p8828_p0 }
   0xb   :  { %8836 = shalt.err (!%p8833_p2)
}
   0xc   :  { %s8837_s22 = scalar_lea.vmem %s37_s14, 5120  ;;  %p8842_p4 = scmp.lt.s32.totalorder %s37_s14, %s37_s14 }
   0xd   :  { %p8838_p3 = scmp.ne.s32.totalorder %s37_s14, %s8837_s22  ;;  %p8843_p5 = scmp.lt.s32.totalorder %s8837_s22, %s8837_s22 }
   0xf   :  { %p8844_p6 = por %p8843_p5, %p8842_p4 }
  0x11   :  { %p8845_p7 = pnand %p8844_p6, %p8838_p3 }
  0x13   :  { %8848 = shalt.err (!%p8845_p7)
}
  0x14   :  { %s9060_s23 = smov 1280   ;;  %s9061_s24 = smov 80  }
  0x15   :  { %42 = dma.hbm_to_vmem [thread:$0]  %s9753_s1, 5120, %s37_s14, [#allocation6], %s9060_s23, %s9060_s23, %s9061_s24  }
  0x16   :  { %s9062_s27 = smov [#allocation8]   ;;  %s8849_s11 = scalar_lea.hbm %s9755_s3, 16384 }
  0x17   :  { %s58_s28 = sshll.u32 %s9062_s27, 4  ;;  %p8850_p8 = scmp.ne.s32.totalorder %s9755_s3, %s8849_s11  ;;  %s59_s28 = int_to_ptr.vmem [resolvable:$true] %s58_s28 }
  0x18   :  { %p8853_p9 = scmp.lt.u32.totalorder %s8849_s11, %s9755_s3 }
  0x1a   :  { %p8855_p10 = pnand %p8853_p9, %p8850_p8 }
  0x1c   :  { %8858 = shalt.err (!%p8855_p10)
}
  0x1d   :  { %s8859_s17 = scalar_lea.vmem %s59_s28, 16384  ;;  %p8864_p12 = scmp.lt.s32.totalorder %s59_s28, %s59_s28 }
  0x1e   :  { %p8860_p11 = scmp.ne.s32.totalorder %s59_s28, %s8859_s17  ;;  %p8865_p13 = scmp.lt.s32.totalorder %s8859_s17, %s8859_s17 }
  0x20   :  { %p8866_p0 = por %p8865_p13, %p8864_p12 }
  0x22   :  { %p8867_p1 = pnand %p8866_p0, %p8860_p11 }
  0x24   :  { %8870 = shalt.err (!%p8867_p1)
}
  0x25   :  { %s9063_s1 = smov 256   ;;  %s9064_s14 = smov 16  }
  0x26   :  { %64 = dma.hbm_to_vmem [thread:$0]  %s9755_s3, 16384, %s59_s28, [#allocation9], %s9063_s1, %s9063_s1, %s9064_s14  }
  0x27   :  { %s9065_s20 = smov [#allocation11]   ;;  %s9066_s22 = smov [#allocation14]  }
  0x28   :  { %s83_s21 = sshll.u32 %s9065_s20, 4  ;;  %s102_s23 = sshll.u32 %s9066_s22, 4  ;;  %s84_s21 = int_to_ptr.vmem [resolvable:$true] %s83_s21  ;;  %s9163_s23 = int_to_ptr.vmem [resolvable:$true] %s102_s23 }
  0x29   :  { %s8871_s26 = scalar_lea.hbm %s9758_s6, 16 }
  0x2a   :  { %p8872_p2 = scmp.ne.s32.totalorder %s9758_s6, %s8871_s26  ;;  %p8875_p3 = scmp.lt.u32.totalorder %s8871_s26, %s9758_s6 }
  0x2c   :  { %p8877_p4 = pnand %p8875_p3, %p8872_p2 }
  0x2e   :  { %8880 = shalt.err (!%p8877_p4)
}
  0x2f   :  { %s8881_s3 = scalar_lea.vmem %s84_s21, 16  ;;  %s8885_s28 = scalar_lea.vmem %s84_s21, 32 }
  0x30   :  { %p8882_p5 = scmp.ne.s32.totalorder %s84_s21, %s8881_s3  ;;  %p8886_p6 = scmp.lt.s32.totalorder %s84_s21, %s84_s21 }
  0x31   :  { %p8887_p7 = scmp.lt.s32.totalorder %s8885_s28, %s8881_s3 }
  0x33   :  { %p8888_p8 = por %p8887_p7, %p8886_p6 }
  0x35   :  { %p8889_p9 = pnand %p8888_p8, %p8882_p5 }
  0x37   :  { %8892 = shalt.err (!%p8889_p9)
}
  0x38   :  { %86 = dma.hbm_to_vmem [thread:$0]  %s9758_s6, 16, %s84_s21, [#allocation12]  }
  0x39   :  { %s8893_s17 = scalar_lea.hbm %s9760_s8, 65536 }
  0x3a   :  { %p8894_p10 = scmp.ne.s32.totalorder %s9760_s8, %s8893_s17  ;;  %p8897_p11 = scmp.lt.u32.totalorder %s8893_s17, %s9760_s8 }
  0x3c   :  { %p8899_p12 = pnand %p8897_p11, %p8894_p10 }
  0x3e   :  { %8902 = shalt.err (!%p8899_p12)
}
  0x3f   :  { %s8903_s24 = scalar_lea.vmem %s9163_s23, 65536  ;;  %p8908_p0 = scmp.lt.s32.totalorder %s9163_s23, %s9163_s23 }
  0x40   :  { %p8904_p13 = scmp.ne.s32.totalorder %s9163_s23, %s8903_s24  ;;  %p8909_p1 = scmp.lt.s32.totalorder %s8903_s24, %s8903_s24 }
  0x42   :  { %p8910_p2 = por %p8909_p1, %p8908_p0 }
  0x44   :  { %p8911_p3 = pnand %p8910_p2, %p8904_p13 }
  0x46   :  { %8914 = shalt.err (!%p8911_p3)
}
  0x47   :  { %s9067_s6 = smov 1024   ;;  %s9068_s21 = smov 64  }
  0x48   :  { %108 = dma.hbm_to_vmem [thread:$0]  %s9760_s8, 65536, %s9163_s23, [#allocation15], %s9067_s6, %s9067_s6, %s9068_s21  }
  0x49   :  { %s9069_s27 = smov [#allocation2]   ;;  %s9070_s30 = smov [#allocation7]  }
  0x4a   :  { %s27_s29 = sshll.u32 %s9069_s27, 4  ;;  %s49_s11 = sshll.u32 %s9070_s30, 4  ;;  %s28_s29 = int_to_ptr.vmem [resolvable:$true] %s27_s29  ;;  %s50_s11 = int_to_ptr.vmem [resolvable:$true] %s49_s11 }
  0x4b   :  { %s8915_s12 = scalar_lea.hbm %s9752_s0, 128 }
  0x4c   :  { %p8916_p4 = scmp.ne.s32.totalorder %s9752_s0, %s8915_s12  ;;  %p8919_p5 = scmp.lt.u32.totalorder %s8915_s12, %s9752_s0 }
  0x4e   :  { %p8921_p6 = pnand %p8919_p5, %p8916_p4 }
  0x50   :  { %8924 = shalt.err (!%p8921_p6)
}
  0x51   :  { %s8925_s8 = scalar_lea.vmem %s28_s29, 128  ;;  %p8930_p8 = scmp.lt.s32.totalorder %s28_s29, %s28_s29 }
  0x52   :  { %p8926_p7 = scmp.ne.s32.totalorder %s28_s29, %s8925_s8  ;;  %p8931_p9 = scmp.lt.s32.totalorder %s8925_s8, %s8925_s8 }
  0x54   :  { %p8932_p10 = por %p8931_p9, %p8930_p8 }
  0x56   :  { %p8933_p11 = pnand %p8932_p10, %p8926_p7 }
  0x58   :  { %8936 = shalt.err (!%p8933_p11)
}
  0x59   :  { %30 = dma.hbm_to_vmem [thread:$0]  %s9752_s0, 128, %s28_s29, [#allocation3]  }
  0x5a   :  { %s8937_s22 = scalar_lea.hbm %s9754_s2, 64 }
  0x5b   :  { %p8938_p12 = scmp.ne.s32.totalorder %s9754_s2, %s8937_s22  ;;  %p8941_p13 = scmp.lt.u32.totalorder %s8937_s22, %s9754_s2 }
  0x5d   :  { %p8943_p0 = pnand %p8941_p13, %p8938_p12 }
  0x5f   :  { %8946 = shalt.err (!%p8943_p0)
}
  0x60   :  { %s8947_s26 = scalar_lea.vmem %s50_s11, 64  ;;  %p8952_p2 = scmp.lt.s32.totalorder %s50_s11, %s50_s11 }
  0x61   :  { %p8948_p1 = scmp.ne.s32.totalorder %s50_s11, %s8947_s26  ;;  %p8953_p3 = scmp.lt.s32.totalorder %s8947_s26, %s8947_s26 }
  0x63   :  { %p8954_p4 = por %p8953_p3, %p8952_p2 }
  0x65   :  { %p8955_p5 = pnand %p8954_p4, %p8948_p1 }
  0x67   :  { %8958 = shalt.err (!%p8955_p5)
}
  0x68   :  { %52 = dma.hbm_to_vmem [thread:$0]  %s9754_s2, 64, %s50_s11, [#allocation6]  }
  0x69   :  { %s9071_s29 = smov [#allocation10]   ;;  %s9072_s3 = smov [#allocation13]  }
  0x6a   :  { %s71_s30 = sshll.u32 %s9071_s29, 4  ;;  %s93_s28 = sshll.u32 %s9072_s3, 4  ;;  %s72_s30 = int_to_ptr.vmem [resolvable:$true] %s71_s30  ;;  %s94_s28 = int_to_ptr.vmem [resolvable:$true] %s93_s28 }
  0x6b   :  { %s8959_s15 = scalar_lea.hbm %s9756_s4, 64 }
  0x6c   :  { %p8960_p6 = scmp.ne.s32.totalorder %s9756_s4, %s8959_s15  ;;  %p8963_p7 = scmp.lt.u32.totalorder %s8959_s15, %s9756_s4 }
  0x6e   :  { %p8965_p8 = pnand %p8963_p7, %p8960_p6 }
  0x70   :  { %8968 = shalt.err (!%p8965_p8)
}
  0x71   :  { %s8969_s2 = scalar_lea.vmem %s72_s30, 64  ;;  %p8974_p10 = scmp.lt.s32.totalorder %s72_s30, %s72_s30 }
  0x72   :  { %p8970_p9 = scmp.ne.s32.totalorder %s72_s30, %s8969_s2  ;;  %p8975_p11 = scmp.lt.s32.totalorder %s8969_s2, %s8969_s2 }
  0x74   :  { %p8976_p12 = por %p8975_p11, %p8974_p10 }
  0x76   :  { %p8977_p13 = pnand %p8976_p12, %p8970_p9 }
  0x78   :  { %8980 = shalt.err (!%p8977_p13)
}
  0x79   :  { %74 = dma.hbm_to_vmem [thread:$0]  %s9756_s4, 64, %s72_s30, [#allocation9]  }
  0x7a   :  { %s8981_s22 = scalar_lea.hbm %s9759_s7, 576 }
  0x7b   :  { %p8982_p0 = scmp.ne.s32.totalorder %s9759_s7, %s8981_s22  ;;  %p8985_p1 = scmp.lt.u32.totalorder %s8981_s22, %s9759_s7 }
  0x7d   :  { %p8987_p2 = pnand %p8985_p1, %p8982_p0 }
  0x7f   :  { %8990 = shalt.err (!%p8987_p2)
}
  0x80   :  { %s8991_s26 = scalar_lea.vmem %s94_s28, 576  ;;  %p8996_p4 = scmp.lt.s32.totalorder %s94_s28, %s94_s28 }
  0x81   :  { %p8992_p3 = scmp.ne.s32.totalorder %s94_s28, %s8991_s26  ;;  %p8997_p5 = scmp.lt.s32.totalorder %s8991_s26, %s8991_s26 }
  0x83   :  { %p8998_p6 = por %p8997_p5, %p8996_p4 }
  0x85   :  { %p8999_p7 = pnand %p8998_p6, %p8992_p3 }
  0x87   :  { %9002 = shalt.err (!%p8999_p7)
}
  0x88   :  { %96 = dma.hbm_to_vmem [thread:$0]  %s9759_s7, 576, %s94_s28, [#allocation12]  }
  0x89   :  { %s9073_s27 = smov [#allocation16]   ;;  %s9003_s12 = scalar_lea.hbm %s9761_s9, 16384 }
  0x8a   :  { %s114_s29 = sshll.u32 %s9073_s27, 4  ;;  %p9004_p8 = scmp.ne.s32.totalorder %s9761_s9, %s9003_s12  ;;  %s115_s29 = int_to_ptr.vmem [resolvable:$true] %s114_s29 }
  0x8b   :  { %p9007_p9 = scmp.lt.u32.totalorder %s9003_s12, %s9761_s9 }
  0x8d   :  { %p9009_p10 = pnand %p9007_p9, %p9004_p8 }
  0x8f   :  { %9012 = shalt.err (!%p9009_p10)
}
  0x90   :  { %s9013_s8 = scalar_lea.vmem %s115_s29, 16384  ;;  %p9018_p12 = scmp.lt.s32.totalorder %s115_s29, %s115_s29 }
  0x91   :  { %p9014_p11 = scmp.ne.s32.totalorder %s115_s29, %s9013_s8  ;;  %p9019_p13 = scmp.lt.s32.totalorder %s9013_s8, %s9013_s8 }
  0x93   :  { %p9020_p0 = por %p9019_p13, %p9018_p12 }
  0x95   :  { %p9021_p1 = pnand %p9020_p0, %p9014_p11 }
  0x97   :  { %9024 = shalt.err (!%p9021_p1)
}
  0x98   :  { %120 = dma.hbm_to_vmem [thread:$0]  %s9761_s9, 16384, %s115_s29, [#allocation15], %s9063_s1, %s9063_s1, %s9064_s14  }
  0x99   :  { %9047 = dma.done.wait [#allocation3], 128  }
  0x9a   :  { %9048 = vsyncadd [#allocation3], 4294967168 }
  0x9b   :  { %9049 = dma.done.wait [#allocation6], 5184  }
  0x9c   :  { %9050 = vsyncadd [#allocation6], 4294962112 }
  0x9d   :  { %9051 = dma.done.wait [#allocation9], 16448  }
  0x9e   :  { %9052 = vsyncadd [#allocation9], 4294950848 }
  0x9f   :  { %9053 = dma.done.wait [#allocation12], 592  }
  0xa0   :  { %9054 = vsyncadd [#allocation12], 4294966704 }
  0xa1   :  { %9055 = dma.done.wait [#allocation15], 81920  }
  0xa2   :  { %9056 = vsyncadd [#allocation15], 4294885376  ;;  %v9074_v0 = vmov 0   ;;  %v8343_v1 = vld [vmem:[#allocation5 + $0x4] ss:$80 sps:$4 sm:$0xff]   ;;  %v149_v5 = vld [vmem:[#allocation2] sm:$0xff] }
  0xa3   :  { %427 = vmatprep.mubr.bf16.mxu0 %v9074_v0  ;;  %468 = vmatprep.mubr.bf16.mxu1 %v9074_v0  ;;  %v8345_v2 = vld [vmem:[#allocation5] ss:$80 sps:$4 sm:$0xff]   ;;  %v8346_v3 = vld [vmem:[#allocation5 + $0xa4] ss:$80 sps:$4 sm:$0xff]   ;;  %v8349_v6 = vld [vmem:[#allocation5 + $0xc] ss:$80 sps:$4 sm:$0xff]   ;;  %v9260_v9 = vpack.c.bf16 %v149_v5, %v149_v5 }
  0xa4   :  { %8338 = vset.pattern.permute.xlu1 %v9074_v0  ;;  %395 = vmatprep.subr.bf16.mxu0 %v8343_v1  ;;  %v8348_v4 = vld [vmem:[#allocation5 + $0xa0] ss:$80 sps:$4 sm:$0xff]   ;;  %v8351_v7 = vld [vmem:[#allocation5 + $0x8] ss:$80 sps:$4 sm:$0xff]   ;;  %v8352_v8 = vld [vmem:[#allocation5 + $0xac] ss:$80 sps:$4 sm:$0xff]  }
  0xa5   :  { %396 = vmatpush1.bf16.msra.mxu0 %v8345_v2  ;;  %436 = vmatprep.subr.bf16.mxu1 %v8349_v6  ;;  %v8354_v10 = vld [vmem:[#allocation5 + $0xa8] ss:$80 sps:$4 sm:$0xff]   ;;  %v8357_v11 = vld [vmem:[#allocation5 + $0x14] ss:$80 sps:$4 sm:$0xff]   ;;  %vm391_vm0 = vcmask 261120   ;;  %vm2048_vm9 = vcmask 31744  }
  0xa6   :  { %397 = vmatprep.subr.bf16.mxu0 %v8346_v3  ;;  %437 = vmatpush1.bf16.msra.mxu1 %v8351_v7  ;;  %v8355_v12 = vld [vmem:[#allocation5 + $0x10] ss:$80 sps:$4 sm:$0xff]   ;;  %v8360_v13 = vld [vmem:[#allocation5 + $0x1c] ss:$80 sps:$4 sm:$0xff]   ;;  %v8363_v14 = vld [vmem:[#allocation5 + $0xb4] ss:$80 sps:$4 sm:$0xff]  }
  0xa7   :  { %438 = vmatprep.subr.bf16.mxu1 %v8352_v8  ;;  %v8358_v15 = vld [vmem:[#allocation5 + $0x18] ss:$80 sps:$4 sm:$0xff]   ;;  %v8361_v16 = vld [vmem:[#allocation5 + $0xb0] ss:$80 sps:$4 sm:$0xff]   ;;  %v8366_v17 = vld [vmem:[#allocation5 + $0xbc] ss:$80 sps:$4 sm:$0xff]  }
  0xa8   :  { %v8369_v18 = vld [vmem:[#allocation5 + $0x24] ss:$80 sps:$4 sm:$0xff]   ;;  %v8364_v19 = vld [vmem:[#allocation5 + $0xb8] ss:$80 sps:$4 sm:$0xff]   ;;  %v8367_v20 = vld [vmem:[#allocation5 + $0x20] ss:$80 sps:$4 sm:$0xff]  }
  0xa9   :  { %398 = vmatpush1.bf16.msra.mxu0 %v8348_v4  ;;  %v8372_v21 = vld [vmem:[#allocation5 + $0x2c] ss:$80 sps:$4 sm:$0xff]   ;;  %v8375_v22 = vld [vmem:[#allocation5 + $0xc4] ss:$80 sps:$4 sm:$0xff]   ;;  %v8370_v23 = vld [vmem:[#allocation5 + $0x28] ss:$80 sps:$4 sm:$0xff]  }
  0xaa   :  { %477 = vmatprep.subr.bf16.mxu0 %v8357_v11  ;;  %439 = vmatpush1.bf16.msra.mxu1 %v8354_v10  ;;  %v8373_v24 = vld [vmem:[#allocation5 + $0xc0] ss:$80 sps:$4 sm:$0xff]   ;;  %v8378_v25 = vld [vmem:[#allocation5 + $0xcc] ss:$80 sps:$4 sm:$0xff]   ;;  %v8381_v26 = vld [vmem:[#allocation5 + $0x34] ss:$80 sps:$4 sm:$0xff]  }
  0xab   :  { %518 = vmatprep.subr.bf16.mxu1 %v8360_v13  ;;  %v8376_v27 = vld [vmem:[#allocation5 + $0xc8] ss:$80 sps:$4 sm:$0xff]   ;;  %v8379_v28 = vld [vmem:[#allocation5 + $0x30] ss:$80 sps:$4 sm:$0xff]   ;;  %v8384_v29 = vld [vmem:[#allocation5 + $0x3c] ss:$80 sps:$4 sm:$0xff]  }
  0xac   :  { %7314 = vmatmul.mubr.msk.bf16.vlgmr.msra.gmra.mrb[0].mxu0 %vm391_vm0, %v9260_v9  ;;  %v8387_v30 = vld [vmem:[#allocation5 + $0xd4] ss:$80 sps:$4 sm:$0xff]   ;;  %v8382_v31 = vld [vmem:[#allocation5 + $0x38] ss:$80 sps:$4 sm:$0xff]   ;;  %v8385_v32 = vld [vmem:[#allocation5 + $0xd0] ss:$80 sps:$4 sm:$0xff]  }
  0xad   :  { %478 = vmatpush1.bf16.msra.mxu0 %v8355_v12  ;;  %509 = vmatprep.mubr.bf16.mxu0 %v9074_v0  ;;  %v8390_v33 = vld [vmem:[#allocation5 + $0xdc] ss:$80 sps:$4 sm:$0xff]   ;;  %v8393_v34 = vld [vmem:[#allocation5 + $0x44] ss:$80 sps:$4 sm:$0xff]   ;;  %v8388_v35 = vld [vmem:[#allocation5 + $0xd8] ss:$80 sps:$4 sm:$0xff]  }
  0xae   :  { %479 = vmatprep.subr.bf16.mxu0 %v8363_v14  ;;  %7315 = vmatmul.mubr.msk.bf16.vlgmr.msra.gmra.mrb[0].mxu1 %vm391_vm0, %v9260_v9  ;;  %v8391_v36 = vld [vmem:[#allocation5 + $0x40] ss:$80 sps:$4 sm:$0xff]   ;;  %v8396_v37 = vld [vmem:[#allocation5 + $0x4c] ss:$80 sps:$4 sm:$0xff]   ;;  %v8399_v38 = vld [vmem:[#allocation5 + $0xe4] ss:$80 sps:$4 sm:$0xff]  }
  0xaf   :  { %519 = vmatpush1.bf16.msra.mxu1 %v8358_v15  ;;  %550 = vmatprep.mubr.bf16.mxu1 %v9074_v0  ;;  %v8394_v39 = vld [vmem:[#allocation5 + $0x48] ss:$80 sps:$4 sm:$0xff]   ;;  %v8397_v40 = vld [vmem:[#allocation5 + $0xe0] ss:$80 sps:$4 sm:$0xff]   ;;  %v8402_v41 = vld [vmem:[#allocation5 + $0xec] ss:$80 sps:$4 sm:$0xff]  }
  0xb0   :  { %520 = vmatprep.subr.bf16.mxu1 %v8366_v17  ;;  %v8405_v42 = vld [vmem:[#allocation8 + $0x4] ss:$16 sps:$4 sm:$0xff]   ;;  %v8403_v44 = vld [vmem:[#allocation8] ss:$16 sps:$4 sm:$0xff]   ;;  %v8408_v45 = vld [vmem:[#allocation8 + $0xc] ss:$16 sps:$4 sm:$0xff]  }
  0xb1   :  { %480 = vmatpush1.bf16.msra.mxu0 %v8361_v16  ;;  %v8400_v43 = vld [vmem:[#allocation5 + $0xe8] ss:$80 sps:$4 sm:$0xff]   ;;  %v8406_v47 = vld [vmem:[#allocation8 + $0x8] ss:$16 sps:$4 sm:$0xff]   ;;  %v8409_v48 = vld [vmem:[#allocation8 + $0x20] ss:$16 sps:$4 sm:$0xff]  }
  0xb2   :  { %559 = vmatprep.subr.bf16.mxu0 %v8369_v18  ;;  %v8411_v46 = vld [vmem:[#allocation8 + $0x24] ss:$16 sps:$4 sm:$0xff]   ;;  %v8414_v49 = vld [vmem:[#allocation8 + $0x2c] ss:$16 sps:$4 sm:$0xff]   ;;  %v8412_v51 = vld [vmem:[#allocation8 + $0x28] ss:$16 sps:$4 sm:$0xff]  }
  0xb3   :  { %521 = vmatpush1.bf16.msra.mxu1 %v8364_v19  ;;  %v8417_v50 = vld [vmem:[#allocation8 + $0x44] ss:$16 sps:$4 sm:$0xff]   ;;  %v8415_v52 = vld [vmem:[#allocation8 + $0x40] ss:$16 sps:$4 sm:$0xff]   ;;  %v8420_v53 = vld [vmem:[#allocation8 + $0x4c] ss:$16 sps:$4 sm:$0xff]  }
  0xb4   :  { %7316 = vmatmul.mubr.msk.bf16.vlgmr.msra.gmra.mrb[4].mxu0 %vm391_vm0, %v9260_v9  ;;  %600 = vmatprep.subr.bf16.mxu1 %v8372_v21  ;;  %v8423_v54 = vld [vmem:[#allocation8 + $0x64] ss:$16 sps:$4 sm:$0xff]   ;;  %v8418_v55 = vld [vmem:[#allocation8 + $0x48] ss:$16 sps:$4 sm:$0xff]   ;;  %v8421_v56 = vld [vmem:[#allocation8 + $0x60] ss:$16 sps:$4 sm:$0xff]  }
  0xb5   :  { %560 = vmatpush1.bf16.msra.mxu0 %v8367_v20  ;;  %591 = vmatprep.mubr.bf16.mxu0 %v9074_v0  ;;  %v8426_v57 = vld [vmem:[#allocation8 + $0x6c] ss:$16 sps:$4 sm:$0xff]   ;;  %v8424_v58 = vld [vmem:[#allocation8 + $0x68] ss:$16 sps:$4 sm:$0xff]   ;;  %v8429_v59 = vld [vmem:[#allocation8 + $0x84] ss:$16 sps:$4 sm:$0xff]  }
  0xb6   :  { %561 = vmatprep.subr.bf16.mxu0 %v8375_v22  ;;  %7317 = vmatmul.mubr.msk.bf16.vlgmr.msra.gmra.mrb[4].mxu1 %vm391_vm0, %v9260_v9  ;;  %v8427_v60 = vld [vmem:[#allocation8 + $0x80] ss:$16 sps:$4 sm:$0xff]   ;;  %v8432_v61 = vld [vmem:[#allocation8 + $0x8c] ss:$16 sps:$4 sm:$0xff]   ;;  %v8435_v62 = vld [vmem:[#allocation8 + $0xa4] ss:$16 sps:$4 sm:$0xff]  }
  0xb7   :  { %601 = vmatpush1.bf16.msra.mxu1 %v8370_v23  ;;  %632 = vmatprep.mubr.bf16.mxu1 %v9074_v0  ;;  %v8430_v63 = vld [vmem:[#allocation8 + $0x88] ss:$16 sps:$4 sm:$0xff]   ;;  %v8438_v1 = vld [vmem:[#allocation8 + $0xac] ss:$16 sps:$4 sm:$0xff]   ;;  %v8441_v2 = vld [vmem:[#allocation8 + $0xc4] ss:$16 sps:$4 sm:$0xff]  }
  0xb8   :  { %602 = vmatprep.subr.bf16.mxu1 %v8378_v25  ;;  %v8436_v3 = vld [vmem:[#allocation8 + $0xa8] ss:$16 sps:$4 sm:$0xff]   ;;  %v8439_v4 = vld [vmem:[#allocation8 + $0xc0] ss:$16 sps:$4 sm:$0xff]   ;;  %v8444_v5 = vld [vmem:[#allocation8 + $0xcc] ss:$16 sps:$4 sm:$0xff]  }
  0xb9   :  { %562 = vmatpush1.bf16.msra.mxu0 %v8373_v24  ;;  %v8447_v6 = vld [vmem:[#allocation8 + $0xe4] ss:$16 sps:$4 sm:$0xff]   ;;  %v8442_v7 = vld [vmem:[#allocation8 + $0xc8] ss:$16 sps:$4 sm:$0xff]   ;;  %v8445_v8 = vld [vmem:[#allocation8 + $0xe0] ss:$16 sps:$4 sm:$0xff]  }
  0xba   :  { %641 = vmatprep.subr.bf16.mxu0 %v8381_v26  ;;  %v8453_v10 = vld [vmem:[#allocation8 + $0x104] ss:$16 sps:$4 sm:$0xff]   ;;  %v8448_v11 = vld [vmem:[#allocation8 + $0xe8] ss:$16 sps:$4 sm:$0xff]   ;;  %v8451_v12 = vld [vmem:[#allocation8 + $0x100] ss:$16 sps:$4 sm:$0xff]  }
  0xbb   :  { %603 = vmatpush1.bf16.msra.mxu1 %v8376_v27  ;;  %v8456_v13 = vld [vmem:[#allocation8 + $0x10c] ss:$16 sps:$4 sm:$0xff]   ;;  %v8459_v14 = vld [vmem:[#allocation8 + $0x124] ss:$16 sps:$4 sm:$0xff]   ;;  %v8454_v15 = vld [vmem:[#allocation8 + $0x108] ss:$16 sps:$4 sm:$0xff]  }
  0xbc   :  { %7318 = vmatmul.mubr.msk.bf16.vlgmr.msra.gmra.mrb[8].mxu0 %vm391_vm0, %v9260_v9  ;;  %682 = vmatprep.subr.bf16.mxu1 %v8384_v29  ;;  %v8457_v16 = vld [vmem:[#allocation8 + $0x120] ss:$16 sps:$4 sm:$0xff]   ;;  %v8462_v17 = vld [vmem:[#allocation8 + $0x12c] ss:$16 sps:$4 sm:$0xff]   ;;  %v8460_v18 = vld [vmem:[#allocation8 + $0x128] ss:$16 sps:$4 sm:$0xff]  }
  0xbd   :  { %642 = vmatpush1.bf16.msra.mxu0 %v8379_v28  ;;  %673 = vmatprep.mubr.bf16.mxu0 %v9074_v0  ;;  %v8465_v19 = vld [vmem:[#allocation8 + $0x144] ss:$16 sps:$4 sm:$0xff]   ;;  %v8468_v20 = vld [vmem:[#allocation8 + $0x14c] ss:$16 sps:$4 sm:$0xff]   ;;  %v8463_v21 = vld [vmem:[#allocation8 + $0x140] ss:$16 sps:$4 sm:$0xff]  }
  0xbe   :  { %643 = vmatprep.subr.bf16.mxu0 %v8387_v30  ;;  %7319 = vmatmul.mubr.msk.bf16.vlgmr.msra.gmra.mrb[8].mxu1 %vm391_vm0, %v9260_v9  ;;  %v8466_v22 = vld [vmem:[#allocation8 + $0x148] ss:$16 sps:$4 sm:$0xff]   ;;  %v8471_v23 = vld [vmem:[#allocation8 + $0x164] ss:$16 sps:$4 sm:$0xff]   ;;  %v8474_v24 = vld [vmem:[#allocation8 + $0x16c] ss:$16 sps:$4 sm:$0xff]  }
  0xbf   :  { %683 = vmatpush1.bf16.msra.mxu1 %v8382_v31  ;;  %714 = vmatprep.mubr.bf16.mxu1 %v9074_v0  ;;  %v8469_v25 = vld [vmem:[#allocation8 + $0x160] ss:$16 sps:$4 sm:$0xff]   ;;  %v8472_v26 = vld [vmem:[#allocation8 + $0x168] ss:$16 sps:$4 sm:$0xff]   ;;  %v8477_v27 = vld [vmem:[#allocation8 + $0x184] ss:$16 sps:$4 sm:$0xff]  }
  0xc0   :  { %684 = vmatprep.subr.bf16.mxu1 %v8390_v33  ;;  %v8480_v28 = vld [vmem:[#allocation8 + $0x18c] ss:$16 sps:$4 sm:$0xff]   ;;  %v8475_v29 = vld [vmem:[#allocation8 + $0x180] ss:$16 sps:$4 sm:$0xff]   ;;  %v8478_v30 = vld [vmem:[#allocation8 + $0x188] ss:$16 sps:$4 sm:$0xff]  }
  0xc1   :  { %644 = vmatpush1.bf16.msra.mxu0 %v8385_v32  ;;  %v8483_v31 = vld [vmem:[#allocation8 + $0x1a4] ss:$16 sps:$4 sm:$0xff]   ;;  %v8486_v32 = vld [vmem:[#allocation8 + $0x1ac] ss:$16 sps:$4 sm:$0xff]   ;;  %v8481_v33 = vld [vmem:[#allocation8 + $0x1a0] ss:$16 sps:$4 sm:$0xff]  }
  0xc2   :  { %723 = vmatprep.subr.bf16.mxu0 %v8393_v34  ;;  %v8484_v34 = vld [vmem:[#allocation8 + $0x1a8] ss:$16 sps:$4 sm:$0xff]   ;;  %vm2077_vm10 = vcmask 1043456   ;;  %vm9078_vm11 = vmmov 0  }
  0xc3   :  { %685 = vmatpush1.bf16.msra.mxu1 %v8388_v35  ;;  %v8489_v35 = vld [vmem:[#allocation8 + $0x1c4] ss:$16 sps:$4 sm:$0xff]  }
  0xc4   :  { %7320 = vmatmul.mubr.msk.bf16.vlgmr.msra.gmra.mrb[12].mxu0 %vm391_vm0, %v9260_v9  ;;  %764 = vmatprep.subr.bf16.mxu1 %v8396_v37  ;;  %v8487_v37 = vld [vmem:[#allocation8 + $0x1c0] ss:$16 sps:$4 sm:$0xff]  }
  0xc5   :  { %724 = vmatpush1.bf16.msra.mxu0 %v8391_v36  ;;  %755 = vmatprep.mubr.bf16.mxu0 %v9074_v0  ;;  %v8492_v36 = vld [vmem:[#allocation8 + $0x1cc] ss:$16 sps:$4 sm:$0xff]  }
  0xc6   :  { %725 = vmatprep.subr.bf16.mxu0 %v8399_v38  ;;  %7321 = vmatmul.mubr.msk.bf16.vlgmr.msra.gmra.mrb[12].mxu1 %vm391_vm0, %v9260_v9  ;;  %v8490_v38 = vld [vmem:[#allocation8 + $0x1c8] ss:$16 sps:$4 sm:$0xff]  }
  0xc7   :  { %765 = vmatpush1.bf16.msra.mxu1 %v8394_v39  ;;  %796 = vmatprep.mubr.bf16.mxu1 %v9074_v0  ;;  %v8433_v0 = vld [vmem:[#allocation8 + $0xa0] ss:$16 sps:$4 sm:$0xff]   ;;  %v8495_v39 = vld [vmem:[#allocation8 + $0x1e4] ss:$16 sps:$4 sm:$0xff]  }
  0xc8   :  { %766 = vmatprep.subr.bf16.mxu1 %v8402_v41  ;;  %v8493_v41 = vld [vmem:[#allocation8 + $0x1e0] ss:$16 sps:$4 sm:$0xff]  }
  0xc9   :  { %726 = vmatpush1.bf16.msra.mxu0 %v8397_v40  ;;  %v8498_v40 = vld [vmem:[#allocation8 + $0x1ec] ss:$16 sps:$4 sm:$0xff]  }
  0xca   :  { %1649 = vmatprep.subr.bf16.mxu0 %v8405_v42  ;;  %v8496_v42 = vld [vmem:[#allocation8 + $0x1e8] ss:$16 sps:$4 sm:$0xff]  }
  0xcb   :  { %767 = vmatpush1.bf16.msra.mxu1 %v8400_v43  ;;  %v8501_v43 = vld [vmem:[#allocation8 + $0x204] ss:$16 sps:$4 sm:$0xff]  }
  0xcc   :  { %7322 = vmatmul.mubr.msk.bf16.vlgmr.msra.gmra.mrb[16].mxu0 %vm391_vm0, %v9260_v9  ;;  %1731 = vmatprep.subr.bf16.mxu1 %v8408_v45  ;;  %v807_v45 = vlaneseq }
  0xcd   :  { %1650 = vmatpush1.bf16.msra.mxu0 %v8403_v44  ;;  %v8504_v44 = vld [vmem:[#allocation8 + $0x20c] ss:$16 sps:$4 sm:$0xff]  }
  0xce   :  { %1651 = vmatprep.subr.bf16.mxu0 %v8411_v46  ;;  %7323 = vmatmul.mubr.msk.bf16.vlgmr.msra.gmra.mrb[16].mxu1 %vm391_vm0, %v9260_v9  ;;  %v8450_v9 = vld [vmem:[#allocation8 + $0xec] ss:$16 sps:$4 sm:$0xff]   ;;  %v9290_v46 = vshrl.u32 %v807_v45, 7  ;;  %v8508_v45 = vld [vmem:[#allocation8 + $0x228] ss:$16 sps:$4 sm:$0xff]  }
  0xcf   :  { %1732 = vmatpush1.bf16.msra.mxu1 %v8406_v47 }
  0xd0   :  { %1733 = vmatprep.subr.bf16.mxu1 %v8414_v49  ;;  %v809_v47 = vsub.s32 0, %v9290_v46  ;;  %v813_v49 = vsub.s32 1, %v9290_v46 }
  0xd1   :  { %1652 = vmatpush1.bf16.msra.mxu0 %v8409_v48  ;;  %v805_v48 = vld [vmem:[#allocation7] sm:$0xf] }
  0xd2   :  { %1653 = vmatprep.subr.bf16.mxu0 %v8417_v50  ;;  %v817_v50 = vsub.s32 2, %v9290_v46 }
  0xd3   :  { %1734 = vmatpush1.bf16.msra.mxu1 %v8412_v51  ;;  %v810_v51 = vrot.slane %v805_v48, %v809_v47 }
  0xd4   :  { %1735 = vmatprep.subr.bf16.mxu1 %v8420_v53  ;;  %v814_v53 = vrot.slane %v805_v48, %v813_v49 }
  0xd5   :  { %1654 = vmatpush1.bf16.msra.mxu0 %v8415_v52  ;;  %v821_v52 = vsub.s32 3, %v9290_v46 }
  0xd6   :  { %1655 = vmatprep.subr.bf16.mxu0 %v8423_v54 }
  0xd7   :  { %1736 = vmatpush1.bf16.msra.mxu1 %v8418_v55  ;;  %v818_v55 = vrot.slane %v805_v48, %v817_v50 }
  0xd8   :  { %1737 = vmatprep.subr.bf16.mxu1 %v8426_v57 }
  0xd9   :  { %1656 = vmatpush1.bf16.msra.mxu0 %v8421_v56 }
  0xda   :  { %1657 = vmatprep.subr.bf16.mxu0 %v8429_v59 }
  0xdb   :  { %1738 = vmatpush1.bf16.msra.mxu1 %v8424_v58  ;;  %v822_v58 = vrot.slane %v805_v48, %v821_v52 }
  0xdc   :  { %1739 = vmatprep.subr.bf16.mxu1 %v8432_v61 }
  0xdd   :  { %1658 = vmatpush1.bf16.msra.mxu0 %v8427_v60 }
  0xde   :  { %1659 = vmatprep.subr.bf16.mxu0 %v8435_v62 }
  0xdf   :  { %1740 = vmatpush1.bf16.msra.mxu1 %v8430_v63 }
  0xe0   :  { %1741 = vmatprep.subr.bf16.mxu1 %v8438_v1 }
  0xe1   :  { %1660 = vmatpush1.bf16.msra.mxu0 %v8433_v0 }
  0xe2   :  { %1661 = vmatprep.subr.bf16.mxu0 %v8441_v2 }
  0xe3   :  { %1742 = vmatpush1.bf16.msra.mxu1 %v8436_v3 }
  0xe4   :  { %1743 = vmatprep.subr.bf16.mxu1 %v8444_v5 }
  0xe5   :  { %1662 = vmatpush1.bf16.msra.mxu0 %v8439_v4 }
  0xe6   :  { %1663 = vmatprep.subr.bf16.mxu0 %v8447_v6 }
  0xe7   :  { %1744 = vmatpush1.bf16.msra.mxu1 %v8442_v7 }
  0xe8   :  { %1745 = vmatprep.subr.bf16.mxu1 %v8450_v9 }
  0xe9   :  { %1664 = vmatpush1.bf16.msra.mxu0 %v8445_v8 }
  0xea   :  { %1665 = vmatprep.subr.bf16.mxu0 %v8453_v10 }
  0xeb   :  { %1746 = vmatpush1.bf16.msra.mxu1 %v8448_v11 }
  0xec   :  { %1747 = vmatprep.subr.bf16.mxu1 %v8456_v13 }
  0xed   :  { %1666 = vmatpush1.bf16.msra.mxu0 %v8451_v12 }
  0xee   :  { %1667 = vmatprep.subr.bf16.mxu0 %v8459_v14 }
  0xef   :  { %1748 = vmatpush1.bf16.msra.mxu1 %v8454_v15 }
  0xf0   :  { %1749 = vmatprep.subr.bf16.mxu1 %v8462_v17 }
  0xf1   :  { %1668 = vmatpush1.bf16.msra.mxu0 %v8457_v16 }
  0xf2   :  { %1669 = vmatprep.subr.bf16.mxu0 %v8465_v19 }
  0xf3   :  { %1750 = vmatpush1.bf16.msra.mxu1 %v8460_v18 }
  0xf4   :  { %1751 = vmatprep.subr.bf16.mxu1 %v8468_v20 }
  0xf5   :  { %1670 = vmatpush1.bf16.msra.mxu0 %v8463_v21 }
  0xf6   :  { %1671 = vmatprep.subr.bf16.mxu0 %v8471_v23 }
  0xf7   :  { %1752 = vmatpush1.bf16.msra.mxu1 %v8466_v22 }
  0xf8   :  { %1753 = vmatprep.subr.bf16.mxu1 %v8474_v24 }
  0xf9   :  { %1672 = vmatpush1.bf16.msra.mxu0 %v8469_v25 }
  0xfa   :  { %1673 = vmatprep.subr.bf16.mxu0 %v8477_v27 }
  0xfb   :  { %1754 = vmatpush1.bf16.msra.mxu1 %v8472_v26 }
  0xfc   :  { %1755 = vmatprep.subr.bf16.mxu1 %v8480_v28 }
  0xfd   :  { %1674 = vmatpush1.bf16.msra.mxu0 %v8475_v29 }
  0xfe   :  { %1675 = vmatprep.subr.bf16.mxu0 %v8483_v31 }
  0xff   :  { %1756 = vmatpush1.bf16.msra.mxu1 %v8478_v30 }
 0x100   :  { %1757 = vmatprep.subr.bf16.mxu1 %v8486_v32 }
 0x101   :  { %1676 = vmatpush1.bf16.msra.mxu0 %v8481_v33  ;;  %v8499_v33 = vld [vmem:[#allocation8 + $0x200] ss:$16 sps:$4 sm:$0xff]  }
 0x102   :  { %1677 = vmatprep.subr.bf16.mxu0 %v8489_v35 }
 0x103   :  { %1758 = vmatpush1.bf16.msra.mxu1 %v8484_v34  ;;  %v8502_v34 = vld [vmem:[#allocation8 + $0x208] ss:$16 sps:$4 sm:$0xff]  }
 0x104   :  { %1759 = vmatprep.subr.bf16.mxu1 %v8492_v36 }
 0x105   :  { %1678 = vmatpush1.bf16.msra.mxu0 %v8487_v37 }
 0x106   :  { %1679 = vmatprep.subr.bf16.mxu0 %v8495_v39  ;;  %v8510_v39 = vld [vmem:[#allocation8 + $0x22c] ss:$16 sps:$4 sm:$0xff]  }
 0x107   :  { %1760 = vmatpush1.bf16.msra.mxu1 %v8490_v38  ;;  %v8507_v38 = vld [vmem:[#allocation8 + $0x224] ss:$16 sps:$4 sm:$0xff]  }
 0x108   :  { %1761 = vmatprep.subr.bf16.mxu1 %v8498_v40 }
 0x109   :  { %1680 = vmatpush1.bf16.msra.mxu0 %v8493_v41 }
 0x10a   :  { %1690 = vmatprep.subr.bf16.mxu0 %v8501_v43 }
 0x10b   :  { %1762 = vmatpush1.bf16.msra.mxu1 %v8496_v42 }
 0x10c   :  { %1772 = vmatprep.subr.bf16.mxu1 %v8504_v44  ;;  %v8505_v44 = vld [vmem:[#allocation8 + $0x220] ss:$16 sps:$4 sm:$0xff]  }
 0x17f   :  { %v429_v54 = vpop.f32.mrb[0].mxu0 }
 0x180   :  { %v827_v56 = vadd.f32 %v810_v51, %v429_v54  ;;  %v431_v57 = vpop.f32.mrb[1].mxu0  ;;  %v8513_v51 = vld [vmem:[#allocation8 + $0x244] ss:$16 sps:$4 sm:$0xff]  }
 0x181   :  { %v828_v59 = vadd.f32 %v814_v53, %v431_v57  ;;  %v433_v60 = vpop.f32.mrb[2].mxu0  ;;  %v470_v63 = vpop.f32.mrb[0].mxu1  ;;  %v8516_v53 = vld [vmem:[#allocation8 + $0x24c] ss:$16 sps:$4 sm:$0xff]  }
 0x182   :  { %v835_v61 = vmin.f32 %v827_v56, 0.0  ;;  %v434_v62 = vpop.f32.mrb[3].mxu0  ;;  %v9304_v1 = vadd.f32 %v818_v55, %v470_v63  ;;  %v472_v2 = vpop.f32.mrb[1].mxu1  ;;  %vm831_vm1 = vcmp.gt.f32.partialorder %v827_v56, 0.0 }
 0x183   :  { %v836_v0 = vmin.f32 %v828_v59, 0.0  ;;  %v830_v4 = vadd.f32 %v822_v58, %v472_v2  ;;  %v474_v5 = vpop.f32.mrb[2].mxu1  ;;  %vm832_vm2 = vcmp.gt.f32.partialorder %v828_v59, 0.0  ;;  %v8511_v58 = vld [vmem:[#allocation8 + $0x240] ss:$16 sps:$4 sm:$0xff]  }
 0x184   :  { %v839_v3 = vmul.f32 1.442695, %v835_v61  ;;  %v475_v7 = vpop.f32.mrb[3].mxu1  ;;  %v8519_v61 = vld [vmem:[#allocation8 + $0x264] ss:$16 sps:$4 sm:$0xff]   ;;  %vm833_vm4 = vcmp.gt.f32.partialorder %v9304_v1, 0.0 }
 0x185   :  { %v841_v6 = vmul.f32 1.442695, %v836_v0  ;;  %v838_v8 = vmin.f32 %v830_v4, 0.0  ;;  %vm834_vm3 = vcmp.gt.f32.partialorder %v830_v4, 0.0  ;;  %v8522_v62 = vld [vmem:[#allocation8 + $0x26c] ss:$16 sps:$4 sm:$0xff]  }
 0x186   :  { %8791 = vpow2.f32 %v839_v3  ;;  %v8517_v2 = vld [vmem:[#allocation8 + $0x260] ss:$16 sps:$4 sm:$0xff]   ;;  %v8520_v3 = vld [vmem:[#allocation8 + $0x268] ss:$16 sps:$4 sm:$0xff]   ;;  %v8525_v5 = vld [vmem:[#allocation8 + $0x284] ss:$16 sps:$4 sm:$0xff]  }
 0x187   :  { %8793 = vpow2.f32 %v841_v6  ;;  %v9306_v9 = vpop.f32.mrb[4].mxu0  ;;  %v845_v10 = vmul.f32 1.442695, %v838_v8  ;;  %v8528_v6 = vld [vmem:[#allocation8 + $0x28c] ss:$16 sps:$4 sm:$0xff]  }
 0x188   :  { %v9308_v11 = vpop.f32.mrb[5].mxu0 }
 0x189   :  { %v515_v12 = vpop.f32.mrb[6].mxu0  ;;  %8795 = vpow2.f32 %v845_v10  ;;  %v9310_v13 = vpop.f32.mrb[4].mxu1 }
 0x18a   :  { %v516_v14 = vpop.f32.mrb[7].mxu0  ;;  %v9312_v15 = vpop.f32.mrb[5].mxu1 }
 0x18b   :  { %v556_v16 = vpop.f32.mrb[6].mxu1  ;;  %v8523_v14 = vld [vmem:[#allocation8 + $0x280] ss:$16 sps:$4 sm:$0xff]  }
 0x18c   :  { %v557_v17 = vpop.f32.mrb[7].mxu1  ;;  %v8526_v16 = vld [vmem:[#allocation8 + $0x288] ss:$16 sps:$4 sm:$0xff]  }
 0x18f   :  { %v9314_v18 = vpop.f32.mrb[8].mxu0 }
 0x190   :  { %v8792_v19 = vpop.eup %8791  ;;  %v9316_v20 = vpop.f32.mrb[9].mxu0 }
 0x191   :  { %v8794_v21 = vpop.eup %8793  ;;  %v7324_v22 = vadd.f32 -1.0, %v8792_v19  ;;  %v597_v23 = vpop.f32.mrb[10].mxu0  ;;  %v8531_v19 = vld [vmem:[#allocation8 + $0x2a4] ss:$16 sps:$4 sm:$0xff]  }
 0x192   :  { %v7325_v24 = vadd.f32 -1.0, %v8794_v21  ;;  %v9318_v25 = vpop.f32.mrb[8].mxu1  ;;  %v598_v26 = vpop.f32.mrb[11].mxu0  ;;  %v8534_v21 = vld [vmem:[#allocation8 + $0x2ac] ss:$16 sps:$4 sm:$0xff]  }
 0x193   :  { %v851_v27 = vsel %vm831_vm1, %v827_v56, %v7324_v22  ;;  %v9320_v28 = vpop.f32.mrb[9].mxu1  ;;  %v8796_v29 = vpop.eup %8795  ;;  %v8529_v22 = vld [vmem:[#allocation8 + $0x2a0] ss:$16 sps:$4 sm:$0xff]   ;;  %v8532_v23 = vld [vmem:[#allocation8 + $0x2a8] ss:$16 sps:$4 sm:$0xff]  }
 0x194   :  { %v852_v30 = vsel %vm832_vm2, %v828_v59, %v7325_v24  ;;  %v638_v31 = vpop.f32.mrb[10].mxu1  ;;  %v7327_v35 = vadd.f32 -1.0, %v8796_v29  ;;  %v855_v37 = vpack.c.bf16 %v851_v27, %v851_v27  ;;  %v8514_v59 = vld [vmem:[#allocation8 + $0x248] ss:$16 sps:$4 sm:$0xff]   ;;  %v8537_v24 = vld [vmem:[#allocation8 + $0x2c4] ss:$16 sps:$4 sm:$0xff]  }
 0x195   :  { %v856_v32 = vpack.c.bf16 %v852_v30, %v852_v30  ;;  %v639_v36 = vpop.f32.mrb[11].mxu1  ;;  %v8540_v26 = vld [vmem:[#allocation8 + $0x2cc] ss:$16 sps:$4 sm:$0xff]   ;;  %v8535_v27 = vld [vmem:[#allocation8 + $0x2c0] ss:$16 sps:$4 sm:$0xff]  }
 0x196   :  { %v854_v40 = vsel %vm834_vm3, %v830_v4, %v7327_v35  ;;  %v8538_v29 = vld [vmem:[#allocation8 + $0x2c8] ss:$16 sps:$4 sm:$0xff]   ;;  %v8543_v30 = vld [vmem:[#allocation8 + $0x2e4] ss:$16 sps:$4 sm:$0xff]   ;;  %v8546_v31 = vld [vmem:[#allocation8 + $0x2ec] ss:$16 sps:$4 sm:$0xff]  }
 0x197   :  { %1681 = vmatprep.mubr.bf16.mxu0 %v856_v32  ;;  %1763 = vmatprep.mubr.bf16.mxu1 %v856_v32  ;;  %v9322_v41 = vpop.f32.mrb[12].mxu0  ;;  %v858_v42 = vpack.c.bf16 %v854_v40, %v854_v40  ;;  %v8541_v32 = vld [vmem:[#allocation8 + $0x2e0] ss:$16 sps:$4 sm:$0xff]   ;;  %v8552_v35 = vld [vmem:[#allocation8 + $0x30c] ss:$16 sps:$4 sm:$0xff]  }
 0x198   :  { %1682 = vmatmul.mubr.bf16.vlgmr.msra.gmra.mrb[20].mxu0 %v855_v37  ;;  %1764 = vmatmul.mubr.bf16.vlgmr.msra.gmra.mrb[20].mxu1 %v855_v37  ;;  %v9324_v43 = vpop.f32.mrb[13].mxu0  ;;  %v8547_v36 = vld [vmem:[#allocation8 + $0x300] ss:$16 sps:$4 sm:$0xff]   ;;  %v8550_v37 = vld [vmem:[#allocation8 + $0x308] ss:$16 sps:$4 sm:$0xff]  }
 0x199   :  { %1691 = vmatpush1.bf16.msra.mxu0 %v8499_v33  ;;  %1773 = vmatpush1.bf16.msra.mxu1 %v8502_v34  ;;  %v679_v48 = vpop.f32.mrb[14].mxu0  ;;  %v9326_v54 = vpop.f32.mrb[12].mxu1  ;;  %v8544_v33 = vld [vmem:[#allocation8 + $0x2e8] ss:$16 sps:$4 sm:$0xff]   ;;  %v8549_v34 = vld [vmem:[#allocation8 + $0x304] ss:$16 sps:$4 sm:$0xff]  }
 0x19a   :  { %1692 = vmatprep.subr.bf16.mxu0 %v8507_v38  ;;  %1774 = vmatprep.subr.bf16.mxu1 %v8510_v39  ;;  %v680_v55 = vpop.f32.mrb[15].mxu0  ;;  %v9328_v56 = vpop.f32.mrb[13].mxu1  ;;  %v8555_v38 = vld [vmem:[#allocation8 + $0x324] ss:$16 sps:$4 sm:$0xff]   ;;  %v8558_v39 = vld [vmem:[#allocation8 + $0x32c] ss:$16 sps:$4 sm:$0xff]  }
 0x19b   :  { %1722 = vmatprep.mubr.bf16.mxu0 %v858_v42  ;;  %1804 = vmatprep.mubr.bf16.mxu1 %v858_v42  ;;  %v720_v57 = vpop.f32.mrb[14].mxu1  ;;  %v8553_v40 = vld [vmem:[#allocation8 + $0x320] ss:$16 sps:$4 sm:$0xff]   ;;  %v8556_v42 = vld [vmem:[#allocation8 + $0x328] ss:$16 sps:$4 sm:$0xff]  }
 0x19c   :  { %v721_v60 = vpop.f32.mrb[15].mxu1  ;;  %v8564_v48 = vld [vmem:[#allocation8 + $0x34c] ss:$16 sps:$4 sm:$0xff]   ;;  %v8567_v57 = vld [vmem:[#allocation8 + $0x364] ss:$16 sps:$4 sm:$0xff]  }
 0x19d   :  { %1693 = vmatpush1.bf16.msra.mxu0 %v8505_v44  ;;  %1775 = vmatpush1.bf16.msra.mxu1 %v8508_v45  ;;  %v837_v44 = vmin.f32 %v9304_v1, 0.0  ;;  %v8561_v45 = vld [vmem:[#allocation8 + $0x344] ss:$16 sps:$4 sm:$0xff]   ;;  %v8568_v60 = vld [vmem:[#allocation8 + $0x368] ss:$16 sps:$4 sm:$0xff]  }
 0x19e   :  { %1694 = vmatprep.subr.bf16.mxu0 %v8513_v51  ;;  %1776 = vmatprep.subr.bf16.mxu1 %v8516_v53  ;;  %v8559_v51 = vld [vmem:[#allocation8 + $0x340] ss:$16 sps:$4 sm:$0xff]   ;;  %v8562_v53 = vld [vmem:[#allocation8 + $0x348] ss:$16 sps:$4 sm:$0xff]  }
 0x19f   :  { %v9330_v63 = vpop.f32.mrb[16].mxu0  ;;  %v843_v55 = vmul.f32 1.442695, %v837_v44  ;;  %v1888_v44 = vld [vmem:[%s9757_s5 + $0x198] sm:$0xff] }
 0x1a0   :  { %v9332_v0 = vpop.f32.mrb[17].mxu0 }
 0x1a1   :  { %1695 = vmatpush1.bf16.msra.mxu0 %v8511_v58  ;;  %1777 = vmatpush1.bf16.msra.mxu1 %v8514_v59  ;;  %v761_v4 = vpop.f32.mrb[18].mxu0  ;;  %v9334_v7 = vpop.f32.mrb[16].mxu1  ;;  %v8570_v58 = vld [vmem:[#allocation8 + $0x36c] ss:$16 sps:$4 sm:$0xff]   ;;  %v8565_v59 = vld [vmem:[#allocation8 + $0x360] ss:$16 sps:$4 sm:$0xff]   ;;  %8797 = vpow2.f32 %v843_v55 }
 0x1a2   :  { %1696 = vmatprep.subr.bf16.mxu0 %v8519_v61  ;;  %1778 = vmatprep.subr.bf16.mxu1 %v8522_v62  ;;  %v762_v8 = vpop.f32.mrb[19].mxu0  ;;  %v9336_v10 = vpop.f32.mrb[17].mxu1  ;;  %v8573_v61 = vld [vmem:[#allocation8 + $0x384] ss:$16 sps:$4 sm:$0xff]   ;;  %v8576_v62 = vld [vmem:[#allocation8 + $0x38c] ss:$16 sps:$4 sm:$0xff]  }
 0x1a3   :  { %v802_v12 = vpop.f32.mrb[18].mxu1  ;;  %v8579_v4 = vld [vmem:[#allocation8 + $0x3a4] ss:$16 sps:$4 sm:$0xff]   ;;  %v8580_v8 = vld [vmem:[#allocation8 + $0x3a8] ss:$16 sps:$4 sm:$0xff]  }
 0x1a4   :  { %v803_v17 = vpop.f32.mrb[19].mxu1  ;;  %v8585_v12 = vld [vmem:[#allocation8 + $0x3c4] ss:$16 sps:$4 sm:$0xff]  }
 0x1a5   :  { %1697 = vmatpush1.bf16.msra.mxu0 %v8517_v2  ;;  %1779 = vmatpush1.bf16.msra.mxu1 %v8520_v3  ;;  %v8571_v2 = vld [vmem:[#allocation8 + $0x380] ss:$16 sps:$4 sm:$0xff]   ;;  %v8574_v3 = vld [vmem:[#allocation8 + $0x388] ss:$16 sps:$4 sm:$0xff]  }
 0x1a6   :  { %1698 = vmatprep.subr.bf16.mxu0 %v8525_v5  ;;  %1780 = vmatprep.subr.bf16.mxu1 %v8528_v6  ;;  %v8582_v5 = vld [vmem:[#allocation8 + $0x3ac] ss:$16 sps:$4 sm:$0xff]   ;;  %v8577_v6 = vld [vmem:[#allocation8 + $0x3a0] ss:$16 sps:$4 sm:$0xff]  }
 0x1a7   :  { %v8583_v17 = vld [vmem:[#allocation8 + $0x3c0] ss:$16 sps:$4 sm:$0xff]  }
 0x1a9   :  { %1699 = vmatpush1.bf16.msra.mxu0 %v8523_v14  ;;  %1781 = vmatpush1.bf16.msra.mxu1 %v8526_v16  ;;  %v8588_v14 = vld [vmem:[#allocation8 + $0x3cc] ss:$16 sps:$4 sm:$0xff]  }
 0x1aa   :  { %1700 = vmatprep.subr.bf16.mxu0 %v8531_v19  ;;  %1782 = vmatprep.subr.bf16.mxu1 %v8534_v21  ;;  %v8586_v19 = vld [vmem:[#allocation8 + $0x3c8] ss:$16 sps:$4 sm:$0xff]   ;;  %v8591_v21 = vld [vmem:[#allocation8 + $0x3e4] ss:$16 sps:$4 sm:$0xff]  }
 0x1ab   :  { %v8798_v16 = vpop.eup %8797 }
 0x1ad   :  { %1701 = vmatpush1.bf16.msra.mxu0 %v8529_v22  ;;  %1783 = vmatpush1.bf16.msra.mxu1 %v8532_v23  ;;  %v8594_v22 = vld [vmem:[#allocation8 + $0x3ec] ss:$16 sps:$4 sm:$0xff]   ;;  %v1853_v23 = vld [vmem:[%s9757_s5 + $0x80] sm:$0xff] }
 0x1ae   :  { %1702 = vmatprep.subr.bf16.mxu0 %v8537_v24  ;;  %1784 = vmatprep.subr.bf16.mxu1 %v8540_v26  ;;  %v7326_v24 = vadd.f32 -1.0, %v8798_v16  ;;  %v1854_v26 = vld [vmem:[%s9757_s5 + $0x88] sm:$0xff] }
 0x1b1   :  { %1703 = vmatpush1.bf16.msra.mxu0 %v8535_v27  ;;  %1785 = vmatpush1.bf16.msra.mxu1 %v8538_v29  ;;  %v1885_v27 = vld [vmem:[%s9757_s5 + $0x180] sm:$0xff]  ;;  %v1886_v29 = vld [vmem:[%s9757_s5 + $0x188] sm:$0xff] }
 0x1b2   :  { %1704 = vmatprep.subr.bf16.mxu0 %v8543_v30  ;;  %1786 = vmatprep.subr.bf16.mxu1 %v8546_v31  ;;  %v8589_v30 = vld [vmem:[#allocation8 + $0x3e0] ss:$16 sps:$4 sm:$0xff]   ;;  %v8592_v31 = vld [vmem:[#allocation8 + $0x3e8] ss:$16 sps:$4 sm:$0xff]  }
 0x1b5   :  { %1705 = vmatpush1.bf16.msra.mxu0 %v8541_v32  ;;  %1787 = vmatpush1.bf16.msra.mxu1 %v8544_v33  ;;  %v1837_v32 = vld [vmem:[%s9757_s5] sm:$0xff]  ;;  %v1838_v33 = vld [vmem:[%s9757_s5 + $0x8] sm:$0xff] }
 0x1b6   :  { %1706 = vmatprep.subr.bf16.mxu0 %v8549_v34  ;;  %1788 = vmatprep.subr.bf16.mxu1 %v8552_v35  ;;  %v8200_v34 = vpack.c.bf16 %v1854_v26, %v1853_v23  ;;  %v8232_v35 = vpack.c.bf16 %v1886_v29, %v1885_v27  ;;  %v1891_v23 = vld [vmem:[%s9757_s5 + $0x1b0] sm:$0xff]  ;;  %v1892_v26 = vld [vmem:[%s9757_s5 + $0x1b8] sm:$0xff] }
 0x1b7   :  { %v1843_v27 = vld [vmem:[%s9757_s5 + $0x30] sm:$0xff]  ;;  %v1844_v29 = vld [vmem:[%s9757_s5 + $0x38] sm:$0xff] }
 0x1b9   :  { %1707 = vmatpush1.bf16.msra.mxu0 %v8547_v36  ;;  %1789 = vmatpush1.bf16.msra.mxu1 %v8550_v37  ;;  %v1869_v36 = vld [vmem:[%s9757_s5 + $0x100] sm:$0xff]  ;;  %v1870_v37 = vld [vmem:[%s9757_s5 + $0x108] sm:$0xff] }
 0x1ba   :  { %1708 = vmatprep.subr.bf16.mxu0 %v8555_v38  ;;  %1790 = vmatprep.subr.bf16.mxu1 %v8558_v39  ;;  %v1855_v38 = vld [vmem:[%s9757_s5 + $0x90] sm:$0xff]  ;;  %v853_v39 = vsel %vm833_vm4, %v9304_v1, %v7326_v24 }
 0x1bb   :  { %v1839_v1 = vld [vmem:[%s9757_s5 + $0x10] sm:$0xff] }
 0x1bd   :  { %1709 = vmatpush1.bf16.msra.mxu0 %v8553_v40  ;;  %1791 = vmatpush1.bf16.msra.mxu1 %v8556_v42  ;;  %v1856_v40 = vld [vmem:[%s9757_s5 + $0x98] sm:$0xff]  ;;  %v1887_v42 = vld [vmem:[%s9757_s5 + $0x190] sm:$0xff] }
 0x1be   :  { %1710 = vmatprep.subr.bf16.mxu0 %v8561_v45  ;;  %1792 = vmatprep.subr.bf16.mxu1 %v8564_v48  ;;  %v8202_v45 = vpack.c.bf16 %v1838_v33, %v1837_v32  ;;  %v8234_v48 = vpack.c.bf16 %v1870_v37, %v1869_v36  ;;  %v8204_v55 = vpack.c.bf16 %v1856_v40, %v1855_v38  ;;  %v1875_v32 = vld [vmem:[%s9757_s5 + $0x130] sm:$0xff]  ;;  %v1876_v33 = vld [vmem:[%s9757_s5 + $0x138] sm:$0xff]  ;;  %v1862_v36 = vld [vmem:[%s9757_s5 + $0xc8] sm:$0xff] }
 0x1bf   :  { %v1893_v37 = vld [vmem:[%s9757_s5 + $0x1c0] sm:$0xff] }
 0x1c0   :  { %v1845_v40 = vld [vmem:[%s9757_s5 + $0x40] sm:$0xff] }
 0x1c1   :  { %1711 = vmatpush1.bf16.msra.mxu0 %v8559_v51  ;;  %1793 = vmatpush1.bf16.msra.mxu1 %v8562_v53  ;;  %v1840_v51 = vld [vmem:[%s9757_s5 + $0x18] sm:$0xff]  ;;  %v857_v53 = vpack.c.bf16 %v853_v39, %v853_v39  ;;  %v1894_v39 = vld [vmem:[%s9757_s5 + $0x1c8] sm:$0xff] }
 0x1c2   :  { %1712 = vmatprep.subr.bf16.mxu0 %v8567_v57  ;;  %1794 = vmatprep.subr.bf16.mxu1 %v8570_v58  ;;  %v8236_v57 = vpack.c.bf16 %v1888_v44, %v1887_v42  ;;  %v1871_v58 = vld [vmem:[%s9757_s5 + $0x110] sm:$0xff]  ;;  %v1846_v42 = vld [vmem:[%s9757_s5 + $0x48] sm:$0xff]  ;;  %v8248_v44 = vpack.c.bf16 %v1894_v39, %v1893_v37  ;;  %v1884_v37 = vld [vmem:[%s9757_s5 + $0x178] sm:$0xff] }
 0x1c5   :  { %1713 = vmatpush1.bf16.msra.mxu0 %v8565_v59  ;;  %1795 = vmatpush1.bf16.msra.mxu1 %v8568_v60  ;;  %v1872_v59 = vld [vmem:[%s9757_s5 + $0x118] sm:$0xff]  ;;  %v1857_v60 = vld [vmem:[%s9757_s5 + $0xa0] sm:$0xff] }
 0x1c6   :  { %1714 = vmatprep.subr.bf16.mxu0 %v8573_v61  ;;  %1796 = vmatprep.subr.bf16.mxu1 %v8576_v62  ;;  %v1858_v61 = vld [vmem:[%s9757_s5 + $0xa8] sm:$0xff]  ;;  %v1889_v62 = vld [vmem:[%s9757_s5 + $0x1a0] sm:$0xff] }
 0x1c9   :  { %1715 = vmatpush1.bf16.msra.mxu0 %v8571_v2  ;;  %1797 = vmatpush1.bf16.msra.mxu1 %v8574_v3  ;;  %v1890_v2 = vld [vmem:[%s9757_s5 + $0x1a8] sm:$0xff]  ;;  %v8206_v3 = vpack.c.bf16 %v1840_v51, %v1839_v1 }
 0x1ca   :  { %1716 = vmatprep.subr.bf16.mxu0 %v8579_v4  ;;  %1798 = vmatprep.subr.bf16.mxu1 %v8582_v5  ;;  %v8238_v4 = vpack.c.bf16 %v1872_v59, %v1871_v58  ;;  %v8208_v5 = vpack.c.bf16 %v1858_v61, %v1857_v60  ;;  %v1878_v1 = vld [vmem:[%s9757_s5 + $0x148] sm:$0xff]  ;;  %v1896_v59 = vld [vmem:[%s9757_s5 + $0x1d8] sm:$0xff]  ;;  %v1847_v60 = vld [vmem:[%s9757_s5 + $0x50] sm:$0xff] }
 0x1cb   :  { %v1848_v61 = vld [vmem:[%s9757_s5 + $0x58] sm:$0xff] }
 0x1cd   :  { %1717 = vmatpush1.bf16.msra.mxu0 %v8577_v6  ;;  %1799 = vmatpush1.bf16.msra.mxu1 %v8580_v8  ;;  %v8240_v6 = vpack.c.bf16 %v1890_v2, %v1889_v62  ;;  %v1841_v8 = vld [vmem:[%s9757_s5 + $0x20] sm:$0xff]  ;;  %v8222_v2 = vpack.c.bf16 %v1848_v61, %v1847_v60 }
 0x1ce   :  { %1718 = vmatprep.subr.bf16.mxu0 %v8585_v12  ;;  %1800 = vmatprep.subr.bf16.mxu1 %v8588_v14  ;;  %v1842_v12 = vld [vmem:[%s9757_s5 + $0x28] sm:$0xff]  ;;  %v1873_v14 = vld [vmem:[%s9757_s5 + $0x120] sm:$0xff] }
 0x1cf   :  { %v8210_v16 = vpack.c.bf16 %v1842_v12, %v1841_v8  ;;  %v1866_v8 = vld [vmem:[%s9757_s5 + $0xe8] sm:$0xff]  ;;  %v1897_v12 = vld [vmem:[%s9757_s5 + $0x1e0] sm:$0xff] }
 0x1d1   :  { %1719 = vmatpush1.bf16.msra.mxu0 %v8583_v17  ;;  %1801 = vmatpush1.bf16.msra.mxu1 %v8586_v19  ;;  %v1874_v17 = vld [vmem:[%s9757_s5 + $0x128] sm:$0xff] }
 0x1d2   :  { %1720 = vmatprep.subr.bf16.mxu0 %v8591_v21  ;;  %1802 = vmatprep.subr.bf16.mxu1 %v8594_v22  ;;  %v8242_v19 = vpack.c.bf16 %v1874_v17, %v1873_v14  ;;  %v1859_v21 = vld [vmem:[%s9757_s5 + $0xb0] sm:$0xff]  ;;  %v1860_v22 = vld [vmem:[%s9757_s5 + $0xb8] sm:$0xff]  ;;  %v1898_v14 = vld [vmem:[%s9757_s5 + $0x1e8] sm:$0xff] }
 0x1d3   :  { %v8212_v24 = vpack.c.bf16 %v1860_v22, %v1859_v21  ;;  %v8256_v17 = vpack.c.bf16 %v1898_v14, %v1897_v12  ;;  %v1850_v21 = vld [vmem:[%s9757_s5 + $0x68] sm:$0xff]  ;;  %v1881_v22 = vld [vmem:[%s9757_s5 + $0x160] sm:$0xff] }
 0x1d5   :  { %1721 = vmatpush1.bf16.msra.mxu0 %v8589_v30  ;;  %1803 = vmatpush1.bf16.msra.mxu1 %v8592_v31  ;;  %v8244_v30 = vpack.c.bf16 %v1892_v26, %v1891_v23  ;;  %v8214_v31 = vpack.c.bf16 %v1844_v29, %v1843_v27  ;;  %v1867_v26 = vld [vmem:[%s9757_s5 + $0xf0] sm:$0xff]  ;;  %v1868_v27 = vld [vmem:[%s9757_s5 + $0xf8] sm:$0xff] }
 0x1d6   :  { %8201 = vmatprep.subr.bf16.mxu0 %v8200_v34  ;;  %8233 = vmatprep.subr.bf16.mxu1 %v8232_v35  ;;  %v8246_v34 = vpack.c.bf16 %v1876_v33, %v1875_v32  ;;  %v1861_v35 = vld [vmem:[%s9757_s5 + $0xc0] sm:$0xff]  ;;  %v1900_v32 = vld [vmem:[%s9757_s5 + $0x1f8] sm:$0xff]  ;;  %v1851_v33 = vld [vmem:[%s9757_s5 + $0x70] sm:$0xff] }
 0x1d7   :  { %v8216_v38 = vpack.c.bf16 %v1862_v36, %v1861_v35  ;;  %v1852_v35 = vld [vmem:[%s9757_s5 + $0x78] sm:$0xff]  ;;  %v1883_v36 = vld [vmem:[%s9757_s5 + $0x170] sm:$0xff] }
 0x1d8   :  { %1723 = vmatmul.mubr.bf16.vlgmr.msra.gmra.mrb[20].mxu0 %v857_v53  ;;  %1805 = vmatmul.mubr.bf16.vlgmr.msra.gmra.mrb[20].mxu1 %v857_v53  ;;  %v1863_v53 = vld [vmem:[%s9757_s5 + $0xd0] sm:$0xff]  ;;  %v8262_v39 = vpack.c.bf16 %v1884_v37, %v1883_v36 }
 0x1d9   :  { %8203 = vmatpush3.bf16.msra.mxu0 %v8202_v45  ;;  %8235 = vmatpush3.bf16.msra.mxu1 %v8234_v48  ;;  %v8218_v45 = vpack.c.bf16 %v1846_v42, %v1845_v40  ;;  %v1877_v48 = vld [vmem:[%s9757_s5 + $0x140] sm:$0xff]  ;;  %v987_v40 = vld [vmem:[#allocation10] sm:$0xf] }
 0x1da   :  { %8205 = vmatprep.subr.bf16.mxu0 %v8204_v55  ;;  %8237 = vmatprep.subr.bf16.mxu1 %v8236_v57  ;;  %v8250_v51 = vpack.c.bf16 %v1878_v1, %v1877_v48  ;;  %v1864_v55 = vld [vmem:[%s9757_s5 + $0xd8] sm:$0xff]  ;;  %v1895_v57 = vld [vmem:[%s9757_s5 + $0x1d0] sm:$0xff]  ;;  %v992_v42 = vrot.slane %v987_v40, %v809_v47  ;;  %v1004_v48 = vrot.slane %v987_v40, %v821_v52 }
 0x1db   :  { %v8220_v58 = vpack.c.bf16 %v1864_v55, %v1863_v53  ;;  %v8252_v62 = vpack.c.bf16 %v1896_v59, %v1895_v57 }
 0x1dd   :  { %8207 = vmatpush3.bf16.msra.mxu0 %v8206_v3  ;;  %8239 = vmatpush3.bf16.msra.mxu1 %v8238_v4  ;;  %v1879_v3 = vld [vmem:[%s9757_s5 + $0x150] sm:$0xff]  ;;  %v1880_v4 = vld [vmem:[%s9757_s5 + $0x158] sm:$0xff] }
 0x1de   :  { %8209 = vmatprep.subr.bf16.mxu0 %v8208_v5  ;;  %8241 = vmatprep.subr.bf16.mxu1 %v8240_v6  ;;  %v1865_v5 = vld [vmem:[%s9757_s5 + $0xe0] sm:$0xff]  ;;  %v8254_v6 = vpack.c.bf16 %v1880_v4, %v1879_v3 }
 0x1e1   :  { %8211 = vmatpush3.bf16.msra.mxu0 %v8210_v16  ;;  %8243 = vmatpush3.bf16.msra.mxu1 %v8242_v19  ;;  %v8224_v16 = vpack.c.bf16 %v1866_v8, %v1865_v5  ;;  %v1849_v19 = vld [vmem:[%s9757_s5 + $0x60] sm:$0xff] }
 0x1e2   :  { %8213 = vmatprep.subr.bf16.mxu0 %v8212_v24  ;;  %8245 = vmatprep.subr.bf16.mxu1 %v8244_v30  ;;  %v8226_v23 = vpack.c.bf16 %v1850_v21, %v1849_v19  ;;  %v1882_v24 = vld [vmem:[%s9757_s5 + $0x168] sm:$0xff]  ;;  %v8228_v30 = vpack.c.bf16 %v1868_v27, %v1867_v26 }
 0x1e3   :  { %v8258_v29 = vpack.c.bf16 %v1882_v24, %v1881_v22 }
 0x1e5   :  { %8215 = vmatpush3.bf16.msra.mxu0 %v8214_v31  ;;  %8247 = vmatpush3.bf16.msra.mxu1 %v8246_v34  ;;  %v1899_v31 = vld [vmem:[%s9757_s5 + $0x1f0] sm:$0xff]  ;;  %s9080_s5 = smov [#allocation17]  }
 0x1e6   :  { %8217 = vmatprep.subr.bf16.mxu0 %v8216_v38  ;;  %8249 = vmatprep.subr.bf16.mxu1 %v8248_v44  ;;  %v8260_v34 = vpack.c.bf16 %v1900_v32, %v1899_v31  ;;  %v8230_v38 = vpack.c.bf16 %v1852_v35, %v1851_v33  ;;  %v1000_v44 = vrot.slane %v987_v40, %v817_v50  ;;  %v7460_v31 = vld [vmem:[#allocation11] ss:$0 sm:$0xff]  ;;  %s7261_s21 = sshll.u32 %s9080_s5, 4  ;;  %s7262_s21 = int_to_ptr.vmem [resolvable:$true] %s7261_s21 }
 0x1e7   :  { %s9025_s25 = scalar_lea.vmem %s7262_s21, 128  ;;  %p9030_p3 = scmp.lt.s32.totalorder %s7262_s21, %s7262_s21 }
 0x1e8   :  { %p9026_p2 = scmp.ne.s32.totalorder %s7262_s21, %s9025_s25  ;;  %p9031_p4 = scmp.lt.s32.totalorder %s9025_s25, %s9025_s25 }
 0x1e9   :  { %8219 = vmatpush3.bf16.msra.mxu0 %v8218_v45  ;;  %8251 = vmatpush3.bf16.msra.mxu1 %v8250_v51  ;;  %v996_v45 = vrot.slane %v987_v40, %v813_v49 }
 0x1ea   :  { %8221 = vmatprep.subr.bf16.mxu0 %v8220_v58  ;;  %8253 = vmatprep.subr.bf16.mxu1 %v8252_v62  ;;  %p9032_p5 = por %p9031_p4, %p9030_p3 }
 0x1ec   :  { %p9033_p6 = pnand %p9032_p5, %p9026_p2 }
 0x1ed   :  { %8223 = vmatpush3.bf16.msra.mxu0 %v8222_v2  ;;  %8255 = vmatpush3.bf16.msra.mxu1 %v8254_v6 }
 0x1ee   :  { %8225 = vmatprep.subr.bf16.mxu0 %v8224_v16  ;;  %8257 = vmatprep.subr.bf16.mxu1 %v8256_v17 }
 0x1f1   :  { %8227 = vmatpush3.bf16.msra.mxu0 %v8226_v23  ;;  %8259 = vmatpush3.bf16.msra.mxu1 %v8258_v29 }
 0x1f2   :  { %8229 = vmatprep.subr.bf16.mxu0 %v8228_v30  ;;  %8261 = vmatprep.subr.bf16.mxu1 %v8260_v34 }
 0x1f5   :  { %8231 = vmatpush3.bf16.msra.mxu0 %v8230_v38  ;;  %8263 = vmatpush3.bf16.msra.mxu1 %v8262_v39 }
 0x2ab   :  { %v1724_v1 = vpop.f32.mrb[20].mxu0  ;;  %v1806_v51 = vpop.f32.mrb[20].mxu1 }
 0x2ac   :  { %v8264_v53 = vadd.f32 %v1724_v1, %v992_v42  ;;  %v8266_v55 = vadd.f32 %v1806_v51, %v1000_v44  ;;  %v1726_v57 = vpop.f32.mrb[21].mxu0  ;;  %v1808_v58 = vpop.f32.mrb[21].mxu1  ;;  %v2061_v1 = vld [vmem:[#allocation13 + $0x8] sm:$0xff] }
 0x2ad   :  { %v8265_v59 = vadd.f32 %v1726_v57, %v996_v45  ;;  %v8267_v60 = vadd.f32 %v1808_v58, %v1004_v48  ;;  %v1728_v61 = vpop.f32.mrb[22].mxu0  ;;  %v1810_v62 = vpop.f32.mrb[22].mxu1  ;;  %v2060_v48 = vld [vmem:[#allocation13] sm:$0xff]  ;;  %v2062_v57 = vld [vmem:[#allocation13 + $0x10] sm:$0xff]  ;;  %v2063_v58 = vld [vmem:[#allocation13 + $0x18] sm:$0xff] }
 0x2ae   :  { %v1817_v47 = vmin.f32 %v8264_v53, 0.0  ;;  %v1819_v2 = vmin.f32 %v8266_v55, 0.0  ;;  %v1729_v3 = vpop.f32.mrb[23].mxu0  ;;  %v1811_v50 = vpop.f32.mrb[23].mxu1  ;;  %vm1813_vm6 = vcmp.gt.f32.partialorder %v8264_v53, 0.0  ;;  %vm1815_vm8 = vcmp.gt.f32.partialorder %v8266_v55, 0.0 }
 0x2af   :  { %v1818_v4 = vmin.f32 %v8265_v59, 0.0  ;;  %v1820_v5 = vmin.f32 %v8267_v60, 0.0  ;;  %vm1814_vm5 = vcmp.gt.f32.partialorder %v8265_v59, 0.0  ;;  %vm1816_vm7 = vcmp.gt.f32.partialorder %v8267_v60, 0.0  ;;  %v2064_v3 = vld [vmem:[#allocation13 + $0x20] sm:$0xf] }
 0x2b0   :  { %v1821_v49 = vmul.f32 1.442695, %v1817_v47  ;;  %v1825_v6 = vmul.f32 1.442695, %v1819_v2  ;;  %v2070_v51 = vcombine.high %v2060_v48, %v2060_v48  ;;  %v2073_v61 = vcombine.high %v2063_v58, %v2063_v58 }
 0x2b1   :  { %v1823_v46 = vmul.f32 1.442695, %v1818_v4  ;;  %v1827_v52 = vmul.f32 1.442695, %v1820_v5  ;;  %v9077_v50 = vmov 1   ;;  %v9079_v4 = vmov 3  }
 0x2b2   :  { %8799 = vpow2.f32 %v1821_v49  ;;  %7461 = vmatprep.subr.msk.mxu0 %vm2077_vm10, %v2070_v51  ;;  %v2526_v5 = vld [vmem:[#allocation14] sm:$0xff] }
 0x2b3   :  { %8801 = vpow2.f32 %v1825_v6  ;;  %v2534_v49 = vld [vmem:[#allocation14 + $0x40] sm:$0xff]  ;;  %v2527_v6 = vld [vmem:[#allocation14 + $0x8] sm:$0xff] }
 0x2b4   :  { %8803 = vpow2.f32 %v1823_v46  ;;  %v7479_v46 = vcombine.low %v2526_v5, %v2534_v49 }
 0x2b5   :  { %8805 = vpow2.f32 %v1827_v52  ;;  %v7480_v52 = vcombine.high %v2526_v5, %v2534_v49  ;;  %v2623_v5 = vld [vmem:[#allocation14 + $0x308] sm:$0xff] }
 0x2b6   :  { %v2631_v49 = vld [vmem:[#allocation14 + $0x348] sm:$0xff] }
 0x2bc   :  { %v8800_v8 = vpop.eup %8799 }
 0x2bd   :  { %v8802_v12 = vpop.eup %8801  ;;  %v7456_v16 = vadd.f32 -1.0, %v8800_v8  ;;  %v2535_v8 = vld [vmem:[#allocation14 + $0x48] sm:$0xff] }
 0x2be   :  { %v8804_v14 = vpop.eup %8803  ;;  %v7458_v21 = vadd.f32 -1.0, %v8802_v12  ;;  %v2542_v12 = vld [vmem:[#allocation14 + $0x80] sm:$0xff] }
 0x2bf   :  { %v8806_v17 = vpop.eup %8805  ;;  %v7457_v19 = vadd.f32 -1.0, %v8804_v14  ;;  %v1833_v26 = vsel %vm1813_vm6, %v8264_v53, %v7456_v16  ;;  %v2071_v53 = vcombine.high %v2061_v1, %v2061_v1  ;;  %v2550_v14 = vld [vmem:[#allocation14 + $0xc0] sm:$0xff]  ;;  %v7481_v16 = vcombine.low %v2527_v6, %v2535_v8 }
 0x2c0   :  { %v7459_v22 = vadd.f32 -1.0, %v8806_v17  ;;  %v1835_v27 = vsel %vm1815_vm8, %v8266_v55, %v7458_v21  ;;  %v9075_v55 = vmov 2   ;;  %v7482_v17 = vcombine.high %v2527_v6, %v2535_v8  ;;  %v2543_v21 = vld [vmem:[#allocation14 + $0x88] sm:$0xff] }
 0x2c1   :  { %v1834_v23 = vsel %vm1814_vm5, %v8265_v59, %v7457_v19  ;;  %7464 = vmatprep.subr.msk.mxu1 %vm2077_vm10, %v2071_v53  ;;  %8340 = vset.pattern.permute.xlu0 %v9075_v55  ;;  %v9076_v59 = vmov 0.0   ;;  %v7496_v19 = vcombine.high %v2542_v12, %v2550_v14  ;;  %v7578_v8 = vcombine.high %v2623_v5, %v2631_v49 }
 0x2c2   :  { %1972 = vmatprep.mubr.f32.mxu0 %v1834_v23  ;;  %v1836_v24 = vsel %vm1816_vm7, %v8267_v60, %v7459_v22  ;;  %v2072_v60 = vcombine.high %v2062_v57, %v2062_v57  ;;  %v2551_v22 = vld [vmem:[#allocation14 + $0xc8] sm:$0xff]  ;;  %v2558_v23 = vld [vmem:[#allocation14 + $0x100] sm:$0xff] }
 0x2c3   :  { %2042 = vmatprep.mubr.f32.mxu1 %v1836_v24  ;;  %1973 = vmatmul.mubr.f32.vlgmr.msra.gmra.mrb[24].mxu0 %v1833_v26  ;;  %v7498_v24 = vcombine.high %v2543_v21, %v2551_v22  ;;  %v2566_v26 = vld [vmem:[#allocation14 + $0x140] sm:$0xff] }
 0x2c4   :  { %2043 = vmatmul.mubr.f32.vlgmr.msra.gmra.mrb[24].mxu1 %v1835_v27  ;;  %7462 = vmatpush1.msk.msra.mxu0 %vm2077_vm10, %v2060_v48  ;;  %v2559_v27 = vld [vmem:[#allocation14 + $0x108] sm:$0xff] }
 0x2c5   :  { %2160 = vmatprep.mubr.f32.mxu0 %v9076_v59  ;;  %7465 = vmatpush1.msk.msra.mxu1 %vm2077_vm10, %v2061_v1  ;;  %v2591_v48 = vld [vmem:[#allocation14 + $0x208] sm:$0xff] }
 0x2c6   :  { %2231 = vmatprep.mubr.f32.mxu1 %v9076_v59  ;;  %7467 = vmatprep.subr.msk.mxu0 %vm2077_vm10, %v2072_v60  ;;  %v2599_v1 = vld [vmem:[#allocation14 + $0x248] sm:$0xff] }
 0x2c7   :  { %7470 = vmatprep.subr.msk.mxu1 %vm2077_vm10, %v2073_v61  ;;  %v2607_v60 = vld [vmem:[#allocation14 + $0x288] sm:$0xff] }
 0x2c8   :  { %v2615_v61 = vld [vmem:[#allocation14 + $0x2c8] sm:$0xff] }
 0x396   :  { %v8155_v29 = vpop.f32.mrb[24].mxu0 }
 0x397   :  { %v8190_v30 = vpop.f32.mrb[24].mxu1  ;;  %v8156_v32 = vpop.f32.mrb[25].mxu0 }
 0x398   :  { %v8157_v33 = vadd.f32 %v8156_v32, %v8155_v29  ;;  %v8191_v34 = vpop.f32.mrb[25].mxu1  ;;  %v2567_v29 = vld [vmem:[#allocation14 + $0x148] sm:$0xff]  ;;  %v7512_v32 = vcombine.high %v2558_v23, %v2566_v26 }
 0x399   :  { %v8192_v35 = vadd.f32 %v8191_v34, %v8190_v30  ;;  %v7495_v30 = vcombine.low %v2542_v12, %v2550_v14  ;;  %v2574_v34 = vld [vmem:[#allocation14 + $0x180] sm:$0xff] }
 0x39a   :  { %v1975_v36 = vadd.f32 %v8157_v33, %v7460_v31  ;;  %v7497_v31 = vcombine.low %v2543_v21, %v2551_v22  ;;  %v7514_v33 = vcombine.high %v2559_v27, %v2567_v29  ;;  %v2638_v12 = vld [vmem:[#allocation14 + $0x380] sm:$0xff]  ;;  %v7577_v21 = vcombine.low %v2623_v5, %v2631_v49 }
 0x39b   :  { %v2646_v14 = vld [vmem:[#allocation14 + $0x3c0] sm:$0xff] }
 0x39c   :  { %v2045_v37 = vadd.f32 %v8192_v35, %v1975_v36  ;;  %v2582_v35 = vld [vmem:[#allocation14 + $0x1c0] sm:$0xff]  ;;  %v2575_v36 = vld [vmem:[#allocation14 + $0x188] sm:$0xff]  ;;  %v7592_v22 = vcombine.high %v2638_v12, %v2646_v14 }
 0x39d   :  { %v7527_v51 = vcombine.low %v2574_v34, %v2582_v35  ;;  %v2718_v5 = vld [vmem:[#allocation14 + $0x600] sm:$0xff] }
 0x39e   :  { %v2049_v38 = vsel %vm2048_vm9, %v2045_v37, -inf  ;;  %v2726_v49 = vld [vmem:[#allocation14 + $0x640] sm:$0xff] }
 0x39f   :  { %2050 = vmax.xlane.f32.xlu0 %v2049_v38  ;;  %v7511_v38 = vcombine.low %v2558_v23, %v2566_v26  ;;  %v2662_v26 = vld [vmem:[#allocation14 + $0x440] sm:$0xff] }
 0x42c   :  { %v2051_v39 = vpop.xlane.xlu0 %2050 }
 0x42d   :  { %v2052_v40 = vsub.f32 %v2045_v37, %v2051_v39  ;;  %v2583_v37 = vld [vmem:[#allocation14 + $0x1c8] sm:$0xff]  ;;  %v7513_v39 = vcombine.low %v2559_v27, %v2567_v29 }
 0x42e   :  { %v7529_v53 = vcombine.low %v2575_v36, %v2583_v37  ;;  %v2655_v27 = vld [vmem:[#allocation14 + $0x408] sm:$0xff] }
 0x42f   :  { %v2053_v42 = vmul.f32 1.442695, %v2052_v40  ;;  %v7528_v40 = vcombine.high %v2574_v34, %v2582_v35  ;;  %v2663_v29 = vld [vmem:[#allocation14 + $0x448] sm:$0xff] }
 0x430   :  { %v7609_v35 = vcombine.low %v2655_v27, %v2663_v29 }
 0x431   :  { %8807 = vpow2.f32 %v2053_v42  ;;  %v7530_v42 = vcombine.high %v2575_v36, %v2583_v37  ;;  %v2670_v36 = vld [vmem:[#allocation14 + $0x480] sm:$0xff] }
 0x432   :  { %v2678_v37 = vld [vmem:[#allocation14 + $0x4c0] sm:$0xff] }
 0x43b   :  { %v8808_v44 = vpop.eup %8807 }
 0x43c   :  { %v2055_v45 = vsel %vm2048_vm9, %v8808_v44, 0.0 }
 0x43d   :  { %2056 = vadd.xlane.f32.xlu0 %v2055_v45  ;;  %v2598_v45 = vld [vmem:[#allocation14 + $0x240] sm:$0xff] }
 0x4ca   :  { %v2057_v62 = vpop.xlane.xlu0 %2056 }
 0x4cb   :  { %8809 = vrcp.f32 %v2057_v62 }
 0x4d5   :  { %v8810_v47 = vpop.eup %8809 }
 0x4d6   :  { %v2059_v2 = vmul.f32 %v8810_v47, %v8808_v44  ;;  %v2590_v44 = vld [vmem:[#allocation14 + $0x200] sm:$0xff]  ;;  %v7545_v47 = vcombine.low %v2591_v48, %v2599_v1 }
 0x4d7   :  { %v7544_v55 = vcombine.high %v2590_v44, %v2598_v45  ;;  %v7543_v62 = vcombine.low %v2590_v44, %v2598_v45 }
 0x4d8   :  { %2459 = vperm.xlu0 %8340, %v2059_v2   ;;  %2451 = vperm.xlu1 %8338, %v2059_v2  }
 0x4d9   :  { %7463 = vmatmul.mubr.msk.f32.vlgmr.msra.gmra.mrb[26].mxu0 %vm2048_vm9, %v2059_v2  ;;  %7466 = vmatmul.mubr.msk.f32.vlgmr.msra.gmra.mrb[26].mxu1 %vm2048_vm9, %v2059_v2 }
 0x4da   :  { %7468 = vmatpush1.msk.msra.mxu0 %vm2077_vm10, %v2062_v57  ;;  %2302 = vmatprep.mubr.f32.mxu0 %v9076_v59  ;;  %v7546_v57 = vcombine.high %v2591_v48, %v2599_v1  ;;  %v2686_v48 = vld [vmem:[#allocation14 + $0x500] sm:$0xff] }
 0x4db   :  { %7471 = vmatpush1.msk.msra.mxu1 %vm2077_vm10, %v2063_v58  ;;  %2373 = vmatprep.mubr.f32.mxu1 %v9076_v59  ;;  %v2606_v58 = vld [vmem:[#allocation14 + $0x280] sm:$0xff] }
 0x4dc   :  { %8339 = vset.pattern.permute.xlu1 %v9077_v50  ;;  %8195 = vmatprep.subr.mxu0 %v9076_v59  ;;  %v2622_v50 = vld [vmem:[#allocation14 + $0x300] sm:$0xff] }
 0x4dd   :  { %7469 = vmatmul.mubr.msk.f32.vlgmr.msra.gmra.mrb[28].mxu0 %vm2048_vm9, %v2059_v2  ;;  %7472 = vmatmul.mubr.msk.f32.vlgmr.msra.gmra.mrb[28].mxu1 %vm2048_vm9, %v2059_v2  ;;  %v2694_v1 = vld [vmem:[#allocation14 + $0x540] sm:$0xff] }
 0x4de   :  { %2455 = vperm.xlu1 %8339, %v2059_v2   ;;  %8196 = vmatpush3.msk.msra.mxu0 %vm2077_vm10, %v2064_v3  ;;  %v7562_v3 = vcombine.high %v2607_v60, %v2615_v61 }
 0x4df   :  { %8197 = vmatprep.mubr.msk.f32.mxu0 %vm9078_vm11, %v9076_v59  ;;  %8342 = vset.pattern.permute.xlu0 %v9079_v4  ;;  %v2614_v59 = vld [vmem:[#allocation14 + $0x2c0] sm:$0xff] }
 0x4e0   :  { %5598 = vmatprep.subr.bf16.mxu1 %v7480_v52  ;;  %5680 = vmatprep.subr.bf16.mxu0 %v7482_v17  ;;  %v7559_v6 = vcombine.low %v2606_v58, %v2614_v59  ;;  %v2647_v17 = vld [vmem:[#allocation14 + $0x3c8] sm:$0xff] }
 0x4e1   :  { %8198 = vmatmul.mubr.msk.f32.vlgmr.msra.gmra.mrb[30].mxu0 %vm2048_vm9, %v2059_v2  ;;  %5599 = vmatpush1.bf16.msra.mxu1 %v7479_v46  ;;  %v7561_v46 = vcombine.low %v2607_v60, %v2615_v61  ;;  %v2702_v60 = vld [vmem:[#allocation14 + $0x580] sm:$0xff] }
 0x4e2   :  { %8341 = vset.pattern.permute.xlu1 %v9079_v4  ;;  %5681 = vmatpush1.bf16.msra.mxu0 %v7481_v16  ;;  %v2630_v4 = vld [vmem:[#allocation14 + $0x340] sm:$0xff]  ;;  %v2639_v16 = vld [vmem:[#allocation14 + $0x388] sm:$0xff] }
 0x4e3   :  { %2463 = vperm.xlu1 %8341, %v2059_v2   ;;  %5600 = vmatprep.subr.bf16.mxu1 %v7496_v19  ;;  %v7560_v2 = vcombine.high %v2606_v58, %v2614_v59  ;;  %v7576_v52 = vcombine.high %v2622_v50, %v2630_v4  ;;  %v7575_v19 = vcombine.low %v2622_v50, %v2630_v4  ;;  %v2710_v61 = vld [vmem:[#allocation14 + $0x5c0] sm:$0xff] }
 0x4e4   :  { %5682 = vmatprep.subr.bf16.mxu0 %v7498_v24  ;;  %v7594_v23 = vcombine.high %v2639_v16, %v2647_v17  ;;  %v2654_v24 = vld [vmem:[#allocation14 + $0x400] sm:$0xff] }
 0x4e5   :  { %5601 = vmatpush1.bf16.msra.mxu1 %v7495_v30  ;;  %v7591_v30 = vcombine.low %v2638_v12, %v2646_v14  ;;  %v7607_v34 = vcombine.low %v2654_v24, %v2662_v26 }
 0x4e6   :  { %5683 = vmatpush1.bf16.msra.mxu0 %v7497_v31  ;;  %5602 = vmatprep.subr.bf16.mxu1 %v7512_v32  ;;  %v7593_v31 = vcombine.low %v2639_v16, %v2647_v17  ;;  %v7608_v32 = vcombine.high %v2654_v24, %v2662_v26  ;;  %v2734_v16 = vld [vmem:[#allocation14 + $0x680] sm:$0xff] }
 0x4e7   :  { %5684 = vmatprep.subr.bf16.mxu0 %v7514_v33  ;;  %v7610_v33 = vcombine.high %v2655_v27, %v2663_v29  ;;  %v2742_v17 = vld [vmem:[#allocation14 + $0x6c0] sm:$0xff] }
 0x4e8   :  { %v2750_v27 = vld [vmem:[#allocation14 + $0x700] sm:$0xff] }
 0x4e9   :  { %5603 = vmatpush1.bf16.msra.mxu1 %v7511_v38  ;;  %v2671_v38 = vld [vmem:[#allocation14 + $0x488] sm:$0xff]  ;;  %v2758_v29 = vld [vmem:[#allocation14 + $0x740] sm:$0xff] }
 0x4ea   :  { %5685 = vmatpush1.bf16.msra.mxu0 %v7513_v39  ;;  %5604 = vmatprep.subr.bf16.mxu1 %v7528_v40  ;;  %v7624_v39 = vcombine.high %v2670_v36, %v2678_v37  ;;  %v2679_v40 = vld [vmem:[#allocation14 + $0x4c8] sm:$0xff] }
 0x4eb   :  { %5686 = vmatprep.subr.bf16.mxu0 %v7530_v42  ;;  %v7623_v42 = vcombine.low %v2670_v36, %v2678_v37  ;;  %v7625_v44 = vcombine.low %v2671_v38, %v2679_v40  ;;  %v7626_v45 = vcombine.high %v2671_v38, %v2679_v40  ;;  %v2766_v36 = vld [vmem:[#allocation14 + $0x780] sm:$0xff]  ;;  %v2767_v38 = vld [vmem:[#allocation14 + $0x788] sm:$0xff] }
 0x4ec   :  { %v2774_v37 = vld [vmem:[#allocation14 + $0x7c0] sm:$0xff]  ;;  %v2775_v40 = vld [vmem:[#allocation14 + $0x7c8] sm:$0xff] }
 0x4ed   :  { %5605 = vmatpush1.bf16.msra.mxu1 %v7527_v51  ;;  %v2687_v51 = vld [vmem:[#allocation14 + $0x508] sm:$0xff] }
 0x4ee   :  { %5687 = vmatpush1.bf16.msra.mxu0 %v7529_v53  ;;  %5606 = vmatprep.subr.bf16.mxu1 %v7544_v55  ;;  %v7640_v53 = vcombine.high %v2686_v48, %v2694_v1  ;;  %v2695_v55 = vld [vmem:[#allocation14 + $0x548] sm:$0xff] }
 0x4ef   :  { %5688 = vmatprep.subr.bf16.mxu0 %v7546_v57  ;;  %v7639_v57 = vcombine.low %v2686_v48, %v2694_v1  ;;  %v7641_v58 = vcombine.low %v2687_v51, %v2695_v55  ;;  %v7642_v59 = vcombine.high %v2687_v51, %v2695_v55  ;;  %v9557_v48 = vld [vmem:[#allocation14 + $0x800] sm:$0xff]  ;;  %v9561_v51 = vld [vmem:[#allocation14 + $0x808] sm:$0xff] }
 0x4f0   :  { %v9559_v1 = vld [vmem:[#allocation14 + $0x840] sm:$0xff]  ;;  %v9565_v55 = vld [vmem:[#allocation14 + $0x848] sm:$0xff] }
 0x4f1   :  { %5607 = vmatpush1.bf16.msra.mxu1 %v7543_v62  ;;  %v2703_v62 = vld [vmem:[#allocation14 + $0x588] sm:$0xff] }
 0x4f2   :  { %5689 = vmatpush1.bf16.msra.mxu0 %v7545_v47  ;;  %5608 = vmatprep.subr.bf16.mxu1 %v7560_v2  ;;  %v7656_v47 = vcombine.high %v2702_v60, %v2710_v61  ;;  %v2711_v2 = vld [vmem:[#allocation14 + $0x5c8] sm:$0xff] }
 0x4f3   :  { %5690 = vmatprep.subr.bf16.mxu0 %v7562_v3  ;;  %v7655_v3 = vcombine.low %v2702_v60, %v2710_v61  ;;  %v7657_v50 = vcombine.low %v2703_v62, %v2711_v2  ;;  %v7658_v4 = vcombine.high %v2703_v62, %v2711_v2 }
 0x4f5   :  { %5609 = vmatpush1.bf16.msra.mxu1 %v7559_v6  ;;  %v2719_v6 = vld [vmem:[#allocation14 + $0x608] sm:$0xff] }
 0x4f6   :  { %5691 = vmatpush1.bf16.msra.mxu0 %v7561_v46  ;;  %5610 = vmatprep.subr.bf16.mxu1 %v7576_v52  ;;  %v7672_v46 = vcombine.high %v2718_v5, %v2726_v49  ;;  %v2727_v52 = vld [vmem:[#allocation14 + $0x648] sm:$0xff] }
 0x4f7   :  { %5692 = vmatprep.subr.bf16.mxu0 %v7578_v8  ;;  %v7671_v8 = vcombine.low %v2718_v5, %v2726_v49  ;;  %v7673_v12 = vcombine.low %v2719_v6, %v2727_v52  ;;  %v7674_v14 = vcombine.high %v2719_v6, %v2727_v52 }
 0x4f9   :  { %5611 = vmatpush1.bf16.msra.mxu1 %v7575_v19  ;;  %v2735_v19 = vld [vmem:[#allocation14 + $0x688] sm:$0xff] }
 0x4fa   :  { %5693 = vmatpush1.bf16.msra.mxu0 %v7577_v21  ;;  %5612 = vmatprep.subr.bf16.mxu1 %v7592_v22  ;;  %v7688_v21 = vcombine.high %v2734_v16, %v2742_v17  ;;  %v2743_v22 = vld [vmem:[#allocation14 + $0x6c8] sm:$0xff] }
 0x4fb   :  { %5694 = vmatprep.subr.bf16.mxu0 %v7594_v23  ;;  %v7687_v23 = vcombine.low %v2734_v16, %v2742_v17  ;;  %v7689_v24 = vcombine.low %v2735_v19, %v2743_v22  ;;  %v7690_v26 = vcombine.high %v2735_v19, %v2743_v22 }
 0x4fd   :  { %5613 = vmatpush1.bf16.msra.mxu1 %v7591_v30  ;;  %v2751_v30 = vld [vmem:[#allocation14 + $0x708] sm:$0xff] }
 0x4fe   :  { %5695 = vmatpush1.bf16.msra.mxu0 %v7593_v31  ;;  %5614 = vmatprep.subr.bf16.mxu1 %v7608_v32  ;;  %v7704_v31 = vcombine.high %v2750_v27, %v2758_v29  ;;  %v2759_v32 = vld [vmem:[#allocation14 + $0x748] sm:$0xff] }
 0x4ff   :  { %5696 = vmatprep.subr.bf16.mxu0 %v7610_v33  ;;  %v7703_v33 = vcombine.low %v2750_v27, %v2758_v29 }
 0x501   :  { %5615 = vmatpush1.bf16.msra.mxu1 %v7607_v34  ;;  %v7705_v34 = vcombine.low %v2751_v30, %v2759_v32 }
 0x502   :  { %5697 = vmatpush1.bf16.msra.mxu0 %v7609_v35  ;;  %5616 = vmatprep.subr.bf16.mxu1 %v7624_v39  ;;  %v7706_v35 = vcombine.high %v2751_v30, %v2759_v32  ;;  %v7720_v39 = vcombine.high %v2766_v36, %v2774_v37 }
 0x503   :  { %5698 = vmatprep.subr.bf16.mxu0 %v7626_v45  ;;  %v7722_v45 = vcombine.high %v2767_v38, %v2775_v40 }
 0x505   :  { %5617 = vmatpush1.bf16.msra.mxu1 %v7623_v42  ;;  %v7719_v42 = vcombine.low %v2766_v36, %v2774_v37 }
 0x506   :  { %5699 = vmatpush1.bf16.msra.mxu0 %v7625_v44  ;;  %5618 = vmatprep.subr.bf16.mxu1 %v7640_v53  ;;  %v7721_v44 = vcombine.low %v2767_v38, %v2775_v40  ;;  %v7736_v53 = vcombine.high %v9557_v48, %v9559_v1 }
 0x507   :  { %5700 = vmatprep.subr.bf16.mxu0 %v7642_v59  ;;  %v7738_v59 = vcombine.high %v9561_v51, %v9565_v55 }
 0x509   :  { %5619 = vmatpush1.bf16.msra.mxu1 %v7639_v57  ;;  %v7735_v57 = vcombine.low %v9557_v48, %v9559_v1 }
 0x50a   :  { %5701 = vmatpush1.bf16.msra.mxu0 %v7641_v58  ;;  %5620 = vmatprep.subr.bf16.mxu1 %v7656_v47  ;;  %v7737_v58 = vcombine.low %v9561_v51, %v9565_v55 }
 0x50b   :  { %5702 = vmatprep.subr.bf16.mxu0 %v7658_v4 }
 0x50d   :  { %5621 = vmatpush1.bf16.msra.mxu1 %v7655_v3 }
 0x50e   :  { %5703 = vmatpush1.bf16.msra.mxu0 %v7657_v50  ;;  %5622 = vmatprep.subr.bf16.mxu1 %v7672_v46 }
 0x50f   :  { %5704 = vmatprep.subr.bf16.mxu0 %v7674_v14 }
 0x511   :  { %5623 = vmatpush1.bf16.msra.mxu1 %v7671_v8 }
 0x512   :  { %5705 = vmatpush1.bf16.msra.mxu0 %v7673_v12  ;;  %5624 = vmatprep.subr.bf16.mxu1 %v7688_v21 }
 0x513   :  { %5706 = vmatprep.subr.bf16.mxu0 %v7690_v26 }
 0x515   :  { %5625 = vmatpush1.bf16.msra.mxu1 %v7687_v23 }
 0x516   :  { %5707 = vmatpush1.bf16.msra.mxu0 %v7689_v24  ;;  %5626 = vmatprep.subr.bf16.mxu1 %v7704_v31 }
 0x517   :  { %5708 = vmatprep.subr.bf16.mxu0 %v7706_v35 }
 0x519   :  { %5627 = vmatpush1.bf16.msra.mxu1 %v7703_v33 }
 0x51a   :  { %5709 = vmatpush1.bf16.msra.mxu0 %v7705_v34  ;;  %5628 = vmatprep.subr.bf16.mxu1 %v7720_v39 }
 0x51b   :  { %5710 = vmatprep.subr.bf16.mxu0 %v7722_v45 }
 0x51d   :  { %5629 = vmatpush1.bf16.msra.mxu1 %v7719_v42 }
 0x51e   :  { %5711 = vmatpush1.bf16.msra.mxu0 %v7721_v44  ;;  %5639 = vmatprep.subr.bf16.mxu1 %v7736_v53 }
 0x51f   :  { %5721 = vmatprep.subr.bf16.mxu0 %v7738_v59 }
 0x557   :  { %v9573_v60 = vpop.permute.xlu1 %2451  ;;  %v9577_v62 = vpop.permute.xlu0 %2459 }
 0x558   :  { %v2466_v47 = vmul.f32 %v9573_v60, %v9306_v9  ;;  %v2468_v2 = vmul.f32 %v9573_v60, %v9310_v13  ;;  %v2467_v4 = vmul.f32 %v9573_v60, %v9308_v11  ;;  %v2469_v5 = vmul.f32 %v9573_v60, %v9312_v15 }
 0x559   :  { %v2483_v21 = vmul.f32 %v9577_v62, %v9324_v43 }
 0x55d   :  { %v9575_v61 = vpop.permute.xlu1 %2455 }
 0x55e   :  { %v2474_v6 = vmul.f32 %v9575_v61, %v9314_v18  ;;  %v2476_v52 = vmul.f32 %v9575_v61, %v9318_v25  ;;  %v2475_v14 = vmul.f32 %v9575_v61, %v9316_v20  ;;  %v2477_v15 = vmul.f32 %v9575_v61, %v9320_v28 }
 0x55f   :  { %v2482_v18 = vmul.f32 %v9577_v62, %v9322_v41  ;;  %v2484_v25 = vmul.f32 %v9577_v62, %v9326_v54  ;;  %v2485_v20 = vmul.f32 %v9577_v62, %v9328_v56 }
 0x562   :  { %v9591_v12 = vpop.permute.xlu1 %2463 }
 0x563   :  { %v2490_v41 = vmul.f32 %v9591_v12, %v9330_v63  ;;  %v2492_v54 = vmul.f32 %v9591_v12, %v9334_v7  ;;  %v2491_v56 = vmul.f32 %v9591_v12, %v9332_v0  ;;  %v2493_v31 = vmul.f32 %v9591_v12, %v9336_v10 }
 0x5ac   :  { %v2162_v3 = vpop.f32.mrb[26].mxu0  ;;  %v2233_v50 = vpop.f32.mrb[26].mxu1 }
 0x5ad   :  { %v2470_v49 = vadd.f32 %v2466_v47, %v2162_v3  ;;  %v2472_v46 = vadd.f32 %v2468_v2, %v2233_v50  ;;  %v2164_v9 = vpop.f32.mrb[27].mxu0  ;;  %v2235_v8 = vpop.f32.mrb[27].mxu1  ;;  %v2798_v2 = vld [vmem:[#allocation14 + $0x880] sm:$0xff] }
 0x5ae   :  { %v2471_v13 = vadd.f32 %v2467_v4, %v2164_v9  ;;  %v2473_v11 = vadd.f32 %v2469_v5, %v2235_v8  ;;  %v2806_v50 = vld [vmem:[#allocation14 + $0x8c0] sm:$0xff]  ;;  %v2799_v4 = vld [vmem:[#allocation14 + $0x888] sm:$0xff] }
 0x5af   :  { %v2478_v16 = vadd.f32 %v2474_v6, %v2470_v49  ;;  %v2480_v17 = vadd.f32 %v2476_v52, %v2472_v46  ;;  %v2807_v5 = vld [vmem:[#allocation14 + $0x8c8] sm:$0xff]  ;;  %v2814_v52 = vld [vmem:[#allocation14 + $0x900] sm:$0xff]  ;;  %v7752_v9 = vcombine.high %v2798_v2, %v2806_v50 }
 0x5b0   :  { %v2479_v19 = vadd.f32 %v2475_v14, %v2471_v13  ;;  %v2481_v22 = vadd.f32 %v2477_v15, %v2473_v11  ;;  %v9605_v23 = vpop.f32.mrb[28].mxu0  ;;  %v9607_v24 = vpop.f32.mrb[28].mxu1  ;;  %v7754_v8 = vcombine.high %v2799_v4, %v2807_v5  ;;  %v2822_v13 = vld [vmem:[#allocation14 + $0x940] sm:$0xff]  ;;  %v2815_v14 = vld [vmem:[#allocation14 + $0x908] sm:$0xff] }
 0x5b1   :  { %v2486_v28 = vadd.f32 %v2482_v18, %v2478_v16  ;;  %v2488_v26 = vadd.f32 %v2484_v25, %v2480_v17  ;;  %v9613_v27 = vpop.f32.mrb[29].mxu0  ;;  %v9615_v29 = vpop.f32.mrb[29].mxu1  ;;  %v2823_v11 = vld [vmem:[#allocation14 + $0x948] sm:$0xff]  ;;  %v7751_v16 = vcombine.low %v2798_v2, %v2806_v50  ;;  %v7753_v18 = vcombine.low %v2799_v4, %v2807_v5 }
 0x5b2   :  { %v2487_v43 = vadd.f32 %v2483_v21, %v2479_v19  ;;  %v2489_v30 = vadd.f32 %v2485_v20, %v2481_v22  ;;  %v7768_v17 = vcombine.high %v2814_v52, %v2822_v13  ;;  %v7770_v25 = vcombine.high %v2815_v14, %v2823_v11  ;;  %v2830_v19 = vld [vmem:[#allocation14 + $0x980] sm:$0xff]  ;;  %v2831_v22 = vld [vmem:[#allocation14 + $0x988] sm:$0xff] }
 0x5b3   :  { %v2494_v32 = vadd.f32 %v2490_v41, %v2486_v28  ;;  %v9621_v33 = vadd.f32 %v2492_v54, %v2488_v26  ;;  %v2838_v21 = vld [vmem:[#allocation14 + $0x9c0] sm:$0xff]  ;;  %v2839_v20 = vld [vmem:[#allocation14 + $0x9c8] sm:$0xff]  ;;  %v7767_v48 = vcombine.low %v2814_v52, %v2822_v13  ;;  %v7769_v1 = vcombine.low %v2815_v14, %v2823_v11 }
 0x5b4   :  { %v2495_v63 = vadd.f32 %v2491_v56, %v2487_v43  ;;  %v2497_v34 = vadd.f32 %v2493_v31, %v2489_v30  ;;  %v9623_v35 = vpop.f32.mrb[30].mxu0  ;;  %v7784_v51 = vcombine.high %v2830_v19, %v2838_v21  ;;  %v7786_v55 = vcombine.high %v2831_v22, %v2839_v20  ;;  %v2847_v28 = vld [vmem:[#allocation14 + $0xa08] sm:$0xff]  ;;  %v2862_v30 = vld [vmem:[#allocation14 + $0xa80] sm:$0xff] }
 0x5b5   :  { %v2502_v7 = vmin.f32 %v2494_v32, 0.0  ;;  %v8199_v36 = vpop.f32.mrb[31].mxu0  ;;  %vm2498_vm12 = vcmp.gt.f32.partialorder %v2494_v32, 0.0  ;;  %v2855_v41 = vld [vmem:[#allocation14 + $0xa48] sm:$0xff]  ;;  %v7783_v26 = vcombine.low %v2830_v19, %v2838_v21  ;;  %v7785_v54 = vcombine.low %v2831_v22, %v2839_v20  ;;  %v2870_v31 = vld [vmem:[#allocation14 + $0xac0] sm:$0xff] }
 0x5b6   :  { %v2503_v37 = vmin.f32 %v2495_v63, 0.0  ;;  %v2505_v38 = vmin.f32 %v2497_v34, 0.0  ;;  %vm2499_vm13 = vcmp.gt.f32.partialorder %v2495_v63, 0.0  ;;  %vm2501_vm14 = vcmp.gt.f32.partialorder %v2497_v34, 0.0  ;;  %v2903_v2 = vld [vmem:[#allocation14 + $0xbc8] sm:$0xff]  ;;  %v2918_v52 = vld [vmem:[#allocation14 + $0xc40] sm:$0xff] }
 0x5b7   :  { %v2506_v39 = vmul.f32 1.442695, %v2502_v7  ;;  %v7802_v56 = vcombine.high %v2847_v28, %v2855_v41  ;;  %v7801_v7 = vcombine.low %v2847_v28, %v2855_v41  ;;  %v7816_v36 = vcombine.high %v2862_v30, %v2870_v31  ;;  %v2935_v19 = vld [vmem:[#allocation14 + $0xcc8] sm:$0xff] }
 0x5b8   :  { %v2508_v40 = vmul.f32 1.442695, %v2503_v37  ;;  %v2512_v42 = vmul.f32 1.442695, %v2505_v38  ;;  %v2878_v38 = vld [vmem:[#allocation14 + $0xb00] sm:$0xff]  ;;  %v2504_v41 = vmin.f32 %v9621_v33, 0.0 }
 0x5b9   :  { %8811 = vpow2.f32 %v2506_v39  ;;  %v2886_v39 = vld [vmem:[#allocation14 + $0xb40] sm:$0xff]  ;;  %vm2500_vm15 = vcmp.gt.f32.partialorder %v9621_v33, 0.0 }
 0x5ba   :  { %8813 = vpow2.f32 %v2508_v40  ;;  %v2879_v40 = vld [vmem:[#allocation14 + $0xb08] sm:$0xff] }
 0x5bb   :  { %8815 = vpow2.f32 %v2512_v42  ;;  %v2887_v42 = vld [vmem:[#allocation14 + $0xb48] sm:$0xff] }
 0x5bc   :  { %v7833_v50 = vcombine.low %v2879_v40, %v2887_v42 }
 0x5c3   :  { %v8812_v0 = vpop.eup %8811 }
 0x5c4   :  { %v7475_v44 = vadd.f32 -1.0, %v8812_v0  ;;  %v8814_v10 = vpop.eup %8813  ;;  %v7815_v0 = vcombine.low %v2862_v30, %v2870_v31  ;;  %v2959_v30 = vld [vmem:[#allocation14 + $0xd88] sm:$0xff] }
 0x5c5   :  { %v8816_v45 = vpop.eup %8815  ;;  %v7476_v53 = vadd.f32 -1.0, %v8814_v10  ;;  %v7832_v10 = vcombine.high %v2878_v38, %v2886_v39  ;;  %v2967_v31 = vld [vmem:[#allocation14 + $0xdc8] sm:$0xff] }
 0x5c6   :  { %v2518_v59 = vsel %vm2498_vm12, %v2494_v32, %v7475_v44  ;;  %v7478_v47 = vadd.f32 -1.0, %v8816_v45  ;;  %v2863_v32 = vld [vmem:[#allocation14 + $0xa88] sm:$0xff]  ;;  %v7834_v45 = vcombine.high %v2879_v40, %v2887_v42 }
 0x5c7   :  { %v2519_v3 = vsel %vm2499_vm13, %v2495_v63, %v7476_v53  ;;  %v9627_v46 = vpack.c.bf16 %v2518_v59, %v2518_v59  ;;  %v2871_v63 = vld [vmem:[#allocation14 + $0xac8] sm:$0xff]  ;;  %v2894_v53 = vld [vmem:[#allocation14 + $0xb80] sm:$0xff] }
 0x5c8   :  { %v9625_v49 = vpack.c.bf16 %v2519_v3, %v2519_v3  ;;  %v2521_v6 = vsel %vm2501_vm14, %v2497_v34, %v7478_v47  ;;  %v7818_v37 = vcombine.high %v2863_v32, %v2871_v63  ;;  %v7817_v44 = vcombine.low %v2863_v32, %v2871_v63  ;;  %v2902_v59 = vld [vmem:[#allocation14 + $0xbc0] sm:$0xff]  ;;  %v2895_v47 = vld [vmem:[#allocation14 + $0xb88] sm:$0xff] }
 0x5c9   :  { %v9631_v15 = vpack.c.bf16 %v2521_v6, %v2521_v6  ;;  %v7831_v3 = vcombine.low %v2878_v38, %v2886_v39  ;;  %v7848_v4 = vcombine.high %v2894_v53, %v2902_v59  ;;  %v7850_v5 = vcombine.high %v2895_v47, %v2903_v2  ;;  %v2910_v6 = vld [vmem:[#allocation14 + $0xc00] sm:$0xff]  ;;  %v2975_v39 = vld [vmem:[#allocation14 + $0xe08] sm:$0xff] }
 0x5ca   :  { %5630 = vmatprep.mubr.bf16.mxu1 %v9625_v49  ;;  %5712 = vmatprep.mubr.bf16.mxu0 %v9625_v49  ;;  %v7847_v13 = vcombine.low %v2894_v53, %v2902_v59  ;;  %v7849_v14 = vcombine.low %v2895_v47, %v2903_v2  ;;  %v7864_v11 = vcombine.high %v2910_v6, %v2918_v52  ;;  %v2982_v38 = vld [vmem:[#allocation14 + $0xe40] sm:$0xff]  ;;  %v2983_v40 = vld [vmem:[#allocation14 + $0xe48] sm:$0xff] }
 0x5cb   :  { %5631 = vmatmul.mubr.bf16.vlgmr.msra.gmra.mrb[32].mxu1 %v9627_v46  ;;  %5713 = vmatmul.mubr.bf16.vlgmr.msra.gmra.mrb[32].mxu0 %v9627_v46  ;;  %v7863_v21 = vcombine.low %v2910_v6, %v2918_v52  ;;  %v2998_v53 = vld [vmem:[#allocation14 + $0xec0] sm:$0xff]  ;;  %v2991_v59 = vld [vmem:[#allocation14 + $0xe88] sm:$0xff] }
 0x5cc   :  { %5640 = vmatpush1.bf16.msra.mxu1 %v7735_v57  ;;  %5722 = vmatpush1.bf16.msra.mxu0 %v7737_v58  ;;  %v2846_v57 = vld [vmem:[#allocation14 + $0xa00] sm:$0xff]  ;;  %v2999_v47 = vld [vmem:[#allocation14 + $0xec8] sm:$0xff] }
 0x5cd   :  { %5671 = vmatprep.mubr.bf16.mxu1 %v9631_v15  ;;  %5753 = vmatprep.mubr.bf16.mxu0 %v9631_v15  ;;  %v2854_v58 = vld [vmem:[#allocation14 + $0xa40] sm:$0xff]  ;;  %v3007_v52 = vld [vmem:[#allocation14 + $0xf08] sm:$0xff] }
 0x5ce   :  { %5641 = vmatprep.subr.bf16.mxu1 %v7752_v9  ;;  %5723 = vmatprep.subr.bf16.mxu0 %v7754_v8  ;;  %v7800_v43 = vcombine.high %v2846_v57, %v2854_v58  ;;  %v7799_v34 = vcombine.low %v2846_v57, %v2854_v58  ;;  %v2911_v9 = vld [vmem:[#allocation14 + $0xc08] sm:$0xff]  ;;  %v3014_v6 = vld [vmem:[#allocation14 + $0xf40] sm:$0xff] }
 0x5cf   :  { %v2919_v8 = vld [vmem:[#allocation14 + $0xc48] sm:$0xff] }
 0x5d0   :  { %5642 = vmatpush1.bf16.msra.mxu1 %v7751_v16  ;;  %5724 = vmatpush1.bf16.msra.mxu0 %v7753_v18  ;;  %v7866_v16 = vcombine.high %v2911_v9, %v2919_v8  ;;  %v2926_v18 = vld [vmem:[#allocation14 + $0xc80] sm:$0xff]  ;;  %v7865_v22 = vcombine.low %v2911_v9, %v2919_v8  ;;  %v2951_v57 = vld [vmem:[#allocation14 + $0xd48] sm:$0xff] }
 0x5d1   :  { %5643 = vmatprep.subr.bf16.mxu1 %v7768_v17  ;;  %5725 = vmatprep.subr.bf16.mxu0 %v7770_v25  ;;  %v2934_v17 = vld [vmem:[#allocation14 + $0xcc0] sm:$0xff]  ;;  %v2927_v25 = vld [vmem:[#allocation14 + $0xc88] sm:$0xff] }
 0x5d2   :  { %v7880_v20 = vcombine.high %v2926_v18, %v2934_v17  ;;  %v7879_v58 = vcombine.low %v2926_v18, %v2934_v17  ;;  %v7881_v28 = vcombine.low %v2927_v25, %v2935_v19  ;;  %v3015_v9 = vld [vmem:[#allocation14 + $0xf48] sm:$0xff]  ;;  %v3030_v18 = vld [vmem:[#allocation14 + $0xfc0] sm:$0xff] }
 0x5d3   :  { %v3023_v17 = vld [vmem:[#allocation14 + $0xf88] sm:$0xff] }
 0x5d4   :  { %5644 = vmatpush1.bf16.msra.mxu1 %v7767_v48  ;;  %5726 = vmatpush1.bf16.msra.mxu0 %v7769_v1  ;;  %v7882_v48 = vcombine.high %v2927_v25, %v2935_v19  ;;  %v2942_v1 = vld [vmem:[#allocation14 + $0xd00] sm:$0xff]  ;;  %v3031_v25 = vld [vmem:[#allocation14 + $0xfc8] sm:$0xff] }
 0x5d5   :  { %5645 = vmatprep.subr.bf16.mxu1 %v7784_v51  ;;  %5727 = vmatprep.subr.bf16.mxu0 %v7786_v55  ;;  %v2950_v51 = vld [vmem:[#allocation14 + $0xd40] sm:$0xff]  ;;  %v2943_v55 = vld [vmem:[#allocation14 + $0xd08] sm:$0xff] }
 0x5d6   :  { %v7895_v32 = vcombine.low %v2942_v1, %v2950_v51  ;;  %v7897_v63 = vcombine.low %v2943_v55, %v2951_v57 }
 0x5d8   :  { %5646 = vmatpush1.bf16.msra.mxu1 %v7783_v26  ;;  %5728 = vmatpush1.bf16.msra.mxu0 %v7785_v54  ;;  %v7896_v26 = vcombine.high %v2942_v1, %v2950_v51  ;;  %v7898_v54 = vcombine.high %v2943_v55, %v2951_v57  ;;  %v2528_v1 = vld [vmem:[#allocation14 + $0x10] sm:$0xff]  ;;  %v2529_v57 = vld [vmem:[#allocation14 + $0x18] sm:$0xff] }
 0x5d9   :  { %5647 = vmatprep.subr.bf16.mxu1 %v7800_v43  ;;  %5729 = vmatprep.subr.bf16.mxu0 %v7802_v56  ;;  %v2958_v43 = vld [vmem:[#allocation14 + $0xd80] sm:$0xff]  ;;  %v2536_v55 = vld [vmem:[#allocation14 + $0x50] sm:$0xff] }
 0x5da   :  { %v2966_v56 = vld [vmem:[#allocation14 + $0xdc0] sm:$0xff] }
 0x5db   :  { %v7911_v42 = vcombine.low %v2958_v43, %v2966_v56 }
 0x5dc   :  { %5648 = vmatpush1.bf16.msra.mxu1 %v7799_v34  ;;  %5730 = vmatpush1.bf16.msra.mxu0 %v7801_v7  ;;  %v2510_v34 = vmul.f32 1.442695, %v2504_v41  ;;  %v7912_v7 = vcombine.high %v2958_v43, %v2966_v56  ;;  %v7977_v41 = vcombine.low %v3023_v17, %v3031_v25  ;;  %v2544_v56 = vld [vmem:[#allocation14 + $0x90] sm:$0xff] }
 0x5dd   :  { %5649 = vmatprep.subr.bf16.mxu1 %v7816_v36  ;;  %5731 = vmatprep.subr.bf16.mxu0 %v7818_v37  ;;  %v7914_v36 = vcombine.high %v2959_v30, %v2967_v31  ;;  %v2974_v37 = vld [vmem:[#allocation14 + $0xe00] sm:$0xff] }
 0x5de   :  { %8817 = vpow2.f32 %v2510_v34  ;;  %v7927_v2 = vcombine.low %v2974_v37, %v2982_v38 }
 0x5e0   :  { %5650 = vmatpush1.bf16.msra.mxu1 %v7815_v0  ;;  %5732 = vmatpush1.bf16.msra.mxu0 %v7817_v44  ;;  %v7913_v0 = vcombine.low %v2959_v30, %v2967_v31  ;;  %v7928_v44 = vcombine.high %v2974_v37, %v2982_v38  ;;  %v2552_v30 = vld [vmem:[#allocation14 + $0xd0] sm:$0xff]  ;;  %v2545_v31 = vld [vmem:[#allocation14 + $0x98] sm:$0xff] }
 0x5e1   :  { %5651 = vmatprep.subr.bf16.mxu1 %v7832_v10  ;;  %5733 = vmatprep.subr.bf16.mxu0 %v7834_v45  ;;  %v7930_v10 = vcombine.high %v2975_v39, %v2983_v40  ;;  %v2990_v45 = vld [vmem:[#allocation14 + $0xe80] sm:$0xff]  ;;  %v2560_v38 = vld [vmem:[#allocation14 + $0x110] sm:$0xff] }
 0x5e2   :  { %v7943_v8 = vcombine.low %v2990_v45, %v2998_v53 }
 0x5e4   :  { %5652 = vmatpush1.bf16.msra.mxu1 %v7831_v3  ;;  %5734 = vmatpush1.bf16.msra.mxu0 %v7833_v50  ;;  %v7929_v3 = vcombine.low %v2975_v39, %v2983_v40  ;;  %v7944_v50 = vcombine.high %v2990_v45, %v2998_v53  ;;  %v2568_v39 = vld [vmem:[#allocation14 + $0x150] sm:$0xff]  ;;  %v2569_v40 = vld [vmem:[#allocation14 + $0x158] sm:$0xff] }
 0x5e5   :  { %5653 = vmatprep.subr.bf16.mxu1 %v7848_v4  ;;  %5735 = vmatprep.subr.bf16.mxu0 %v7850_v5  ;;  %v7946_v4 = vcombine.high %v2991_v59, %v2999_v47  ;;  %v3006_v5 = vld [vmem:[#allocation14 + $0xf00] sm:$0xff]  ;;  %v2576_v45 = vld [vmem:[#allocation14 + $0x190] sm:$0xff] }
 0x5e6   :  { %v2584_v53 = vld [vmem:[#allocation14 + $0x1d0] sm:$0xff] }
 0x5e8   :  { %5654 = vmatpush1.bf16.msra.mxu1 %v7847_v13  ;;  %5736 = vmatpush1.bf16.msra.mxu0 %v7849_v14  ;;  %v7945_v13 = vcombine.low %v2991_v59, %v2999_v47  ;;  %v7960_v14 = vcombine.high %v3006_v5, %v3014_v6  ;;  %v8818_v19 = vpop.eup %8817  ;;  %v2577_v59 = vld [vmem:[#allocation14 + $0x198] sm:$0xff] }
 0x5e9   :  { %5655 = vmatprep.subr.bf16.mxu1 %v7864_v11  ;;  %5737 = vmatprep.subr.bf16.mxu0 %v7866_v16  ;;  %v7962_v11 = vcombine.high %v3007_v52, %v3015_v9  ;;  %v3022_v16 = vld [vmem:[#allocation14 + $0xf80] sm:$0xff]  ;;  %v7477_v51 = vadd.f32 -1.0, %v8818_v19  ;;  %v2585_v47 = vld [vmem:[#allocation14 + $0x1d8] sm:$0xff] }
 0x5eb   :  { %v2520_v43 = vsel %vm2500_vm15, %v9621_v33, %v7477_v51  ;;  %v2561_v33 = vld [vmem:[#allocation14 + $0x118] sm:$0xff] }
 0x5ec   :  { %5656 = vmatpush1.bf16.msra.mxu1 %v7863_v21  ;;  %5738 = vmatpush1.bf16.msra.mxu0 %v7865_v22  ;;  %v7959_v21 = vcombine.low %v3006_v5, %v3014_v6  ;;  %v7961_v22 = vcombine.low %v3007_v52, %v3015_v9  ;;  %v9646_v34 = vpack.c.bf16 %v2520_v43, %v2520_v43  ;;  %v2592_v5 = vld [vmem:[#allocation14 + $0x210] sm:$0xff]  ;;  %v2593_v52 = vld [vmem:[#allocation14 + $0x218] sm:$0xff] }
 0x5ed   :  { %5657 = vmatprep.subr.bf16.mxu1 %v7880_v20  ;;  %5739 = vmatprep.subr.bf16.mxu0 %v7882_v48  ;;  %v7976_v20 = vcombine.high %v3022_v16, %v3030_v18  ;;  %v7978_v48 = vcombine.high %v3023_v17, %v3031_v25  ;;  %v2600_v6 = vld [vmem:[#allocation14 + $0x250] sm:$0xff]  ;;  %v2601_v9 = vld [vmem:[#allocation14 + $0x258] sm:$0xff] }
 0x5ee   :  { %v2609_v17 = vld [vmem:[#allocation14 + $0x298] sm:$0xff]  ;;  %v7547_v19 = vcombine.low %v2592_v5, %v2600_v6 }
 0x5ef   :  { %v2617_v25 = vld [vmem:[#allocation14 + $0x2d8] sm:$0xff] }
 0x5f0   :  { %5658 = vmatpush1.bf16.msra.mxu1 %v7879_v58  ;;  %5740 = vmatpush1.bf16.msra.mxu0 %v7881_v28  ;;  %v2537_v58 = vld [vmem:[#allocation14 + $0x58] sm:$0xff]  ;;  %v7975_v28 = vcombine.low %v3022_v16, %v3030_v18  ;;  %v2608_v16 = vld [vmem:[#allocation14 + $0x290] sm:$0xff] }
 0x5f1   :  { %5659 = vmatprep.subr.bf16.mxu1 %v7896_v26  ;;  %5741 = vmatprep.subr.bf16.mxu0 %v7898_v54  ;;  %v7484_v26 = vcombine.high %v2528_v1, %v2536_v55  ;;  %v7486_v54 = vcombine.high %v2529_v57, %v2537_v58  ;;  %v2616_v18 = vld [vmem:[#allocation14 + $0x2d0] sm:$0xff]  ;;  %v2625_v51 = vld [vmem:[#allocation14 + $0x318] sm:$0xff] }
 0x5f2   :  { %v2641_v43 = vld [vmem:[#allocation14 + $0x398] sm:$0xff] }
 0x5f4   :  { %5660 = vmatpush1.bf16.msra.mxu1 %v7895_v32  ;;  %5742 = vmatpush1.bf16.msra.mxu0 %v7897_v63  ;;  %v2553_v32 = vld [vmem:[#allocation14 + $0xd8] sm:$0xff]  ;;  %v7483_v63 = vcombine.low %v2528_v1, %v2536_v55  ;;  %v2632_v1 = vld [vmem:[#allocation14 + $0x350] sm:$0xff] }
 0x5f5   :  { %5661 = vmatprep.subr.bf16.mxu1 %v7912_v7  ;;  %5743 = vmatprep.subr.bf16.mxu0 %v7914_v36  ;;  %v7485_v7 = vcombine.low %v2529_v57, %v2537_v58  ;;  %v7500_v36 = vcombine.high %v2544_v56, %v2552_v30  ;;  %v7502_v37 = vcombine.high %v2545_v31, %v2553_v32  ;;  %v2633_v55 = vld [vmem:[#allocation14 + $0x358] sm:$0xff] }
 0x5f6   :  { %v7563_v57 = vcombine.low %v2608_v16, %v2616_v18  ;;  %v7565_v58 = vcombine.low %v2609_v17, %v2617_v25 }
 0x5f8   :  { %5662 = vmatpush1.bf16.msra.mxu1 %v7911_v42  ;;  %5744 = vmatpush1.bf16.msra.mxu0 %v7913_v0  ;;  %v7499_v42 = vcombine.low %v2544_v56, %v2552_v30  ;;  %v7501_v0 = vcombine.low %v2545_v31, %v2553_v32  ;;  %v2649_v56 = vld [vmem:[#allocation14 + $0x3d8] sm:$0xff]  ;;  %v7581_v31 = vcombine.low %v2625_v51, %v2633_v55 }
 0x5f9   :  { %5663 = vmatprep.subr.bf16.mxu1 %v7928_v44  ;;  %5745 = vmatprep.subr.bf16.mxu0 %v7930_v10  ;;  %v7516_v44 = vcombine.high %v2560_v38, %v2568_v39  ;;  %v7518_v10 = vcombine.high %v2561_v33, %v2569_v40 }
 0x5fc   :  { %5664 = vmatpush1.bf16.msra.mxu1 %v7927_v2  ;;  %5746 = vmatpush1.bf16.msra.mxu0 %v7929_v3  ;;  %v7515_v2 = vcombine.low %v2560_v38, %v2568_v39  ;;  %v7517_v3 = vcombine.low %v2561_v33, %v2569_v40  ;;  %v2665_v38 = vld [vmem:[#allocation14 + $0x458] sm:$0xff]  ;;  %v7597_v33 = vcombine.low %v2641_v43, %v2649_v56 }
 0x5fd   :  { %5665 = vmatprep.subr.bf16.mxu1 %v7944_v50  ;;  %5747 = vmatprep.subr.bf16.mxu0 %v7946_v4  ;;  %v7532_v50 = vcombine.high %v2576_v45, %v2584_v53  ;;  %v7534_v4 = vcombine.high %v2577_v59, %v2585_v47 }
 0x600   :  { %5666 = vmatpush1.bf16.msra.mxu1 %v7943_v8  ;;  %5748 = vmatpush1.bf16.msra.mxu0 %v7945_v13  ;;  %v7531_v8 = vcombine.low %v2576_v45, %v2584_v53  ;;  %v7533_v13 = vcombine.low %v2577_v59, %v2585_v47  ;;  %v2681_v45 = vld [vmem:[#allocation14 + $0x4d8] sm:$0xff] }
 0x601   :  { %5667 = vmatprep.subr.bf16.mxu1 %v7960_v14  ;;  %5749 = vmatprep.subr.bf16.mxu0 %v7962_v11  ;;  %v7548_v14 = vcombine.high %v2592_v5, %v2600_v6  ;;  %v7550_v11 = vcombine.high %v2593_v52, %v2601_v9  ;;  %v2697_v5 = vld [vmem:[#allocation14 + $0x558] sm:$0xff] }
 0x604   :  { %5668 = vmatpush1.bf16.msra.mxu1 %v7959_v21  ;;  %5750 = vmatpush1.bf16.msra.mxu0 %v7961_v22  ;;  %v7549_v21 = vcombine.low %v2593_v52, %v2601_v9  ;;  %v7564_v22 = vcombine.high %v2608_v16, %v2616_v18  ;;  %v2713_v16 = vld [vmem:[#allocation14 + $0x5d8] sm:$0xff] }
 0x605   :  { %5669 = vmatprep.subr.bf16.mxu1 %v7976_v20  ;;  %5751 = vmatprep.subr.bf16.mxu0 %v7978_v48  ;;  %v7566_v20 = vcombine.high %v2609_v17, %v2617_v25  ;;  %v2624_v48 = vld [vmem:[#allocation14 + $0x310] sm:$0xff] }
 0x606   :  { %v7579_v30 = vcombine.low %v2624_v48, %v2632_v1 }
 0x608   :  { %5670 = vmatpush1.bf16.msra.mxu1 %v7975_v28  ;;  %5752 = vmatpush1.bf16.msra.mxu0 %v7977_v41  ;;  %v7580_v28 = vcombine.high %v2624_v48, %v2632_v1  ;;  %v7582_v41 = vcombine.high %v2625_v51, %v2633_v55  ;;  %v2729_v48 = vld [vmem:[#allocation14 + $0x658] sm:$0xff] }
 0x609   :  { %5762 = vmatprep.subr.bf16.mxu1 %v7484_v26  ;;  %5844 = vmatprep.subr.bf16.mxu0 %v7486_v54  ;;  %v2640_v26 = vld [vmem:[#allocation14 + $0x390] sm:$0xff] }
 0x60a   :  { %v2648_v54 = vld [vmem:[#allocation14 + $0x3d0] sm:$0xff] }
 0x60b   :  { %5672 = vmatmul.mubr.bf16.vlgmr.msra.gmra.mrb[32].mxu1 %v9646_v34  ;;  %5754 = vmatmul.mubr.bf16.vlgmr.msra.gmra.mrb[32].mxu0 %v9646_v34  ;;  %v7596_v32 = vcombine.high %v2640_v26, %v2648_v54  ;;  %v7595_v39 = vcombine.low %v2640_v26, %v2648_v54  ;;  %v2745_v26 = vld [vmem:[#allocation14 + $0x6d8] sm:$0xff] }
 0x60c   :  { %5763 = vmatpush1.bf16.msra.mxu1 %v7483_v63  ;;  %5794 = vmatprep.mubr.bf16.mxu1 %v9625_v49  ;;  %v7598_v63 = vcombine.high %v2641_v43, %v2649_v56 }
 0x60d   :  { %5845 = vmatpush1.bf16.msra.mxu0 %v7485_v7  ;;  %5876 = vmatprep.mubr.bf16.mxu0 %v9625_v49  ;;  %v2656_v7 = vld [vmem:[#allocation14 + $0x410] sm:$0xff] }
 0x60e   :  { %5764 = vmatprep.subr.bf16.mxu1 %v7500_v36  ;;  %5846 = vmatprep.subr.bf16.mxu0 %v7502_v37  ;;  %v2664_v36 = vld [vmem:[#allocation14 + $0x450] sm:$0xff]  ;;  %v2657_v37 = vld [vmem:[#allocation14 + $0x418] sm:$0xff] }
 0x60f   :  { %v7612_v40 = vcombine.high %v2656_v7, %v2664_v36  ;;  %v7611_v53 = vcombine.low %v2656_v7, %v2664_v36  ;;  %v7613_v59 = vcombine.low %v2657_v37, %v2665_v38  ;;  %v2761_v7 = vld [vmem:[#allocation14 + $0x758] sm:$0xff] }
 0x610   :  { %5765 = vmatpush1.bf16.msra.mxu1 %v7499_v42  ;;  %v7614_v42 = vcombine.high %v2657_v37, %v2665_v38 }
 0x611   :  { %5847 = vmatpush1.bf16.msra.mxu0 %v7501_v0  ;;  %5766 = vmatprep.subr.bf16.mxu1 %v7516_v44  ;;  %v2672_v0 = vld [vmem:[#allocation14 + $0x490] sm:$0xff] }
 0x612   :  { %5848 = vmatprep.subr.bf16.mxu0 %v7518_v10  ;;  %v2680_v44 = vld [vmem:[#allocation14 + $0x4d0] sm:$0xff]  ;;  %v2673_v10 = vld [vmem:[#allocation14 + $0x498] sm:$0xff] }
 0x613   :  { %v7628_v47 = vcombine.high %v2672_v0, %v2680_v44  ;;  %v7627_v6 = vcombine.low %v2672_v0, %v2680_v44  ;;  %v7629_v52 = vcombine.low %v2673_v10, %v2681_v45  ;;  %v2777_v0 = vld [vmem:[#allocation14 + $0x7d8] sm:$0xff] }
 0x614   :  { %5767 = vmatpush1.bf16.msra.mxu1 %v7515_v2  ;;  %v7630_v2 = vcombine.high %v2673_v10, %v2681_v45 }
 0x615   :  { %5849 = vmatpush1.bf16.msra.mxu0 %v7517_v3  ;;  %5768 = vmatprep.subr.bf16.mxu1 %v7532_v50  ;;  %v2688_v3 = vld [vmem:[#allocation14 + $0x510] sm:$0xff] }
 0x616   :  { %5850 = vmatprep.subr.bf16.mxu0 %v7534_v4  ;;  %v2696_v50 = vld [vmem:[#allocation14 + $0x550] sm:$0xff]  ;;  %v2689_v4 = vld [vmem:[#allocation14 + $0x518] sm:$0xff] }
 0x617   :  { %v7644_v9 = vcombine.high %v2688_v3, %v2696_v50  ;;  %v7643_v18 = vcombine.low %v2688_v3, %v2696_v50  ;;  %v7645_v17 = vcombine.low %v2689_v4, %v2697_v5  ;;  %v2793_v3 = vld [vmem:[#allocation14 + $0x858] sm:$0xff] }
 0x618   :  { %5769 = vmatpush1.bf16.msra.mxu1 %v7531_v8  ;;  %v7646_v8 = vcombine.high %v2689_v4, %v2697_v5 }
 0x619   :  { %5851 = vmatpush1.bf16.msra.mxu0 %v7533_v13  ;;  %5770 = vmatprep.subr.bf16.mxu1 %v7548_v14  ;;  %v2704_v13 = vld [vmem:[#allocation14 + $0x590] sm:$0xff] }
 0x61a   :  { %5852 = vmatprep.subr.bf16.mxu0 %v7550_v11  ;;  %v2712_v14 = vld [vmem:[#allocation14 + $0x5d0] sm:$0xff]  ;;  %v2705_v11 = vld [vmem:[#allocation14 + $0x598] sm:$0xff] }
 0x61b   :  { %v7660_v25 = vcombine.high %v2704_v13, %v2712_v14  ;;  %v7659_v1 = vcombine.low %v2704_v13, %v2712_v14  ;;  %v7661_v51 = vcombine.low %v2705_v11, %v2713_v16  ;;  %v2801_v13 = vld [vmem:[#allocation14 + $0x898] sm:$0xff] }
 0x61c   :  { %5771 = vmatpush1.bf16.msra.mxu1 %v7547_v19  ;;  %v7662_v19 = vcombine.high %v2705_v11, %v2713_v16  ;;  %v2809_v14 = vld [vmem:[#allocation14 + $0x8d8] sm:$0xff] }
 0x61d   :  { %5853 = vmatpush1.bf16.msra.mxu0 %v7549_v21  ;;  %5772 = vmatprep.subr.bf16.mxu1 %v7564_v22  ;;  %v2720_v21 = vld [vmem:[#allocation14 + $0x610] sm:$0xff] }
 0x61e   :  { %5854 = vmatprep.subr.bf16.mxu0 %v7566_v20  ;;  %v2728_v22 = vld [vmem:[#allocation14 + $0x650] sm:$0xff]  ;;  %v2721_v20 = vld [vmem:[#allocation14 + $0x618] sm:$0xff] }
 0x61f   :  { %v7676_v55 = vcombine.high %v2720_v21, %v2728_v22  ;;  %v7675_v54 = vcombine.low %v2720_v21, %v2728_v22  ;;  %v7677_v43 = vcombine.low %v2721_v20, %v2729_v48  ;;  %v2825_v21 = vld [vmem:[#allocation14 + $0x958] sm:$0xff] }
 0x620   :  { %5773 = vmatpush1.bf16.msra.mxu1 %v7563_v57  ;;  %v7678_v57 = vcombine.high %v2721_v20, %v2729_v48  ;;  %v7757_v20 = vcombine.low %v2801_v13, %v2809_v14 }
 0x621   :  { %5855 = vmatpush1.bf16.msra.mxu0 %v7565_v58  ;;  %5774 = vmatprep.subr.bf16.mxu1 %v7580_v28  ;;  %v2736_v58 = vld [vmem:[#allocation14 + $0x690] sm:$0xff] }
 0x622   :  { %5856 = vmatprep.subr.bf16.mxu0 %v7582_v41  ;;  %v2744_v28 = vld [vmem:[#allocation14 + $0x6d0] sm:$0xff]  ;;  %v2737_v41 = vld [vmem:[#allocation14 + $0x698] sm:$0xff] }
 0x623   :  { %v7692_v56 = vcombine.high %v2736_v58, %v2744_v28  ;;  %v7691_v36 = vcombine.low %v2736_v58, %v2744_v28  ;;  %v7693_v37 = vcombine.low %v2737_v41, %v2745_v26  ;;  %v2841_v58 = vld [vmem:[#allocation14 + $0x9d8] sm:$0xff] }
 0x624   :  { %5775 = vmatpush1.bf16.msra.mxu1 %v7579_v30  ;;  %v7694_v30 = vcombine.high %v2737_v41, %v2745_v26 }
 0x625   :  { %5857 = vmatpush1.bf16.msra.mxu0 %v7581_v31  ;;  %5776 = vmatprep.subr.bf16.mxu1 %v7596_v32  ;;  %v2752_v31 = vld [vmem:[#allocation14 + $0x710] sm:$0xff] }
 0x626   :  { %5858 = vmatprep.subr.bf16.mxu0 %v7598_v63  ;;  %v2760_v32 = vld [vmem:[#allocation14 + $0x750] sm:$0xff]  ;;  %v2753_v63 = vld [vmem:[#allocation14 + $0x718] sm:$0xff] }
 0x627   :  { %v7708_v38 = vcombine.high %v2752_v31, %v2760_v32  ;;  %v7707_v44 = vcombine.low %v2752_v31, %v2760_v32  ;;  %v7709_v10 = vcombine.low %v2753_v63, %v2761_v7  ;;  %v2857_v31 = vld [vmem:[#allocation14 + $0xa58] sm:$0xff] }
 0x628   :  { %5777 = vmatpush1.bf16.msra.mxu1 %v7595_v39  ;;  %v7710_v39 = vcombine.high %v2753_v63, %v2761_v7 }
 0x629   :  { %5859 = vmatpush1.bf16.msra.mxu0 %v7597_v33  ;;  %5778 = vmatprep.subr.bf16.mxu1 %v7612_v40  ;;  %v2768_v33 = vld [vmem:[#allocation14 + $0x790] sm:$0xff] }
 0x62a   :  { %5860 = vmatprep.subr.bf16.mxu0 %v7614_v42  ;;  %v2776_v40 = vld [vmem:[#allocation14 + $0x7d0] sm:$0xff]  ;;  %v2769_v42 = vld [vmem:[#allocation14 + $0x798] sm:$0xff] }
 0x62b   :  { %v7724_v45 = vcombine.high %v2768_v33, %v2776_v40  ;;  %v7723_v50 = vcombine.low %v2768_v33, %v2776_v40  ;;  %v7725_v4 = vcombine.low %v2769_v42, %v2777_v0  ;;  %v2873_v33 = vld [vmem:[#allocation14 + $0xad8] sm:$0xff] }
 0x62c   :  { %5779 = vmatpush1.bf16.msra.mxu1 %v7611_v53  ;;  %v7726_v53 = vcombine.high %v2769_v42, %v2777_v0 }
 0x62d   :  { %5861 = vmatpush1.bf16.msra.mxu0 %v7613_v59  ;;  %5780 = vmatprep.subr.bf16.mxu1 %v7628_v47  ;;  %v2784_v59 = vld [vmem:[#allocation14 + $0x810] sm:$0xff] }
 0x62e   :  { %5862 = vmatprep.subr.bf16.mxu0 %v7630_v2  ;;  %v2792_v47 = vld [vmem:[#allocation14 + $0x850] sm:$0xff]  ;;  %v2785_v2 = vld [vmem:[#allocation14 + $0x818] sm:$0xff] }
 0x62f   :  { %v7740_v5 = vcombine.high %v2784_v59, %v2792_v47  ;;  %v7741_v11 = vcombine.low %v2785_v2, %v2793_v3 }
 0x630   :  { %5781 = vmatpush1.bf16.msra.mxu1 %v7627_v6  ;;  %v7742_v6 = vcombine.high %v2785_v2, %v2793_v3 }
 0x631   :  { %5863 = vmatpush1.bf16.msra.mxu0 %v7629_v52  ;;  %5782 = vmatprep.subr.bf16.mxu1 %v7644_v9  ;;  %v2800_v52 = vld [vmem:[#allocation14 + $0x890] sm:$0xff] }
 0x632   :  { %5864 = vmatprep.subr.bf16.mxu0 %v7646_v8  ;;  %v2808_v9 = vld [vmem:[#allocation14 + $0x8d0] sm:$0xff]  ;;  %v7739_v8 = vcombine.low %v2784_v59, %v2792_v47  ;;  %v2889_v59 = vld [vmem:[#allocation14 + $0xb58] sm:$0xff] }
 0x633   :  { %v7756_v16 = vcombine.high %v2800_v52, %v2808_v9  ;;  %v7755_v22 = vcombine.low %v2800_v52, %v2808_v9  ;;  %v2905_v52 = vld [vmem:[#allocation14 + $0xbd8] sm:$0xff] }
 0x634   :  { %5783 = vmatpush1.bf16.msra.mxu1 %v7643_v18  ;;  %v2816_v18 = vld [vmem:[#allocation14 + $0x910] sm:$0xff] }
 0x635   :  { %5865 = vmatpush1.bf16.msra.mxu0 %v7645_v17  ;;  %5784 = vmatprep.subr.bf16.mxu1 %v7660_v25  ;;  %v2824_v17 = vld [vmem:[#allocation14 + $0x950] sm:$0xff]  ;;  %v7758_v25 = vcombine.high %v2801_v13, %v2809_v14 }
 0x636   :  { %5866 = vmatprep.subr.bf16.mxu0 %v7662_v19  ;;  %v2817_v19 = vld [vmem:[#allocation14 + $0x918] sm:$0xff]  ;;  %v7772_v48 = vcombine.high %v2816_v18, %v2824_v17  ;;  %v7771_v28 = vcombine.low %v2816_v18, %v2824_v17 }
 0x637   :  { %v7773_v41 = vcombine.low %v2817_v19, %v2825_v21  ;;  %v2913_v18 = vld [vmem:[#allocation14 + $0xc18] sm:$0xff] }
 0x638   :  { %5785 = vmatpush1.bf16.msra.mxu1 %v7659_v1  ;;  %v7774_v1 = vcombine.high %v2817_v19, %v2825_v21  ;;  %v2921_v17 = vld [vmem:[#allocation14 + $0xc58] sm:$0xff] }
 0x639   :  { %5867 = vmatpush1.bf16.msra.mxu0 %v7661_v51  ;;  %5786 = vmatprep.subr.bf16.mxu1 %v7676_v55  ;;  %v2832_v51 = vld [vmem:[#allocation14 + $0x990] sm:$0xff] }
 0x63a   :  { %5868 = vmatprep.subr.bf16.mxu0 %v7678_v57  ;;  %v2840_v55 = vld [vmem:[#allocation14 + $0x9d0] sm:$0xff]  ;;  %v2833_v57 = vld [vmem:[#allocation14 + $0x998] sm:$0xff] }
 0x63b   :  { %v7788_v26 = vcombine.high %v2832_v51, %v2840_v55  ;;  %v7787_v32 = vcombine.low %v2832_v51, %v2840_v55  ;;  %v7789_v63 = vcombine.low %v2833_v57, %v2841_v58  ;;  %v2937_v51 = vld [vmem:[#allocation14 + $0xcd8] sm:$0xff] }
 0x63c   :  { %5787 = vmatpush1.bf16.msra.mxu1 %v7675_v54  ;;  %v7790_v54 = vcombine.high %v2833_v57, %v2841_v58  ;;  %v7869_v57 = vcombine.low %v2913_v18, %v2921_v17 }
 0x63d   :  { %5869 = vmatpush1.bf16.msra.mxu0 %v7677_v43  ;;  %5788 = vmatprep.subr.bf16.mxu1 %v7692_v56  ;;  %v2848_v43 = vld [vmem:[#allocation14 + $0xa10] sm:$0xff] }
 0x63e   :  { %5870 = vmatprep.subr.bf16.mxu0 %v7694_v30  ;;  %v2856_v56 = vld [vmem:[#allocation14 + $0xa50] sm:$0xff]  ;;  %v2849_v30 = vld [vmem:[#allocation14 + $0xa18] sm:$0xff] }
 0x63f   :  { %v7804_v7 = vcombine.high %v2848_v43, %v2856_v56  ;;  %v7803_v40 = vcombine.low %v2848_v43, %v2856_v56  ;;  %v7805_v42 = vcombine.low %v2849_v30, %v2857_v31  ;;  %v2953_v43 = vld [vmem:[#allocation14 + $0xd58] sm:$0xff] }
 0x640   :  { %5789 = vmatpush1.bf16.msra.mxu1 %v7691_v36  ;;  %v7806_v36 = vcombine.high %v2849_v30, %v2857_v31 }
 0x641   :  { %5871 = vmatpush1.bf16.msra.mxu0 %v7693_v37  ;;  %5790 = vmatprep.subr.bf16.mxu1 %v7708_v38  ;;  %v2864_v37 = vld [vmem:[#allocation14 + $0xa90] sm:$0xff] }
 0x642   :  { %5872 = vmatprep.subr.bf16.mxu0 %v7710_v39  ;;  %v2872_v38 = vld [vmem:[#allocation14 + $0xad0] sm:$0xff]  ;;  %v2865_v39 = vld [vmem:[#allocation14 + $0xa98] sm:$0xff] }
 0x643   :  { %v7820_v0 = vcombine.high %v2864_v37, %v2872_v38  ;;  %v7819_v47 = vcombine.low %v2864_v37, %v2872_v38  ;;  %v7821_v2 = vcombine.low %v2865_v39, %v2873_v33  ;;  %v2969_v37 = vld [vmem:[#allocation14 + $0xdd8] sm:$0xff] }
 0x644   :  { %5791 = vmatpush1.bf16.msra.mxu1 %v7707_v44  ;;  %v7822_v44 = vcombine.high %v2865_v39, %v2873_v33 }
 0x645   :  { %5873 = vmatpush1.bf16.msra.mxu0 %v7709_v10  ;;  %5792 = vmatprep.subr.bf16.mxu1 %v7724_v45  ;;  %v2880_v10 = vld [vmem:[#allocation14 + $0xb10] sm:$0xff] }
 0x646   :  { %5874 = vmatprep.subr.bf16.mxu0 %v7726_v53  ;;  %v2888_v45 = vld [vmem:[#allocation14 + $0xb50] sm:$0xff]  ;;  %v2881_v53 = vld [vmem:[#allocation14 + $0xb18] sm:$0xff] }
 0x647   :  { %v7836_v3 = vcombine.high %v2880_v10, %v2888_v45  ;;  %v7835_v9 = vcombine.low %v2880_v10, %v2888_v45  ;;  %v2985_v10 = vld [vmem:[#allocation14 + $0xe58] sm:$0xff] }
 0x648   :  { %5793 = vmatpush1.bf16.msra.mxu1 %v7723_v50  ;;  %v7838_v50 = vcombine.high %v2881_v53, %v2889_v59 }
 0x649   :  { %5875 = vmatpush1.bf16.msra.mxu0 %v7725_v4  ;;  %5803 = vmatprep.subr.bf16.mxu1 %v7740_v5  ;;  %v2896_v4 = vld [vmem:[#allocation14 + $0xb90] sm:$0xff] }
 0x64a   :  { %5885 = vmatprep.subr.bf16.mxu0 %v7742_v6  ;;  %v2904_v5 = vld [vmem:[#allocation14 + $0xbd0] sm:$0xff]  ;;  %v2897_v6 = vld [vmem:[#allocation14 + $0xb98] sm:$0xff] }
 0x64b   :  { %5795 = vmatmul.mubr.bf16.vlgmr.msra.gmra.mrb[36].mxu1 %v9627_v46  ;;  %v7852_v13 = vcombine.high %v2896_v4, %v2904_v5  ;;  %v7854_v14 = vcombine.high %v2897_v6, %v2905_v52  ;;  %v7853_v19 = vcombine.low %v2897_v6, %v2905_v52 }
 0x64c   :  { %5877 = vmatmul.mubr.bf16.vlgmr.msra.gmra.mrb[36].mxu0 %v9627_v46  ;;  %5804 = vmatpush1.bf16.msra.mxu1 %v7739_v8  ;;  %v7837_v8 = vcombine.low %v2881_v53, %v2889_v59 }
 0x64d   :  { %5835 = vmatprep.mubr.bf16.mxu1 %v9631_v15  ;;  %5886 = vmatpush1.bf16.msra.mxu0 %v7741_v11  ;;  %v2912_v11 = vld [vmem:[#allocation14 + $0xc10] sm:$0xff] }
 0x64e   :  { %5917 = vmatprep.mubr.bf16.mxu0 %v9631_v15  ;;  %5805 = vmatprep.subr.bf16.mxu1 %v7756_v16  ;;  %v2920_v16 = vld [vmem:[#allocation14 + $0xc50] sm:$0xff] }
 0x64f   :  { %5887 = vmatprep.subr.bf16.mxu0 %v7758_v25  ;;  %v7851_v25 = vcombine.low %v2896_v4, %v2904_v5  ;;  %v7868_v21 = vcombine.high %v2912_v11, %v2920_v16  ;;  %v7867_v55 = vcombine.low %v2912_v11, %v2920_v16  ;;  %v3001_v4 = vld [vmem:[#allocation14 + $0xed8] sm:$0xff] }
 0x650   :  { %5806 = vmatpush1.bf16.msra.mxu1 %v7755_v22  ;;  %v7870_v22 = vcombine.high %v2913_v18, %v2921_v17  ;;  %v3017_v11 = vld [vmem:[#allocation14 + $0xf58] sm:$0xff] }
 0x651   :  { %5888 = vmatpush1.bf16.msra.mxu0 %v7757_v20  ;;  %5807 = vmatprep.subr.bf16.mxu1 %v7772_v48  ;;  %v2928_v20 = vld [vmem:[#allocation14 + $0xc90] sm:$0xff] }
 0x652   :  { %5889 = vmatprep.subr.bf16.mxu0 %v7774_v1  ;;  %v2936_v48 = vld [vmem:[#allocation14 + $0xcd0] sm:$0xff]  ;;  %v2929_v1 = vld [vmem:[#allocation14 + $0xc98] sm:$0xff] }
 0x653   :  { %v7884_v58 = vcombine.high %v2928_v20, %v2936_v48  ;;  %v7883_v56 = vcombine.low %v2928_v20, %v2936_v48  ;;  %v7885_v30 = vcombine.low %v2929_v1, %v2937_v51  ;;  %v3033_v20 = vld [vmem:[#allocation14 + $0xfd8] sm:$0xff] }
 0x654   :  { %5808 = vmatpush1.bf16.msra.mxu1 %v7771_v28  ;;  %v7886_v28 = vcombine.high %v2929_v1, %v2937_v51 }
 0x655   :  { %5890 = vmatpush1.bf16.msra.mxu0 %v7773_v41  ;;  %5809 = vmatprep.subr.bf16.mxu1 %v7788_v26  ;;  %v2944_v41 = vld [vmem:[#allocation14 + $0xd10] sm:$0xff] }
 0x656   :  { %5891 = vmatprep.subr.bf16.mxu0 %v7790_v54  ;;  %v2952_v26 = vld [vmem:[#allocation14 + $0xd50] sm:$0xff]  ;;  %v2945_v54 = vld [vmem:[#allocation14 + $0xd18] sm:$0xff] }
 0x657   :  { %v7900_v31 = vcombine.high %v2944_v41, %v2952_v26  ;;  %v7899_v38 = vcombine.low %v2944_v41, %v2952_v26  ;;  %v7901_v39 = vcombine.low %v2945_v54, %v2953_v43  ;;  %v2539_v41 = vld [vmem:[#allocation14 + $0x68] sm:$0xff] }
 0x658   :  { %5810 = vmatpush1.bf16.msra.mxu1 %v7787_v32  ;;  %v7902_v32 = vcombine.high %v2945_v54, %v2953_v43 }
 0x659   :  { %5892 = vmatpush1.bf16.msra.mxu0 %v7789_v63  ;;  %5811 = vmatprep.subr.bf16.mxu1 %v7804_v7  ;;  %v2960_v63 = vld [vmem:[#allocation14 + $0xd90] sm:$0xff] }
 0x65a   :  { %5893 = vmatprep.subr.bf16.mxu0 %v7806_v36  ;;  %v2968_v7 = vld [vmem:[#allocation14 + $0xdd0] sm:$0xff]  ;;  %v2961_v36 = vld [vmem:[#allocation14 + $0xd98] sm:$0xff] }
 0x65b   :  { %v7916_v33 = vcombine.high %v2960_v63, %v2968_v7  ;;  %v7915_v45 = vcombine.low %v2960_v63, %v2968_v7  ;;  %v7917_v53 = vcombine.low %v2961_v36, %v2969_v37  ;;  %v2547_v63 = vld [vmem:[#allocation14 + $0xa8] sm:$0xff] }
 0x65c   :  { %5812 = vmatpush1.bf16.msra.mxu1 %v7803_v40  ;;  %v7918_v40 = vcombine.high %v2961_v36, %v2969_v37  ;;  %v2555_v7 = vld [vmem:[#allocation14 + $0xe8] sm:$0xff] }
 0x65d   :  { %5894 = vmatpush1.bf16.msra.mxu0 %v7805_v42  ;;  %5813 = vmatprep.subr.bf16.mxu1 %v7820_v0  ;;  %v2976_v42 = vld [vmem:[#allocation14 + $0xe10] sm:$0xff] }
 0x65e   :  { %5895 = vmatprep.subr.bf16.mxu0 %v7822_v44  ;;  %v2984_v0 = vld [vmem:[#allocation14 + $0xe50] sm:$0xff]  ;;  %v2977_v44 = vld [vmem:[#allocation14 + $0xe18] sm:$0xff] }
 0x65f   :  { %v7932_v59 = vcombine.high %v2976_v42, %v2984_v0  ;;  %v7931_v5 = vcombine.low %v2976_v42, %v2984_v0  ;;  %v7933_v6 = vcombine.low %v2977_v44, %v2985_v10  ;;  %v2571_v42 = vld [vmem:[#allocation14 + $0x168] sm:$0xff] }
 0x660   :  { %5814 = vmatpush1.bf16.msra.mxu1 %v7819_v47  ;;  %v7934_v47 = vcombine.high %v2977_v44, %v2985_v10  ;;  %v7505_v44 = vcombine.low %v2547_v63, %v2555_v7 }
 0x661   :  { %5896 = vmatpush1.bf16.msra.mxu0 %v7821_v2  ;;  %5815 = vmatprep.subr.bf16.mxu1 %v7836_v3  ;;  %v2992_v2 = vld [vmem:[#allocation14 + $0xe90] sm:$0xff] }
 0x662   :  { %5897 = vmatprep.subr.bf16.mxu0 %v7838_v50  ;;  %v3000_v3 = vld [vmem:[#allocation14 + $0xed0] sm:$0xff]  ;;  %v2993_v50 = vld [vmem:[#allocation14 + $0xe98] sm:$0xff] }
 0x663   :  { %v7948_v52 = vcombine.high %v2992_v2, %v3000_v3  ;;  %v7947_v16 = vcombine.low %v2992_v2, %v3000_v3  ;;  %v7949_v18 = vcombine.low %v2993_v50, %v3001_v4  ;;  %v2587_v2 = vld [vmem:[#allocation14 + $0x1e8] sm:$0xff] }
 0x664   :  { %5816 = vmatpush1.bf16.msra.mxu1 %v7835_v9  ;;  %v7950_v9 = vcombine.high %v2993_v50, %v3001_v4 }
 0x665   :  { %5898 = vmatpush1.bf16.msra.mxu0 %v7837_v8  ;;  %5817 = vmatprep.subr.bf16.mxu1 %v7852_v13  ;;  %v3008_v8 = vld [vmem:[#allocation14 + $0xf10] sm:$0xff] }
 0x666   :  { %5899 = vmatprep.subr.bf16.mxu0 %v7854_v14  ;;  %v3016_v13 = vld [vmem:[#allocation14 + $0xf50] sm:$0xff]  ;;  %v3009_v14 = vld [vmem:[#allocation14 + $0xf18] sm:$0xff] }
 0x667   :  { %v7964_v17 = vcombine.high %v3008_v8, %v3016_v13  ;;  %v7963_v48 = vcombine.low %v3008_v8, %v3016_v13  ;;  %v7965_v1 = vcombine.low %v3009_v14, %v3017_v11  ;;  %v2603_v8 = vld [vmem:[#allocation14 + $0x268] sm:$0xff] }
 0x668   :  { %5818 = vmatpush1.bf16.msra.mxu1 %v7851_v25  ;;  %v7966_v25 = vcombine.high %v3009_v14, %v3017_v11 }
 0x669   :  { %5900 = vmatpush1.bf16.msra.mxu0 %v7853_v19  ;;  %5819 = vmatprep.subr.bf16.mxu1 %v7868_v21  ;;  %v3024_v19 = vld [vmem:[#allocation14 + $0xf90] sm:$0xff] }
 0x66a   :  { %5901 = vmatprep.subr.bf16.mxu0 %v7870_v22  ;;  %v3032_v21 = vld [vmem:[#allocation14 + $0xfd0] sm:$0xff]  ;;  %v3025_v22 = vld [vmem:[#allocation14 + $0xf98] sm:$0xff] }
 0x66b   :  { %v7980_v51 = vcombine.high %v3024_v19, %v3032_v21  ;;  %v7979_v26 = vcombine.low %v3024_v19, %v3032_v21  ;;  %v7981_v54 = vcombine.low %v3025_v22, %v3033_v20  ;;  %v2619_v19 = vld [vmem:[#allocation14 + $0x2e8] sm:$0xff] }
 0x66c   :  { %5820 = vmatpush1.bf16.msra.mxu1 %v7867_v55  ;;  %v7982_v55 = vcombine.high %v3025_v22, %v3033_v20 }
 0x66d   :  { %5902 = vmatpush1.bf16.msra.mxu0 %v7869_v57  ;;  %5821 = vmatprep.subr.bf16.mxu1 %v7884_v58  ;;  %v2530_v57 = vld [vmem:[#allocation14 + $0x20] sm:$0xff] }
 0x66e   :  { %5903 = vmatprep.subr.bf16.mxu0 %v7886_v28  ;;  %v2538_v58 = vld [vmem:[#allocation14 + $0x60] sm:$0xff]  ;;  %v2531_v28 = vld [vmem:[#allocation14 + $0x28] sm:$0xff] }
 0x66f   :  { %v7488_v43 = vcombine.high %v2530_v57, %v2538_v58  ;;  %v7489_v36 = vcombine.low %v2531_v28, %v2539_v41 }
 0x670   :  { %5822 = vmatpush1.bf16.msra.mxu1 %v7883_v56  ;;  %v7490_v56 = vcombine.high %v2531_v28, %v2539_v41 }
 0x671   :  { %5904 = vmatpush1.bf16.msra.mxu0 %v7885_v30  ;;  %5823 = vmatprep.subr.bf16.mxu1 %v7900_v31  ;;  %v2546_v30 = vld [vmem:[#allocation14 + $0xa0] sm:$0xff] }
 0x672   :  { %5905 = vmatprep.subr.bf16.mxu0 %v7902_v32  ;;  %v2554_v31 = vld [vmem:[#allocation14 + $0xe0] sm:$0xff]  ;;  %v7487_v32 = vcombine.low %v2530_v57, %v2538_v58  ;;  %v2635_v57 = vld [vmem:[#allocation14 + $0x368] sm:$0xff] }
 0x673   :  { %v7504_v37 = vcombine.high %v2546_v30, %v2554_v31  ;;  %v7503_v0 = vcombine.low %v2546_v30, %v2554_v31  ;;  %v2651_v30 = vld [vmem:[#allocation14 + $0x3e8] sm:$0xff] }
 0x674   :  { %5824 = vmatpush1.bf16.msra.mxu1 %v7899_v38  ;;  %v2562_v38 = vld [vmem:[#allocation14 + $0x120] sm:$0xff] }
 0x675   :  { %5906 = vmatpush1.bf16.msra.mxu0 %v7901_v39  ;;  %5825 = vmatprep.subr.bf16.mxu1 %v7916_v33  ;;  %v2570_v39 = vld [vmem:[#allocation14 + $0x160] sm:$0xff]  ;;  %v7506_v33 = vcombine.high %v2547_v63, %v2555_v7 }
 0x676   :  { %5907 = vmatprep.subr.bf16.mxu0 %v7918_v40  ;;  %v2563_v40 = vld [vmem:[#allocation14 + $0x128] sm:$0xff]  ;;  %v7520_v10 = vcombine.high %v2562_v38, %v2570_v39  ;;  %v7519_v3 = vcombine.low %v2562_v38, %v2570_v39 }
 0x677   :  { %v7521_v50 = vcombine.low %v2563_v40, %v2571_v42  ;;  %v2659_v38 = vld [vmem:[#allocation14 + $0x428] sm:$0xff] }
 0x678   :  { %5826 = vmatpush1.bf16.msra.mxu1 %v7915_v45  ;;  %v7522_v45 = vcombine.high %v2563_v40, %v2571_v42  ;;  %v2667_v39 = vld [vmem:[#allocation14 + $0x468] sm:$0xff] }
 0x679   :  { %5908 = vmatpush1.bf16.msra.mxu0 %v7917_v53  ;;  %5827 = vmatprep.subr.bf16.mxu1 %v7932_v59  ;;  %v2578_v53 = vld [vmem:[#allocation14 + $0x1a0] sm:$0xff] }
 0x67a   :  { %5909 = vmatprep.subr.bf16.mxu0 %v7934_v47  ;;  %v2586_v59 = vld [vmem:[#allocation14 + $0x1e0] sm:$0xff]  ;;  %v2579_v47 = vld [vmem:[#allocation14 + $0x1a8] sm:$0xff] }
 0x67b   :  { %v7536_v4 = vcombine.high %v2578_v53, %v2586_v59  ;;  %v7535_v13 = vcombine.low %v2578_v53, %v2586_v59  ;;  %v7537_v14 = vcombine.low %v2579_v47, %v2587_v2  ;;  %v2683_v53 = vld [vmem:[#allocation14 + $0x4e8] sm:$0xff] }
 0x67c   :  { %5828 = vmatpush1.bf16.msra.mxu1 %v7931_v5  ;;  %v7538_v5 = vcombine.high %v2579_v47, %v2587_v2  ;;  %v7617_v47 = vcombine.low %v2659_v38, %v2667_v39 }
 0x67d   :  { %5910 = vmatpush1.bf16.msra.mxu0 %v7933_v6  ;;  %5829 = vmatprep.subr.bf16.mxu1 %v7948_v52  ;;  %v2594_v6 = vld [vmem:[#allocation14 + $0x220] sm:$0xff] }
 0x67e   :  { %5911 = vmatprep.subr.bf16.mxu0 %v7950_v9  ;;  %v2602_v52 = vld [vmem:[#allocation14 + $0x260] sm:$0xff]  ;;  %v2595_v9 = vld [vmem:[#allocation14 + $0x228] sm:$0xff] }
 0x67f   :  { %v7552_v11 = vcombine.high %v2594_v6, %v2602_v52  ;;  %v7551_v21 = vcombine.low %v2594_v6, %v2602_v52  ;;  %v7553_v22 = vcombine.low %v2595_v9, %v2603_v8  ;;  %v2699_v6 = vld [vmem:[#allocation14 + $0x568] sm:$0xff] }
 0x680   :  { %5830 = vmatpush1.bf16.msra.mxu1 %v7947_v16  ;;  %v7554_v16 = vcombine.high %v2595_v9, %v2603_v8 }
 0x681   :  { %5912 = vmatpush1.bf16.msra.mxu0 %v7949_v18  ;;  %5831 = vmatprep.subr.bf16.mxu1 %v7964_v17  ;;  %v2610_v18 = vld [vmem:[#allocation14 + $0x2a0] sm:$0xff] }
 0x682   :  { %5913 = vmatprep.subr.bf16.mxu0 %v7966_v25  ;;  %v2618_v17 = vld [vmem:[#allocation14 + $0x2e0] sm:$0xff]  ;;  %v2611_v25 = vld [vmem:[#allocation14 + $0x2a8] sm:$0xff] }
 0x683   :  { %v7568_v20 = vcombine.high %v2610_v18, %v2618_v17  ;;  %v7567_v58 = vcombine.low %v2610_v18, %v2618_v17  ;;  %v7569_v28 = vcombine.low %v2611_v25, %v2619_v19  ;;  %v2715_v18 = vld [vmem:[#allocation14 + $0x5e8] sm:$0xff] }
 0x684   :  { %5832 = vmatpush1.bf16.msra.mxu1 %v7963_v48  ;;  %v7570_v48 = vcombine.high %v2611_v25, %v2619_v19 }
 0x685   :  { %5914 = vmatpush1.bf16.msra.mxu0 %v7965_v1  ;;  %5833 = vmatprep.subr.bf16.mxu1 %v7980_v51  ;;  %v2626_v1 = vld [vmem:[#allocation14 + $0x320] sm:$0xff] }
 0x686   :  { %5915 = vmatprep.subr.bf16.mxu0 %v7982_v55  ;;  %v2634_v51 = vld [vmem:[#allocation14 + $0x360] sm:$0xff]  ;;  %v2627_v55 = vld [vmem:[#allocation14 + $0x328] sm:$0xff] }
 0x687   :  { %v7584_v41 = vcombine.high %v2626_v1, %v2634_v51  ;;  %v7583_v31 = vcombine.low %v2626_v1, %v2634_v51  ;;  %v2731_v1 = vld [vmem:[#allocation14 + $0x668] sm:$0xff] }
 0x688   :  { %5834 = vmatpush1.bf16.msra.mxu1 %v7979_v26  ;;  %v7586_v26 = vcombine.high %v2627_v55, %v2635_v57 }
 0x689   :  { %5916 = vmatpush1.bf16.msra.mxu0 %v7981_v54  ;;  %5926 = vmatprep.subr.bf16.mxu1 %v7488_v43  ;;  %v2642_v54 = vld [vmem:[#allocation14 + $0x3a0] sm:$0xff] }
 0x68a   :  { %6008 = vmatprep.subr.bf16.mxu0 %v7490_v56  ;;  %v2650_v43 = vld [vmem:[#allocation14 + $0x3e0] sm:$0xff]  ;;  %v2643_v56 = vld [vmem:[#allocation14 + $0x3a8] sm:$0xff] }
 0x68b   :  { %5836 = vmatmul.mubr.bf16.vlgmr.msra.gmra.mrb[36].mxu1 %v9646_v34  ;;  %v7600_v63 = vcombine.high %v2642_v54, %v2650_v43  ;;  %v7602_v7 = vcombine.high %v2643_v56, %v2651_v30  ;;  %v7601_v40 = vcombine.low %v2643_v56, %v2651_v30 }
 0x68c   :  { %5918 = vmatmul.mubr.bf16.vlgmr.msra.gmra.mrb[36].mxu0 %v9646_v34  ;;  %5927 = vmatpush1.bf16.msra.mxu1 %v7487_v32  ;;  %v7585_v32 = vcombine.low %v2627_v55, %v2635_v57 }
 0x68d   :  { %5958 = vmatprep.mubr.bf16.mxu1 %v9625_v49  ;;  %6009 = vmatpush1.bf16.msra.mxu0 %v7489_v36  ;;  %v2658_v36 = vld [vmem:[#allocation14 + $0x420] sm:$0xff] }
 0x68e   :  { %6040 = vmatprep.mubr.bf16.mxu0 %v9625_v49  ;;  %5928 = vmatprep.subr.bf16.mxu1 %v7504_v37  ;;  %v2666_v37 = vld [vmem:[#allocation14 + $0x460] sm:$0xff] }
 0x68f   :  { %6010 = vmatprep.subr.bf16.mxu0 %v7506_v33  ;;  %v7599_v33 = vcombine.low %v2642_v54, %v2650_v43  ;;  %v7616_v42 = vcombine.high %v2658_v36, %v2666_v37  ;;  %v7615_v59 = vcombine.low %v2658_v36, %v2666_v37  ;;  %v2747_v54 = vld [vmem:[#allocation14 + $0x6e8] sm:$0xff] }
 0x690   :  { %5929 = vmatpush1.bf16.msra.mxu1 %v7503_v0  ;;  %v7618_v0 = vcombine.high %v2659_v38, %v2667_v39  ;;  %v2763_v36 = vld [vmem:[#allocation14 + $0x768] sm:$0xff] }
 0x691   :  { %6011 = vmatpush1.bf16.msra.mxu0 %v7505_v44  ;;  %5930 = vmatprep.subr.bf16.mxu1 %v7520_v10  ;;  %v2674_v44 = vld [vmem:[#allocation14 + $0x4a0] sm:$0xff] }
 0x692   :  { %6012 = vmatprep.subr.bf16.mxu0 %v7522_v45  ;;  %v2682_v10 = vld [vmem:[#allocation14 + $0x4e0] sm:$0xff]  ;;  %v2675_v45 = vld [vmem:[#allocation14 + $0x4a8] sm:$0xff] }
 0x693   :  { %v7632_v2 = vcombine.high %v2674_v44, %v2682_v10  ;;  %v7631_v52 = vcombine.low %v2674_v44, %v2682_v10  ;;  %v7633_v9 = vcombine.low %v2675_v45, %v2683_v53  ;;  %v2779_v44 = vld [vmem:[#allocation14 + $0x7e8] sm:$0xff] }
 0x694   :  { %5931 = vmatpush1.bf16.msra.mxu1 %v7519_v3  ;;  %v7634_v3 = vcombine.high %v2675_v45, %v2683_v53 }
 0x695   :  { %6013 = vmatpush1.bf16.msra.mxu0 %v7521_v50  ;;  %5932 = vmatprep.subr.bf16.mxu1 %v7536_v4  ;;  %v2690_v50 = vld [vmem:[#allocation14 + $0x520] sm:$0xff] }
 0x696   :  { %6014 = vmatprep.subr.bf16.mxu0 %v7538_v5  ;;  %v2698_v4 = vld [vmem:[#allocation14 + $0x560] sm:$0xff]  ;;  %v2691_v5 = vld [vmem:[#allocation14 + $0x528] sm:$0xff] }
 0x697   :  { %v7648_v8 = vcombine.high %v2690_v50, %v2698_v4  ;;  %v7647_v17 = vcombine.low %v2690_v50, %v2698_v4  ;;  %v7649_v25 = vcombine.low %v2691_v5, %v2699_v6  ;;  %v2795_v50 = vld [vmem:[#allocation14 + $0x868] sm:$0xff] }
 0x698   :  { %5933 = vmatpush1.bf16.msra.mxu1 %v7535_v13  ;;  %v7650_v13 = vcombine.high %v2691_v5, %v2699_v6 }
 0x699   :  { %6015 = vmatpush1.bf16.msra.mxu0 %v7537_v14  ;;  %5934 = vmatprep.subr.bf16.mxu1 %v7552_v11  ;;  %v2706_v14 = vld [vmem:[#allocation14 + $0x5a0] sm:$0xff] }
 0x69a   :  { %6016 = vmatprep.subr.bf16.mxu0 %v7554_v16  ;;  %v2714_v11 = vld [vmem:[#allocation14 + $0x5e0] sm:$0xff]  ;;  %v2707_v16 = vld [vmem:[#allocation14 + $0x5a8] sm:$0xff] }
 0x69b   :  { %v7664_v19 = vcombine.high %v2706_v14, %v2714_v11  ;;  %v7663_v51 = vcombine.low %v2706_v14, %v2714_v11  ;;  %v7665_v55 = vcombine.low %v2707_v16, %v2715_v18  ;;  %v2803_v14 = vld [vmem:[#allocation14 + $0x8a8] sm:$0xff] }
 0x69c   :  { %5935 = vmatpush1.bf16.msra.mxu1 %v7551_v21  ;;  %v7666_v21 = vcombine.high %v2707_v16, %v2715_v18  ;;  %v2811_v11 = vld [vmem:[#allocation14 + $0x8e8] sm:$0xff] }
 0x69d   :  { %6017 = vmatpush1.bf16.msra.mxu0 %v7553_v22  ;;  %5936 = vmatprep.subr.bf16.mxu1 %v7568_v20  ;;  %v2722_v22 = vld [vmem:[#allocation14 + $0x620] sm:$0xff] }
 0x69e   :  { %6018 = vmatprep.subr.bf16.mxu0 %v7570_v48  ;;  %v2730_v20 = vld [vmem:[#allocation14 + $0x660] sm:$0xff]  ;;  %v2723_v48 = vld [vmem:[#allocation14 + $0x628] sm:$0xff] }
 0x69f   :  { %v7680_v57 = vcombine.high %v2722_v22, %v2730_v20  ;;  %v7679_v43 = vcombine.low %v2722_v22, %v2730_v20  ;;  %v7681_v56 = vcombine.low %v2723_v48, %v2731_v1  ;;  %v2827_v22 = vld [vmem:[#allocation14 + $0x968] sm:$0xff] }
 0x6a0   :  { %5937 = vmatpush1.bf16.msra.mxu1 %v7567_v58  ;;  %v7682_v58 = vcombine.high %v2723_v48, %v2731_v1  ;;  %v7761_v48 = vcombine.low %v2803_v14, %v2811_v11 }
 0x6a1   :  { %6019 = vmatpush1.bf16.msra.mxu0 %v7569_v28  ;;  %5938 = vmatprep.subr.bf16.mxu1 %v7584_v41  ;;  %v2738_v28 = vld [vmem:[#allocation14 + $0x6a0] sm:$0xff] }
 0x6a2   :  { %6020 = vmatprep.subr.bf16.mxu0 %v7586_v26  ;;  %v2746_v41 = vld [vmem:[#allocation14 + $0x6e0] sm:$0xff]  ;;  %v2739_v26 = vld [vmem:[#allocation14 + $0x6a8] sm:$0xff] }
 0x6a3   :  { %v7696_v30 = vcombine.high %v2738_v28, %v2746_v41  ;;  %v7695_v37 = vcombine.low %v2738_v28, %v2746_v41  ;;  %v7697_v38 = vcombine.low %v2739_v26, %v2747_v54  ;;  %v2843_v28 = vld [vmem:[#allocation14 + $0x9e8] sm:$0xff] }
 0x6a4   :  { %5939 = vmatpush1.bf16.msra.mxu1 %v7583_v31  ;;  %v7698_v31 = vcombine.high %v2739_v26, %v2747_v54 }
 0x6a5   :  { %6021 = vmatpush1.bf16.msra.mxu0 %v7585_v32  ;;  %5940 = vmatprep.subr.bf16.mxu1 %v7600_v63  ;;  %v2754_v32 = vld [vmem:[#allocation14 + $0x720] sm:$0xff] }
 0x6a6   :  { %6022 = vmatprep.subr.bf16.mxu0 %v7602_v7  ;;  %v2762_v63 = vld [vmem:[#allocation14 + $0x760] sm:$0xff]  ;;  %v2755_v7 = vld [vmem:[#allocation14 + $0x728] sm:$0xff] }
 0x6a7   :  { %v7712_v39 = vcombine.high %v2754_v32, %v2762_v63  ;;  %v7711_v10 = vcombine.low %v2754_v32, %v2762_v63  ;;  %v7713_v45 = vcombine.low %v2755_v7, %v2763_v36  ;;  %v2859_v32 = vld [vmem:[#allocation14 + $0xa68] sm:$0xff] }
 0x6a8   :  { %5941 = vmatpush1.bf16.msra.mxu1 %v7599_v33  ;;  %v7714_v33 = vcombine.high %v2755_v7, %v2763_v36 }
 0x6a9   :  { %6023 = vmatpush1.bf16.msra.mxu0 %v7601_v40  ;;  %5942 = vmatprep.subr.bf16.mxu1 %v7616_v42  ;;  %v2770_v40 = vld [vmem:[#allocation14 + $0x7a0] sm:$0xff] }
 0x6aa   :  { %6024 = vmatprep.subr.bf16.mxu0 %v7618_v0  ;;  %v2778_v42 = vld [vmem:[#allocation14 + $0x7e0] sm:$0xff]  ;;  %v2771_v0 = vld [vmem:[#allocation14 + $0x7a8] sm:$0xff] }
 0x6ab   :  { %v7728_v53 = vcombine.high %v2770_v40, %v2778_v42  ;;  %v7727_v4 = vcombine.low %v2770_v40, %v2778_v42  ;;  %v7729_v5 = vcombine.low %v2771_v0, %v2779_v44  ;;  %v2875_v40 = vld [vmem:[#allocation14 + $0xae8] sm:$0xff] }
 0x6ac   :  { %5943 = vmatpush1.bf16.msra.mxu1 %v7615_v59  ;;  %v7730_v59 = vcombine.high %v2771_v0, %v2779_v44 }
 0x6ad   :  { %6025 = vmatpush1.bf16.msra.mxu0 %v7617_v47  ;;  %5944 = vmatprep.subr.bf16.mxu1 %v7632_v2  ;;  %v2786_v47 = vld [vmem:[#allocation14 + $0x820] sm:$0xff] }
 0x6ae   :  { %6026 = vmatprep.subr.bf16.mxu0 %v7634_v3  ;;  %v2794_v2 = vld [vmem:[#allocation14 + $0x860] sm:$0xff]  ;;  %v2787_v3 = vld [vmem:[#allocation14 + $0x828] sm:$0xff] }
 0x6af   :  { %v7744_v6 = vcombine.high %v2786_v47, %v2794_v2  ;;  %v7745_v16 = vcombine.low %v2787_v3, %v2795_v50 }
 0x6b0   :  { %5945 = vmatpush1.bf16.msra.mxu1 %v7631_v52  ;;  %v7746_v52 = vcombine.high %v2787_v3, %v2795_v50 }
 0x6b1   :  { %6027 = vmatpush1.bf16.msra.mxu0 %v7633_v9  ;;  %5946 = vmatprep.subr.bf16.mxu1 %v7648_v8  ;;  %v2802_v9 = vld [vmem:[#allocation14 + $0x8a0] sm:$0xff] }
 0x6b2   :  { %6028 = vmatprep.subr.bf16.mxu0 %v7650_v13  ;;  %v2810_v8 = vld [vmem:[#allocation14 + $0x8e0] sm:$0xff]  ;;  %v7743_v13 = vcombine.low %v2786_v47, %v2794_v2  ;;  %v2891_v47 = vld [vmem:[#allocation14 + $0xb68] sm:$0xff] }
 0x6b3   :  { %v7760_v18 = vcombine.high %v2802_v9, %v2810_v8  ;;  %v7759_v20 = vcombine.low %v2802_v9, %v2810_v8  ;;  %v2906_v9 = vld [vmem:[#allocation14 + $0xbe0] sm:$0xff] }
 0x6b4   :  { %5947 = vmatpush1.bf16.msra.mxu1 %v7647_v17  ;;  %v2818_v17 = vld [vmem:[#allocation14 + $0x920] sm:$0xff] }
 0x6b5   :  { %6029 = vmatpush1.bf16.msra.mxu0 %v7649_v25  ;;  %5948 = vmatprep.subr.bf16.mxu1 %v7664_v19  ;;  %v2826_v25 = vld [vmem:[#allocation14 + $0x960] sm:$0xff]  ;;  %v7762_v19 = vcombine.high %v2803_v14, %v2811_v11 }
 0x6b6   :  { %6030 = vmatprep.subr.bf16.mxu0 %v7666_v21  ;;  %v2819_v21 = vld [vmem:[#allocation14 + $0x928] sm:$0xff]  ;;  %v7776_v1 = vcombine.high %v2818_v17, %v2826_v25  ;;  %v7775_v41 = vcombine.low %v2818_v17, %v2826_v25 }
 0x6b7   :  { %v7777_v26 = vcombine.low %v2819_v21, %v2827_v22 }
 0x6b8   :  { %5949 = vmatpush1.bf16.msra.mxu1 %v7663_v51  ;;  %v7778_v51 = vcombine.high %v2819_v21, %v2827_v22 }
 0x6b9   :  { %6031 = vmatpush1.bf16.msra.mxu0 %v7665_v55  ;;  %5950 = vmatprep.subr.bf16.mxu1 %v7680_v57  ;;  %v2834_v55 = vld [vmem:[#allocation14 + $0x9a0] sm:$0xff] }
 0x6ba   :  { %6032 = vmatprep.subr.bf16.mxu0 %v7682_v58  ;;  %v2842_v57 = vld [vmem:[#allocation14 + $0x9e0] sm:$0xff]  ;;  %v2835_v58 = vld [vmem:[#allocation14 + $0x9a8] sm:$0xff] }
 0x6bb   :  { %v7792_v54 = vcombine.high %v2834_v55, %v2842_v57  ;;  %v7791_v63 = vcombine.low %v2834_v55, %v2842_v57  ;;  %v7793_v7 = vcombine.low %v2835_v58, %v2843_v28 }
 0x6bc   :  { %5951 = vmatpush1.bf16.msra.mxu1 %v7679_v43  ;;  %v7794_v43 = vcombine.high %v2835_v58, %v2843_v28 }
 0x6bd   :  { %6033 = vmatpush1.bf16.msra.mxu0 %v7681_v56  ;;  %5952 = vmatprep.subr.bf16.mxu1 %v7696_v30  ;;  %v2850_v56 = vld [vmem:[#allocation14 + $0xa20] sm:$0xff] }
 0x6be   :  { %6034 = vmatprep.subr.bf16.mxu0 %v7698_v31  ;;  %v2858_v30 = vld [vmem:[#allocation14 + $0xa60] sm:$0xff]  ;;  %v2851_v31 = vld [vmem:[#allocation14 + $0xa28] sm:$0xff] }
 0x6bf   :  { %v7808_v36 = vcombine.high %v2850_v56, %v2858_v30  ;;  %v7807_v42 = vcombine.low %v2850_v56, %v2858_v30  ;;  %v7809_v0 = vcombine.low %v2851_v31, %v2859_v32 }
 0x6c0   :  { %5953 = vmatpush1.bf16.msra.mxu1 %v7695_v37  ;;  %v7810_v37 = vcombine.high %v2851_v31, %v2859_v32  ;;  %v2930_v32 = vld [vmem:[#allocation14 + $0xca0] sm:$0xff] }
 0x6c1   :  { %6035 = vmatpush1.bf16.msra.mxu0 %v7697_v38  ;;  %5954 = vmatprep.subr.bf16.mxu1 %v7712_v39  ;;  %v2866_v38 = vld [vmem:[#allocation14 + $0xaa0] sm:$0xff] }
 0x6c2   :  { %6036 = vmatprep.subr.bf16.mxu0 %v7714_v33  ;;  %v2874_v39 = vld [vmem:[#allocation14 + $0xae0] sm:$0xff]  ;;  %v2867_v33 = vld [vmem:[#allocation14 + $0xaa8] sm:$0xff] }
 0x6c3   :  { %v7824_v44 = vcombine.high %v2866_v38, %v2874_v39  ;;  %v7823_v2 = vcombine.low %v2866_v38, %v2874_v39  ;;  %v7825_v3 = vcombine.low %v2867_v33, %v2875_v40  ;;  %v2946_v39 = vld [vmem:[#allocation14 + $0xd20] sm:$0xff] }
 0x6c4   :  { %5955 = vmatpush1.bf16.msra.mxu1 %v7711_v10  ;;  %v7826_v10 = vcombine.high %v2867_v33, %v2875_v40  ;;  %v2954_v33 = vld [vmem:[#allocation14 + $0xd60] sm:$0xff]  ;;  %v2947_v40 = vld [vmem:[#allocation14 + $0xd28] sm:$0xff] }
 0x6c5   :  { %6037 = vmatpush1.bf16.msra.mxu0 %v7713_v45  ;;  %5956 = vmatprep.subr.bf16.mxu1 %v7728_v53  ;;  %v2882_v45 = vld [vmem:[#allocation14 + $0xb20] sm:$0xff] }
 0x6c6   :  { %6038 = vmatprep.subr.bf16.mxu0 %v7730_v59  ;;  %v2890_v53 = vld [vmem:[#allocation14 + $0xb60] sm:$0xff]  ;;  %v2883_v59 = vld [vmem:[#allocation14 + $0xb28] sm:$0xff] }
 0x6c7   :  { %v7840_v50 = vcombine.high %v2882_v45, %v2890_v53  ;;  %v7839_v22 = vcombine.low %v2882_v45, %v2890_v53  ;;  %v2962_v53 = vld [vmem:[#allocation14 + $0xda0] sm:$0xff] }
 0x6c8   :  { %5957 = vmatpush1.bf16.msra.mxu1 %v7727_v4 }
 0x6c9   :  { %6039 = vmatpush1.bf16.msra.mxu0 %v7729_v5  ;;  %5967 = vmatprep.subr.bf16.mxu1 %v7744_v6  ;;  %v7842_v6 = vcombine.high %v2883_v59, %v2891_v47 }
 0x6ca   :  { %6049 = vmatprep.subr.bf16.mxu0 %v7746_v52  ;;  %v2898_v52 = vld [vmem:[#allocation14 + $0xba0] sm:$0xff] }
 0x6cb   :  { %5959 = vmatmul.mubr.bf16.vlgmr.msra.gmra.mrb[40].mxu1 %v9627_v46  ;;  %v7856_v57 = vcombine.high %v2898_v52, %v2906_v9 }
 0x6cc   :  { %6041 = vmatmul.mubr.bf16.vlgmr.msra.gmra.mrb[40].mxu0 %v9627_v46  ;;  %5968 = vmatpush1.bf16.msra.mxu1 %v7743_v13 }
 0x6cd   :  { %5999 = vmatprep.mubr.bf16.mxu1 %v9631_v15  ;;  %6050 = vmatpush1.bf16.msra.mxu0 %v7745_v16  ;;  %v2899_v16 = vld [vmem:[#allocation14 + $0xba8] sm:$0xff] }
 0x6ce   :  { %6081 = vmatprep.mubr.bf16.mxu0 %v9631_v15  ;;  %5969 = vmatprep.subr.bf16.mxu1 %v7760_v18  ;;  %v2907_v18 = vld [vmem:[#allocation14 + $0xbe8] sm:$0xff] }
 0x6cf   :  { %6051 = vmatprep.subr.bf16.mxu0 %v7762_v19  ;;  %v7857_v56 = vcombine.low %v2899_v16, %v2907_v18 }
 0x6d0   :  { %5970 = vmatpush1.bf16.msra.mxu1 %v7759_v20  ;;  %v7841_v20 = vcombine.low %v2883_v59, %v2891_v47  ;;  %v2970_v59 = vld [vmem:[#allocation14 + $0xde0] sm:$0xff]  ;;  %v2963_v47 = vld [vmem:[#allocation14 + $0xda8] sm:$0xff] }
 0x6d1   :  { %6052 = vmatpush1.bf16.msra.mxu0 %v7761_v48  ;;  %5971 = vmatprep.subr.bf16.mxu1 %v7776_v1 }
 0x6d2   :  { %6053 = vmatprep.subr.bf16.mxu0 %v7778_v51 }
 0x6d4   :  { %5972 = vmatpush1.bf16.msra.mxu1 %v7775_v41  ;;  %v7858_v41 = vcombine.high %v2899_v16, %v2907_v18  ;;  %v2994_v18 = vld [vmem:[#allocation14 + $0xea0] sm:$0xff] }
 0x6d5   :  { %6054 = vmatpush1.bf16.msra.mxu0 %v7777_v26  ;;  %5973 = vmatprep.subr.bf16.mxu1 %v7792_v54  ;;  %v2914_v26 = vld [vmem:[#allocation14 + $0xc20] sm:$0xff] }
 0x6d6   :  { %6055 = vmatprep.subr.bf16.mxu0 %v7794_v43  ;;  %v2922_v54 = vld [vmem:[#allocation14 + $0xc60] sm:$0xff]  ;;  %v2923_v43 = vld [vmem:[#allocation14 + $0xc68] sm:$0xff] }
 0x6d7   :  { %v7872_v30 = vcombine.high %v2914_v26, %v2922_v54 }
 0x6d8   :  { %5974 = vmatpush1.bf16.msra.mxu1 %v7791_v63  ;;  %v2931_v63 = vld [vmem:[#allocation14 + $0xca8] sm:$0xff] }
 0x6d9   :  { %6056 = vmatpush1.bf16.msra.mxu0 %v7793_v7  ;;  %5975 = vmatprep.subr.bf16.mxu1 %v7808_v36  ;;  %v2939_v7 = vld [vmem:[#allocation14 + $0xce8] sm:$0xff] }
 0x6da   :  { %6057 = vmatprep.subr.bf16.mxu0 %v7810_v37  ;;  %v7890_v38 = vcombine.high %v2931_v63, %v2939_v7 }
 0x6dc   :  { %5976 = vmatpush1.bf16.msra.mxu1 %v7807_v42  ;;  %v2955_v42 = vld [vmem:[#allocation14 + $0xd68] sm:$0xff] }
 0x6dd   :  { %6058 = vmatpush1.bf16.msra.mxu0 %v7809_v0  ;;  %5977 = vmatprep.subr.bf16.mxu1 %v7824_v44  ;;  %v7889_v44 = vcombine.low %v2931_v63, %v2939_v7  ;;  %v7906_v45 = vcombine.high %v2947_v40, %v2955_v42 }
 0x6de   :  { %v5673_v4 = vpop.f32.mrb[32].mxu1  ;;  %v5755_v5 = vpop.f32.mrb[32].mxu0  ;;  %6059 = vmatprep.subr.bf16.mxu0 %v7826_v10  ;;  %v7904_v10 = vcombine.high %v2946_v39, %v2954_v33 }
 0x6df   :  { %v6254_v8 = vmul.f32 %v5673_v4, %v9573_v60  ;;  %v6256_v13 = vmul.f32 %v5755_v5, %v9573_v60  ;;  %v5675_v14 = vpop.f32.mrb[33].mxu1  ;;  %v5757_v11 = vpop.f32.mrb[33].mxu0  ;;  %v7920_v4 = vcombine.high %v2962_v53, %v2970_v59 }
 0x6e0   :  { %v6255_v17 = vmul.f32 %v5675_v14, %v9573_v60  ;;  %v6257_v25 = vmul.f32 %v5757_v11, %v9573_v60  ;;  %v5677_v19 = vpop.f32.mrb[34].mxu1  ;;  %v5759_v21 = vpop.f32.mrb[34].mxu0  ;;  %5978 = vmatpush1.bf16.msra.mxu1 %v7823_v2  ;;  %v2971_v2 = vld [vmem:[#allocation14 + $0xde8] sm:$0xff] }
 0x6e1   :  { %v9669_v48 = vadd.f32 %v6254_v8, %v9605_v23  ;;  %v9672_v1 = vadd.f32 %v6256_v13, %v9607_v24  ;;  %6060 = vmatpush1.bf16.msra.mxu0 %v7825_v3  ;;  %v5678_v51 = vpop.f32.mrb[35].mxu1  ;;  %v5760_v55 = vpop.f32.mrb[35].mxu0  ;;  %5979 = vmatprep.subr.bf16.mxu1 %v7840_v50  ;;  %v2915_v23 = vld [vmem:[#allocation14 + $0xc28] sm:$0xff]  ;;  %v7855_v24 = vcombine.low %v2898_v52, %v2906_v9  ;;  %v2986_v52 = vld [vmem:[#allocation14 + $0xe60] sm:$0xff] }
 0x6e2   :  { %v9675_v58 = vadd.f32 %v6255_v17, %v9613_v27  ;;  %v9678_v28 = vadd.f32 %v6257_v25, %v9615_v29  ;;  %6061 = vmatprep.subr.bf16.mxu0 %v7842_v6  ;;  %v7874_v31 = vcombine.high %v2915_v23, %v2923_v43  ;;  %v2938_v27 = vld [vmem:[#allocation14 + $0xce0] sm:$0xff]  ;;  %v7871_v29 = vcombine.low %v2914_v26, %v2922_v54  ;;  %v2979_v9 = vld [vmem:[#allocation14 + $0xe28] sm:$0xff] }
 0x6e3   :  { %v7873_v36 = vcombine.low %v2915_v23, %v2923_v43  ;;  %v7888_v37 = vcombine.high %v2930_v32, %v2938_v27  ;;  %v7887_v0 = vcombine.low %v2930_v32, %v2938_v27  ;;  %v7903_v3 = vcombine.low %v2946_v39, %v2954_v33  ;;  %v2978_v6 = vld [vmem:[#allocation14 + $0xe20] sm:$0xff]  ;;  %v2987_v8 = vld [vmem:[#allocation14 + $0xe68] sm:$0xff]  ;;  %v2541_v39 = vld [vmem:[#allocation14 + $0x78] sm:$0xff] }
 0x6e4   :  { %5980 = vmatpush1.bf16.msra.mxu1 %v7839_v22  ;;  %v7905_v50 = vcombine.low %v2947_v40, %v2955_v42  ;;  %v7922_v5 = vcombine.high %v2963_v47, %v2971_v2  ;;  %v7919_v13 = vcombine.low %v2962_v53, %v2970_v59  ;;  %v7921_v14 = vcombine.low %v2963_v47, %v2971_v2  ;;  %v3002_v17 = vld [vmem:[#allocation14 + $0xee0] sm:$0xff]  ;;  %v2995_v25 = vld [vmem:[#allocation14 + $0xea8] sm:$0xff]  ;;  %v2549_v53 = vld [vmem:[#allocation14 + $0xb8] sm:$0xff] }
 0x6e5   :  { %6062 = vmatpush1.bf16.msra.mxu0 %v7841_v20  ;;  %5981 = vmatprep.subr.bf16.mxu1 %v7856_v57  ;;  %v7936_v11 = vcombine.high %v2978_v6, %v2986_v52  ;;  %v7938_v16 = vcombine.high %v2979_v9, %v2987_v8  ;;  %v3003_v19 = vld [vmem:[#allocation14 + $0xee8] sm:$0xff]  ;;  %v7935_v21 = vcombine.low %v2978_v6, %v2986_v52  ;;  %v3010_v55 = vld [vmem:[#allocation14 + $0xf20] sm:$0xff]  ;;  %v2557_v59 = vld [vmem:[#allocation14 + $0xf8] sm:$0xff] }
 0x6e6   :  { %6063 = vmatprep.subr.bf16.mxu0 %v7858_v41  ;;  %v7937_v22 = vcombine.low %v2979_v9, %v2987_v8  ;;  %v7952_v20 = vcombine.high %v2994_v18, %v3002_v17  ;;  %v7954_v51 = vcombine.high %v2995_v25, %v3003_v19  ;;  %v3018_v57 = vld [vmem:[#allocation14 + $0xf60] sm:$0xff]  ;;  %v3011_v41 = vld [vmem:[#allocation14 + $0xf28] sm:$0xff]  ;;  %v7951_v54 = vcombine.low %v2994_v18, %v3002_v17  ;;  %v2573_v6 = vld [vmem:[#allocation14 + $0x178] sm:$0xff] }
 0x6e7   :  { %v3019_v26 = vld [vmem:[#allocation14 + $0xf68] sm:$0xff]  ;;  %v7953_v23 = vcombine.low %v2995_v25, %v3003_v19  ;;  %v7968_v43 = vcombine.high %v3010_v55, %v3018_v57  ;;  %v7967_v27 = vcombine.low %v3010_v55, %v3018_v57  ;;  %v7509_v9 = vcombine.low %v2549_v53, %v2557_v59  ;;  %v2589_v18 = vld [vmem:[#allocation14 + $0x1f8] sm:$0xff] }
 0x6e8   :  { %5982 = vmatpush1.bf16.msra.mxu1 %v7855_v24  ;;  %v7970_v24 = vcombine.high %v3011_v41, %v3019_v26  ;;  %v3035_v32 = vld [vmem:[#allocation14 + $0xfe8] sm:$0xff]  ;;  %v7969_v63 = vcombine.low %v3011_v41, %v3019_v26  ;;  %v2605_v55 = vld [vmem:[#allocation14 + $0x278] sm:$0xff] }
 0x6e9   :  { %6064 = vmatpush1.bf16.msra.mxu0 %v7857_v56  ;;  %5983 = vmatprep.subr.bf16.mxu1 %v7872_v30  ;;  %v3026_v56 = vld [vmem:[#allocation14 + $0xfa0] sm:$0xff] }
 0x6ea   :  { %6065 = vmatprep.subr.bf16.mxu0 %v7874_v31  ;;  %v3034_v30 = vld [vmem:[#allocation14 + $0xfe0] sm:$0xff]  ;;  %v3027_v31 = vld [vmem:[#allocation14 + $0xfa8] sm:$0xff] }
 0x6eb   :  { %v7984_v7 = vcombine.high %v3026_v56, %v3034_v30  ;;  %v7983_v33 = vcombine.low %v3026_v56, %v3034_v30  ;;  %v7985_v40 = vcombine.low %v3027_v31, %v3035_v32 }
 0x6ec   :  { %5984 = vmatpush1.bf16.msra.mxu1 %v7871_v29  ;;  %v7986_v29 = vcombine.high %v3027_v31, %v3035_v32 }
 0x6ed   :  { %6066 = vmatpush1.bf16.msra.mxu0 %v7873_v36  ;;  %5985 = vmatprep.subr.bf16.mxu1 %v7888_v37  ;;  %v2532_v36 = vld [vmem:[#allocation14 + $0x30] sm:$0xff] }
 0x6ee   :  { %6067 = vmatprep.subr.bf16.mxu0 %v7890_v38  ;;  %v2540_v37 = vld [vmem:[#allocation14 + $0x70] sm:$0xff]  ;;  %v2533_v38 = vld [vmem:[#allocation14 + $0x38] sm:$0xff] }
 0x6ef   :  { %v7492_v42 = vcombine.high %v2532_v36, %v2540_v37  ;;  %v7493_v47 = vcombine.low %v2533_v38, %v2541_v39 }
 0x6f0   :  { %5986 = vmatpush1.bf16.msra.mxu1 %v7887_v0  ;;  %v7494_v0 = vcombine.high %v2533_v38, %v2541_v39 }
 0x6f1   :  { %6068 = vmatpush1.bf16.msra.mxu0 %v7889_v44  ;;  %5987 = vmatprep.subr.bf16.mxu1 %v7904_v10  ;;  %v2548_v44 = vld [vmem:[#allocation14 + $0xb0] sm:$0xff] }
 0x6f2   :  { %6069 = vmatprep.subr.bf16.mxu0 %v7906_v45  ;;  %v2556_v10 = vld [vmem:[#allocation14 + $0xf0] sm:$0xff]  ;;  %v7491_v45 = vcombine.low %v2532_v36, %v2540_v37 }
 0x6f3   :  { %v7508_v2 = vcombine.high %v2548_v44, %v2556_v10  ;;  %v7507_v52 = vcombine.low %v2548_v44, %v2556_v10 }
 0x6f4   :  { %5988 = vmatpush1.bf16.msra.mxu1 %v7903_v3  ;;  %v2564_v3 = vld [vmem:[#allocation14 + $0x130] sm:$0xff] }
 0x6f5   :  { %6070 = vmatpush1.bf16.msra.mxu0 %v7905_v50  ;;  %5989 = vmatprep.subr.bf16.mxu1 %v7920_v4  ;;  %v2572_v50 = vld [vmem:[#allocation14 + $0x170] sm:$0xff]  ;;  %v7510_v4 = vcombine.high %v2549_v53, %v2557_v59 }
 0x6f6   :  { %6071 = vmatprep.subr.bf16.mxu0 %v7922_v5  ;;  %v2565_v5 = vld [vmem:[#allocation14 + $0x138] sm:$0xff]  ;;  %v7524_v8 = vcombine.high %v2564_v3, %v2572_v50  ;;  %v7523_v17 = vcombine.low %v2564_v3, %v2572_v50  ;;  %v2660_v59 = vld [vmem:[#allocation14 + $0x430] sm:$0xff] }
 0x6f7   :  { %v7525_v25 = vcombine.low %v2565_v5, %v2573_v6  ;;  %v2669_v3 = vld [vmem:[#allocation14 + $0x478] sm:$0xff] }
 0x6f8   :  { %5990 = vmatpush1.bf16.msra.mxu1 %v7919_v13  ;;  %v7526_v13 = vcombine.high %v2565_v5, %v2573_v6 }
 0x6f9   :  { %6072 = vmatpush1.bf16.msra.mxu0 %v7921_v14  ;;  %5991 = vmatprep.subr.bf16.mxu1 %v7936_v11  ;;  %v2580_v14 = vld [vmem:[#allocation14 + $0x1b0] sm:$0xff] }
 0x6fa   :  { %6073 = vmatprep.subr.bf16.mxu0 %v7938_v16  ;;  %v2588_v11 = vld [vmem:[#allocation14 + $0x1f0] sm:$0xff]  ;;  %v2581_v16 = vld [vmem:[#allocation14 + $0x1b8] sm:$0xff] }
 0x6fb   :  { %v7540_v19 = vcombine.high %v2580_v14, %v2588_v11  ;;  %v7541_v57 = vcombine.low %v2581_v16, %v2589_v18 }
 0x6fc   :  { %5992 = vmatpush1.bf16.msra.mxu1 %v7935_v21  ;;  %v7542_v21 = vcombine.high %v2581_v16, %v2589_v18 }
 0x6fd   :  { %6074 = vmatpush1.bf16.msra.mxu0 %v7937_v22  ;;  %5993 = vmatprep.subr.bf16.mxu1 %v7952_v20  ;;  %v2596_v22 = vld [vmem:[#allocation14 + $0x230] sm:$0xff] }
 0x6fe   :  { %6075 = vmatprep.subr.bf16.mxu0 %v7954_v51  ;;  %v2604_v20 = vld [vmem:[#allocation14 + $0x270] sm:$0xff]  ;;  %v2597_v51 = vld [vmem:[#allocation14 + $0x238] sm:$0xff] }
 0x6ff   :  { %v7556_v41 = vcombine.high %v2596_v22, %v2604_v20  ;;  %v7558_v26 = vcombine.high %v2597_v51, %v2605_v55  ;;  %v7555_v56 = vcombine.low %v2596_v22, %v2604_v20  ;;  %v7557_v30 = vcombine.low %v2597_v51, %v2605_v55 }
 0x700   :  { %5994 = vmatpush1.bf16.msra.mxu1 %v7951_v54  ;;  %v2612_v54 = vld [vmem:[#allocation14 + $0x2b0] sm:$0xff] }
 0x701   :  { %6076 = vmatpush1.bf16.msra.mxu0 %v7953_v23  ;;  %5995 = vmatprep.subr.bf16.mxu1 %v7968_v43  ;;  %v2620_v23 = vld [vmem:[#allocation14 + $0x2f0] sm:$0xff]  ;;  %v2613_v43 = vld [vmem:[#allocation14 + $0x2b8] sm:$0xff] }
 0x702   :  { %6077 = vmatprep.subr.bf16.mxu0 %v7970_v24  ;;  %v2621_v24 = vld [vmem:[#allocation14 + $0x2f8] sm:$0xff]  ;;  %v7572_v31 = vcombine.high %v2612_v54, %v2620_v23  ;;  %v7571_v36 = vcombine.low %v2612_v54, %v2620_v23 }
 0x703   :  { %v7574_v32 = vcombine.high %v2613_v43, %v2621_v24  ;;  %v7573_v37 = vcombine.low %v2613_v43, %v2621_v24 }
 0x704   :  { %5996 = vmatpush1.bf16.msra.mxu1 %v7967_v27  ;;  %v2628_v27 = vld [vmem:[#allocation14 + $0x330] sm:$0xff] }
 0x705   :  { %6078 = vmatpush1.bf16.msra.mxu0 %v7969_v63  ;;  %5997 = vmatprep.subr.bf16.mxu1 %v7984_v7  ;;  %v2636_v63 = vld [vmem:[#allocation14 + $0x370] sm:$0xff]  ;;  %v2629_v7 = vld [vmem:[#allocation14 + $0x338] sm:$0xff] }
 0x706   :  { %6079 = vmatprep.subr.bf16.mxu0 %v7986_v29  ;;  %v2637_v29 = vld [vmem:[#allocation14 + $0x378] sm:$0xff]  ;;  %v7588_v38 = vcombine.high %v2628_v27, %v2636_v63  ;;  %v7587_v44 = vcombine.low %v2628_v27, %v2636_v63 }
 0x707   :  { %v7590_v39 = vcombine.high %v2629_v7, %v2637_v29  ;;  %v7589_v10 = vcombine.low %v2629_v7, %v2637_v29 }
 0x708   :  { %5998 = vmatpush1.bf16.msra.mxu1 %v7983_v33  ;;  %v2644_v33 = vld [vmem:[#allocation14 + $0x3b0] sm:$0xff] }
 0x709   :  { %6080 = vmatpush1.bf16.msra.mxu0 %v7985_v40  ;;  %6090 = vmatprep.subr.bf16.mxu1 %v7492_v42  ;;  %v2652_v40 = vld [vmem:[#allocation14 + $0x3f0] sm:$0xff]  ;;  %v2645_v42 = vld [vmem:[#allocation14 + $0x3b8] sm:$0xff] }
 0x70a   :  { %6172 = vmatprep.subr.bf16.mxu0 %v7494_v0  ;;  %v2653_v0 = vld [vmem:[#allocation14 + $0x3f8] sm:$0xff]  ;;  %v7603_v50 = vcombine.low %v2644_v33, %v2652_v40 }
 0x70b   :  { %6000 = vmatmul.mubr.bf16.vlgmr.msra.gmra.mrb[40].mxu1 %v9646_v34  ;;  %v7606_v53 = vcombine.high %v2645_v42, %v2653_v0 }
 0x70c   :  { %6082 = vmatmul.mubr.bf16.vlgmr.msra.gmra.mrb[40].mxu0 %v9646_v34  ;;  %6091 = vmatpush1.bf16.msra.mxu1 %v7491_v45  ;;  %v7604_v45 = vcombine.high %v2644_v33, %v2652_v40 }
 0x70d   :  { %6122 = vmatprep.mubr.bf16.mxu1 %v9625_v49  ;;  %6173 = vmatpush1.bf16.msra.mxu0 %v7493_v47  ;;  %v2668_v47 = vld [vmem:[#allocation14 + $0x470] sm:$0xff] }
 0x70e   :  { %6204 = vmatprep.mubr.bf16.mxu0 %v9625_v49  ;;  %6092 = vmatprep.subr.bf16.mxu1 %v7508_v2  ;;  %v7539_v49 = vcombine.low %v2580_v14, %v2588_v11  ;;  %v2661_v2 = vld [vmem:[#allocation14 + $0x438] sm:$0xff]  ;;  %v7620_v5 = vcombine.high %v2660_v59, %v2668_v47  ;;  %v7619_v14 = vcombine.low %v2660_v59, %v2668_v47 }
 0x70f   :  { %6174 = vmatprep.subr.bf16.mxu0 %v7510_v4  ;;  %v7605_v4 = vcombine.low %v2645_v42, %v2653_v0  ;;  %v7622_v6 = vcombine.high %v2661_v2, %v2669_v3  ;;  %v7621_v11 = vcombine.low %v2661_v2, %v2669_v3 }
 0x710   :  { %6093 = vmatpush1.bf16.msra.mxu1 %v7507_v52  ;;  %v2676_v52 = vld [vmem:[#allocation14 + $0x4b0] sm:$0xff] }
 0x711   :  { %6175 = vmatpush1.bf16.msra.mxu0 %v7509_v9  ;;  %6094 = vmatprep.subr.bf16.mxu1 %v7524_v8  ;;  %v2684_v9 = vld [vmem:[#allocation14 + $0x4f0] sm:$0xff]  ;;  %v2677_v8 = vld [vmem:[#allocation14 + $0x4b8] sm:$0xff] }
 0x712   :  { %6176 = vmatprep.subr.bf16.mxu0 %v7526_v13  ;;  %v2685_v13 = vld [vmem:[#allocation14 + $0x4f8] sm:$0xff]  ;;  %v7636_v16 = vcombine.high %v2676_v52, %v2684_v9  ;;  %v7635_v22 = vcombine.low %v2676_v52, %v2684_v9 }
 0x713   :  { %v7638_v18 = vcombine.high %v2677_v8, %v2685_v13  ;;  %v7637_v20 = vcombine.low %v2677_v8, %v2685_v13 }
 0x714   :  { %6095 = vmatpush1.bf16.msra.mxu1 %v7523_v17  ;;  %v2692_v17 = vld [vmem:[#allocation14 + $0x530] sm:$0xff] }
 0x715   :  { %6177 = vmatpush1.bf16.msra.mxu0 %v7525_v25  ;;  %6096 = vmatprep.subr.bf16.mxu1 %v7540_v19  ;;  %v2700_v25 = vld [vmem:[#allocation14 + $0x570] sm:$0xff]  ;;  %v2693_v19 = vld [vmem:[#allocation14 + $0x538] sm:$0xff] }
 0x716   :  { %6178 = vmatprep.subr.bf16.mxu0 %v7542_v21  ;;  %v2701_v21 = vld [vmem:[#allocation14 + $0x578] sm:$0xff]  ;;  %v7652_v51 = vcombine.high %v2692_v17, %v2700_v25  ;;  %v7651_v54 = vcombine.low %v2692_v17, %v2700_v25 }
 0x717   :  { %v7654_v55 = vcombine.high %v2693_v19, %v2701_v21  ;;  %v7653_v23 = vcombine.low %v2693_v19, %v2701_v21 }
 0x718   :  { %6097 = vmatpush1.bf16.msra.mxu1 %v7539_v49  ;;  %v2708_v49 = vld [vmem:[#allocation14 + $0x5b0] sm:$0xff] }
 0x719   :  { %6179 = vmatpush1.bf16.msra.mxu0 %v7541_v57  ;;  %6098 = vmatprep.subr.bf16.mxu1 %v7556_v41  ;;  %v2716_v57 = vld [vmem:[#allocation14 + $0x5f0] sm:$0xff]  ;;  %v2709_v41 = vld [vmem:[#allocation14 + $0x5b8] sm:$0xff] }
 0x71a   :  { %6180 = vmatprep.subr.bf16.mxu0 %v7558_v26  ;;  %v2717_v26 = vld [vmem:[#allocation14 + $0x5f8] sm:$0xff]  ;;  %v7668_v43 = vcombine.high %v2708_v49, %v2716_v57  ;;  %v7667_v27 = vcombine.low %v2708_v49, %v2716_v57 }
 0x71b   :  { %v7670_v24 = vcombine.high %v2709_v41, %v2717_v26  ;;  %v7669_v63 = vcombine.low %v2709_v41, %v2717_v26  ;;  %v2813_v49 = vld [vmem:[#allocation14 + $0x8f8] sm:$0xff]  ;;  %v2820_v26 = vld [vmem:[#allocation14 + $0x930] sm:$0xff] }
 0x71c   :  { %6099 = vmatpush1.bf16.msra.mxu1 %v7555_v56  ;;  %v2724_v56 = vld [vmem:[#allocation14 + $0x630] sm:$0xff] }
 0x71d   :  { %6181 = vmatpush1.bf16.msra.mxu0 %v7557_v30  ;;  %6100 = vmatprep.subr.bf16.mxu1 %v7572_v31  ;;  %v2732_v30 = vld [vmem:[#allocation14 + $0x670] sm:$0xff]  ;;  %v2725_v31 = vld [vmem:[#allocation14 + $0x638] sm:$0xff] }
 0x71e   :  { %6182 = vmatprep.subr.bf16.mxu0 %v7574_v32  ;;  %v2733_v32 = vld [vmem:[#allocation14 + $0x678] sm:$0xff]  ;;  %v7684_v7 = vcombine.high %v2724_v56, %v2732_v30  ;;  %v7683_v33 = vcombine.low %v2724_v56, %v2732_v30 }
 0x71f   :  { %v7686_v29 = vcombine.high %v2725_v31, %v2733_v32  ;;  %v7685_v40 = vcombine.low %v2725_v31, %v2733_v32 }
 0x720   :  { %6101 = vmatpush1.bf16.msra.mxu1 %v7571_v36  ;;  %v2740_v36 = vld [vmem:[#allocation14 + $0x6b0] sm:$0xff] }
 0x721   :  { %6183 = vmatpush1.bf16.msra.mxu0 %v7573_v37  ;;  %6102 = vmatprep.subr.bf16.mxu1 %v7588_v38  ;;  %v2748_v37 = vld [vmem:[#allocation14 + $0x6f0] sm:$0xff]  ;;  %v2741_v38 = vld [vmem:[#allocation14 + $0x6b8] sm:$0xff] }
 0x722   :  { %6184 = vmatprep.subr.bf16.mxu0 %v7590_v39  ;;  %v2749_v39 = vld [vmem:[#allocation14 + $0x6f8] sm:$0xff]  ;;  %v7700_v42 = vcombine.high %v2740_v36, %v2748_v37  ;;  %v7699_v59 = vcombine.low %v2740_v36, %v2748_v37 }
 0x723   :  { %v7702_v0 = vcombine.high %v2741_v38, %v2749_v39  ;;  %v7701_v47 = vcombine.low %v2741_v38, %v2749_v39  ;;  %v2852_v39 = vld [vmem:[#allocation14 + $0xa30] sm:$0xff] }
 0x724   :  { %6103 = vmatpush1.bf16.msra.mxu1 %v7587_v44  ;;  %v2756_v44 = vld [vmem:[#allocation14 + $0x730] sm:$0xff] }
 0x725   :  { %6185 = vmatpush1.bf16.msra.mxu0 %v7589_v10  ;;  %6104 = vmatprep.subr.bf16.mxu1 %v7604_v45  ;;  %v2764_v10 = vld [vmem:[#allocation14 + $0x770] sm:$0xff]  ;;  %v2757_v45 = vld [vmem:[#allocation14 + $0x738] sm:$0xff] }
 0x726   :  { %6186 = vmatprep.subr.bf16.mxu0 %v7606_v53  ;;  %v2765_v53 = vld [vmem:[#allocation14 + $0x778] sm:$0xff]  ;;  %v7716_v2 = vcombine.high %v2756_v44, %v2764_v10  ;;  %v7715_v52 = vcombine.low %v2756_v44, %v2764_v10 }
 0x727   :  { %v7718_v3 = vcombine.high %v2757_v45, %v2765_v53  ;;  %v7717_v9 = vcombine.low %v2757_v45, %v2765_v53  ;;  %v2868_v45 = vld [vmem:[#allocation14 + $0xab0] sm:$0xff] }
 0x728   :  { %6105 = vmatpush1.bf16.msra.mxu1 %v7603_v50  ;;  %v2772_v50 = vld [vmem:[#allocation14 + $0x7b0] sm:$0xff] }
 0x729   :  { %6187 = vmatpush1.bf16.msra.mxu0 %v7605_v4  ;;  %6106 = vmatprep.subr.bf16.mxu1 %v7620_v5  ;;  %v2780_v4 = vld [vmem:[#allocation14 + $0x7f0] sm:$0xff]  ;;  %v2773_v5 = vld [vmem:[#allocation14 + $0x7b8] sm:$0xff] }
 0x72a   :  { %6188 = vmatprep.subr.bf16.mxu0 %v7622_v6  ;;  %v2781_v6 = vld [vmem:[#allocation14 + $0x7f8] sm:$0xff]  ;;  %v7732_v8 = vcombine.high %v2772_v50, %v2780_v4  ;;  %v7731_v17 = vcombine.low %v2772_v50, %v2780_v4  ;;  %v2876_v53 = vld [vmem:[#allocation14 + $0xaf0] sm:$0xff] }
 0x72b   :  { %v7734_v13 = vcombine.high %v2773_v5, %v2781_v6  ;;  %v7733_v25 = vcombine.low %v2773_v5, %v2781_v6  ;;  %v7828_v50 = vcombine.high %v2868_v45, %v2876_v53  ;;  %v2884_v5 = vld [vmem:[#allocation14 + $0xb30] sm:$0xff] }
 0x72c   :  { %6107 = vmatpush1.bf16.msra.mxu1 %v7619_v14  ;;  %v2788_v14 = vld [vmem:[#allocation14 + $0x830] sm:$0xff] }
 0x72d   :  { %6189 = vmatpush1.bf16.msra.mxu0 %v7621_v11  ;;  %6108 = vmatprep.subr.bf16.mxu1 %v7636_v16  ;;  %v2796_v11 = vld [vmem:[#allocation14 + $0x870] sm:$0xff]  ;;  %v2789_v16 = vld [vmem:[#allocation14 + $0x838] sm:$0xff] }
 0x72e   :  { %6190 = vmatprep.subr.bf16.mxu0 %v7638_v18  ;;  %v2797_v18 = vld [vmem:[#allocation14 + $0x878] sm:$0xff]  ;;  %v7748_v19 = vcombine.high %v2788_v14, %v2796_v11  ;;  %v2892_v6 = vld [vmem:[#allocation14 + $0xb70] sm:$0xff] }
 0x72f   :  { %v7750_v21 = vcombine.high %v2789_v16, %v2797_v18  ;;  %v7749_v57 = vcombine.low %v2789_v16, %v2797_v18  ;;  %v2900_v18 = vld [vmem:[#allocation14 + $0xbb0] sm:$0xff] }
 0x730   :  { %6109 = vmatpush1.bf16.msra.mxu1 %v7635_v22  ;;  %v2804_v22 = vld [vmem:[#allocation14 + $0x8b0] sm:$0xff] }
 0x731   :  { %6191 = vmatpush1.bf16.msra.mxu0 %v7637_v20  ;;  %6110 = vmatprep.subr.bf16.mxu1 %v7652_v51  ;;  %v2812_v20 = vld [vmem:[#allocation14 + $0x8f0] sm:$0xff]  ;;  %v7747_v51 = vcombine.low %v2788_v14, %v2796_v11  ;;  %v7844_v14 = vcombine.high %v2884_v5, %v2892_v6 }
 0x732   :  { %6192 = vmatprep.subr.bf16.mxu0 %v7654_v55  ;;  %v2805_v55 = vld [vmem:[#allocation14 + $0x8b8] sm:$0xff]  ;;  %v7764_v41 = vcombine.high %v2804_v22, %v2812_v20  ;;  %v7763_v56 = vcombine.low %v2804_v22, %v2812_v20 }
 0x733   :  { %v7765_v30 = vcombine.low %v2805_v55, %v2813_v49  ;;  %v2901_v22 = vld [vmem:[#allocation14 + $0xbb8] sm:$0xff] }
 0x734   :  { %6111 = vmatpush1.bf16.msra.mxu1 %v7651_v54  ;;  %v2828_v54 = vld [vmem:[#allocation14 + $0x970] sm:$0xff]  ;;  %v2909_v20 = vld [vmem:[#allocation14 + $0xbf8] sm:$0xff] }
 0x735   :  { %6193 = vmatpush1.bf16.msra.mxu0 %v7653_v23  ;;  %6112 = vmatprep.subr.bf16.mxu1 %v7668_v43  ;;  %v7766_v23 = vcombine.high %v2805_v55, %v2813_v49  ;;  %v2821_v43 = vld [vmem:[#allocation14 + $0x938] sm:$0xff]  ;;  %v7780_v31 = vcombine.high %v2820_v26, %v2828_v54  ;;  %v7779_v36 = vcombine.low %v2820_v26, %v2828_v54 }
 0x736   :  { %6194 = vmatprep.subr.bf16.mxu0 %v7670_v24  ;;  %v2829_v24 = vld [vmem:[#allocation14 + $0x978] sm:$0xff] }
 0x737   :  { %v7782_v32 = vcombine.high %v2821_v43, %v2829_v24 }
 0x738   :  { %6113 = vmatpush1.bf16.msra.mxu1 %v7667_v27  ;;  %v2836_v27 = vld [vmem:[#allocation14 + $0x9b0] sm:$0xff] }
 0x739   :  { %6195 = vmatpush1.bf16.msra.mxu0 %v7669_v63  ;;  %6114 = vmatprep.subr.bf16.mxu1 %v7684_v7  ;;  %v2844_v63 = vld [vmem:[#allocation14 + $0x9f0] sm:$0xff]  ;;  %v2837_v7 = vld [vmem:[#allocation14 + $0x9b8] sm:$0xff] }
 0x73a   :  { %6196 = vmatprep.subr.bf16.mxu0 %v7686_v29  ;;  %v2845_v29 = vld [vmem:[#allocation14 + $0x9f8] sm:$0xff]  ;;  %v7796_v37 = vcombine.high %v2836_v27, %v2844_v63 }
 0x73b   :  { %v7798_v38 = vcombine.high %v2837_v7, %v2845_v29 }
 0x73c   :  { %6115 = vmatpush1.bf16.msra.mxu1 %v7683_v33  ;;  %v2860_v33 = vld [vmem:[#allocation14 + $0xa70] sm:$0xff] }
 0x73d   :  { %6197 = vmatpush1.bf16.msra.mxu0 %v7685_v40  ;;  %6116 = vmatprep.subr.bf16.mxu1 %v7700_v42  ;;  %v2853_v40 = vld [vmem:[#allocation14 + $0xa38] sm:$0xff]  ;;  %v7812_v44 = vcombine.high %v2852_v39, %v2860_v33 }
 0x73e   :  { %6198 = vmatprep.subr.bf16.mxu0 %v7702_v0  ;;  %v2861_v42 = vld [vmem:[#allocation14 + $0xa78] sm:$0xff]  ;;  %v7797_v0 = vcombine.low %v2837_v7, %v2845_v29  ;;  %v2924_v7 = vld [vmem:[#allocation14 + $0xc70] sm:$0xff] }
 0x73f   :  { %v7814_v10 = vcombine.high %v2853_v40, %v2861_v42  ;;  %v2917_v29 = vld [vmem:[#allocation14 + $0xc38] sm:$0xff] }
 0x740   :  { %6117 = vmatpush1.bf16.msra.mxu1 %v7699_v59  ;;  %v2869_v59 = vld [vmem:[#allocation14 + $0xab8] sm:$0xff] }
 0x741   :  { %6199 = vmatpush1.bf16.msra.mxu0 %v7701_v47  ;;  %6118 = vmatprep.subr.bf16.mxu1 %v7716_v2  ;;  %v2877_v47 = vld [vmem:[#allocation14 + $0xaf8] sm:$0xff]  ;;  %v7811_v2 = vcombine.low %v2852_v39, %v2860_v33  ;;  %v2940_v39 = vld [vmem:[#allocation14 + $0xcf0] sm:$0xff] }
 0x742   :  { %6200 = vmatprep.subr.bf16.mxu0 %v7718_v3  ;;  %v7813_v3 = vcombine.low %v2853_v40, %v2861_v42  ;;  %v7830_v4 = vcombine.high %v2869_v59, %v2877_v47  ;;  %v2933_v33 = vld [vmem:[#allocation14 + $0xcb8] sm:$0xff] }
 0x743   :  { %v2941_v40 = vld [vmem:[#allocation14 + $0xcf8] sm:$0xff] }
 0x744   :  { %6119 = vmatpush1.bf16.msra.mxu1 %v7715_v52  ;;  %v2885_v52 = vld [vmem:[#allocation14 + $0xb38] sm:$0xff] }
 0x745   :  { %6201 = vmatpush1.bf16.msra.mxu0 %v7717_v9  ;;  %6120 = vmatprep.subr.bf16.mxu1 %v7732_v8  ;;  %v2893_v9 = vld [vmem:[#allocation14 + $0xb78] sm:$0xff]  ;;  %v7827_v8 = vcombine.low %v2868_v45, %v2876_v53 }
 0x746   :  { %6202 = vmatprep.subr.bf16.mxu0 %v7734_v13  ;;  %v7829_v13 = vcombine.low %v2869_v59, %v2877_v47  ;;  %v7846_v16 = vcombine.high %v2885_v52, %v2893_v9  ;;  %v7845_v26 = vcombine.low %v2885_v52, %v2893_v9  ;;  %v2949_v45 = vld [vmem:[#allocation14 + $0xd38] sm:$0xff]  ;;  %v7893_v47 = vcombine.low %v2933_v33, %v2941_v40 }
 0x747   :  { %v2957_v53 = vld [vmem:[#allocation14 + $0xd78] sm:$0xff] }
 0x748   :  { %6121 = vmatpush1.bf16.msra.mxu1 %v7731_v17  ;;  %v2908_v17 = vld [vmem:[#allocation14 + $0xbf0] sm:$0xff]  ;;  %v7909_v9 = vcombine.low %v2949_v45, %v2957_v53 }
 0x749   :  { %6203 = vmatpush1.bf16.msra.mxu0 %v7733_v25  ;;  %6131 = vmatprep.subr.bf16.mxu1 %v7748_v19 }
 0x74a   :  { %6213 = vmatprep.subr.bf16.mxu0 %v7750_v21 }
 0x74b   :  { %6123 = vmatmul.mubr.bf16.vlgmr.msra.gmra.mrb[44].mxu1 %v9627_v46 }
 0x74c   :  { %6205 = vmatmul.mubr.bf16.vlgmr.msra.gmra.mrb[44].mxu0 %v9627_v46  ;;  %6132 = vmatpush1.bf16.msra.mxu1 %v7747_v51  ;;  %v7781_v46 = vcombine.low %v2821_v43, %v2829_v24 }
 0x74d   :  { %6163 = vmatprep.mubr.bf16.mxu1 %v9631_v15  ;;  %6214 = vmatpush1.bf16.msra.mxu0 %v7749_v57 }
 0x74e   :  { %6245 = vmatprep.mubr.bf16.mxu0 %v9631_v15  ;;  %6133 = vmatprep.subr.bf16.mxu1 %v7764_v41  ;;  %v7795_v15 = vcombine.low %v2836_v27, %v2844_v63  ;;  %v7843_v41 = vcombine.low %v2884_v5, %v2892_v6  ;;  %v7862_v27 = vcombine.high %v2901_v22, %v2909_v20  ;;  %v2916_v63 = vld [vmem:[#allocation14 + $0xc30] sm:$0xff]  ;;  %v2965_v5 = vld [vmem:[#allocation14 + $0xdb8] sm:$0xff] }
 0x74f   :  { %6215 = vmatprep.subr.bf16.mxu0 %v7766_v23  ;;  %v7875_v42 = vcombine.low %v2916_v63, %v2924_v7  ;;  %v2973_v6 = vld [vmem:[#allocation14 + $0xdf8] sm:$0xff] }
 0x750   :  { %6134 = vmatpush1.bf16.msra.mxu1 %v7763_v56  ;;  %v7860_v56 = vcombine.high %v2900_v18, %v2908_v17 }
 0x751   :  { %6216 = vmatpush1.bf16.msra.mxu0 %v7765_v30  ;;  %6135 = vmatprep.subr.bf16.mxu1 %v7780_v31 }
 0x752   :  { %6217 = vmatprep.subr.bf16.mxu0 %v7782_v32 }
 0x754   :  { %6136 = vmatpush1.bf16.msra.mxu1 %v7779_v36  ;;  %v2925_v36 = vld [vmem:[#allocation14 + $0xc78] sm:$0xff] }
 0x755   :  { %6218 = vmatpush1.bf16.msra.mxu0 %v7781_v46  ;;  %6137 = vmatprep.subr.bf16.mxu1 %v7796_v37  ;;  %v7859_v46 = vcombine.low %v2900_v18, %v2908_v17  ;;  %v7861_v37 = vcombine.low %v2901_v22, %v2909_v20  ;;  %v2989_v18 = vld [vmem:[#allocation14 + $0xe78] sm:$0xff]  ;;  %v2996_v22 = vld [vmem:[#allocation14 + $0xeb0] sm:$0xff] }
 0x756   :  { %6219 = vmatprep.subr.bf16.mxu0 %v7798_v38  ;;  %v7878_v38 = vcombine.high %v2917_v29, %v2925_v36  ;;  %v3004_v20 = vld [vmem:[#allocation14 + $0xef0] sm:$0xff] }
 0x758   :  { %6138 = vmatpush1.bf16.msra.mxu1 %v7795_v15 }
 0x759   :  { %6220 = vmatpush1.bf16.msra.mxu0 %v7797_v0  ;;  %6139 = vmatprep.subr.bf16.mxu1 %v7812_v44  ;;  %v7894_v0 = vcombine.high %v2933_v33, %v2941_v40  ;;  %v2948_v44 = vld [vmem:[#allocation14 + $0xd30] sm:$0xff] }
 0x75a   :  { %6221 = vmatprep.subr.bf16.mxu0 %v7814_v10  ;;  %v2956_v10 = vld [vmem:[#allocation14 + $0xd70] sm:$0xff] }
 0x75b   :  { %v7907_v52 = vcombine.low %v2948_v44, %v2956_v10 }
 0x75c   :  { %6140 = vmatpush1.bf16.msra.mxu1 %v7811_v2  ;;  %v7908_v2 = vcombine.high %v2948_v44, %v2956_v10  ;;  %v8607_v44 = vld [vmem:[#allocation16 + $0x24] ss:$16 sps:$4 sm:$0xff]   ;;  %v8610_v10 = vld [vmem:[#allocation16 + $0x2c] ss:$16 sps:$4 sm:$0xff]  }
 0x75d   :  { %6222 = vmatpush1.bf16.msra.mxu0 %v7813_v3  ;;  %6141 = vmatprep.subr.bf16.mxu1 %v7828_v50  ;;  %v7910_v3 = vcombine.high %v2949_v45, %v2957_v53  ;;  %v2964_v50 = vld [vmem:[#allocation14 + $0xdb0] sm:$0xff]  ;;  %v8608_v53 = vld [vmem:[#allocation16 + $0x28] ss:$16 sps:$4 sm:$0xff]  }
 0x75e   :  { %v5837_v11 = vpop.f32.mrb[36].mxu1  ;;  %6223 = vmatprep.subr.bf16.mxu0 %v7830_v4  ;;  %v2972_v4 = vld [vmem:[#allocation14 + $0xdf0] sm:$0xff] }
 0x75f   :  { %v6262_v25 = vmul.f32 %v5837_v11, %v9575_v61  ;;  %v5919_v19 = vpop.f32.mrb[36].mxu0  ;;  %v5839_v21 = vpop.f32.mrb[37].mxu1  ;;  %v2988_v11 = vld [vmem:[#allocation14 + $0xe70] sm:$0xff]  ;;  %v7923_v17 = vcombine.low %v2964_v50, %v2972_v4 }
 0x760   :  { %v6264_v51 = vmul.f32 %v5919_v19, %v9575_v61  ;;  %v6263_v55 = vmul.f32 %v5839_v21, %v9575_v61  ;;  %v5921_v49 = vpop.f32.mrb[37].mxu0  ;;  %v5841_v57 = vpop.f32.mrb[38].mxu1  ;;  %6142 = vmatpush1.bf16.msra.mxu1 %v7827_v8  ;;  %v7924_v8 = vcombine.high %v2964_v50, %v2972_v4  ;;  %v8605_v45 = vld [vmem:[#allocation16 + $0x20] ss:$16 sps:$4 sm:$0xff]   ;;  %v8619_v50 = vld [vmem:[#allocation16 + $0x64] ss:$16 sps:$4 sm:$0xff]  }
 0x761   :  { %v9692_v54 = vadd.f32 %v6262_v25, %v9669_v48  ;;  %v6265_v23 = vmul.f32 %v5921_v49, %v9575_v61  ;;  %v5923_v43 = vpop.f32.mrb[38].mxu0  ;;  %6224 = vmatpush1.bf16.msra.mxu0 %v7829_v13  ;;  %v5842_v24 = vpop.f32.mrb[39].mxu1  ;;  %6143 = vmatprep.subr.bf16.mxu1 %v7844_v14  ;;  %v7926_v13 = vcombine.high %v2965_v5, %v2973_v6  ;;  %v2980_v14 = vld [vmem:[#allocation14 + $0xe30] sm:$0xff]  ;;  %v8622_v4 = vld [vmem:[#allocation16 + $0x6c] ss:$16 sps:$4 sm:$0xff]  }
 0x762   :  { %v9696_v30 = vadd.f32 %v6264_v51, %v9672_v1  ;;  %v9699_v31 = vadd.f32 %v6263_v55, %v9675_v58  ;;  %v5924_v32 = vpop.f32.mrb[39].mxu0  ;;  %6225 = vmatprep.subr.bf16.mxu0 %v7846_v16  ;;  %v7876_v1 = vcombine.high %v2916_v63, %v2924_v7  ;;  %v2932_v58 = vld [vmem:[#allocation14 + $0xcb0] sm:$0xff]  ;;  %v2981_v16 = vld [vmem:[#allocation14 + $0xe38] sm:$0xff]  ;;  %v7925_v25 = vcombine.low %v2965_v5, %v2973_v6 }
 0x763   :  { %v9702_v48 = vadd.f32 %v6265_v23, %v9678_v28  ;;  %v7877_v28 = vcombine.low %v2917_v29, %v2925_v36  ;;  %v7892_v15 = vcombine.high %v2932_v58, %v2940_v39  ;;  %v7891_v59 = vcombine.low %v2932_v58, %v2940_v39  ;;  %v2997_v51 = vld [vmem:[#allocation14 + $0xeb8] sm:$0xff]  ;;  %v3012_v23 = vld [vmem:[#allocation14 + $0xf30] sm:$0xff] }
 0x764   :  { %6144 = vmatpush1.bf16.msra.mxu1 %v7843_v41  ;;  %v7940_v19 = vcombine.high %v2980_v14, %v2988_v11  ;;  %v7942_v21 = vcombine.high %v2981_v16, %v2989_v18  ;;  %v3005_v55 = vld [vmem:[#allocation14 + $0xef8] sm:$0xff]  ;;  %v7939_v49 = vcombine.low %v2980_v14, %v2988_v11  ;;  %v7941_v57 = vcombine.low %v2981_v16, %v2989_v18  ;;  %v3020_v43 = vld [vmem:[#allocation14 + $0xf70] sm:$0xff] }
 0x765   :  { %6226 = vmatpush1.bf16.msra.mxu0 %v7845_v26  ;;  %6145 = vmatprep.subr.bf16.mxu1 %v7860_v56  ;;  %v7956_v41 = vcombine.high %v2996_v22, %v3004_v20  ;;  %v7958_v26 = vcombine.high %v2997_v51, %v3005_v55  ;;  %v3013_v24 = vld [vmem:[#allocation14 + $0xf38] sm:$0xff]  ;;  %v7955_v32 = vcombine.low %v2996_v22, %v3004_v20  ;;  %v3028_v29 = vld [vmem:[#allocation14 + $0xfb0] sm:$0xff] }
 0x766   :  { %6227 = vmatprep.subr.bf16.mxu0 %v7862_v27  ;;  %v3021_v56 = vld [vmem:[#allocation14 + $0xf78] sm:$0xff]  ;;  %v7957_v27 = vcombine.low %v2997_v51, %v3005_v55  ;;  %v7972_v63 = vcombine.high %v3012_v23, %v3020_v43  ;;  %v3036_v36 = vld [vmem:[#allocation14 + $0xff0] sm:$0xff] }
 0x767   :  { %v7974_v7 = vcombine.high %v3013_v24, %v3021_v56  ;;  %v7988_v58 = vcombine.high %v3028_v29, %v3036_v36  ;;  %v7987_v33 = vcombine.low %v3028_v29, %v3036_v36  ;;  %v8617_v5 = vld [vmem:[#allocation16 + $0x60] ss:$16 sps:$4 sm:$0xff]   ;;  %v8625_v6 = vld [vmem:[#allocation16 + $0x84] ss:$16 sps:$4 sm:$0xff]   ;;  %v8634_v14 = vld [vmem:[#allocation16 + $0xac] ss:$16 sps:$4 sm:$0xff]  }
 0x768   :  { %6146 = vmatpush1.bf16.msra.mxu1 %v7859_v46  ;;  %v3029_v46 = vld [vmem:[#allocation14 + $0xfb8] sm:$0xff]  ;;  %v8629_v11 = vld [vmem:[#allocation16 + $0xa0] ss:$16 sps:$4 sm:$0xff]   ;;  %v8637_v18 = vld [vmem:[#allocation16 + $0xc4] ss:$16 sps:$4 sm:$0xff]  }
 0x769   :  { %6228 = vmatpush1.bf16.msra.mxu0 %v7861_v37  ;;  %6147 = vmatprep.subr.bf16.mxu1 %v7876_v1  ;;  %v3037_v37 = vld [vmem:[#allocation14 + $0xff8] sm:$0xff]  ;;  %v7971_v1 = vcombine.low %v3012_v23, %v3020_v43  ;;  %v8641_v20 = vld [vmem:[#allocation16 + $0xe0] ss:$16 sps:$4 sm:$0xff]   ;;  %v8649_v55 = vld [vmem:[#allocation16 + $0x104] ss:$16 sps:$4 sm:$0xff]  }
 0x76a   :  { %6229 = vmatprep.subr.bf16.mxu0 %v7878_v38  ;;  %v7973_v38 = vcombine.low %v3013_v24, %v3021_v56  ;;  %v7990_v39 = vcombine.high %v3029_v46, %v3037_v37  ;;  %v7989_v40 = vcombine.low %v3029_v46, %v3037_v37  ;;  %v8632_v16 = vld [vmem:[#allocation16 + $0xa8] ss:$16 sps:$4 sm:$0xff]   ;;  %v8646_v22 = vld [vmem:[#allocation16 + $0xec] ss:$16 sps:$4 sm:$0xff]   ;;  %v8653_v43 = vld [vmem:[#allocation16 + $0x120] ss:$16 sps:$4 sm:$0xff]  }
 0x76b   :  { %v8644_v51 = vld [vmem:[#allocation16 + $0xe8] ss:$16 sps:$4 sm:$0xff]   ;;  %v8658_v23 = vld [vmem:[#allocation16 + $0x12c] ss:$16 sps:$4 sm:$0xff]   ;;  %v8661_v37 = vld [vmem:[#allocation16 + $0x144] ss:$16 sps:$4 sm:$0xff]  }
 0x76c   :  { %6148 = vmatpush1.bf16.msra.mxu1 %v7875_v42  ;;  %v8601_v42 = vld [vmem:[#allocation16 + $0x4] ss:$16 sps:$4 sm:$0xff]   ;;  %v8656_v24 = vld [vmem:[#allocation16 + $0x128] ss:$16 sps:$4 sm:$0xff]  }
 0x76d   :  { %6230 = vmatpush1.bf16.msra.mxu0 %v7877_v28  ;;  %6149 = vmatprep.subr.bf16.mxu1 %v7892_v15  ;;  %v8604_v28 = vld [vmem:[#allocation16 + $0xc] ss:$16 sps:$4 sm:$0xff]   ;;  %v8599_v15 = vld [vmem:[#allocation16] ss:$16 sps:$4 sm:$0xff]  }
 0x76e   :  { %6231 = vmatprep.subr.bf16.mxu0 %v7894_v0  ;;  %v8602_v0 = vld [vmem:[#allocation16 + $0x8] ss:$16 sps:$4 sm:$0xff]  }
 0x770   :  { %6150 = vmatpush1.bf16.msra.mxu1 %v7891_v59  ;;  %v8613_v59 = vld [vmem:[#allocation16 + $0x44] ss:$16 sps:$4 sm:$0xff]  }
 0x771   :  { %6232 = vmatpush1.bf16.msra.mxu0 %v7893_v47  ;;  %6151 = vmatprep.subr.bf16.mxu1 %v7908_v2  ;;  %v8616_v47 = vld [vmem:[#allocation16 + $0x4c] ss:$16 sps:$4 sm:$0xff]   ;;  %v8611_v2 = vld [vmem:[#allocation16 + $0x40] ss:$16 sps:$4 sm:$0xff]  }
 0x772   :  { %6233 = vmatprep.subr.bf16.mxu0 %v7910_v3  ;;  %v8614_v3 = vld [vmem:[#allocation16 + $0x48] ss:$16 sps:$4 sm:$0xff]  }
 0x774   :  { %6152 = vmatpush1.bf16.msra.mxu1 %v7907_v52  ;;  %v8628_v52 = vld [vmem:[#allocation16 + $0x8c] ss:$16 sps:$4 sm:$0xff]  }
 0x775   :  { %6234 = vmatpush1.bf16.msra.mxu0 %v7909_v9  ;;  %6153 = vmatprep.subr.bf16.mxu1 %v7924_v8  ;;  %v8623_v9 = vld [vmem:[#allocation16 + $0x80] ss:$16 sps:$4 sm:$0xff]   ;;  %v8626_v8 = vld [vmem:[#allocation16 + $0x88] ss:$16 sps:$4 sm:$0xff]  }
 0x776   :  { %6235 = vmatprep.subr.bf16.mxu0 %v7926_v13  ;;  %v8631_v13 = vld [vmem:[#allocation16 + $0xa4] ss:$16 sps:$4 sm:$0xff]  }
 0x778   :  { %6154 = vmatpush1.bf16.msra.mxu1 %v7923_v17  ;;  %v8640_v17 = vld [vmem:[#allocation16 + $0xcc] ss:$16 sps:$4 sm:$0xff]  }
 0x779   :  { %6236 = vmatpush1.bf16.msra.mxu0 %v7925_v25  ;;  %6155 = vmatprep.subr.bf16.mxu1 %v7940_v19  ;;  %v8635_v25 = vld [vmem:[#allocation16 + $0xc0] ss:$16 sps:$4 sm:$0xff]   ;;  %v8638_v19 = vld [vmem:[#allocation16 + $0xc8] ss:$16 sps:$4 sm:$0xff]  }
 0x77a   :  { %6237 = vmatprep.subr.bf16.mxu0 %v7942_v21  ;;  %v8643_v21 = vld [vmem:[#allocation16 + $0xe4] ss:$16 sps:$4 sm:$0xff]  }
 0x77c   :  { %6156 = vmatpush1.bf16.msra.mxu1 %v7939_v49  ;;  %v8652_v49 = vld [vmem:[#allocation16 + $0x10c] ss:$16 sps:$4 sm:$0xff]  }
 0x77d   :  { %6238 = vmatpush1.bf16.msra.mxu0 %v7941_v57  ;;  %6157 = vmatprep.subr.bf16.mxu1 %v7956_v41  ;;  %v8647_v57 = vld [vmem:[#allocation16 + $0x100] ss:$16 sps:$4 sm:$0xff]   ;;  %v8650_v41 = vld [vmem:[#allocation16 + $0x108] ss:$16 sps:$4 sm:$0xff]  }
 0x77e   :  { %6239 = vmatprep.subr.bf16.mxu0 %v7958_v26  ;;  %v8655_v26 = vld [vmem:[#allocation16 + $0x124] ss:$16 sps:$4 sm:$0xff]  }
 0x780   :  { %6158 = vmatpush1.bf16.msra.mxu1 %v7955_v32 }
 0x781   :  { %6240 = vmatpush1.bf16.msra.mxu0 %v7957_v27  ;;  %6159 = vmatprep.subr.bf16.mxu1 %v7972_v63 }
 0x782   :  { %6241 = vmatprep.subr.bf16.mxu0 %v7974_v7 }
 0x784   :  { %6160 = vmatpush1.bf16.msra.mxu1 %v7971_v1  ;;  %v8664_v1 = vld [vmem:[#allocation16 + $0x14c] ss:$16 sps:$4 sm:$0xff]  }
 0x785   :  { %6242 = vmatpush1.bf16.msra.mxu0 %v7973_v38  ;;  %6161 = vmatprep.subr.bf16.mxu1 %v7988_v58 }
 0x786   :  { %6243 = vmatprep.subr.bf16.mxu0 %v7990_v39 }
 0x788   :  { %6162 = vmatpush1.bf16.msra.mxu1 %v7987_v33 }
 0x789   :  { %6244 = vmatpush1.bf16.msra.mxu0 %v7989_v40  ;;  %7082 = vmatprep.subr.bf16.mxu1 %v8601_v42  ;;  %v8659_v40 = vld [vmem:[#allocation16 + $0x140] ss:$16 sps:$4 sm:$0xff]   ;;  %v8662_v42 = vld [vmem:[#allocation16 + $0x148] ss:$16 sps:$4 sm:$0xff]  }
 0x78a   :  { %7164 = vmatprep.subr.bf16.mxu0 %v8604_v28 }
 0x78b   :  { %6164 = vmatmul.mubr.bf16.vlgmr.msra.gmra.mrb[44].mxu1 %v9646_v34 }
 0x78c   :  { %6246 = vmatmul.mubr.bf16.vlgmr.msra.gmra.mrb[44].mxu0 %v9646_v34  ;;  %7083 = vmatpush1.bf16.msra.mxu1 %v8599_v15  ;;  %v8620_v34 = vld [vmem:[#allocation16 + $0x68] ss:$16 sps:$4 sm:$0xff]  }
 0x78d   :  { %7165 = vmatpush1.bf16.msra.mxu0 %v8602_v0  ;;  %7084 = vmatprep.subr.bf16.mxu1 %v8607_v44 }
 0x78e   :  { %7166 = vmatprep.subr.bf16.mxu0 %v8610_v10  ;;  %v8670_v10 = vld [vmem:[#allocation16 + $0x16c] ss:$16 sps:$4 sm:$0xff]  }
 0x790   :  { %7085 = vmatpush1.bf16.msra.mxu1 %v8605_v45  ;;  %v8665_v45 = vld [vmem:[#allocation16 + $0x160] ss:$16 sps:$4 sm:$0xff]  }
 0x791   :  { %7167 = vmatpush1.bf16.msra.mxu0 %v8608_v53  ;;  %7086 = vmatprep.subr.bf16.mxu1 %v8613_v59  ;;  %v8668_v53 = vld [vmem:[#allocation16 + $0x168] ss:$16 sps:$4 sm:$0xff]   ;;  %v8676_v59 = vld [vmem:[#allocation16 + $0x18c] ss:$16 sps:$4 sm:$0xff]  }
 0x792   :  { %7168 = vmatprep.subr.bf16.mxu0 %v8616_v47  ;;  %v8674_v47 = vld [vmem:[#allocation16 + $0x188] ss:$16 sps:$4 sm:$0xff]  }
 0x794   :  { %7087 = vmatpush1.bf16.msra.mxu1 %v8611_v2  ;;  %v8682_v2 = vld [vmem:[#allocation16 + $0x1ac] ss:$16 sps:$4 sm:$0xff]  }
 0x795   :  { %7169 = vmatpush1.bf16.msra.mxu0 %v8614_v3  ;;  %7088 = vmatprep.subr.bf16.mxu1 %v8619_v50  ;;  %v8677_v3 = vld [vmem:[#allocation16 + $0x1a0] ss:$16 sps:$4 sm:$0xff]   ;;  %v8680_v50 = vld [vmem:[#allocation16 + $0x1a8] ss:$16 sps:$4 sm:$0xff]  }
 0x796   :  { %7170 = vmatprep.subr.bf16.mxu0 %v8622_v4  ;;  %v8685_v4 = vld [vmem:[#allocation16 + $0x1c4] ss:$16 sps:$4 sm:$0xff]  }
 0x798   :  { %7089 = vmatpush1.bf16.msra.mxu1 %v8617_v5  ;;  %v8688_v5 = vld [vmem:[#allocation16 + $0x1cc] ss:$16 sps:$4 sm:$0xff]  }
 0x799   :  { %7171 = vmatpush1.bf16.msra.mxu0 %v8620_v34  ;;  %7090 = vmatprep.subr.bf16.mxu1 %v8625_v6  ;;  %v8683_v34 = vld [vmem:[#allocation16 + $0x1c0] ss:$16 sps:$4 sm:$0xff]   ;;  %v8686_v6 = vld [vmem:[#allocation16 + $0x1c8] ss:$16 sps:$4 sm:$0xff]  }
 0x79a   :  { %7172 = vmatprep.subr.bf16.mxu0 %v8628_v52  ;;  %v8691_v52 = vld [vmem:[#allocation16 + $0x1e4] ss:$16 sps:$4 sm:$0xff]  }
 0x79c   :  { %7091 = vmatpush1.bf16.msra.mxu1 %v8623_v9  ;;  %v8694_v9 = vld [vmem:[#allocation16 + $0x1ec] ss:$16 sps:$4 sm:$0xff]  }
 0x79d   :  { %7173 = vmatpush1.bf16.msra.mxu0 %v8626_v8  ;;  %7092 = vmatprep.subr.bf16.mxu1 %v8631_v13  ;;  %v8689_v8 = vld [vmem:[#allocation16 + $0x1e0] ss:$16 sps:$4 sm:$0xff]   ;;  %v8692_v13 = vld [vmem:[#allocation16 + $0x1e8] ss:$16 sps:$4 sm:$0xff]  }
 0x79e   :  { %7174 = vmatprep.subr.bf16.mxu0 %v8634_v14  ;;  %v8697_v14 = vld [vmem:[#allocation16 + $0x204] ss:$16 sps:$4 sm:$0xff]  }
 0x7a0   :  { %7093 = vmatpush1.bf16.msra.mxu1 %v8629_v11  ;;  %v8700_v11 = vld [vmem:[#allocation16 + $0x20c] ss:$16 sps:$4 sm:$0xff]  }
 0x7a1   :  { %7175 = vmatpush1.bf16.msra.mxu0 %v8632_v16  ;;  %7094 = vmatprep.subr.bf16.mxu1 %v8637_v18 }
 0x7a2   :  { %7176 = vmatprep.subr.bf16.mxu0 %v8640_v17 }
 0x7a4   :  { %7095 = vmatpush1.bf16.msra.mxu1 %v8635_v25 }
 0x7a5   :  { %7177 = vmatpush1.bf16.msra.mxu0 %v8638_v19  ;;  %7096 = vmatprep.subr.bf16.mxu1 %v8643_v21 }
 0x7a6   :  { %7178 = vmatprep.subr.bf16.mxu0 %v8646_v22 }
 0x7a8   :  { %7097 = vmatpush1.bf16.msra.mxu1 %v8641_v20 }
 0x7a9   :  { %7179 = vmatpush1.bf16.msra.mxu0 %v8644_v51  ;;  %7098 = vmatprep.subr.bf16.mxu1 %v8649_v55 }
 0x7aa   :  { %7180 = vmatprep.subr.bf16.mxu0 %v8652_v49 }
 0x7ac   :  { %7099 = vmatpush1.bf16.msra.mxu1 %v8647_v57 }
 0x7ad   :  { %7181 = vmatpush1.bf16.msra.mxu0 %v8650_v41  ;;  %7100 = vmatprep.subr.bf16.mxu1 %v8655_v26 }
 0x7ae   :  { %7182 = vmatprep.subr.bf16.mxu0 %v8658_v23 }
 0x7b0   :  { %7101 = vmatpush1.bf16.msra.mxu1 %v8653_v43 }
 0x7b1   :  { %7183 = vmatpush1.bf16.msra.mxu0 %v8656_v24  ;;  %7102 = vmatprep.subr.bf16.mxu1 %v8661_v37 }
 0x7b2   :  { %7184 = vmatprep.subr.bf16.mxu0 %v8664_v1 }
 0x7b4   :  { %7103 = vmatpush1.bf16.msra.mxu1 %v8659_v40  ;;  %v8695_v40 = vld [vmem:[#allocation16 + $0x200] ss:$16 sps:$4 sm:$0xff]  }
 0x7b5   :  { %7185 = vmatpush1.bf16.msra.mxu0 %v8662_v42  ;;  %v8698_v42 = vld [vmem:[#allocation16 + $0x208] ss:$16 sps:$4 sm:$0xff]  }
 0x7b6   :  { %7186 = vmatprep.subr.bf16.mxu0 %v8670_v10  ;;  %v8701_v10 = vld [vmem:[#allocation16 + $0x220] ss:$16 sps:$4 sm:$0xff]  }
 0x7b9   :  { %7187 = vmatpush1.bf16.msra.mxu0 %v8668_v53  ;;  %v8709_v53 = vld [vmem:[#allocation16 + $0x244] ss:$16 sps:$4 sm:$0xff]  }
 0x7ba   :  { %7188 = vmatprep.subr.bf16.mxu0 %v8676_v59  ;;  %v8707_v59 = vld [vmem:[#allocation16 + $0x240] ss:$16 sps:$4 sm:$0xff]  }
 0x7bd   :  { %7189 = vmatpush1.bf16.msra.mxu0 %v8674_v47  ;;  %v8715_v47 = vld [vmem:[#allocation16 + $0x264] ss:$16 sps:$4 sm:$0xff]  }
 0x7be   :  { %7190 = vmatprep.subr.bf16.mxu0 %v8682_v2  ;;  %v8713_v2 = vld [vmem:[#allocation16 + $0x260] ss:$16 sps:$4 sm:$0xff]  }
 0x7c1   :  { %7191 = vmatpush1.bf16.msra.mxu0 %v8680_v50  ;;  %v8721_v50 = vld [vmem:[#allocation16 + $0x284] ss:$16 sps:$4 sm:$0xff]  }
 0x7c2   :  { %7192 = vmatprep.subr.bf16.mxu0 %v8688_v5  ;;  %v8719_v5 = vld [vmem:[#allocation16 + $0x280] ss:$16 sps:$4 sm:$0xff]  }
 0x7c5   :  { %7193 = vmatpush1.bf16.msra.mxu0 %v8686_v6  ;;  %v8727_v6 = vld [vmem:[#allocation16 + $0x2a4] ss:$16 sps:$4 sm:$0xff]  }
 0x7c6   :  { %7194 = vmatprep.subr.bf16.mxu0 %v8694_v9  ;;  %v8725_v9 = vld [vmem:[#allocation16 + $0x2a0] ss:$16 sps:$4 sm:$0xff]  }
 0x7c9   :  { %7195 = vmatpush1.bf16.msra.mxu0 %v8692_v13  ;;  %v8733_v13 = vld [vmem:[#allocation16 + $0x2c4] ss:$16 sps:$4 sm:$0xff]  }
 0x7ca   :  { %7205 = vmatprep.subr.bf16.mxu0 %v8700_v11  ;;  %v8731_v11 = vld [vmem:[#allocation16 + $0x2c0] ss:$16 sps:$4 sm:$0xff]  }
 0x7de   :  { %v6001_v56 = vpop.f32.mrb[40].mxu1 }
 0x7df   :  { %v6270_v32 = vmul.f32 %v6001_v56, %v9577_v62  ;;  %v6083_v27 = vpop.f32.mrb[40].mxu0  ;;  %v6003_v63 = vpop.f32.mrb[41].mxu1 }
 0x7e0   :  { %v6272_v7 = vmul.f32 %v6083_v27, %v9577_v62  ;;  %v6271_v29 = vmul.f32 %v6003_v63, %v9577_v62  ;;  %v6085_v36 = vpop.f32.mrb[41].mxu0  ;;  %v6005_v46 = vpop.f32.mrb[42].mxu1 }
 0x7e1   :  { %v9710_v38 = vadd.f32 %v6270_v32, %v9692_v54  ;;  %v6273_v58 = vmul.f32 %v6085_v36, %v9577_v62  ;;  %v6087_v39 = vpop.f32.mrb[42].mxu0  ;;  %v6006_v33 = vpop.f32.mrb[43].mxu1  ;;  %v8667_v54 = vld [vmem:[#allocation16 + $0x164] ss:$16 sps:$4 sm:$0xff]  }
 0x7e2   :  { %v9714_v28 = vadd.f32 %v6272_v7, %v9696_v30  ;;  %v9717_v15 = vadd.f32 %v6271_v29, %v9699_v31  ;;  %v6088_v0 = vpop.f32.mrb[43].mxu0  ;;  %7104 = vmatprep.subr.bf16.mxu1 %v8667_v54  ;;  %v8673_v30 = vld [vmem:[#allocation16 + $0x184] ss:$16 sps:$4 sm:$0xff]   ;;  %v8671_v31 = vld [vmem:[#allocation16 + $0x180] ss:$16 sps:$4 sm:$0xff]  }
 0x7e3   :  { %v9720_v44 = vadd.f32 %v6273_v58, %v9702_v48  ;;  %7105 = vmatpush1.bf16.msra.mxu1 %v8665_v45  ;;  %v8679_v48 = vld [vmem:[#allocation16 + $0x1a4] ss:$16 sps:$4 sm:$0xff]   ;;  %v8704_v45 = vld [vmem:[#allocation16 + $0x228] ss:$16 sps:$4 sm:$0xff]  }
 0x7e4   :  { %7106 = vmatprep.subr.bf16.mxu1 %v8673_v30  ;;  %v8703_v0 = vld [vmem:[#allocation16 + $0x224] ss:$16 sps:$4 sm:$0xff]   ;;  %v8712_v30 = vld [vmem:[#allocation16 + $0x24c] ss:$16 sps:$4 sm:$0xff]  }
 0x7e7   :  { %7107 = vmatpush1.bf16.msra.mxu1 %v8671_v31  ;;  %v8710_v31 = vld [vmem:[#allocation16 + $0x248] ss:$16 sps:$4 sm:$0xff]  }
 0x7e8   :  { %7108 = vmatprep.subr.bf16.mxu1 %v8679_v48  ;;  %v8718_v48 = vld [vmem:[#allocation16 + $0x26c] ss:$16 sps:$4 sm:$0xff]  }
 0x7eb   :  { %7109 = vmatpush1.bf16.msra.mxu1 %v8677_v3  ;;  %v8716_v3 = vld [vmem:[#allocation16 + $0x268] ss:$16 sps:$4 sm:$0xff]  }
 0x7ec   :  { %7110 = vmatprep.subr.bf16.mxu1 %v8685_v4  ;;  %v8724_v4 = vld [vmem:[#allocation16 + $0x28c] ss:$16 sps:$4 sm:$0xff]  }
 0x7ef   :  { %7111 = vmatpush1.bf16.msra.mxu1 %v8683_v34  ;;  %v8722_v34 = vld [vmem:[#allocation16 + $0x288] ss:$16 sps:$4 sm:$0xff]  }
 0x7f0   :  { %7112 = vmatprep.subr.bf16.mxu1 %v8691_v52  ;;  %v8730_v52 = vld [vmem:[#allocation16 + $0x2ac] ss:$16 sps:$4 sm:$0xff]  }
 0x7f3   :  { %7113 = vmatpush1.bf16.msra.mxu1 %v8689_v8  ;;  %v8728_v8 = vld [vmem:[#allocation16 + $0x2a8] ss:$16 sps:$4 sm:$0xff]  }
 0x7f4   :  { %7123 = vmatprep.subr.bf16.mxu1 %v8697_v14  ;;  %v8736_v14 = vld [vmem:[#allocation16 + $0x2cc] ss:$16 sps:$4 sm:$0xff]  }
 0x85e   :  { %v6165_v16 = vpop.f32.mrb[44].mxu1 }
 0x85f   :  { %v6278_v18 = vmul.f32 %v6165_v16, %v9591_v12  ;;  %v6247_v17 = vpop.f32.mrb[44].mxu0  ;;  %v6167_v25 = vpop.f32.mrb[45].mxu1  ;;  %v8734_v16 = vld [vmem:[#allocation16 + $0x2c8] ss:$16 sps:$4 sm:$0xff]  }
 0x860   :  { %v6280_v19 = vmul.f32 %v6247_v17, %v9591_v12  ;;  %v6279_v21 = vmul.f32 %v6167_v25, %v9591_v12  ;;  %v6249_v22 = vpop.f32.mrb[45].mxu0  ;;  %v6169_v20 = vpop.f32.mrb[46].mxu1  ;;  %v8742_v17 = vld [vmem:[#allocation16 + $0x2ec] ss:$16 sps:$4 sm:$0xff]   ;;  %v8737_v25 = vld [vmem:[#allocation16 + $0x2e0] ss:$16 sps:$4 sm:$0xff]  }
 0x861   :  { %v6282_v51 = vadd.f32 %v6278_v18, %v9710_v38  ;;  %v6281_v55 = vmul.f32 %v6249_v22, %v9591_v12  ;;  %v6251_v49 = vpop.f32.mrb[46].mxu0  ;;  %v6170_v57 = vpop.f32.mrb[47].mxu1  ;;  %v8739_v18 = vld [vmem:[#allocation16 + $0x2e4] ss:$16 sps:$4 sm:$0xff]   ;;  %v8748_v22 = vld [vmem:[#allocation16 + $0x30c] ss:$16 sps:$4 sm:$0xff]  }
 0x862   :  { %v9728_v41 = vadd.f32 %v6280_v19, %v9714_v28  ;;  %v6283_v26 = vadd.f32 %v6279_v21, %v9717_v15  ;;  %v6252_v23 = vpop.f32.mrb[47].mxu0  ;;  %v8740_v19 = vld [vmem:[#allocation16 + $0x2e8] ss:$16 sps:$4 sm:$0xff]   ;;  %v8745_v21 = vld [vmem:[#allocation16 + $0x304] ss:$16 sps:$4 sm:$0xff]  }
 0x863   :  { %v6290_v43 = vmin.f32 %v6282_v51, 0.0  ;;  %v6285_v24 = vadd.f32 %v6281_v55, %v9720_v44  ;;  %vm6286_vm0 = vcmp.gt.f32.partialorder %v6282_v51, 0.0  ;;  %v8706_v44 = vld [vmem:[#allocation16 + $0x22c] ss:$16 sps:$4 sm:$0xff]   ;;  %v8743_v20 = vld [vmem:[#allocation16 + $0x300] ss:$16 sps:$4 sm:$0xff]  }
 0x864   :  { %v6291_v56 = vmin.f32 %v6283_v26, 0.0  ;;  %vm6287_vm1 = vcmp.gt.f32.partialorder %v6283_v26, 0.0  ;;  %v8751_v55 = vld [vmem:[#allocation16 + $0x324] ss:$16 sps:$4 sm:$0xff]   ;;  %v8754_v49 = vld [vmem:[#allocation16 + $0x32c] ss:$16 sps:$4 sm:$0xff]  }
 0x865   :  { %v6294_v32 = vmul.f32 1.442695, %v6290_v43  ;;  %v6293_v27 = vmin.f32 %v6285_v24, 0.0  ;;  %vm6289_vm2 = vcmp.gt.f32.partialorder %v6285_v24, 0.0  ;;  %v8749_v57 = vld [vmem:[#allocation16 + $0x320] ss:$16 sps:$4 sm:$0xff]  }
 0x866   :  { %v6296_v63 = vmul.f32 1.442695, %v6291_v56  ;;  %v6292_v23 = vmin.f32 %v9728_v41, 0.0  ;;  %v8757_v43 = vld [vmem:[#allocation16 + $0x344] ss:$16 sps:$4 sm:$0xff]   ;;  %vm6288_vm3 = vcmp.gt.f32.partialorder %v9728_v41, 0.0 }
 0x867   :  { %8819 = vpow2.f32 %v6294_v32  ;;  %v6300_v7 = vmul.f32 1.442695, %v6293_v27  ;;  %v8755_v56 = vld [vmem:[#allocation16 + $0x340] ss:$16 sps:$4 sm:$0xff]   ;;  %v8758_v32 = vld [vmem:[#allocation16 + $0x348] ss:$16 sps:$4 sm:$0xff]  }
 0x868   :  { %8821 = vpow2.f32 %v6296_v63  ;;  %v6298_v27 = vmul.f32 1.442695, %v6292_v23  ;;  %v8763_v63 = vld [vmem:[#allocation16 + $0x364] ss:$16 sps:$4 sm:$0xff]  }
 0x869   :  { %8823 = vpow2.f32 %v6300_v7  ;;  %v8766_v7 = vld [vmem:[#allocation16 + $0x36c] ss:$16 sps:$4 sm:$0xff]  }
 0x86a   :  { %8825 = vpow2.f32 %v6298_v27 }
 0x871   :  { %v8820_v29 = vpop.eup %8819 }
 0x872   :  { %v7991_v36 = vadd.f32 -1.0, %v8820_v29  ;;  %v8822_v46 = vpop.eup %8821  ;;  %v8761_v29 = vld [vmem:[#allocation16 + $0x360] ss:$16 sps:$4 sm:$0xff]  }
 0x873   :  { %v8824_v37 = vpop.eup %8823  ;;  %v7992_v1 = vadd.f32 -1.0, %v8822_v46  ;;  %v8769_v46 = vld [vmem:[#allocation16 + $0x384] ss:$16 sps:$4 sm:$0xff]  }
 0x874   :  { %v6306_v38 = vsel %vm6286_vm0, %v6282_v51, %v7991_v36  ;;  %v7994_v58 = vadd.f32 -1.0, %v8824_v37  ;;  %v8746_v51 = vld [vmem:[#allocation16 + $0x308] ss:$16 sps:$4 sm:$0xff]   ;;  %v8772_v37 = vld [vmem:[#allocation16 + $0x38c] ss:$16 sps:$4 sm:$0xff]  }
 0x875   :  { %v6307_v39 = vsel %vm6287_vm1, %v6283_v26, %v7992_v1  ;;  %v6310_v15 = vpack.c.bf16 %v6306_v38, %v6306_v38  ;;  %v8752_v26 = vld [vmem:[#allocation16 + $0x328] ss:$16 sps:$4 sm:$0xff]   ;;  %v8767_v1 = vld [vmem:[#allocation16 + $0x380] ss:$16 sps:$4 sm:$0xff]  }
 0x876   :  { %v6311_v33 = vpack.c.bf16 %v6307_v39, %v6307_v39  ;;  %v6309_v28 = vsel %vm6289_vm2, %v6285_v24, %v7994_v58  ;;  %v8760_v24 = vld [vmem:[#allocation16 + $0x34c] ss:$16 sps:$4 sm:$0xff]   ;;  %v8764_v36 = vld [vmem:[#allocation16 + $0x368] ss:$16 sps:$4 sm:$0xff]   ;;  %v8775_v58 = vld [vmem:[#allocation16 + $0x3a4] ss:$16 sps:$4 sm:$0xff]  }
 0x877   :  { %v6313_v54 = vpack.c.bf16 %v6309_v28, %v6309_v28  ;;  %v8770_v38 = vld [vmem:[#allocation16 + $0x388] ss:$16 sps:$4 sm:$0xff]   ;;  %v8778_v39 = vld [vmem:[#allocation16 + $0x3ac] ss:$16 sps:$4 sm:$0xff]  }
 0x878   :  { %7114 = vmatprep.mubr.bf16.mxu1 %v6311_v33  ;;  %7196 = vmatprep.mubr.bf16.mxu0 %v6311_v33  ;;  %v8773_v33 = vld [vmem:[#allocation16 + $0x3a0] ss:$16 sps:$4 sm:$0xff]   ;;  %v8784_v28 = vld [vmem:[#allocation16 + $0x3cc] ss:$16 sps:$4 sm:$0xff]  }
 0x879   :  { %7115 = vmatmul.mubr.bf16.vlgmr.msra.gmra.mrb[48].mxu1 %v6310_v15  ;;  %7197 = vmatmul.mubr.bf16.vlgmr.msra.gmra.mrb[48].mxu0 %v6310_v15  ;;  %v8826_v15 = vpop.eup %8825 }
 0x87a   :  { %7124 = vmatpush1.bf16.msra.mxu1 %v8695_v40  ;;  %7206 = vmatpush1.bf16.msra.mxu0 %v8698_v42  ;;  %v8776_v40 = vld [vmem:[#allocation16 + $0x3a8] ss:$16 sps:$4 sm:$0xff]   ;;  %v8781_v42 = vld [vmem:[#allocation16 + $0x3c4] ss:$16 sps:$4 sm:$0xff]  }
 0x87b   :  { %7155 = vmatprep.mubr.bf16.mxu1 %v6313_v54  ;;  %7237 = vmatprep.mubr.bf16.mxu0 %v6313_v54  ;;  %v8787_v54 = vld [vmem:[#allocation16 + $0x3e4] ss:$16 sps:$4 sm:$0xff]  }
 0x87c   :  { %7125 = vmatprep.subr.bf16.mxu1 %v8703_v0  ;;  %7207 = vmatprep.subr.bf16.mxu0 %v8706_v44  ;;  %v8779_v0 = vld [vmem:[#allocation16 + $0x3c0] ss:$16 sps:$4 sm:$0xff]   ;;  %v8782_v44 = vld [vmem:[#allocation16 + $0x3c8] ss:$16 sps:$4 sm:$0xff]  }
 0x87e   :  { %7126 = vmatpush1.bf16.msra.mxu1 %v8701_v10  ;;  %7208 = vmatpush1.bf16.msra.mxu0 %v8704_v45  ;;  %v8790_v10 = vld [vmem:[#allocation16 + $0x3ec] ss:$16 sps:$4 sm:$0xff]   ;;  %v7993_v45 = vadd.f32 -1.0, %v8826_v15 }
 0x87f   :  { %7127 = vmatprep.subr.bf16.mxu1 %v8709_v53  ;;  %7209 = vmatprep.subr.bf16.mxu0 %v8712_v30  ;;  %v8785_v53 = vld [vmem:[#allocation16 + $0x3e0] ss:$16 sps:$4 sm:$0xff]   ;;  %v8788_v30 = vld [vmem:[#allocation16 + $0x3e8] ss:$16 sps:$4 sm:$0xff]  }
 0x882   :  { %7128 = vmatpush1.bf16.msra.mxu1 %v8707_v59  ;;  %7210 = vmatpush1.bf16.msra.mxu0 %v8710_v31  ;;  %v6308_v59 = vsel %vm6288_vm3, %v9728_v41, %v7993_v45 }
 0x883   :  { %7129 = vmatprep.subr.bf16.mxu1 %v8715_v47  ;;  %7211 = vmatprep.subr.bf16.mxu0 %v8718_v48  ;;  %v6312_v31 = vpack.c.bf16 %v6308_v59, %v6308_v59 }
 0x886   :  { %7130 = vmatpush1.bf16.msra.mxu1 %v8713_v2  ;;  %7212 = vmatpush1.bf16.msra.mxu0 %v8716_v3 }
 0x887   :  { %7131 = vmatprep.subr.bf16.mxu1 %v8721_v50  ;;  %7213 = vmatprep.subr.bf16.mxu0 %v8724_v4 }
 0x88a   :  { %7132 = vmatpush1.bf16.msra.mxu1 %v8719_v5  ;;  %7214 = vmatpush1.bf16.msra.mxu0 %v8722_v34 }
 0x88b   :  { %7133 = vmatprep.subr.bf16.mxu1 %v8727_v6  ;;  %7215 = vmatprep.subr.bf16.mxu0 %v8730_v52 }
 0x88e   :  { %7134 = vmatpush1.bf16.msra.mxu1 %v8725_v9  ;;  %7216 = vmatpush1.bf16.msra.mxu0 %v8728_v8 }
 0x88f   :  { %7135 = vmatprep.subr.bf16.mxu1 %v8733_v13  ;;  %7217 = vmatprep.subr.bf16.mxu0 %v8736_v14 }
 0x892   :  { %7136 = vmatpush1.bf16.msra.mxu1 %v8731_v11  ;;  %7218 = vmatpush1.bf16.msra.mxu0 %v8734_v16 }
 0x893   :  { %7137 = vmatprep.subr.bf16.mxu1 %v8739_v18  ;;  %7219 = vmatprep.subr.bf16.mxu0 %v8742_v17 }
 0x896   :  { %7138 = vmatpush1.bf16.msra.mxu1 %v8737_v25  ;;  %7220 = vmatpush1.bf16.msra.mxu0 %v8740_v19 }
 0x897   :  { %7139 = vmatprep.subr.bf16.mxu1 %v8745_v21  ;;  %7221 = vmatprep.subr.bf16.mxu0 %v8748_v22 }
 0x89a   :  { %7140 = vmatpush1.bf16.msra.mxu1 %v8743_v20  ;;  %7222 = vmatpush1.bf16.msra.mxu0 %v8746_v51 }
 0x89b   :  { %7141 = vmatprep.subr.bf16.mxu1 %v8751_v55  ;;  %7223 = vmatprep.subr.bf16.mxu0 %v8754_v49 }
 0x89e   :  { %7142 = vmatpush1.bf16.msra.mxu1 %v8749_v57  ;;  %7224 = vmatpush1.bf16.msra.mxu0 %v8752_v26 }
 0x89f   :  { %7143 = vmatprep.subr.bf16.mxu1 %v8757_v43  ;;  %7225 = vmatprep.subr.bf16.mxu0 %v8760_v24 }
 0x8a2   :  { %7144 = vmatpush1.bf16.msra.mxu1 %v8755_v56  ;;  %7226 = vmatpush1.bf16.msra.mxu0 %v8758_v32 }
 0x8a3   :  { %7145 = vmatprep.subr.bf16.mxu1 %v8763_v63  ;;  %7227 = vmatprep.subr.bf16.mxu0 %v8766_v7 }
 0x8a6   :  { %7146 = vmatpush1.bf16.msra.mxu1 %v8761_v29  ;;  %7228 = vmatpush1.bf16.msra.mxu0 %v8764_v36 }
 0x8a7   :  { %7147 = vmatprep.subr.bf16.mxu1 %v8769_v46  ;;  %7229 = vmatprep.subr.bf16.mxu0 %v8772_v37 }
 0x8aa   :  { %7148 = vmatpush1.bf16.msra.mxu1 %v8767_v1  ;;  %7230 = vmatpush1.bf16.msra.mxu0 %v8770_v38 }
 0x8ab   :  { %7149 = vmatprep.subr.bf16.mxu1 %v8775_v58  ;;  %7231 = vmatprep.subr.bf16.mxu0 %v8778_v39 }
 0x8ae   :  { %7150 = vmatpush1.bf16.msra.mxu1 %v8773_v33  ;;  %7232 = vmatpush1.bf16.msra.mxu0 %v8776_v40 }
 0x8af   :  { %7151 = vmatprep.subr.bf16.mxu1 %v8781_v42  ;;  %7233 = vmatprep.subr.bf16.mxu0 %v8784_v28 }
 0x8b2   :  { %7152 = vmatpush1.bf16.msra.mxu1 %v8779_v0  ;;  %7234 = vmatpush1.bf16.msra.mxu0 %v8782_v44 }
 0x8b3   :  { %7153 = vmatprep.subr.bf16.mxu1 %v8787_v54  ;;  %7235 = vmatprep.subr.bf16.mxu0 %v8790_v10 }
 0x8b6   :  { %7154 = vmatpush1.bf16.msra.mxu1 %v8785_v53  ;;  %7236 = vmatpush1.bf16.msra.mxu0 %v8788_v30 }
 0x8b9   :  { %7156 = vmatmul.mubr.bf16.vlgmr.msra.gmra.mrb[48].mxu1 %v6312_v31  ;;  %7238 = vmatmul.mubr.bf16.vlgmr.msra.gmra.mrb[48].mxu0 %v6312_v31 }
 0x98c   :  { %v7157_v47 = vpop.f32.mrb[48].mxu1  ;;  %v7239_v48 = vpop.f32.mrb[48].mxu0 }
 0x98d   :  { %v7246_v2 = vmul.f32 %v7157_v47, %v9573_v60  ;;  %v7159_v3 = vpop.f32.mrb[49].mxu1  ;;  %v7241_v50 = vpop.f32.mrb[49].mxu0  ;;  %v7250_v41 = vmul.f32 %v7239_v48, %v9577_v62 }
 0x98e   :  { %v7248_v4 = vmul.f32 %v7159_v3, %v9575_v61  ;;  %v7161_v5 = vpop.f32.mrb[50].mxu1  ;;  %v7243_v34 = vpop.f32.mrb[50].mxu0  ;;  %v7252_v14 = vmul.f32 %v7241_v50, %v9591_v12 }
 0x98f   :  { %v7247_v6 = vadd.f32 %v7246_v2, %v9623_v35  ;;  %v7162_v52 = vpop.f32.mrb[51].mxu1  ;;  %v7244_v9 = vpop.f32.mrb[51].mxu0 }
 0x991   :  { %v7249_v8 = vadd.f32 %v7248_v4, %v7247_v6 }
 0x993   :  { %v7251_v13 = vadd.f32 %v7250_v41, %v7249_v8 }
 0x995   :  { %v7253_v11 = vadd.f32 %v7252_v14, %v7251_v13 }
 0x997   :  { %7254 = vst [vmem:[#allocation17] sm:$0xff] %v7253_v11 }
 0x998   :  { %9036 = shalt.err (!%p9033_p6)
}
 0x999   :  { %s9037_s0 = scalar_lea.hbm %s9762_s10, 128 }
 0x99a   :  { %p9038_p7 = scmp.ne.s32.totalorder %s9762_s10, %s9037_s0  ;;  %p9041_p8 = scmp.lt.u32.totalorder %s9037_s0, %s9762_s10 }
 0x99c   :  { %p9043_p9 = pnand %p9041_p8, %p9038_p7 }
 0x99e   :  { %9046 = shalt.err (!%p9043_p9)
}
 0x99f   :  { %7264 = dma.vmem_to_hbm [thread:$0]  %s7262_s21, 128, %s9762_s10, [#allocation4]  }
 0x9a0   :  { %9057 = dma.done.wait [#allocation4], 128  }
 0x9a1   :  { %9058 = vsyncadd [#allocation4], 4294967168 }
 0x9a2   :  { %7268 = vsyncpa [#allocation3], 1 }
 0x9a3   :  { %7269 = vsyncpa [#allocation6], 1 }
 0x9a4   :  { %7270 = vsyncpa [#allocation9], 1 }
 0x9a5   :  { %7271 = vsyncpa [#allocation12], 1 }
 0x9a6   :  { %7272 = vsyncpa [#allocation15], 1 }
 0x9a7   :  { %7273 = vsyncpa [#allocation4], 1 }

// kernel: tpu_custom_call.1
= control target key start
LH: loop header
LB: loop body
LE: loop exit
PB: predicated region body
PF: predicated region fallthrough
CT: control target
= control target key end

     0   :  { %15 = vsyncpa [#allocation3], 0  ;;  %s9752_s0 = inlined_call_operand.hbm [shape: f32[8,32], index: 0, kind: input, shape index: {}]   ;;  %s9753_s1 = inlined_call_operand.hbm [shape: bf16[32,2560], index: 1, kind: input, shape index: {}]   ;;  %s9754_s2 = inlined_call_operand.hbm [shape: f32[1,512], index: 2, kind: input, shape index: {}]   ;;  %s9755_s3 = inlined_call_operand.hbm [shape: bf16[512,512], index: 3, kind: input, shape index: {}]   ;;  %s9756_s4 = inlined_call_operand.hbm [shape: f32[1,512], index: 4, kind: input, shape index: {}]   ;;  %s9757_s5 = inlined_call_operand.vmem [shape: f32[512,4], index: 5, kind: input, shape index: {}]   ;;  %s9758_s6 = inlined_call_operand.hbm [shape: f32[1,4], index: 6, kind: input, shape index: {}]   ;;  %s9759_s7 = inlined_call_operand.hbm [shape: f32[4,1152], index: 7, kind: input, shape index: {}]   ;;  %s9760_s8 = inlined_call_operand.hbm [shape: bf16[512,2048], index: 8, kind: input, shape index: {}]   ;;  %s9761_s9 = inlined_call_operand.hbm [shape: bf16[512,512], index: 9, kind: input, shape index: {}]   ;;  %s9762_s10 = inlined_call_operand.hbm [shape: f32[8,128], index: 10, kind: output, shape index: {}]  }
   0x1   :  { %16 = vsyncpa [#allocation6], 0 }
   0x2   :  { %17 = vsyncpa [#allocation9], 0 }
   0x3   :  { %18 = vsyncpa [#allocation12], 0 }
   0x4   :  { %19 = vsyncpa [#allocation15], 0 }
   0x5   :  { %20 = vsyncpa [#allocation4], 0  ;;  %s9059_s13 = smov [#allocation5]   ;;  %s8827_s17 = scalar_lea.hbm %s9753_s1, 5120 }
   0x6   :  { %s36_s14 = sshll.u32 %s9059_s13, 4  ;;  %p8828_p0 = scmp.ne.s32.totalorder %s9753_s1, %s8827_s17  ;;  %s37_s14 = int_to_ptr.vmem [resolvable:$true] %s36_s14 }
   0x7   :  { %p8831_p1 = scmp.lt.u32.totalorder %s8827_s17, %s9753_s1 }
   0x9   :  { %p8833_p2 = pnand %p8831_p1, %p8828_p0 }
   0xb   :  { %8836 = shalt.err (!%p8833_p2)
}
   0xc   :  { %s8837_s22 = scalar_lea.vmem %s37_s14, 5120  ;;  %p8842_p4 = scmp.lt.s32.totalorder %s37_s14, %s37_s14 }
   0xd   :  { %p8838_p3 = scmp.ne.s32.totalorder %s37_s14, %s8837_s22  ;;  %p8843_p5 = scmp.lt.s32.totalorder %s8837_s22, %s8837_s22 }
   0xf   :  { %p8844_p6 = por %p8843_p5, %p8842_p4 }
  0x11   :  { %p8845_p7 = pnand %p8844_p6, %p8838_p3 }
  0x13   :  { %8848 = shalt.err (!%p8845_p7)
}
  0x14   :  { %s9060_s23 = smov 1280   ;;  %s9061_s24 = smov 80  }
  0x15   :  { %42 = dma.hbm_to_vmem [thread:$0]  %s9753_s1, 5120, %s37_s14, [#allocation6], %s9060_s23, %s9060_s23, %s9061_s24  }
  0x16   :  { %s9062_s27 = smov [#allocation8]   ;;  %s8849_s11 = scalar_lea.hbm %s9755_s3, 16384 }
  0x17   :  { %s58_s28 = sshll.u32 %s9062_s27, 4  ;;  %p8850_p8 = scmp.ne.s32.totalorder %s9755_s3, %s8849_s11  ;;  %s59_s28 = int_to_ptr.vmem [resolvable:$true] %s58_s28 }
  0x18   :  { %p8853_p9 = scmp.lt.u32.totalorder %s8849_s11, %s9755_s3 }
  0x1a   :  { %p8855_p10 = pnand %p8853_p9, %p8850_p8 }
  0x1c   :  { %8858 = shalt.err (!%p8855_p10)
}
  0x1d   :  { %s8859_s17 = scalar_lea.vmem %s59_s28, 16384  ;;  %p8864_p12 = scmp.lt.s32.totalorder %s59_s28, %s59_s28 }
  0x1e   :  { %p8860_p11 = scmp.ne.s32.totalorder %s59_s28, %s8859_s17  ;;  %p8865_p13 = scmp.lt.s32.totalorder %s8859_s17, %s8859_s17 }
  0x20   :  { %p8866_p0 = por %p8865_p13, %p8864_p12 }
  0x22   :  { %p8867_p1 = pnand %p8866_p0, %p8860_p11 }
  0x24   :  { %8870 = shalt.err (!%p8867_p1)
}
  0x25   :  { %s9063_s1 = smov 256   ;;  %s9064_s14 = smov 16  }
  0x26   :  { %64 = dma.hbm_to_vmem [thread:$0]  %s9755_s3, 16384, %s59_s28, [#allocation9], %s9063_s1, %s9063_s1, %s9064_s14  }
  0x27   :  { %s9065_s20 = smov [#allocation11]   ;;  %s9066_s22 = smov [#allocation14]  }
  0x28   :  { %s83_s21 = sshll.u32 %s9065_s20, 4  ;;  %s102_s23 = sshll.u32 %s9066_s22, 4  ;;  %s84_s21 = int_to_ptr.vmem [resolvable:$true] %s83_s21  ;;  %s9163_s23 = int_to_ptr.vmem [resolvable:$true] %s102_s23 }
  0x29   :  { %s8871_s26 = scalar_lea.hbm %s9758_s6, 16 }
  0x2a   :  { %p8872_p2 = scmp.ne.s32.totalorder %s9758_s6, %s8871_s26  ;;  %p8875_p3 = scmp.lt.u32.totalorder %s8871_s26, %s9758_s6 }
  0x2c   :  { %p8877_p4 = pnand %p8875_p3, %p8872_p2 }
  0x2e   :  { %8880 = shalt.err (!%p8877_p4)
}
  0x2f   :  { %s8881_s3 = scalar_lea.vmem %s84_s21, 16  ;;  %s8885_s28 = scalar_lea.vmem %s84_s21, 32 }
  0x30   :  { %p8882_p5 = scmp.ne.s32.totalorder %s84_s21, %s8881_s3  ;;  %p8886_p6 = scmp.lt.s32.totalorder %s84_s21, %s84_s21 }
  0x31   :  { %p8887_p7 = scmp.lt.s32.totalorder %s8885_s28, %s8881_s3 }
  0x33   :  { %p8888_p8 = por %p8887_p7, %p8886_p6 }
  0x35   :  { %p8889_p9 = pnand %p8888_p8, %p8882_p5 }
  0x37   :  { %8892 = shalt.err (!%p8889_p9)
}
  0x38   :  { %86 = dma.hbm_to_vmem [thread:$0]  %s9758_s6, 16, %s84_s21, [#allocation12]  }
  0x39   :  { %s8893_s17 = scalar_lea.hbm %s9760_s8, 65536 }
  0x3a   :  { %p8894_p10 = scmp.ne.s32.totalorder %s9760_s8, %s8893_s17  ;;  %p8897_p11 = scmp.lt.u32.totalorder %s8893_s17, %s9760_s8 }
  0x3c   :  { %p8899_p12 = pnand %p8897_p11, %p8894_p10 }
  0x3e   :  { %8902 = shalt.err (!%p8899_p12)
}
  0x3f   :  { %s8903_s24 = scalar_lea.vmem %s9163_s23, 65536  ;;  %p8908_p0 = scmp.lt.s32.totalorder %s9163_s23, %s9163_s23 }
  0x40   :  { %p8904_p13 = scmp.ne.s32.totalorder %s9163_s23, %s8903_s24  ;;  %p8909_p1 = scmp.lt.s32.totalorder %s8903_s24, %s8903_s24 }
  0x42   :  { %p8910_p2 = por %p8909_p1, %p8908_p0 }
  0x44   :  { %p8911_p3 = pnand %p8910_p2, %p8904_p13 }
  0x46   :  { %8914 = shalt.err (!%p8911_p3)
}
  0x47   :  { %s9067_s6 = smov 1024   ;;  %s9068_s21 = smov 64  }
  0x48   :  { %108 = dma.hbm_to_vmem [thread:$0]  %s9760_s8, 65536, %s9163_s23, [#allocation15], %s9067_s6, %s9067_s6, %s9068_s21  }
  0x49   :  { %s9069_s27 = smov [#allocation2]   ;;  %s9070_s30 = smov [#allocation7]  }
  0x4a   :  { %s27_s29 = sshll.u32 %s9069_s27, 4  ;;  %s49_s11 = sshll.u32 %s9070_s30, 4  ;;  %s28_s29 = int_to_ptr.vmem [resolvable:$true] %s27_s29  ;;  %s50_s11 = int_to_ptr.vmem [resolvable:$true] %s49_s11 }
  0x4b   :  { %s8915_s12 = scalar_lea.hbm %s9752_s0, 128 }
  0x4c   :  { %p8916_p4 = scmp.ne.s32.totalorder %s9752_s0, %s8915_s12  ;;  %p8919_p5 = scmp.lt.u32.totalorder %s8915_s12, %s9752_s0 }
  0x4e   :  { %p8921_p6 = pnand %p8919_p5, %p8916_p4 }
  0x50   :  { %8924 = shalt.err (!%p8921_p6)
}
  0x51   :  { %s8925_s8 = scalar_lea.vmem %s28_s29, 128  ;;  %p8930_p8 = scmp.lt.s32.totalorder %s28_s29, %s28_s29 }
  0x52   :  { %p8926_p7 = scmp.ne.s32.totalorder %s28_s29, %s8925_s8  ;;  %p8931_p9 = scmp.lt.s32.totalorder %s8925_s8, %s8925_s8 }
  0x54   :  { %p8932_p10 = por %p8931_p9, %p8930_p8 }
  0x56   :  { %p8933_p11 = pnand %p8932_p10, %p8926_p7 }
  0x58   :  { %8936 = shalt.err (!%p8933_p11)
}
  0x59   :  { %30 = dma.hbm_to_vmem [thread:$0]  %s9752_s0, 128, %s28_s29, [#allocation3]  }
  0x5a   :  { %s8937_s22 = scalar_lea.hbm %s9754_s2, 64 }
  0x5b   :  { %p8938_p12 = scmp.ne.s32.totalorder %s9754_s2, %s8937_s22  ;;  %p8941_p13 = scmp.lt.u32.totalorder %s8937_s22, %s9754_s2 }
  0x5d   :  { %p8943_p0 = pnand %p8941_p13, %p8938_p12 }
  0x5f   :  { %8946 = shalt.err (!%p8943_p0)
}
  0x60   :  { %s8947_s26 = scalar_lea.vmem %s50_s11, 64  ;;  %p8952_p2 = scmp.lt.s32.totalorder %s50_s11, %s50_s11 }
  0x61   :  { %p8948_p1 = scmp.ne.s32.totalorder %s50_s11, %s8947_s26  ;;  %p8953_p3 = scmp.lt.s32.totalorder %s8947_s26, %s8947_s26 }
  0x63   :  { %p8954_p4 = por %p8953_p3, %p8952_p2 }
  0x65   :  { %p8955_p5 = pnand %p8954_p4, %p8948_p1 }
  0x67   :  { %8958 = shalt.err (!%p8955_p5)
}
  0x68   :  { %52 = dma.hbm_to_vmem [thread:$0]  %s9754_s2, 64, %s50_s11, [#allocation6]  }
  0x69   :  { %s9071_s29 = smov [#allocation10]   ;;  %s9072_s3 = smov [#allocation13]  }
  0x6a   :  { %s71_s30 = sshll.u32 %s9071_s29, 4  ;;  %s93_s28 = sshll.u32 %s9072_s3, 4  ;;  %s72_s30 = int_to_ptr.vmem [resolvable:$true] %s71_s30  ;;  %s94_s28 = int_to_ptr.vmem [resolvable:$true] %s93_s28 }
  0x6b   :  { %s8959_s15 = scalar_lea.hbm %s9756_s4, 64 }
  0x6c   :  { %p8960_p6 = scmp.ne.s32.totalorder %s9756_s4, %s8959_s15  ;;  %p8963_p7 = scmp.lt.u32.totalorder %s8959_s15, %s9756_s4 }
  0x6e   :  { %p8965_p8 = pnand %p8963_p7, %p8960_p6 }
  0x70   :  { %8968 = shalt.err (!%p8965_p8)
}
  0x71   :  { %s8969_s2 = scalar_lea.vmem %s72_s30, 64  ;;  %p8974_p10 = scmp.lt.s32.totalorder %s72_s30, %s72_s30 }
  0x72   :  { %p8970_p9 = scmp.ne.s32.totalorder %s72_s30, %s8969_s2  ;;  %p8975_p11 = scmp.lt.s32.totalorder %s8969_s2, %s8969_s2 }
  0x74   :  { %p8976_p12 = por %p8975_p11, %p8974_p10 }
  0x76   :  { %p8977_p13 = pnand %p8976_p12, %p8970_p9 }
  0x78   :  { %8980 = shalt.err (!%p8977_p13)
}
  0x79   :  { %74 = dma.hbm_to_vmem [thread:$0]  %s9756_s4, 64, %s72_s30, [#allocation9]  }
  0x7a   :  { %s8981_s22 = scalar_lea.hbm %s9759_s7, 576 }
  0x7b   :  { %p8982_p0 = scmp.ne.s32.totalorder %s9759_s7, %s8981_s22  ;;  %p8985_p1 = scmp.lt.u32.totalorder %s8981_s22, %s9759_s7 }
  0x7d   :  { %p8987_p2 = pnand %p8985_p1, %p8982_p0 }
  0x7f   :  { %8990 = shalt.err (!%p8987_p2)
}
  0x80   :  { %s8991_s26 = scalar_lea.vmem %s94_s28, 576  ;;  %p8996_p4 = scmp.lt.s32.totalorder %s94_s28, %s94_s28 }
  0x81   :  { %p8992_p3 = scmp.ne.s32.totalorder %s94_s28, %s8991_s26  ;;  %p8997_p5 = scmp.lt.s32.totalorder %s8991_s26, %s8991_s26 }
  0x83   :  { %p8998_p6 = por %p8997_p5, %p8996_p4 }
  0x85   :  { %p8999_p7 = pnand %p8998_p6, %p8992_p3 }
  0x87   :  { %9002 = shalt.err (!%p8999_p7)
}
  0x88   :  { %96 = dma.hbm_to_vmem [thread:$0]  %s9759_s7, 576, %s94_s28, [#allocation12]  }
  0x89   :  { %s9073_s27 = smov [#allocation16]   ;;  %s9003_s12 = scalar_lea.hbm %s9761_s9, 16384 }
  0x8a   :  { %s114_s29 = sshll.u32 %s9073_s27, 4  ;;  %p9004_p8 = scmp.ne.s32.totalorder %s9761_s9, %s9003_s12  ;;  %s115_s29 = int_to_ptr.vmem [resolvable:$true] %s114_s29 }
  0x8b   :  { %p9007_p9 = scmp.lt.u32.totalorder %s9003_s12, %s9761_s9 }
  0x8d   :  { %p9009_p10 = pnand %p9007_p9, %p9004_p8 }
  0x8f   :  { %9012 = shalt.err (!%p9009_p10)
}
  0x90   :  { %s9013_s8 = scalar_lea.vmem %s115_s29, 16384  ;;  %p9018_p12 = scmp.lt.s32.totalorder %s115_s29, %s115_s29 }
  0x91   :  { %p9014_p11 = scmp.ne.s32.totalorder %s115_s29, %s9013_s8  ;;  %p9019_p13 = scmp.lt.s32.totalorder %s9013_s8, %s9013_s8 }
  0x93   :  { %p9020_p0 = por %p9019_p13, %p9018_p12 }
  0x95   :  { %p9021_p1 = pnand %p9020_p0, %p9014_p11 }
  0x97   :  { %9024 = shalt.err (!%p9021_p1)
}
  0x98   :  { %120 = dma.hbm_to_vmem [thread:$0]  %s9761_s9, 16384, %s115_s29, [#allocation15], %s9063_s1, %s9063_s1, %s9064_s14  }
  0x99   :  { %9047 = dma.done.wait [#allocation3], 128  }
  0x9a   :  { %9048 = vsyncadd [#allocation3], 4294967168 }
  0x9b   :  { %9049 = dma.done.wait [#allocation6], 5184  }
  0x9c   :  { %9050 = vsyncadd [#allocation6], 4294962112 }
  0x9d   :  { %9051 = dma.done.wait [#allocation9], 16448  }
  0x9e   :  { %9052 = vsyncadd [#allocation9], 4294950848 }
  0x9f   :  { %9053 = dma.done.wait [#allocation12], 592  }
  0xa0   :  { %9054 = vsyncadd [#allocation12], 4294966704 }
  0xa1   :  { %9055 = dma.done.wait [#allocation15], 81920  }
  0xa2   :  { %9056 = vsyncadd [#allocation15], 4294885376  ;;  %v9074_v0 = vmov 0   ;;  %v8343_v1 = vld [vmem:[#allocation5 + $0x4] ss:$80 sps:$4 sm:$0xff]   ;;  %v149_v5 = vld [vmem:[#allocation2] sm:$0xff] }
  0xa3   :  { %427 = vmatprep.mubr.bf16.mxu0 %v9074_v0  ;;  %468 = vmatprep.mubr.bf16.mxu1 %v9074_v0  ;;  %v8345_v2 = vld [vmem:[#allocation5] ss:$80 sps:$4 sm:$0xff]   ;;  %v8346_v3 = vld [vmem:[#allocation5 + $0xa4] ss:$80 sps:$4 sm:$0xff]   ;;  %v8349_v6 = vld [vmem:[#allocation5 + $0xc] ss:$80 sps:$4 sm:$0xff]   ;;  %v9260_v9 = vpack.c.bf16 %v149_v5, %v149_v5 }
  0xa4   :  { %8338 = vset.pattern.permute.xlu1 %v9074_v0  ;;  %395 = vmatprep.subr.bf16.mxu0 %v8343_v1  ;;  %v8348_v4 = vld [vmem:[#allocation5 + $0xa0] ss:$80 sps:$4 sm:$0xff]   ;;  %v8351_v7 = vld [vmem:[#allocation5 + $0x8] ss:$80 sps:$4 sm:$0xff]   ;;  %v8352_v8 = vld [vmem:[#allocation5 + $0xac] ss:$80 sps:$4 sm:$0xff]  }
  0xa5   :  { %396 = vmatpush1.bf16.msra.mxu0 %v8345_v2  ;;  %436 = vmatprep.subr.bf16.mxu1 %v8349_v6  ;;  %v8354_v10 = vld [vmem:[#allocation5 + $0xa8] ss:$80 sps:$4 sm:$0xff]   ;;  %v8357_v11 = vld [vmem:[#allocation5 + $0x14] ss:$80 sps:$4 sm:$0xff]   ;;  %vm391_vm0 = vcmask 261120   ;;  %vm2048_vm9 = vcmask 31744  }
  0xa6   :  { %397 = vmatprep.subr.bf16.mxu0 %v8346_v3  ;;  %437 = vmatpush1.bf16.msra.mxu1 %v8351_v7  ;;  %v8355_v12 = vld [vmem:[#allocation5 + $0x10] ss:$80 sps:$4 sm:$0xff]   ;;  %v8360_v13 = vld [vmem:[#allocation5 + $0x1c] ss:$80 sps:$4 sm:$0xff]   ;;  %v8363_v14 = vld [vmem:[#allocation5 + $0xb4] ss:$80 sps:$4 sm:$0xff]  }
  0xa7   :  { %438 = vmatprep.subr.bf16.mxu1 %v8352_v8  ;;  %v8358_v15 = vld [vmem:[#allocation5 + $0x18] ss:$80 sps:$4 sm:$0xff]   ;;  %v8361_v16 = vld [vmem:[#allocation5 + $0xb0] ss:$80 sps:$4 sm:$0xff]   ;;  %v8366_v17 = vld [vmem:[#allocation5 + $0xbc] ss:$80 sps:$4 sm:$0xff]  }
  0xa8   :  { %v8369_v18 = vld [vmem:[#allocation5 + $0x24] ss:$80 sps:$4 sm:$0xff]   ;;  %v8364_v19 = vld [vmem:[#allocation5 + $0xb8] ss:$80 sps:$4 sm:$0xff]   ;;  %v8367_v20 = vld [vmem:[#allocation5 + $0x20] ss:$80 sps:$4 sm:$0xff]  }
  0xa9   :  { %398 = vmatpush1.bf16.msra.mxu0 %v8348_v4  ;;  %v8372_v21 = vld [vmem:[#allocation5 + $0x2c] ss:$80 sps:$4 sm:$0xff]   ;;  %v8375_v22 = vld [vmem:[#allocation5 + $0xc4] ss:$80 sps:$4 sm:$0xff]   ;;  %v8370_v23 = vld [vmem:[#allocation5 + $0x28] ss:$80 sps:$4 sm:$0xff]  }
  0xaa   :  { %477 = vmatprep.subr.bf16.mxu0 %v8357_v11  ;;  %439 = vmatpush1.bf16.msra.mxu1 %v8354_v10  ;;  %v8373_v24 = vld [vmem:[#allocation5 + $0xc0] ss:$80 sps:$4 sm:$0xff]   ;;  %v8378_v25 = vld [vmem:[#allocation5 + $0xcc] ss:$80 sps:$4 sm:$0xff]   ;;  %v8381_v26 = vld [vmem:[#allocation5 + $0x34] ss:$80 sps:$4 sm:$0xff]  }
  0xab   :  { %518 = vmatprep.subr.bf16.mxu1 %v8360_v13  ;;  %v8376_v27 = vld [vmem:[#allocation5 + $0xc8] ss:$80 sps:$4 sm:$0xff]   ;;  %v8379_v28 = vld [vmem:[#allocation5 + $0x30] ss:$80 sps:$4 sm:$0xff]   ;;  %v8384_v29 = vld [vmem:[#allocation5 + $0x3c] ss:$80 sps:$4 sm:$0xff]  }
  0xac   :  { %7314 = vmatmul.mubr.msk.bf16.vlgmr.msra.gmra.mrb[0].mxu0 %vm391_vm0, %v9260_v9  ;;  %v8387_v30 = vld [vmem:[#allocation5 + $0xd4] ss:$80 sps:$4 sm:$0xff]   ;;  %v8382_v31 = vld [vmem:[#allocation5 + $0x38] ss:$80 sps:$4 sm:$0xff]   ;;  %v8385_v32 = vld [vmem:[#allocation5 + $0xd0] ss:$80 sps:$4 sm:$0xff]  }
  0xad   :  { %478 = vmatpush1.bf16.msra.mxu0 %v8355_v12  ;;  %509 = vmatprep.mubr.bf16.mxu0 %v9074_v0  ;;  %v8390_v33 = vld [vmem:[#allocation5 + $0xdc] ss:$80 sps:$4 sm:$0xff]   ;;  %v8393_v34 = vld [vmem:[#allocation5 + $0x44] ss:$80 sps:$4 sm:$0xff]   ;;  %v8388_v35 = vld [vmem:[#allocation5 + $0xd8] ss:$80 sps:$4 sm:$0xff]  }
  0xae   :  { %479 = vmatprep.subr.bf16.mxu0 %v8363_v14  ;;  %7315 = vmatmul.mubr.msk.bf16.vlgmr.msra.gmra.mrb[0].mxu1 %vm391_vm0, %v9260_v9  ;;  %v8391_v36 = vld [vmem:[#allocation5 + $0x40] ss:$80 sps:$4 sm:$0xff]   ;;  %v8396_v37 = vld [vmem:[#allocation5 + $0x4c] ss:$80 sps:$4 sm:$0xff]   ;;  %v8399_v38 = vld [vmem:[#allocation5 + $0xe4] ss:$80 sps:$4 sm:$0xff]  }
  0xaf   :  { %519 = vmatpush1.bf16.msra.mxu1 %v8358_v15  ;;  %550 = vmatprep.mubr.bf16.mxu1 %v9074_v0  ;;  %v8394_v39 = vld [vmem:[#allocation5 + $0x48] ss:$80 sps:$4 sm:$0xff]   ;;  %v8397_v40 = vld [vmem:[#allocation5 + $0xe0] ss:$80 sps:$4 sm:$0xff]   ;;  %v8402_v41 = vld [vmem:[#allocation5 + $0xec] ss:$80 sps:$4 sm:$0xff]  }
  0xb0   :  { %520 = vmatprep.subr.bf16.mxu1 %v8366_v17  ;;  %v8405_v42 = vld [vmem:[#allocation8 + $0x4] ss:$16 sps:$4 sm:$0xff]   ;;  %v8403_v44 = vld [vmem:[#allocation8] ss:$16 sps:$4 sm:$0xff]   ;;  %v8408_v45 = vld [vmem:[#allocation8 + $0xc] ss:$16 sps:$4 sm:$0xff]  }
  0xb1   :  { %480 = vmatpush1.bf16.msra.mxu0 %v8361_v16  ;;  %v8400_v43 = vld [vmem:[#allocation5 + $0xe8] ss:$80 sps:$4 sm:$0xff]   ;;  %v8406_v47 = vld [vmem:[#allocation8 + $0x8] ss:$16 sps:$4 sm:$0xff]   ;;  %v8409_v48 = vld [vmem:[#allocation8 + $0x20] ss:$16 sps:$4 sm:$0xff]  }
  0xb2   :  { %559 = vmatprep.subr.bf16.mxu0 %v8369_v18  ;;  %v8411_v46 = vld [vmem:[#allocation8 + $0x24] ss:$16 sps:$4 sm:$0xff]   ;;  %v8414_v49 = vld [vmem:[#allocation8 + $0x2c] ss:$16 sps:$4 sm:$0xff]   ;;  %v8412_v51 = vld [vmem:[#allocation8 + $0x28] ss:$16 sps:$4 sm:$0xff]  }
  0xb3   :  { %521 = vmatpush1.bf16.msra.mxu1 %v8364_v19  ;;  %v8417_v50 = vld [vmem:[#allocation8 + $0x44] ss:$16 sps:$4 sm:$0xff]   ;;  %v8415_v52 = vld [vmem:[#allocation8 + $0x40] ss:$16 sps:$4 sm:$0xff]   ;;  %v8420_v53 = vld [vmem:[#allocation8 + $0x4c] ss:$16 sps:$4 sm:$0xff]  }
  0xb4   :  { %7316 = vmatmul.mubr.msk.bf16.vlgmr.msra.gmra.mrb[4].mxu0 %vm391_vm0, %v9260_v9  ;;  %600 = vmatprep.subr.bf16.mxu1 %v8372_v21  ;;  %v8423_v54 = vld [vmem:[#allocation8 + $0x64] ss:$16 sps:$4 sm:$0xff]   ;;  %v8418_v55 = vld [vmem:[#allocation8 + $0x48] ss:$16 sps:$4 sm:$0xff]   ;;  %v8421_v56 = vld [vmem:[#allocation8 + $0x60] ss:$16 sps:$4 sm:$0xff]  }
  0xb5   :  { %560 = vmatpush1.bf16.msra.mxu0 %v8367_v20  ;;  %591 = vmatprep.mubr.bf16.mxu0 %v9074_v0  ;;  %v8426_v57 = vld [vmem:[#allocation8 + $0x6c] ss:$16 sps:$4 sm:$0xff]   ;;  %v8424_v58 = vld [vmem:[#allocation8 + $0x68] ss:$16 sps:$4 sm:$0xff]   ;;  %v8429_v59 = vld [vmem:[#allocation8 + $0x84] ss:$16 sps:$4 sm:$0xff]  }
  0xb6   :  { %561 = vmatprep.subr.bf16.mxu0 %v8375_v22  ;;  %7317 = vmatmul.mubr.msk.bf16.vlgmr.msra.gmra.mrb[4].mxu1 %vm391_vm0, %v9260_v9  ;;  %v8427_v60 = vld [vmem:[#allocation8 + $0x80] ss:$16 sps:$4 sm:$0xff]   ;;  %v8432_v61 = vld [vmem:[#allocation8 + $0x8c] ss:$16 sps:$4 sm:$0xff]   ;;  %v8435_v62 = vld [vmem:[#allocation8 + $0xa4] ss:$16 sps:$4 sm:$0xff]  }
  0xb7   :  { %601 = vmatpush1.bf16.msra.mxu1 %v8370_v23  ;;  %632 = vmatprep.mubr.bf16.mxu1 %v9074_v0  ;;  %v8430_v63 = vld [vmem:[#allocation8 + $0x88] ss:$16 sps:$4 sm:$0xff]   ;;  %v8438_v1 = vld [vmem:[#allocation8 + $0xac] ss:$16 sps:$4 sm:$0xff]   ;;  %v8441_v2 = vld [vmem:[#allocation8 + $0xc4] ss:$16 sps:$4 sm:$0xff]  }
  0xb8   :  { %602 = vmatprep.subr.bf16.mxu1 %v8378_v25  ;;  %v8436_v3 = vld [vmem:[#allocation8 + $0xa8] ss:$16 sps:$4 sm:$0xff]   ;;  %v8439_v4 = vld [vmem:[#allocation8 + $0xc0] ss:$16 sps:$4 sm:$0xff]   ;;  %v8444_v5 = vld [vmem:[#allocation8 + $0xcc] ss:$16 sps:$4 sm:$0xff]  }
  0xb9   :  { %562 = vmatpush1.bf16.msra.mxu0 %v8373_v24  ;;  %v8447_v6 = vld [vmem:[#allocation8 + $0xe4] ss:$16 sps:$4 sm:$0xff]   ;;  %v8442_v7 = vld [vmem:[#allocation8 + $0xc8] ss:$16 sps:$4 sm:$0xff]   ;;  %v8445_v8 = vld [vmem:[#allocation8 + $0xe0] ss:$16 sps:$4 sm:$0xff]  }
  0xba   :  { %641 = vmatprep.subr.bf16.mxu0 %v8381_v26  ;;  %v8453_v10 = vld [vmem:[#allocation8 + $0x104] ss:$16 sps:$4 sm:$0xff]   ;;  %v8448_v11 = vld [vmem:[#allocation8 + $0xe8] ss:$16 sps:$4 sm:$0xff]   ;;  %v8451_v12 = vld [vmem:[#allocation8 + $0x100] ss:$16 sps:$4 sm:$0xff]  }
  0xbb   :  { %603 = vmatpush1.bf16.msra.mxu1 %v8376_v27  ;;  %v8456_v13 = vld [vmem:[#allocation8 + $0x10c] ss:$16 sps:$4 sm:$0xff]   ;;  %v8459_v14 = vld [vmem:[#allocation8 + $0x124] ss:$16 sps:$4 sm:$0xff]   ;;  %v8454_v15 = vld [vmem:[#allocation8 + $0x108] ss:$16 sps:$4 sm:$0xff]  }
  0xbc   :  { %7318 = vmatmul.mubr.msk.bf16.vlgmr.msra.gmra.mrb[8].mxu0 %vm391_vm0, %v9260_v9  ;;  %682 = vmatprep.subr.bf16.mxu1 %v8384_v29  ;;  %v8457_v16 = vld [vmem:[#allocation8 + $0x120] ss:$16 sps:$4 sm:$0xff]   ;;  %v8462_v17 = vld [vmem:[#allocation8 + $0x12c] ss:$16 sps:$4 sm:$0xff]   ;;  %v8460_v18 = vld [vmem:[#allocation8 + $0x128] ss:$16 sps:$4 sm:$0xff]  }
  0xbd   :  { %642 = vmatpush1.bf16.msra.mxu0 %v8379_v28  ;;  %673 = vmatprep.mubr.bf16.mxu0 %v9074_v0  ;;  %v8465_v19 = vld [vmem:[#allocation8 + $0x144] ss:$16 sps:$4 sm:$0xff]   ;;  %v8468_v20 = vld [vmem:[#allocation8 + $0x14c] ss:$16 sps:$4 sm:$0xff]   ;;  %v8463_v21 = vld [vmem:[#allocation8 + $0x140] ss:$16 sps:$4 sm:$0xff]  }
  0xbe   :  { %643 = vmatprep.subr.bf16.mxu0 %v8387_v30  ;;  %7319 = vmatmul.mubr.msk.bf16.vlgmr.msra.gmra.mrb[8].mxu1 %vm391_vm0, %v9260_v9  ;;  %v8466_v22 = vld [vmem:[#allocation8 + $0x148] ss:$16 sps:$4 sm:$0xff]   ;;  %v8471_v23 = vld [vmem:[#allocation8 + $0x164] ss:$16 sps:$4 sm:$0xff]   ;;  %v8474_v24 = vld [vmem:[#allocation8 + $0x16c] ss:$16 sps:$4 sm:$0xff]  }
  0xbf   :  { %683 = vmatpush1.bf16.msra.mxu1 %v8382_v31  ;;  %714 = vmatprep.mubr.bf16.mxu1 %v9074_v0  ;;  %v8469_v25 = vld [vmem:[#allocation8 + $0x160] ss:$16 sps:$4 sm:$0xff]   ;;  %v8472_v26 = vld [vmem:[#allocation8 + $0x168] ss:$16 sps:$4 sm:$0xff]   ;;  %v8477_v27 = vld [vmem:[#allocation8 + $0x184] ss:$16 sps:$4 sm:$0xff]  }
  0xc0   :  { %684 = vmatprep.subr.bf16.mxu1 %v8390_v33  ;;  %v8480_v28 = vld [vmem:[#allocation8 + $0x18c] ss:$16 sps:$4 sm:$0xff]   ;;  %v8475_v29 = vld [vmem:[#allocation8 + $0x180] ss:$16 sps:$4 sm:$0xff]   ;;  %v8478_v30 = vld [vmem:[#allocation8 + $0x188] ss:$16 sps:$4 sm:$0xff]  }
  0xc1   :  { %644 = vmatpush1.bf16.msra.mxu0 %v8385_v32  ;;  %v8483_v31 = vld [vmem:[#allocation8 + $0x1a4] ss:$16 sps:$4 sm:$0xff]   ;;  %v8486_v32 = vld [vmem:[#allocation8 + $0x1ac] ss:$16 sps:$4 sm:$0xff]   ;;  %v8481_v33 = vld [vmem:[#allocation8 + $0x1a0] ss:$16 sps:$4 sm:$0xff]  }
  0xc2   :  { %723 = vmatprep.subr.bf16.mxu0 %v8393_v34  ;;  %v8484_v34 = vld [vmem:[#allocation8 + $0x1a8] ss:$16 sps:$4 sm:$0xff]   ;;  %vm2077_vm10 = vcmask 1043456   ;;  %vm9078_vm11 = vmmov 0  }
  0xc3   :  { %685 = vmatpush1.bf16.msra.mxu1 %v8388_v35  ;;  %v8489_v35 = vld [vmem:[#allocation8 + $0x1c4] ss:$16 sps:$4 sm:$0xff]  }
  0xc4   :  { %7320 = vmatmul.mubr.msk.bf16.vlgmr.msra.gmra.mrb[12].mxu0 %vm391_vm0, %v9260_v9  ;;  %764 = vmatprep.subr.bf16.mxu1 %v8396_v37  ;;  %v8487_v37 = vld [vmem:[#allocation8 + $0x1c0] ss:$16 sps:$4 sm:$0xff]  }
  0xc5   :  { %724 = vmatpush1.bf16.msra.mxu0 %v8391_v36  ;;  %755 = vmatprep.mubr.bf16.mxu0 %v9074_v0  ;;  %v8492_v36 = vld [vmem:[#allocation8 + $0x1cc] ss:$16 sps:$4 sm:$0xff]  }
  0xc6   :  { %725 = vmatprep.subr.bf16.mxu0 %v8399_v38  ;;  %7321 = vmatmul.mubr.msk.bf16.vlgmr.msra.gmra.mrb[12].mxu1 %vm391_vm0, %v9260_v9  ;;  %v8490_v38 = vld [vmem:[#allocation8 + $0x1c8] ss:$16 sps:$4 sm:$0xff]  }
  0xc7   :  { %765 = vmatpush1.bf16.msra.mxu1 %v8394_v39  ;;  %796 = vmatprep.mubr.bf16.mxu1 %v9074_v0  ;;  %v8433_v0 = vld [vmem:[#allocation8 + $0xa0] ss:$16 sps:$4 sm:$0xff]   ;;  %v8495_v39 = vld [vmem:[#allocation8 + $0x1e4] ss:$16 sps:$4 sm:$0xff]  }
  0xc8   :  { %766 = vmatprep.subr.bf16.mxu1 %v8402_v41  ;;  %v8493_v41 = vld [vmem:[#allocation8 + $0x1e0] ss:$16 sps:$4 sm:$0xff]  }
  0xc9   :  { %726 = vmatpush1.bf16.msra.mxu0 %v8397_v40  ;;  %v8498_v40 = vld [vmem:[#allocation8 + $0x1ec] ss:$16 sps:$4 sm:$0xff]  }
  0xca   :  { %1649 = vmatprep.subr.bf16.mxu0 %v8405_v42  ;;  %v8496_v42 = vld [vmem:[#allocation8 + $0x1e8] ss:$16 sps:$4 sm:$0xff]  }
  0xcb   :  { %767 = vmatpush1.bf16.msra.mxu1 %v8400_v43  ;;  %v8501_v43 = vld [vmem:[#allocation8 + $0x204] ss:$16 sps:$4 sm:$0xff]  }
  0xcc   :  { %7322 = vmatmul.mubr.msk.bf16.vlgmr.msra.gmra.mrb[16].mxu0 %vm391_vm0, %v9260_v9  ;;  %1731 = vmatprep.subr.bf16.mxu1 %v8408_v45  ;;  %v807_v45 = vlaneseq }
  0xcd   :  { %1650 = vmatpush1.bf16.msra.mxu0 %v8403_v44  ;;  %v8504_v44 = vld [vmem:[#allocation8 + $0x20c] ss:$16 sps:$4 sm:$0xff]  }
  0xce   :  { %1651 = vmatprep.subr.bf16.mxu0 %v8411_v46  ;;  %7323 = vmatmul.mubr.msk.bf16.vlgmr.msra.gmra.mrb[16].mxu1 %vm391_vm0, %v9260_v9  ;;  %v8450_v9 = vld [vmem:[#allocation8 + $0xec] ss:$16 sps:$4 sm:$0xff]   ;;  %v9290_v46 = vshrl.u32 %v807_v45, 7  ;;  %v8508_v45 = vld [vmem:[#allocation8 + $0x228] ss:$16 sps:$4 sm:$0xff]  }
  0xcf   :  { %1732 = vmatpush1.bf16.msra.mxu1 %v8406_v47 }
  0xd0   :  { %1733 = vmatprep.subr.bf16.mxu1 %v8414_v49  ;;  %v809_v47 = vsub.s32 0, %v9290_v46  ;;  %v813_v49 = vsub.s32 1, %v9290_v46 }
  0xd1   :  { %1652 = vmatpush1.bf16.msra.mxu0 %v8409_v48  ;;  %v805_v48 = vld [vmem:[#allocation7] sm:$0xf] }
  0xd2   :  { %1653 = vmatprep.subr.bf16.mxu0 %v8417_v50  ;;  %v817_v50 = vsub.s32 2, %v9290_v46 }
  0xd3   :  { %1734 = vmatpush1.bf16.msra.mxu1 %v8412_v51  ;;  %v810_v51 = vrot.slane %v805_v48, %v809_v47 }
  0xd4   :  { %1735 = vmatprep.subr.bf16.mxu1 %v8420_v53  ;;  %v814_v53 = vrot.slane %v805_v48, %v813_v49 }
  0xd5   :  { %1654 = vmatpush1.bf16.msra.mxu0 %v8415_v52  ;;  %v821_v52 = vsub.s32 3, %v9290_v46 }
  0xd6   :  { %1655 = vmatprep.subr.bf16.mxu0 %v8423_v54 }
  0xd7   :  { %1736 = vmatpush1.bf16.msra.mxu1 %v8418_v55  ;;  %v818_v55 = vrot.slane %v805_v48, %v817_v50 }
  0xd8   :  { %1737 = vmatprep.subr.bf16.mxu1 %v8426_v57 }
  0xd9   :  { %1656 = vmatpush1.bf16.msra.mxu0 %v8421_v56 }
  0xda   :  { %1657 = vmatprep.subr.bf16.mxu0 %v8429_v59 }
  0xdb   :  { %1738 = vmatpush1.bf16.msra.mxu1 %v8424_v58  ;;  %v822_v58 = vrot.slane %v805_v48, %v821_v52 }
  0xdc   :  { %1739 = vmatprep.subr.bf16.mxu1 %v8432_v61 }
  0xdd   :  { %1658 = vmatpush1.bf16.msra.mxu0 %v8427_v60 }
  0xde   :  { %1659 = vmatprep.subr.bf16.mxu0 %v8435_v62 }
  0xdf   :  { %1740 = vmatpush1.bf16.msra.mxu1 %v8430_v63 }
  0xe0   :  { %1741 = vmatprep.subr.bf16.mxu1 %v8438_v1 }
  0xe1   :  { %1660 = vmatpush1.bf16.msra.mxu0 %v8433_v0 }
  0xe2   :  { %1661 = vmatprep.subr.bf16.mxu0 %v8441_v2 }
  0xe3   :  { %1742 = vmatpush1.bf16.msra.mxu1 %v8436_v3 }
  0xe4   :  { %1743 = vmatprep.subr.bf16.mxu1 %v8444_v5 }
  0xe5   :  { %1662 = vmatpush1.bf16.msra.mxu0 %v8439_v4 }
  0xe6   :  { %1663 = vmatprep.subr.bf16.mxu0 %v8447_v6 }
  0xe7   :  { %1744 = vmatpush1.bf16.msra.mxu1 %v8442_v7 }
  0xe8   :  { %1745 = vmatprep.subr.bf16.mxu1 %v8450_v9 }
  0xe9   :  { %1664 = vmatpush1.bf16.msra.mxu0 %v8445_v8 }
  0xea   :  { %1665 = vmatprep.subr.bf16.mxu0 %v8453_v10 }
  0xeb   :  { %1746 = vmatpush1.bf16.msra.mxu1 %v8448_v11 }
  0xec   :  { %1747 = vmatprep.subr.bf16.mxu1 %v8456_v13 }
  0xed   :  { %1666 = vmatpush1.bf16.msra.mxu0 %v8451_v12 }
  0xee   :  { %1667 = vmatprep.subr.bf16.mxu0 %v8459_v14 }
  0xef   :  { %1748 = vmatpush1.bf16.msra.mxu1 %v8454_v15 }
  0xf0   :  { %1749 = vmatprep.subr.bf16.mxu1 %v8462_v17 }
  0xf1   :  { %1668 = vmatpush1.bf16.msra.mxu0 %v8457_v16 }
  0xf2   :  { %1669 = vmatprep.subr.bf16.mxu0 %v8465_v19 }
  0xf3   :  { %1750 = vmatpush1.bf16.msra.mxu1 %v8460_v18 }
  0xf4   :  { %1751 = vmatprep.subr.bf16.mxu1 %v8468_v20 }
  0xf5   :  { %1670 = vmatpush1.bf16.msra.mxu0 %v8463_v21 }
  0xf6   :  { %1671 = vmatprep.subr.bf16.mxu0 %v8471_v23 }
  0xf7   :  { %1752 = vmatpush1.bf16.msra.mxu1 %v8466_v22 }
  0xf8   :  { %1753 = vmatprep.subr.bf16.mxu1 %v8474_v24 }
  0xf9   :  { %1672 = vmatpush1.bf16.msra.mxu0 %v8469_v25 }
  0xfa   :  { %1673 = vmatprep.subr.bf16.mxu0 %v8477_v27 }
  0xfb   :  { %1754 = vmatpush1.bf16.msra.mxu1 %v8472_v26 }
  0xfc   :  { %1755 = vmatprep.subr.bf16.mxu1 %v8480_v28 }
  0xfd   :  { %1674 = vmatpush1.bf16.msra.mxu0 %v8475_v29 }
  0xfe   :  { %1675 = vmatprep.subr.bf16.mxu0 %v8483_v31 }
  0xff   :  { %1756 = vmatpush1.bf16.msra.mxu1 %v8478_v30 }
 0x100   :  { %1757 = vmatprep.subr.bf16.mxu1 %v8486_v32 }
 0x101   :  { %1676 = vmatpush1.bf16.msra.mxu0 %v8481_v33  ;;  %v8499_v33 = vld [vmem:[#allocation8 + $0x200] ss:$16 sps:$4 sm:$0xff]  }
 0x102   :  { %1677 = vmatprep.subr.bf16.mxu0 %v8489_v35 }
 0x103   :  { %1758 = vmatpush1.bf16.msra.mxu1 %v8484_v34  ;;  %v8502_v34 = vld [vmem:[#allocation8 + $0x208] ss:$16 sps:$4 sm:$0xff]  }
 0x104   :  { %1759 = vmatprep.subr.bf16.mxu1 %v8492_v36 }
 0x105   :  { %1678 = vmatpush1.bf16.msra.mxu0 %v8487_v37 }
 0x106   :  { %1679 = vmatprep.subr.bf16.mxu0 %v8495_v39  ;;  %v8510_v39 = vld [vmem:[#allocation8 + $0x22c] ss:$16 sps:$4 sm:$0xff]  }
 0x107   :  { %1760 = vmatpush1.bf16.msra.mxu1 %v8490_v38  ;;  %v8507_v38 = vld [vmem:[#allocation8 + $0x224] ss:$16 sps:$4 sm:$0xff]  }
 0x108   :  { %1761 = vmatprep.subr.bf16.mxu1 %v8498_v40 }
 0x109   :  { %1680 = vmatpush1.bf16.msra.mxu0 %v8493_v41 }
 0x10a   :  { %1690 = vmatprep.subr.bf16.mxu0 %v8501_v43 }
 0x10b   :  { %1762 = vmatpush1.bf16.msra.mxu1 %v8496_v42 }
 0x10c   :  { %1772 = vmatprep.subr.bf16.mxu1 %v8504_v44  ;;  %v8505_v44 = vld [vmem:[#allocation8 + $0x220] ss:$16 sps:$4 sm:$0xff]  }
 0x17f   :  { %v429_v54 = vpop.f32.mrb[0].mxu0 }
 0x180   :  { %v827_v56 = vadd.f32 %v810_v51, %v429_v54  ;;  %v431_v57 = vpop.f32.mrb[1].mxu0  ;;  %v8513_v51 = vld [vmem:[#allocation8 + $0x244] ss:$16 sps:$4 sm:$0xff]  }
 0x181   :  { %v828_v59 = vadd.f32 %v814_v53, %v431_v57  ;;  %v433_v60 = vpop.f32.mrb[2].mxu0  ;;  %v470_v63 = vpop.f32.mrb[0].mxu1  ;;  %v8516_v53 = vld [vmem:[#allocation8 + $0x24c] ss:$16 sps:$4 sm:$0xff]  }
 0x182   :  { %v835_v61 = vmin.f32 %v827_v56, 0.0  ;;  %v434_v62 = vpop.f32.mrb[3].mxu0  ;;  %v9304_v1 = vadd.f32 %v818_v55, %v470_v63  ;;  %v472_v2 = vpop.f32.mrb[1].mxu1  ;;  %vm831_vm1 = vcmp.gt.f32.partialorder %v827_v56, 0.0 }
 0x183   :  { %v836_v0 = vmin.f32 %v828_v59, 0.0  ;;  %v830_v4 = vadd.f32 %v822_v58, %v472_v2  ;;  %v474_v5 = vpop.f32.mrb[2].mxu1  ;;  %vm832_vm2 = vcmp.gt.f32.partialorder %v828_v59, 0.0  ;;  %v8511_v58 = vld [vmem:[#allocation8 + $0x240] ss:$16 sps:$4 sm:$0xff]  }
 0x184   :  { %v839_v3 = vmul.f32 1.442695, %v835_v61  ;;  %v475_v7 = vpop.f32.mrb[3].mxu1  ;;  %v8519_v61 = vld [vmem:[#allocation8 + $0x264] ss:$16 sps:$4 sm:$0xff]   ;;  %vm833_vm4 = vcmp.gt.f32.partialorder %v9304_v1, 0.0 }
 0x185   :  { %v841_v6 = vmul.f32 1.442695, %v836_v0  ;;  %v838_v8 = vmin.f32 %v830_v4, 0.0  ;;  %vm834_vm3 = vcmp.gt.f32.partialorder %v830_v4, 0.0  ;;  %v8522_v62 = vld [vmem:[#allocation8 + $0x26c] ss:$16 sps:$4 sm:$0xff]  }
 0x186   :  { %8791 = vpow2.f32 %v839_v3  ;;  %v8517_v2 = vld [vmem:[#allocation8 + $0x260] ss:$16 sps:$4 sm:$0xff]   ;;  %v8520_v3 = vld [vmem:[#allocation8 + $0x268] ss:$16 sps:$4 sm:$0xff]   ;;  %v8525_v5 = vld [vmem:[#allocation8 + $0x284] ss:$16 sps:$4 sm:$0xff]  }
 0x187   :  { %8793 = vpow2.f32 %v841_v6  ;;  %v9306_v9 = vpop.f32.mrb[4].mxu0  ;;  %v845_v10 = vmul.f32 1.442695, %v838_v8  ;;  %v8528_v6 = vld [vmem:[#allocation8 + $0x28c] ss:$16 sps:$4 sm:$0xff]  }
 0x188   :  { %v9308_v11 = vpop.f32.mrb[5].mxu0 }
 0x189   :  { %v515_v12 = vpop.f32.mrb[6].mxu0  ;;  %8795 = vpow2.f32 %v845_v10  ;;  %v9310_v13 = vpop.f32.mrb[4].mxu1 }
 0x18a   :  { %v516_v14 = vpop.f32.mrb[7].mxu0  ;;  %v9312_v15 = vpop.f32.mrb[5].mxu1 }
 0x18b   :  { %v556_v16 = vpop.f32.mrb[6].mxu1  ;;  %v8523_v14 = vld [vmem:[#allocation8 + $0x280] ss:$16 sps:$4 sm:$0xff]  }
 0x18c   :  { %v557_v17 = vpop.f32.mrb[7].mxu1  ;;  %v8526_v16 = vld [vmem:[#allocation8 + $0x288] ss:$16 sps:$4 sm:$0xff]  }
 0x18f   :  { %v9314_v18 = vpop.f32.mrb[8].mxu0 }
 0x190   :  { %v8792_v19 = vpop.eup %8791  ;;  %v9316_v20 = vpop.f32.mrb[9].mxu0 }
 0x191   :  { %v8794_v21 = vpop.eup %8793  ;;  %v7324_v22 = vadd.f32 -1.0, %v8792_v19  ;;  %v597_v23 = vpop.f32.mrb[10].mxu0  ;;  %v8531_v19 = vld [vmem:[#allocation8 + $0x2a4] ss:$16 sps:$4 sm:$0xff]  }
 0x192   :  { %v7325_v24 = vadd.f32 -1.0, %v8794_v21  ;;  %v9318_v25 = vpop.f32.mrb[8].mxu1  ;;  %v598_v26 = vpop.f32.mrb[11].mxu0  ;;  %v8534_v21 = vld [vmem:[#allocation8 + $0x2ac] ss:$16 sps:$4 sm:$0xff]  }
 0x193   :  { %v851_v27 = vsel %vm831_vm1, %v827_v56, %v7324_v22  ;;  %v9320_v28 = vpop.f32.mrb[9].mxu1  ;;  %v8796_v29 = vpop.eup %8795  ;;  %v8529_v22 = vld [vmem:[#allocation8 + $0x2a0] ss:$16 sps:$4 sm:$0xff]   ;;  %v8532_v23 = vld [vmem:[#allocation8 + $0x2a8] ss:$16 sps:$4 sm:$0xff]  }
 0x194   :  { %v852_v30 = vsel %vm832_vm2, %v828_v59, %v7325_v24  ;;  %v638_v31 = vpop.f32.mrb[10].mxu1  ;;  %v7327_v35 = vadd.f32 -1.0, %v8796_v29  ;;  %v855_v37 = vpack.c.bf16 %v851_v27, %v851_v27  ;;  %v8514_v59 = vld [vmem:[#allocation8 + $0x248] ss:$16 sps:$4 sm:$0xff]   ;;  %v8537_v24 = vld [vmem:[#allocation8 + $0x2c4] ss:$16 sps:$4 sm:$0xff]  }
 0x195   :  { %v856_v32 = vpack.c.bf16 %v852_v30, %v852_v30  ;;  %v639_v36 = vpop.f32.mrb[11].mxu1  ;;  %v8540_v26 = vld [vmem:[#allocation8 + $0x2cc] ss:$16 sps:$4 sm:$0xff]   ;;  %v8535_v27 = vld [vmem:[#allocation8 + $0x2c0] ss:$16 sps:$4 sm:$0xff]  }
 0x196   :  { %v854_v40 = vsel %vm834_vm3, %v830_v4, %v7327_v35  ;;  %v8538_v29 = vld [vmem:[#allocation8 + $0x2c8] ss:$16 sps:$4 sm:$0xff]   ;;  %v8543_v30 = vld [vmem:[#allocation8 + $0x2e4] ss:$16 sps:$4 sm:$0xff]   ;;  %v8546_v31 = vld [vmem:[#allocation8 + $0x2ec] ss:$16 sps:$4 sm:$0xff]  }
 0x197   :  { %1681 = vmatprep.mubr.bf16.mxu0 %v856_v32  ;;  %1763 = vmatprep.mubr.bf16.mxu1 %v856_v32  ;;  %v9322_v41 = vpop.f32.mrb[12].mxu0  ;;  %v858_v42 = vpack.c.bf16 %v854_v40, %v854_v40  ;;  %v8541_v32 = vld [vmem:[#allocation8 + $0x2e0] ss:$16 sps:$4 sm:$0xff]   ;;  %v8552_v35 = vld [vmem:[#allocation8 + $0x30c] ss:$16 sps:$4 sm:$0xff]  }
 0x198   :  { %1682 = vmatmul.mubr.bf16.vlgmr.msra.gmra.mrb[20].mxu0 %v855_v37  ;;  %1764 = vmatmul.mubr.bf16.vlgmr.msra.gmra.mrb[20].mxu1 %v855_v37  ;;  %v9324_v43 = vpop.f32.mrb[13].mxu0  ;;  %v8547_v36 = vld [vmem:[#allocation8 + $0x300] ss:$16 sps:$4 sm:$0xff]   ;;  %v8550_v37 = vld [vmem:[#allocation8 + $0x308] ss:$16 sps:$4 sm:$0xff]  }
 0x199   :  { %1691 = vmatpush1.bf16.msra.mxu0 %v8499_v33  ;;  %1773 = vmatpush1.bf16.msra.mxu1 %v8502_v34  ;;  %v679_v48 = vpop.f32.mrb[14].mxu0  ;;  %v9326_v54 = vpop.f32.mrb[12].mxu1  ;;  %v8544_v33 = vld [vmem:[#allocation8 + $0x2e8] ss:$16 sps:$4 sm:$0xff]   ;;  %v8549_v34 = vld [vmem:[#allocation8 + $0x304] ss:$16 sps:$4 sm:$0xff]  }
 0x19a   :  { %1692 = vmatprep.subr.bf16.mxu0 %v8507_v38  ;;  %1774 = vmatprep.subr.bf16.mxu1 %v8510_v39  ;;  %v680_v55 = vpop.f32.mrb[15].mxu0  ;;  %v9328_v56 = vpop.f32.mrb[13].mxu1  ;;  %v8555_v38 = vld [vmem:[#allocation8 + $0x324] ss:$16 sps:$4 sm:$0xff]   ;;  %v8558_v39 = vld [vmem:[#allocation8 + $0x32c] ss:$16 sps:$4 sm:$0xff]  }
 0x19b   :  { %1722 = vmatprep.mubr.bf16.mxu0 %v858_v42  ;;  %1804 = vmatprep.mubr.bf16.mxu1 %v858_v42  ;;  %v720_v57 = vpop.f32.mrb[14].mxu1  ;;  %v8553_v40 = vld [vmem:[#allocation8 + $0x320] ss:$16 sps:$4 sm:$0xff]   ;;  %v8556_v42 = vld [vmem:[#allocation8 + $0x328] ss:$16 sps:$4 sm:$0xff]  }
 0x19c   :  { %v721_v60 = vpop.f32.mrb[15].mxu1  ;;  %v8564_v48 = vld [vmem:[#allocation8 + $0x34c] ss:$16 sps:$4 sm:$0xff]   ;;  %v8567_v57 = vld [vmem:[#allocation8 + $0x364] ss:$16 sps:$4 sm:$0xff]  }
 0x19d   :  { %1693 = vmatpush1.bf16.msra.mxu0 %v8505_v44  ;;  %1775 = vmatpush1.bf16.msra.mxu1 %v8508_v45  ;;  %v837_v44 = vmin.f32 %v9304_v1, 0.0  ;;  %v8561_v45 = vld [vmem:[#allocation8 + $0x344] ss:$16 sps:$4 sm:$0xff]   ;;  %v8568_v60 = vld [vmem:[#allocation8 + $0x368] ss:$16 sps:$4 sm:$0xff]  }
 0x19e   :  { %1694 = vmatprep.subr.bf16.mxu0 %v8513_v51  ;;  %1776 = vmatprep.subr.bf16.mxu1 %v8516_v53  ;;  %v8559_v51 = vld [vmem:[#allocation8 + $0x340] ss:$16 sps:$4 sm:$0xff]   ;;  %v8562_v53 = vld [vmem:[#allocation8 + $0x348] ss:$16 sps:$4 sm:$0xff]  }
 0x19f   :  { %v9330_v63 = vpop.f32.mrb[16].mxu0  ;;  %v843_v55 = vmul.f32 1.442695, %v837_v44  ;;  %v1888_v44 = vld [vmem:[%s9757_s5 + $0x198] sm:$0xff] }
 0x1a0   :  { %v9332_v0 = vpop.f32.mrb[17].mxu0 }
 0x1a1   :  { %1695 = vmatpush1.bf16.msra.mxu0 %v8511_v58  ;;  %1777 = vmatpush1.bf16.msra.mxu1 %v8514_v59  ;;  %v761_v4 = vpop.f32.mrb[18].mxu0  ;;  %v9334_v7 = vpop.f32.mrb[16].mxu1  ;;  %v8570_v58 = vld [vmem:[#allocation8 + $0x36c] ss:$16 sps:$4 sm:$0xff]   ;;  %v8565_v59 = vld [vmem:[#allocation8 + $0x360] ss:$16 sps:$4 sm:$0xff]   ;;  %8797 = vpow2.f32 %v843_v55 }
 0x1a2   :  { %1696 = vmatprep.subr.bf16.mxu0 %v8519_v61  ;;  %1778 = vmatprep.subr.bf16.mxu1 %v8522_v62  ;;  %v762_v8 = vpop.f32.mrb[19].mxu0  ;;  %v9336_v10 = vpop.f32.mrb[17].mxu1  ;;  %v8573_v61 = vld [vmem:[#allocation8 + $0x384] ss:$16 sps:$4 sm:$0xff]   ;;  %v8576_v62 = vld [vmem:[#allocation8 + $0x38c] ss:$16 sps:$4 sm:$0xff]  }
 0x1a3   :  { %v802_v12 = vpop.f32.mrb[18].mxu1  ;;  %v8579_v4 = vld [vmem:[#allocation8 + $0x3a4] ss:$16 sps:$4 sm:$0xff]   ;;  %v8580_v8 = vld [vmem:[#allocation8 + $0x3a8] ss:$16 sps:$4 sm:$0xff]  }
 0x1a4   :  { %v803_v17 = vpop.f32.mrb[19].mxu1  ;;  %v8585_v12 = vld [vmem:[#allocation8 + $0x3c4] ss:$16 sps:$4 sm:$0xff]  }
 0x1a5   :  { %1697 = vmatpush1.bf16.msra.mxu0 %v8517_v2  ;;  %1779 = vmatpush1.bf16.msra.mxu1 %v8520_v3  ;;  %v8571_v2 = vld [vmem:[#allocation8 + $0x380] ss:$16 sps:$4 sm:$0xff]   ;;  %v8574_v3 = vld [vmem:[#allocation8 + $0x388] ss:$16 sps:$4 sm:$0xff]  }
 0x1a6   :  { %1698 = vmatprep.subr.bf16.mxu0 %v8525_v5  ;;  %1780 = vmatprep.subr.bf16.mxu1 %v8528_v6  ;;  %v8582_v5 = vld [vmem:[#allocation8 + $0x3ac] ss:$16 sps:$4 sm:$0xff]   ;;  %v8577_v6 = vld [vmem:[#allocation8 + $0x3a0] ss:$16 sps:$4 sm:$0xff]  }
 0x1a7   :  { %v8583_v17 = vld [vmem:[#allocation8 + $0x3c0] ss:$16 sps:$4 sm:$0xff]  }
 0x1a9   :  { %1699 = vmatpush1.bf16.msra.mxu0 %v8523_v14  ;;  %1781 = vmatpush1.bf16.msra.mxu1 %v8526_v16  ;;  %v8588_v14 = vld [vmem:[#allocation8 + $0x3cc] ss:$16 sps:$4 sm:$0xff]  }
 0x1aa   :  { %1700 = vmatprep.subr.bf16.mxu0 %v8531_v19  ;;  %1782 = vmatprep.subr.bf16.mxu1 %v8534_v21  ;;  %v8586_v19 = vld [vmem:[#allocation8 + $0x3c8] ss:$16 sps:$4 sm:$0xff]   ;;  %v8591_v21 = vld [vmem:[#allocation8 + $0x3e4] ss:$16 sps:$4 sm:$0xff]  }
 0x1ab   :  { %v8798_v16 = vpop.eup %8797 }
 0x1ad   :  { %1701 = vmatpush1.bf16.msra.mxu0 %v8529_v22  ;;  %1783 = vmatpush1.bf16.msra.mxu1 %v8532_v23  ;;  %v8594_v22 = vld [vmem:[#allocation8 + $0x3ec] ss:$16 sps:$4 sm:$0xff]   ;;  %v1853_v23 = vld [vmem:[%s9757_s5 + $0x80] sm:$0xff] }
 0x1ae   :  { %1702 = vmatprep.subr.bf16.mxu0 %v8537_v24  ;;  %1784 = vmatprep.subr.bf16.mxu1 %v8540_v26  ;;  %v7326_v24 = vadd.f32 -1.0, %v8798_v16  ;;  %v1854_v26 = vld [vmem:[%s9757_s5 + $0x88] sm:$0xff] }
 0x1b1   :  { %1703 = vmatpush1.bf16.msra.mxu0 %v8535_v27  ;;  %1785 = vmatpush1.bf16.msra.mxu1 %v8538_v29  ;;  %v1885_v27 = vld [vmem:[%s9757_s5 + $0x180] sm:$0xff]  ;;  %v1886_v29 = vld [vmem:[%s9757_s5 + $0x188] sm:$0xff] }
 0x1b2   :  { %1704 = vmatprep.subr.bf16.mxu0 %v8543_v30  ;;  %1786 = vmatprep.subr.bf16.mxu1 %v8546_v31  ;;  %v8589_v30 = vld [vmem:[#allocation8 + $0x3e0] ss:$16 sps:$4 sm:$0xff]   ;;  %v8592_v31 = vld [vmem:[#allocation8 + $0x3e8] ss:$16 sps:$4 sm:$0xff]  }
 0x1b5   :  { %1705 = vmatpush1.bf16.msra.mxu0 %v8541_v32  ;;  %1787 = vmatpush1.bf16.msra.mxu1 %v8544_v33  ;;  %v1837_v32 = vld [vmem:[%s9757_s5] sm:$0xff]  ;;  %v1838_v33 = vld [vmem:[%s9757_s5 + $0x8] sm:$0xff] }
 0x1b6   :  { %1706 = vmatprep.subr.bf16.mxu0 %v8549_v34  ;;  %1788 = vmatprep.subr.bf16.mxu1 %v8552_v35  ;;  %v8200_v34 = vpack.c.bf16 %v1854_v26, %v1853_v23  ;;  %v8232_v35 = vpack.c.bf16 %v1886_v29, %v1885_v27  ;;  %v1891_v23 = vld [vmem:[%s9757_s5 + $0x1b0] sm:$0xff]  ;;  %v1892_v26 = vld [vmem:[%s9757_s5 + $0x1b8] sm:$0xff] }
 0x1b7   :  { %v1843_v27 = vld [vmem:[%s9757_s5 + $0x30] sm:$0xff]  ;;  %v1844_v29 = vld [vmem:[%s9757_s5 + $0x38] sm:$0xff] }
 0x1b9   :  { %1707 = vmatpush1.bf16.msra.mxu0 %v8547_v36  ;;  %1789 = vmatpush1.bf16.msra.mxu1 %v8550_v37  ;;  %v1869_v36 = vld [vmem:[%s9757_s5 + $0x100] sm:$0xff]  ;;  %v1870_v37 = vld [vmem:[%s9757_s5 + $0x108] sm:$0xff] }
 0x1ba   :  { %1708 = vmatprep.subr.bf16.mxu0 %v8555_v38  ;;  %1790 = vmatprep.subr.bf16.mxu1 %v8558_v39  ;;  %v1855_v38 = vld [vmem:[%s9757_s5 + $0x90] sm:$0xff]  ;;  %v853_v39 = vsel %vm833_vm4, %v9304_v1, %v7326_v24 }
 0x1bb   :  { %v1839_v1 = vld [vmem:[%s9757_s5 + $0x10] sm:$0xff] }
 0x1bd   :  { %1709 = vmatpush1.bf16.msra.mxu0 %v8553_v40  ;;  %1791 = vmatpush1.bf16.msra.mxu1 %v8556_v42  ;;  %v1856_v40 = vld [vmem:[%s9757_s5 + $0x98] sm:$0xff]  ;;  %v1887_v42 = vld [vmem:[%s9757_s5 + $0x190] sm:$0xff] }
 0x1be   :  { %1710 = vmatprep.subr.bf16.mxu0 %v8561_v45  ;;  %1792 = vmatprep.subr.bf16.mxu1 %v8564_v48  ;;  %v8202_v45 = vpack.c.bf16 %v1838_v33, %v1837_v32  ;;  %v8234_v48 = vpack.c.bf16 %v1870_v37, %v1869_v36  ;;  %v8204_v55 = vpack.c.bf16 %v1856_v40, %v1855_v38  ;;  %v1875_v32 = vld [vmem:[%s9757_s5 + $0x130] sm:$0xff]  ;;  %v1876_v33 = vld [vmem:[%s9757_s5 + $0x138] sm:$0xff]  ;;  %v1862_v36 = vld [vmem:[%s9757_s5 + $0xc8] sm:$0xff] }
 0x1bf   :  { %v1893_v37 = vld [vmem:[%s9757_s5 + $0x1c0] sm:$0xff] }
 0x1c0   :  { %v1845_v40 = vld [vmem:[%s9757_s5 + $0x40] sm:$0xff] }
 0x1c1   :  { %1711 = vmatpush1.bf16.msra.mxu0 %v8559_v51  ;;  %1793 = vmatpush1.bf16.msra.mxu1 %v8562_v53  ;;  %v1840_v51 = vld [vmem:[%s9757_s5 + $0x18] sm:$0xff]  ;;  %v857_v53 = vpack.c.bf16 %v853_v39, %v853_v39  ;;  %v1894_v39 = vld [vmem:[%s9757_s5 + $0x1c8] sm:$0xff] }
 0x1c2   :  { %1712 = vmatprep.subr.bf16.mxu0 %v8567_v57  ;;  %1794 = vmatprep.subr.bf16.mxu1 %v8570_v58  ;;  %v8236_v57 = vpack.c.bf16 %v1888_v44, %v1887_v42  ;;  %v1871_v58 = vld [vmem:[%s9757_s5 + $0x110] sm:$0xff]  ;;  %v1846_v42 = vld [vmem:[%s9757_s5 + $0x48] sm:$0xff]  ;;  %v8248_v44 = vpack.c.bf16 %v1894_v39, %v1893_v37  ;;  %v1884_v37 = vld [vmem:[%s9757_s5 + $0x178] sm:$0xff] }
 0x1c5   :  { %1713 = vmatpush1.bf16.msra.mxu0 %v8565_v59  ;;  %1795 = vmatpush1.bf16.msra.mxu1 %v8568_v60  ;;  %v1872_v59 = vld [vmem:[%s9757_s5 + $0x118] sm:$0xff]  ;;  %v1857_v60 = vld [vmem:[%s9757_s5 + $0xa0] sm:$0xff] }
 0x1c6   :  { %1714 = vmatprep.subr.bf16.mxu0 %v8573_v61  ;;  %1796 = vmatprep.subr.bf16.mxu1 %v8576_v62  ;;  %v1858_v61 = vld [vmem:[%s9757_s5 + $0xa8] sm:$0xff]  ;;  %v1889_v62 = vld [vmem:[%s9757_s5 + $0x1a0] sm:$0xff] }
 0x1c9   :  { %1715 = vmatpush1.bf16.msra.mxu0 %v8571_v2  ;;  %1797 = vmatpush1.bf16.msra.mxu1 %v8574_v3  ;;  %v1890_v2 = vld [vmem:[%s9757_s5 + $0x1a8] sm:$0xff]  ;;  %v8206_v3 = vpack.c.bf16 %v1840_v51, %v1839_v1 }
 0x1ca   :  { %1716 = vmatprep.subr.bf16.mxu0 %v8579_v4  ;;  %1798 = vmatprep.subr.bf16.mxu1 %v8582_v5  ;;  %v8238_v4 = vpack.c.bf16 %v1872_v59, %v1871_v58  ;;  %v8208_v5 = vpack.c.bf16 %v1858_v61, %v1857_v60  ;;  %v1878_v1 = vld [vmem:[%s9757_s5 + $0x148] sm:$0xff]  ;;  %v1896_v59 = vld [vmem:[%s9757_s5 + $0x1d8] sm:$0xff]  ;;  %v1847_v60 = vld [vmem:[%s9757_s5 + $0x50] sm:$0xff] }
 0x1cb   :  { %v1848_v61 = vld [vmem:[%s9757_s5 + $0x58] sm:$0xff] }
 0x1cd   :  { %1717 = vmatpush1.bf16.msra.mxu0 %v8577_v6  ;;  %1799 = vmatpush1.bf16.msra.mxu1 %v8580_v8  ;;  %v8240_v6 = vpack.c.bf16 %v1890_v2, %v1889_v62  ;;  %v1841_v8 = vld [vmem:[%s9757_s5 + $0x20] sm:$0xff]  ;;  %v8222_v2 = vpack.c.bf16 %v1848_v61, %v1847_v60 }
 0x1ce   :  { %1718 = vmatprep.subr.bf16.mxu0 %v8585_v12  ;;  %1800 = vmatprep.subr.bf16.mxu1 %v8588_v14  ;;  %v1842_v12 = vld [vmem:[%s9757_s5 + $0x28] sm:$0xff]  ;;  %v1873_v14 = vld [vmem:[%s9757_s5 + $0x120] sm:$0xff] }
 0x1cf   :  { %v8210_v16 = vpack.c.bf16 %v1842_v12, %v1841_v8  ;;  %v1866_v8 = vld [vmem:[%s9757_s5 + $0xe8] sm:$0xff]  ;;  %v1897_v12 = vld [vmem:[%s9757_s5 + $0x1e0] sm:$0xff] }
 0x1d1   :  { %1719 = vmatpush1.bf16.msra.mxu0 %v8583_v17  ;;  %1801 = vmatpush1.bf16.msra.mxu1 %v8586_v19  ;;  %v1874_v17 = vld [vmem:[%s9757_s5 + $0x128] sm:$0xff] }
 0x1d2   :  { %1720 = vmatprep.subr.bf16.mxu0 %v8591_v21  ;;  %1802 = vmatprep.subr.bf16.mxu1 %v8594_v22  ;;  %v8242_v19 = vpack.c.bf16 %v1874_v17, %v1873_v14  ;;  %v1859_v21 = vld [vmem:[%s9757_s5 + $0xb0] sm:$0xff]  ;;  %v1860_v22 = vld [vmem:[%s9757_s5 + $0xb8] sm:$0xff]  ;;  %v1898_v14 = vld [vmem:[%s9757_s5 + $0x1e8] sm:$0xff] }
 0x1d3   :  { %v8212_v24 = vpack.c.bf16 %v1860_v22, %v1859_v21  ;;  %v8256_v17 = vpack.c.bf16 %v1898_v14, %v1897_v12  ;;  %v1850_v21 = vld [vmem:[%s9757_s5 + $0x68] sm:$0xff]  ;;  %v1881_v22 = vld [vmem:[%s9757_s5 + $0x160] sm:$0xff] }
 0x1d5   :  { %1721 = vmatpush1.bf16.msra.mxu0 %v8589_v30  ;;  %1803 = vmatpush1.bf16.msra.mxu1 %v8592_v31  ;;  %v8244_v30 = vpack.c.bf16 %v1892_v26, %v1891_v23  ;;  %v8214_v31 = vpack.c.bf16 %v1844_v29, %v1843_v27  ;;  %v1867_v26 = vld [vmem:[%s9757_s5 + $0xf0] sm:$0xff]  ;;  %v1868_v27 = vld [vmem:[%s9757_s5 + $0xf8] sm:$0xff] }
 0x1d6   :  { %8201 = vmatprep.subr.bf16.mxu0 %v8200_v34  ;;  %8233 = vmatprep.subr.bf16.mxu1 %v8232_v35  ;;  %v8246_v34 = vpack.c.bf16 %v1876_v33, %v1875_v32  ;;  %v1861_v35 = vld [vmem:[%s9757_s5 + $0xc0] sm:$0xff]  ;;  %v1900_v32 = vld [vmem:[%s9757_s5 + $0x1f8] sm:$0xff]  ;;  %v1851_v33 = vld [vmem:[%s9757_s5 + $0x70] sm:$0xff] }
 0x1d7   :  { %v8216_v38 = vpack.c.bf16 %v1862_v36, %v1861_v35  ;;  %v1852_v35 = vld [vmem:[%s9757_s5 + $0x78] sm:$0xff]  ;;  %v1883_v36 = vld [vmem:[%s9757_s5 + $0x170] sm:$0xff] }
 0x1d8   :  { %1723 = vmatmul.mubr.bf16.vlgmr.msra.gmra.mrb[20].mxu0 %v857_v53  ;;  %1805 = vmatmul.mubr.bf16.vlgmr.msra.gmra.mrb[20].mxu1 %v857_v53  ;;  %v1863_v53 = vld [vmem:[%s9757_s5 + $0xd0] sm:$0xff]  ;;  %v8262_v39 = vpack.c.bf16 %v1884_v37, %v1883_v36 }
 0x1d9   :  { %8203 = vmatpush3.bf16.msra.mxu0 %v8202_v45  ;;  %8235 = vmatpush3.bf16.msra.mxu1 %v8234_v48  ;;  %v8218_v45 = vpack.c.bf16 %v1846_v42, %v1845_v40  ;;  %v1877_v48 = vld [vmem:[%s9757_s5 + $0x140] sm:$0xff]  ;;  %v987_v40 = vld [vmem:[#allocation10] sm:$0xf] }
 0x1da   :  { %8205 = vmatprep.subr.bf16.mxu0 %v8204_v55  ;;  %8237 = vmatprep.subr.bf16.mxu1 %v8236_v57  ;;  %v8250_v51 = vpack.c.bf16 %v1878_v1, %v1877_v48  ;;  %v1864_v55 = vld [vmem:[%s9757_s5 + $0xd8] sm:$0xff]  ;;  %v1895_v57 = vld [vmem:[%s9757_s5 + $0x1d0] sm:$0xff]  ;;  %v992_v42 = vrot.slane %v987_v40, %v809_v47  ;;  %v1004_v48 = vrot.slane %v987_v40, %v821_v52 }
 0x1db   :  { %v8220_v58 = vpack.c.bf16 %v1864_v55, %v1863_v53  ;;  %v8252_v62 = vpack.c.bf16 %v1896_v59, %v1895_v57 }
 0x1dd   :  { %8207 = vmatpush3.bf16.msra.mxu0 %v8206_v3  ;;  %8239 = vmatpush3.bf16.msra.mxu1 %v8238_v4  ;;  %v1879_v3 = vld [vmem:[%s9757_s5 + $0x150] sm:$0xff]  ;;  %v1880_v4 = vld [vmem:[%s9757_s5 + $0x158] sm:$0xff] }
 0x1de   :  { %8209 = vmatprep.subr.bf16.mxu0 %v8208_v5  ;;  %8241 = vmatprep.subr.bf16.mxu1 %v8240_v6  ;;  %v1865_v5 = vld [vmem:[%s9757_s5 + $0xe0] sm:$0xff]  ;;  %v8254_v6 = vpack.c.bf16 %v1880_v4, %v1879_v3 }
 0x1e1   :  { %8211 = vmatpush3.bf16.msra.mxu0 %v8210_v16  ;;  %8243 = vmatpush3.bf16.msra.mxu1 %v8242_v19  ;;  %v8224_v16 = vpack.c.bf16 %v1866_v8, %v1865_v5  ;;  %v1849_v19 = vld [vmem:[%s9757_s5 + $0x60] sm:$0xff] }
 0x1e2   :  { %8213 = vmatprep.subr.bf16.mxu0 %v8212_v24  ;;  %8245 = vmatprep.subr.bf16.mxu1 %v8244_v30  ;;  %v8226_v23 = vpack.c.bf16 %v1850_v21, %v1849_v19  ;;  %v1882_v24 = vld [vmem:[%s9757_s5 + $0x168] sm:$0xff]  ;;  %v8228_v30 = vpack.c.bf16 %v1868_v27, %v1867_v26 }
 0x1e3   :  { %v8258_v29 = vpack.c.bf16 %v1882_v24, %v1881_v22 }
 0x1e5   :  { %8215 = vmatpush3.bf16.msra.mxu0 %v8214_v31  ;;  %8247 = vmatpush3.bf16.msra.mxu1 %v8246_v34  ;;  %v1899_v31 = vld [vmem:[%s9757_s5 + $0x1f0] sm:$0xff]  ;;  %s9080_s5 = smov [#allocation17]  }
 0x1e6   :  { %8217 = vmatprep.subr.bf16.mxu0 %v8216_v38  ;;  %8249 = vmatprep.subr.bf16.mxu1 %v8248_v44  ;;  %v8260_v34 = vpack.c.bf16 %v1900_v32, %v1899_v31  ;;  %v8230_v38 = vpack.c.bf16 %v1852_v35, %v1851_v33  ;;  %v1000_v44 = vrot.slane %v987_v40, %v817_v50  ;;  %v7460_v31 = vld [vmem:[#allocation11] ss:$0 sm:$0xff]  ;;  %s7261_s21 = sshll.u32 %s9080_s5, 4  ;;  %s7262_s21 = int_to_ptr.vmem [resolvable:$true] %s7261_s21 }
 0x1e7   :  { %s9025_s25 = scalar_lea.vmem %s7262_s21, 128  ;;  %p9030_p3 = scmp.lt.s32.totalorder %s7262_s21, %s7262_s21 }
 0x1e8   :  { %p9026_p2 = scmp.ne.s32.totalorder %s7262_s21, %s9025_s25  ;;  %p9031_p4 = scmp.lt.s32.totalorder %s9025_s25, %s9025_s25 }
 0x1e9   :  { %8219 = vmatpush3.bf16.msra.mxu0 %v8218_v45  ;;  %8251 = vmatpush3.bf16.msra.mxu1 %v8250_v51  ;;  %v996_v45 = vrot.slane %v987_v40, %v813_v49 }
 0x1ea   :  { %8221 = vmatprep.subr.bf16.mxu0 %v8220_v58  ;;  %8253 = vmatprep.subr.bf16.mxu1 %v8252_v62  ;;  %p9032_p5 = por %p9031_p4, %p9030_p3 }
 0x1ec   :  { %p9033_p6 = pnand %p9032_p5, %p9026_p2 }
 0x1ed   :  { %8223 = vmatpush3.bf16.msra.mxu0 %v8222_v2  ;;  %8255 = vmatpush3.bf16.msra.mxu1 %v8254_v6 }
 0x1ee   :  { %8225 = vmatprep.subr.bf16.mxu0 %v8224_v16  ;;  %8257 = vmatprep.subr.bf16.mxu1 %v8256_v17 }
 0x1f1   :  { %8227 = vmatpush3.bf16.msra.mxu0 %v8226_v23  ;;  %8259 = vmatpush3.bf16.msra.mxu1 %v8258_v29 }
 0x1f2   :  { %8229 = vmatprep.subr.bf16.mxu0 %v8228_v30  ;;  %8261 = vmatprep.subr.bf16.mxu1 %v8260_v34 }
 0x1f5   :  { %8231 = vmatpush3.bf16.msra.mxu0 %v8230_v38  ;;  %8263 = vmatpush3.bf16.msra.mxu1 %v8262_v39 }
 0x2ab   :  { %v1724_v1 = vpop.f32.mrb[20].mxu0  ;;  %v1806_v51 = vpop.f32.mrb[20].mxu1 }
 0x2ac   :  { %v8264_v53 = vadd.f32 %v1724_v1, %v992_v42  ;;  %v8266_v55 = vadd.f32 %v1806_v51, %v1000_v44  ;;  %v1726_v57 = vpop.f32.mrb[21].mxu0  ;;  %v1808_v58 = vpop.f32.mrb[21].mxu1  ;;  %v2061_v1 = vld [vmem:[#allocation13 + $0x8] sm:$0xff] }
 0x2ad   :  { %v8265_v59 = vadd.f32 %v1726_v57, %v996_v45  ;;  %v8267_v60 = vadd.f32 %v1808_v58, %v1004_v48  ;;  %v1728_v61 = vpop.f32.mrb[22].mxu0  ;;  %v1810_v62 = vpop.f32.mrb[22].mxu1  ;;  %v2060_v48 = vld [vmem:[#allocation13] sm:$0xff]  ;;  %v2062_v57 = vld [vmem:[#allocation13 + $0x10] sm:$0xff]  ;;  %v2063_v58 = vld [vmem:[#allocation13 + $0x18] sm:$0xff] }
 0x2ae   :  { %v1817_v47 = vmin.f32 %v8264_v53, 0.0  ;;  %v1819_v2 = vmin.f32 %v8266_v55, 0.0  ;;  %v1729_v3 = vpop.f32.mrb[23].mxu0  ;;  %v1811_v50 = vpop.f32.mrb[23].mxu1  ;;  %vm1813_vm6 = vcmp.gt.f32.partialorder %v8264_v53, 0.0  ;;  %vm1815_vm8 = vcmp.gt.f32.partialorder %v8266_v55, 0.0 }
 0x2af   :  { %v1818_v4 = vmin.f32 %v8265_v59, 0.0  ;;  %v1820_v5 = vmin.f32 %v8267_v60, 0.0  ;;  %vm1814_vm5 = vcmp.gt.f32.partialorder %v8265_v59, 0.0  ;;  %vm1816_vm7 = vcmp.gt.f32.partialorder %v8267_v60, 0.0  ;;  %v2064_v3 = vld [vmem:[#allocation13 + $0x20] sm:$0xf] }
 0x2b0   :  { %v1821_v49 = vmul.f32 1.442695, %v1817_v47  ;;  %v1825_v6 = vmul.f32 1.442695, %v1819_v2  ;;  %v2070_v51 = vcombine.high %v2060_v48, %v2060_v48  ;;  %v2073_v61 = vcombine.high %v2063_v58, %v2063_v58 }
 0x2b1   :  { %v1823_v46 = vmul.f32 1.442695, %v1818_v4  ;;  %v1827_v52 = vmul.f32 1.442695, %v1820_v5  ;;  %v9077_v50 = vmov 1   ;;  %v9079_v4 = vmov 3  }
 0x2b2   :  { %8799 = vpow2.f32 %v1821_v49  ;;  %7461 = vmatprep.subr.msk.mxu0 %vm2077_vm10, %v2070_v51  ;;  %v2526_v5 = vld [vmem:[#allocation14] sm:$0xff] }
 0x2b3   :  { %8801 = vpow2.f32 %v1825_v6  ;;  %v2534_v49 = vld [vmem:[#allocation14 + $0x40] sm:$0xff]  ;;  %v2527_v6 = vld [vmem:[#allocation14 + $0x8] sm:$0xff] }
 0x2b4   :  { %8803 = vpow2.f32 %v1823_v46  ;;  %v7479_v46 = vcombine.low %v2526_v5, %v2534_v49 }
 0x2b5   :  { %8805 = vpow2.f32 %v1827_v52  ;;  %v7480_v52 = vcombine.high %v2526_v5, %v2534_v49  ;;  %v2623_v5 = vld [vmem:[#allocation14 + $0x308] sm:$0xff] }
 0x2b6   :  { %v2631_v49 = vld [vmem:[#allocation14 + $0x348] sm:$0xff] }
 0x2bc   :  { %v8800_v8 = vpop.eup %8799 }
 0x2bd   :  { %v8802_v12 = vpop.eup %8801  ;;  %v7456_v16 = vadd.f32 -1.0, %v8800_v8  ;;  %v2535_v8 = vld [vmem:[#allocation14 + $0x48] sm:$0xff] }
 0x2be   :  { %v8804_v14 = vpop.eup %8803  ;;  %v7458_v21 = vadd.f32 -1.0, %v8802_v12  ;;  %v2542_v12 = vld [vmem:[#allocation14 + $0x80] sm:$0xff] }
 0x2bf   :  { %v8806_v17 = vpop.eup %8805  ;;  %v7457_v19 = vadd.f32 -1.0, %v8804_v14  ;;  %v1833_v26 = vsel %vm1813_vm6, %v8264_v53, %v7456_v16  ;;  %v2071_v53 = vcombine.high %v2061_v1, %v2061_v1  ;;  %v2550_v14 = vld [vmem:[#allocation14 + $0xc0] sm:$0xff]  ;;  %v7481_v16 = vcombine.low %v2527_v6, %v2535_v8 }
 0x2c0   :  { %v7459_v22 = vadd.f32 -1.0, %v8806_v17  ;;  %v1835_v27 = vsel %vm1815_vm8, %v8266_v55, %v7458_v21  ;;  %v9075_v55 = vmov 2   ;;  %v7482_v17 = vcombine.high %v2527_v6, %v2535_v8  ;;  %v2543_v21 = vld [vmem:[#allocation14 + $0x88] sm:$0xff] }
 0x2c1   :  { %v1834_v23 = vsel %vm1814_vm5, %v8265_v59, %v7457_v19  ;;  %7464 = vmatprep.subr.msk.mxu1 %vm2077_vm10, %v2071_v53  ;;  %8340 = vset.pattern.permute.xlu0 %v9075_v55  ;;  %v9076_v59 = vmov 0.0   ;;  %v7496_v19 = vcombine.high %v2542_v12, %v2550_v14  ;;  %v7578_v8 = vcombine.high %v2623_v5, %v2631_v49 }
 0x2c2   :  { %1972 = vmatprep.mubr.f32.mxu0 %v1834_v23  ;;  %v1836_v24 = vsel %vm1816_vm7, %v8267_v60, %v7459_v22  ;;  %v2072_v60 = vcombine.high %v2062_v57, %v2062_v57  ;;  %v2551_v22 = vld [vmem:[#allocation14 + $0xc8] sm:$0xff]  ;;  %v2558_v23 = vld [vmem:[#allocation14 + $0x100] sm:$0xff] }
 0x2c3   :  { %2042 = vmatprep.mubr.f32.mxu1 %v1836_v24  ;;  %1973 = vmatmul.mubr.f32.vlgmr.msra.gmra.mrb[24].mxu0 %v1833_v26  ;;  %v7498_v24 = vcombine.high %v2543_v21, %v2551_v22  ;;  %v2566_v26 = vld [vmem:[#allocation14 + $0x140] sm:$0xff] }
 0x2c4   :  { %2043 = vmatmul.mubr.f32.vlgmr.msra.gmra.mrb[24].mxu1 %v1835_v27  ;;  %7462 = vmatpush1.msk.msra.mxu0 %vm2077_vm10, %v2060_v48  ;;  %v2559_v27 = vld [vmem:[#allocation14 + $0x108] sm:$0xff] }
 0x2c5   :  { %2160 = vmatprep.mubr.f32.mxu0 %v9076_v59  ;;  %7465 = vmatpush1.msk.msra.mxu1 %vm2077_vm10, %v2061_v1  ;;  %v2591_v48 = vld [vmem:[#allocation14 + $0x208] sm:$0xff] }
 0x2c6   :  { %2231 = vmatprep.mubr.f32.mxu1 %v9076_v59  ;;  %7467 = vmatprep.subr.msk.mxu0 %vm2077_vm10, %v2072_v60  ;;  %v2599_v1 = vld [vmem:[#allocation14 + $0x248] sm:$0xff] }
 0x2c7   :  { %7470 = vmatprep.subr.msk.mxu1 %vm2077_vm10, %v2073_v61  ;;  %v2607_v60 = vld [vmem:[#allocation14 + $0x288] sm:$0xff] }
 0x2c8   :  { %v2615_v61 = vld [vmem:[#allocation14 + $0x2c8] sm:$0xff] }
 0x396   :  { %v8155_v29 = vpop.f32.mrb[24].mxu0 }
 0x397   :  { %v8190_v30 = vpop.f32.mrb[24].mxu1  ;;  %v8156_v32 = vpop.f32.mrb[25].mxu0 }
 0x398   :  { %v8157_v33 = vadd.f32 %v8156_v32, %v8155_v29  ;;  %v8191_v34 = vpop.f32.mrb[25].mxu1  ;;  %v2567_v29 = vld [vmem:[#allocation14 + $0x148] sm:$0xff]  ;;  %v7512_v32 = vcombine.high %v2558_v23, %v2566_v26 }
 0x399   :  { %v8192_v35 = vadd.f32 %v8191_v34, %v8190_v30  ;;  %v7495_v30 = vcombine.low %v2542_v12, %v2550_v14  ;;  %v2574_v34 = vld [vmem:[#allocation14 + $0x180] sm:$0xff] }
 0x39a   :  { %v1975_v36 = vadd.f32 %v8157_v33, %v7460_v31  ;;  %v7497_v31 = vcombine.low %v2543_v21, %v2551_v22  ;;  %v7514_v33 = vcombine.high %v2559_v27, %v2567_v29  ;;  %v2638_v12 = vld [vmem:[#allocation14 + $0x380] sm:$0xff]  ;;  %v7577_v21 = vcombine.low %v2623_v5, %v2631_v49 }
 0x39b   :  { %v2646_v14 = vld [vmem:[#allocation14 + $0x3c0] sm:$0xff] }
 0x39c   :  { %v2045_v37 = vadd.f32 %v8192_v35, %v1975_v36  ;;  %v2582_v35 = vld [vmem:[#allocation14 + $0x1c0] sm:$0xff]  ;;  %v2575_v36 = vld [vmem:[#allocation14 + $0x188] sm:$0xff]  ;;  %v7592_v22 = vcombine.high %v2638_v12, %v2646_v14 }
 0x39d   :  { %v7527_v51 = vcombine.low %v2574_v34, %v2582_v35  ;;  %v2718_v5 = vld [vmem:[#allocation14 + $0x600] sm:$0xff] }
 0x39e   :  { %v2049_v38 = vsel %vm2048_vm9, %v2045_v37, -inf  ;;  %v2726_v49 = vld [vmem:[#allocation14 + $0x640] sm:$0xff] }
 0x39f   :  { %2050 = vmax.xlane.f32.xlu0 %v2049_v38  ;;  %v7511_v38 = vcombine.low %v2558_v23, %v2566_v26  ;;  %v2662_v26 = vld [vmem:[#allocation14 + $0x440] sm:$0xff] }
 0x42c   :  { %v2051_v39 = vpop.xlane.xlu0 %2050 }
 0x42d   :  { %v2052_v40 = vsub.f32 %v2045_v37, %v2051_v39  ;;  %v2583_v37 = vld [vmem:[#allocation14 + $0x1c8] sm:$0xff]  ;;  %v7513_v39 = vcombine.low %v2559_v27, %v2567_v29 }
 0x42e   :  { %v7529_v53 = vcombine.low %v2575_v36, %v2583_v37  ;;  %v2655_v27 = vld [vmem:[#allocation14 + $0x408] sm:$0xff] }
 0x42f   :  { %v2053_v42 = vmul.f32 1.442695, %v2052_v40  ;;  %v7528_v40 = vcombine.high %v2574_v34, %v2582_v35  ;;  %v2663_v29 = vld [vmem:[#allocation14 + $0x448] sm:$0xff] }
 0x430   :  { %v7609_v35 = vcombine.low %v2655_v27, %v2663_v29 }
 0x431   :  { %8807 = vpow2.f32 %v2053_v42  ;;  %v7530_v42 = vcombine.high %v2575_v36, %v2583_v37  ;;  %v2670_v36 = vld [vmem:[#allocation14 + $0x480] sm:$0xff] }
 0x432   :  { %v2678_v37 = vld [vmem:[#allocation14 + $0x4c0] sm:$0xff] }
 0x43b   :  { %v8808_v44 = vpop.eup %8807 }
 0x43c   :  { %v2055_v45 = vsel %vm2048_vm9, %v8808_v44, 0.0 }
 0x43d   :  { %2056 = vadd.xlane.f32.xlu0 %v2055_v45  ;;  %v2598_v45 = vld [vmem:[#allocation14 + $0x240] sm:$0xff] }
 0x4ca   :  { %v2057_v62 = vpop.xlane.xlu0 %2056 }
 0x4cb   :  { %8809 = vrcp.f32 %v2057_v62 }
 0x4d5   :  { %v8810_v47 = vpop.eup %8809 }
 0x4d6   :  { %v2059_v2 = vmul.f32 %v8810_v47, %v8808_v44  ;;  %v2590_v44 = vld [vmem:[#allocation14 + $0x200] sm:$0xff]  ;;  %v7545_v47 = vcombine.low %v2591_v48, %v2599_v1 }
 0x4d7   :  { %v7544_v55 = vcombine.high %v2590_v44, %v2598_v45  ;;  %v7543_v62 = vcombine.low %v2590_v44, %v2598_v45 }
 0x4d8   :  { %2459 = vperm.xlu0 %8340, %v2059_v2   ;;  %2451 = vperm.xlu1 %8338, %v2059_v2  }
 0x4d9   :  { %7463 = vmatmul.mubr.msk.f32.vlgmr.msra.gmra.mrb[26].mxu0 %vm2048_vm9, %v2059_v2  ;;  %7466 = vmatmul.mubr.msk.f32.vlgmr.msra.gmra.mrb[26].mxu1 %vm2048_vm9, %v2059_v2 }
 0x4da   :  { %7468 = vmatpush1.msk.msra.mxu0 %vm2077_vm10, %v2062_v57  ;;  %2302 = vmatprep.mubr.f32.mxu0 %v9076_v59  ;;  %v7546_v57 = vcombine.high %v2591_v48, %v2599_v1  ;;  %v2686_v48 = vld [vmem:[#allocation14 + $0x500] sm:$0xff] }
 0x4db   :  { %7471 = vmatpush1.msk.msra.mxu1 %vm2077_vm10, %v2063_v58  ;;  %2373 = vmatprep.mubr.f32.mxu1 %v9076_v59  ;;  %v2606_v58 = vld [vmem:[#allocation14 + $0x280] sm:$0xff] }
 0x4dc   :  { %8339 = vset.pattern.permute.xlu1 %v9077_v50  ;;  %8195 = vmatprep.subr.mxu0 %v9076_v59  ;;  %v2622_v50 = vld [vmem:[#allocation14 + $0x300] sm:$0xff] }
 0x4dd   :  { %7469 = vmatmul.mubr.msk.f32.vlgmr.msra.gmra.mrb[28].mxu0 %vm2048_vm9, %v2059_v2  ;;  %7472 = vmatmul.mubr.msk.f32.vlgmr.msra.gmra.mrb[28].mxu1 %vm2048_vm9, %v2059_v2  ;;  %v2694_v1 = vld [vmem:[#allocation14 + $0x540] sm:$0xff] }
 0x4de   :  { %2455 = vperm.xlu1 %8339, %v2059_v2   ;;  %8196 = vmatpush3.msk.msra.mxu0 %vm2077_vm10, %v2064_v3  ;;  %v7562_v3 = vcombine.high %v2607_v60, %v2615_v61 }
 0x4df   :  { %8197 = vmatprep.mubr.msk.f32.mxu0 %vm9078_vm11, %v9076_v59  ;;  %8342 = vset.pattern.permute.xlu0 %v9079_v4  ;;  %v2614_v59 = vld [vmem:[#allocation14 + $0x2c0] sm:$0xff] }
 0x4e0   :  { %5598 = vmatprep.subr.bf16.mxu1 %v7480_v52  ;;  %5680 = vmatprep.subr.bf16.mxu0 %v7482_v17  ;;  %v7559_v6 = vcombine.low %v2606_v58, %v2614_v59  ;;  %v2647_v17 = vld [vmem:[#allocation14 + $0x3c8] sm:$0xff] }
 0x4e1   :  { %8198 = vmatmul.mubr.msk.f32.vlgmr.msra.gmra.mrb[30].mxu0 %vm2048_vm9, %v2059_v2  ;;  %5599 = vmatpush1.bf16.msra.mxu1 %v7479_v46  ;;  %v7561_v46 = vcombine.low %v2607_v60, %v2615_v61  ;;  %v2702_v60 = vld [vmem:[#allocation14 + $0x580] sm:$0xff] }
 0x4e2   :  { %8341 = vset.pattern.permute.xlu1 %v9079_v4  ;;  %5681 = vmatpush1.bf16.msra.mxu0 %v7481_v16  ;;  %v2630_v4 = vld [vmem:[#allocation14 + $0x340] sm:$0xff]  ;;  %v2639_v16 = vld [vmem:[#allocation14 + $0x388] sm:$0xff] }
 0x4e3   :  { %2463 = vperm.xlu1 %8341, %v2059_v2   ;;  %5600 = vmatprep.subr.bf16.mxu1 %v7496_v19  ;;  %v7560_v2 = vcombine.high %v2606_v58, %v2614_v59  ;;  %v7576_v52 = vcombine.high %v2622_v50, %v2630_v4  ;;  %v7575_v19 = vcombine.low %v2622_v50, %v2630_v4  ;;  %v2710_v61 = vld [vmem:[#allocation14 + $0x5c0] sm:$0xff] }
 0x4e4   :  { %5682 = vmatprep.subr.bf16.mxu0 %v7498_v24  ;;  %v7594_v23 = vcombine.high %v2639_v16, %v2647_v17  ;;  %v2654_v24 = vld [vmem:[#allocation14 + $0x400] sm:$0xff] }
 0x4e5   :  { %5601 = vmatpush1.bf16.msra.mxu1 %v7495_v30  ;;  %v7591_v30 = vcombine.low %v2638_v12, %v2646_v14  ;;  %v7607_v34 = vcombine.low %v2654_v24, %v2662_v26 }
 0x4e6   :  { %5683 = vmatpush1.bf16.msra.mxu0 %v7497_v31  ;;  %5602 = vmatprep.subr.bf16.mxu1 %v7512_v32  ;;  %v7593_v31 = vcombine.low %v2639_v16, %v2647_v17  ;;  %v7608_v32 = vcombine.high %v2654_v24, %v2662_v26  ;;  %v2734_v16 = vld [vmem:[#allocation14 + $0x680] sm:$0xff] }
 0x4e7   :  { %5684 = vmatprep.subr.bf16.mxu0 %v7514_v33  ;;  %v7610_v33 = vcombine.high %v2655_v27, %v2663_v29  ;;  %v2742_v17 = vld [vmem:[#allocation14 + $0x6c0] sm:$0xff] }
 0x4e8   :  { %v2750_v27 = vld [vmem:[#allocation14 + $0x700] sm:$0xff] }
 0x4e9   :  { %5603 = vmatpush1.bf16.msra.mxu1 %v7511_v38  ;;  %v2671_v38 = vld [vmem:[#allocation14 + $0x488] sm:$0xff]  ;;  %v2758_v29 = vld [vmem:[#allocation14 + $0x740] sm:$0xff] }
 0x4ea   :  { %5685 = vmatpush1.bf16.msra.mxu0 %v7513_v39  ;;  %5604 = vmatprep.subr.bf16.mxu1 %v7528_v40  ;;  %v7624_v39 = vcombine.high %v2670_v36, %v2678_v37  ;;  %v2679_v40 = vld [vmem:[#allocation14 + $0x4c8] sm:$0xff] }
 0x4eb   :  { %5686 = vmatprep.subr.bf16.mxu0 %v7530_v42  ;;  %v7623_v42 = vcombine.low %v2670_v36, %v2678_v37  ;;  %v7625_v44 = vcombine.low %v2671_v38, %v2679_v40  ;;  %v7626_v45 = vcombine.high %v2671_v38, %v2679_v40  ;;  %v2766_v36 = vld [vmem:[#allocation14 + $0x780] sm:$0xff]  ;;  %v2767_v38 = vld [vmem:[#allocation14 + $0x788] sm:$0xff] }
 0x4ec   :  { %v2774_v37 = vld [vmem:[#allocation14 + $0x7c0] sm:$0xff]  ;;  %v2775_v40 = vld [vmem:[#allocation14 + $0x7c8] sm:$0xff] }
 0x4ed   :  { %5605 = vmatpush1.bf16.msra.mxu1 %v7527_v51  ;;  %v2687_v51 = vld [vmem:[#allocation14 + $0x508] sm:$0xff] }
 0x4ee   :  { %5687 = vmatpush1.bf16.msra.mxu0 %v7529_v53  ;;  %5606 = vmatprep.subr.bf16.mxu1 %v7544_v55  ;;  %v7640_v53 = vcombine.high %v2686_v48, %v2694_v1  ;;  %v2695_v55 = vld [vmem:[#allocation14 + $0x548] sm:$0xff] }
 0x4ef   :  { %5688 = vmatprep.subr.bf16.mxu0 %v7546_v57  ;;  %v7639_v57 = vcombine.low %v2686_v48, %v2694_v1  ;;  %v7641_v58 = vcombine.low %v2687_v51, %v2695_v55  ;;  %v7642_v59 = vcombine.high %v2687_v51, %v2695_v55  ;;  %v9557_v48 = vld [vmem:[#allocation14 + $0x800] sm:$0xff]  ;;  %v9561_v51 = vld [vmem:[#allocation14 + $0x808] sm:$0xff] }
 0x4f0   :  { %v9559_v1 = vld [vmem:[#allocation14 + $0x840] sm:$0xff]  ;;  %v9565_v55 = vld [vmem:[#allocation14 + $0x848] sm:$0xff] }
 0x4f1   :  { %5607 = vmatpush1.bf16.msra.mxu1 %v7543_v62  ;;  %v2703_v62 = vld [vmem:[#allocation14 + $0x588] sm:$0xff] }
 0x4f2   :  { %5689 = vmatpush1.bf16.msra.mxu0 %v7545_v47  ;;  %5608 = vmatprep.subr.bf16.mxu1 %v7560_v2  ;;  %v7656_v47 = vcombine.high %v2702_v60, %v2710_v61  ;;  %v2711_v2 = vld [vmem:[#allocation14 + $0x5c8] sm:$0xff] }
 0x4f3   :  { %5690 = vmatprep.subr.bf16.mxu0 %v7562_v3  ;;  %v7655_v3 = vcombine.low %v2702_v60, %v2710_v61  ;;  %v7657_v50 = vcombine.low %v2703_v62, %v2711_v2  ;;  %v7658_v4 = vcombine.high %v2703_v62, %v2711_v2 }
 0x4f5   :  { %5609 = vmatpush1.bf16.msra.mxu1 %v7559_v6  ;;  %v2719_v6 = vld [vmem:[#allocation14 + $0x608] sm:$0xff] }
 0x4f6   :  { %5691 = vmatpush1.bf16.msra.mxu0 %v7561_v46  ;;  %5610 = vmatprep.subr.bf16.mxu1 %v7576_v52  ;;  %v7672_v46 = vcombine.high %v2718_v5, %v2726_v49  ;;  %v2727_v52 = vld [vmem:[#allocation14 + $0x648] sm:$0xff] }
 0x4f7   :  { %5692 = vmatprep.subr.bf16.mxu0 %v7578_v8  ;;  %v7671_v8 = vcombine.low %v2718_v5, %v2726_v49  ;;  %v7673_v12 = vcombine.low %v2719_v6, %v2727_v52  ;;  %v7674_v14 = vcombine.high %v2719_v6, %v2727_v52 }
 0x4f9   :  { %5611 = vmatpush1.bf16.msra.mxu1 %v7575_v19  ;;  %v2735_v19 = vld [vmem:[#allocation14 + $0x688] sm:$0xff] }
 0x4fa   :  { %5693 = vmatpush1.bf16.msra.mxu0 %v7577_v21  ;;  %5612 = vmatprep.subr.bf16.mxu1 %v7592_v22  ;;  %v7688_v21 = vcombine.high %v2734_v16, %v2742_v17  ;;  %v2743_v22 = vld [vmem:[#allocation14 + $0x6c8] sm:$0xff] }
 0x4fb   :  { %5694 = vmatprep.subr.bf16.mxu0 %v7594_v23  ;;  %v7687_v23 = vcombine.low %v2734_v16, %v2742_v17  ;;  %v7689_v24 = vcombine.low %v2735_v19, %v2743_v22  ;;  %v7690_v26 = vcombine.high %v2735_v19, %v2743_v22 }
 0x4fd   :  { %5613 = vmatpush1.bf16.msra.mxu1 %v7591_v30  ;;  %v2751_v30 = vld [vmem:[#allocation14 + $0x708] sm:$0xff] }
 0x4fe   :  { %5695 = vmatpush1.bf16.msra.mxu0 %v7593_v31  ;;  %5614 = vmatprep.subr.bf16.mxu1 %v7608_v32  ;;  %v7704_v31 = vcombine.high %v2750_v27, %v2758_v29  ;;  %v2759_v32 = vld [vmem:[#allocation14 + $0x748] sm:$0xff] }
 0x4ff   :  { %5696 = vmatprep.subr.bf16.mxu0 %v7610_v33  ;;  %v7703_v33 = vcombine.low %v2750_v27, %v2758_v29 }
 0x501   :  { %5615 = vmatpush1.bf16.msra.mxu1 %v7607_v34  ;;  %v7705_v34 = vcombine.low %v2751_v30, %v2759_v32 }
 0x502   :  { %5697 = vmatpush1.bf16.msra.mxu0 %v7609_v35  ;;  %5616 = vmatprep.subr.bf16.mxu1 %v7624_v39  ;;  %v7706_v35 = vcombine.high %v2751_v30, %v2759_v32  ;;  %v7720_v39 = vcombine.high %v2766_v36, %v2774_v37 }
 0x503   :  { %5698 = vmatprep.subr.bf16.mxu0 %v7626_v45  ;;  %v7722_v45 = vcombine.high %v2767_v38, %v2775_v40 }
 0x505   :  { %5617 = vmatpush1.bf16.msra.mxu1 %v7623_v42  ;;  %v7719_v42 = vcombine.low %v2766_v36, %v2774_v37 }
 0x506   :  { %5699 = vmatpush1.bf16.msra.mxu0 %v7625_v44  ;;  %5618 = vmatprep.subr.bf16.mxu1 %v7640_v53  ;;  %v7721_v44 = vcombine.low %v2767_v38, %v2775_v40  ;;  %v7736_v53 = vcombine.high %v9557_v48, %v9559_v1 }
 0x507   :  { %5700 = vmatprep.subr.bf16.mxu0 %v7642_v59  ;;  %v7738_v59 = vcombine.high %v9561_v51, %v9565_v55 }
 0x509   :  { %5619 = vmatpush1.bf16.msra.mxu1 %v7639_v57  ;;  %v7735_v57 = vcombine.low %v9557_v48, %v9559_v1 }
 0x50a   :  { %5701 = vmatpush1.bf16.msra.mxu0 %v7641_v58  ;;  %5620 = vmatprep.subr.bf16.mxu1 %v7656_v47  ;;  %v7737_v58 = vcombine.low %v9561_v51, %v9565_v55 }
 0x50b   :  { %5702 = vmatprep.subr.bf16.mxu0 %v7658_v4 }
 0x50d   :  { %5621 = vmatpush1.bf16.msra.mxu1 %v7655_v3 }
 0x50e   :  { %5703 = vmatpush1.bf16.msra.mxu0 %v7657_v50  ;;  %5622 = vmatprep.subr.bf16.mxu1 %v7672_v46 }
 0x50f   :  { %5704 = vmatprep.subr.bf16.mxu0 %v7674_v14 }
 0x511   :  { %5623 = vmatpush1.bf16.msra.mxu1 %v7671_v8 }
 0x512   :  { %5705 = vmatpush1.bf16.msra.mxu0 %v7673_v12  ;;  %5624 = vmatprep.subr.bf16.mxu1 %v7688_v21 }
 0x513   :  { %5706 = vmatprep.subr.bf16.mxu0 %v7690_v26 }
 0x515   :  { %5625 = vmatpush1.bf16.msra.mxu1 %v7687_v23 }
 0x516   :  { %5707 = vmatpush1.bf16.msra.mxu0 %v7689_v24  ;;  %5626 = vmatprep.subr.bf16.mxu1 %v7704_v31 }
 0x517   :  { %5708 = vmatprep.subr.bf16.mxu0 %v7706_v35 }
 0x519   :  { %5627 = vmatpush1.bf16.msra.mxu1 %v7703_v33 }
 0x51a   :  { %5709 = vmatpush1.bf16.msra.mxu0 %v7705_v34  ;;  %5628 = vmatprep.subr.bf16.mxu1 %v7720_v39 }
 0x51b   :  { %5710 = vmatprep.subr.bf16.mxu0 %v7722_v45 }
 0x51d   :  { %5629 = vmatpush1.bf16.msra.mxu1 %v7719_v42 }
 0x51e   :  { %5711 = vmatpush1.bf16.msra.mxu0 %v7721_v44  ;;  %5639 = vmatprep.subr.bf16.mxu1 %v7736_v53 }
 0x51f   :  { %5721 = vmatprep.subr.bf16.mxu0 %v7738_v59 }
 0x557   :  { %v9573_v60 = vpop.permute.xlu1 %2451  ;;  %v9577_v62 = vpop.permute.xlu0 %2459 }
 0x558   :  { %v2466_v47 = vmul.f32 %v9573_v60, %v9306_v9  ;;  %v2468_v2 = vmul.f32 %v9573_v60, %v9310_v13  ;;  %v2467_v4 = vmul.f32 %v9573_v60, %v9308_v11  ;;  %v2469_v5 = vmul.f32 %v9573_v60, %v9312_v15 }
 0x559   :  { %v2483_v21 = vmul.f32 %v9577_v62, %v9324_v43 }
 0x55d   :  { %v9575_v61 = vpop.permute.xlu1 %2455 }
 0x55e   :  { %v2474_v6 = vmul.f32 %v9575_v61, %v9314_v18  ;;  %v2476_v52 = vmul.f32 %v9575_v61, %v9318_v25  ;;  %v2475_v14 = vmul.f32 %v9575_v61, %v9316_v20  ;;  %v2477_v15 = vmul.f32 %v9575_v61, %v9320_v28 }
 0x55f   :  { %v2482_v18 = vmul.f32 %v9577_v62, %v9322_v41  ;;  %v2484_v25 = vmul.f32 %v9577_v62, %v9326_v54  ;;  %v2485_v20 = vmul.f32 %v9577_v62, %v9328_v56 }
 0x562   :  { %v9591_v12 = vpop.permute.xlu1 %2463 }
 0x563   :  { %v2490_v41 = vmul.f32 %v9591_v12, %v9330_v63  ;;  %v2492_v54 = vmul.f32 %v9591_v12, %v9334_v7  ;;  %v2491_v56 = vmul.f32 %v9591_v12, %v9332_v0  ;;  %v2493_v31 = vmul.f32 %v9591_v12, %v9336_v10 }
 0x5ac   :  { %v2162_v3 = vpop.f32.mrb[26].mxu0  ;;  %v2233_v50 = vpop.f32.mrb[26].mxu1 }
 0x5ad   :  { %v2470_v49 = vadd.f32 %v2466_v47, %v2162_v3  ;;  %v2472_v46 = vadd.f32 %v2468_v2, %v2233_v50  ;;  %v2164_v9 = vpop.f32.mrb[27].mxu0  ;;  %v2235_v8 = vpop.f32.mrb[27].mxu1  ;;  %v2798_v2 = vld [vmem:[#allocation14 + $0x880] sm:$0xff] }
 0x5ae   :  { %v2471_v13 = vadd.f32 %v2467_v4, %v2164_v9  ;;  %v2473_v11 = vadd.f32 %v2469_v5, %v2235_v8  ;;  %v2806_v50 = vld [vmem:[#allocation14 + $0x8c0] sm:$0xff]  ;;  %v2799_v4 = vld [vmem:[#allocation14 + $0x888] sm:$0xff] }
 0x5af   :  { %v2478_v16 = vadd.f32 %v2474_v6, %v2470_v49  ;;  %v2480_v17 = vadd.f32 %v2476_v52, %v2472_v46  ;;  %v2807_v5 = vld [vmem:[#allocation14 + $0x8c8] sm:$0xff]  ;;  %v2814_v52 = vld [vmem:[#allocation14 + $0x900] sm:$0xff]  ;;  %v7752_v9 = vcombine.high %v2798_v2, %v2806_v50 }
 0x5b0   :  { %v2479_v19 = vadd.f32 %v2475_v14, %v2471_v13  ;;  %v2481_v22 = vadd.f32 %v2477_v15, %v2473_v11  ;;  %v9605_v23 = vpop.f32.mrb[28].mxu0  ;;  %v9607_v24 = vpop.f32.mrb[28].mxu1  ;;  %v7754_v8 = vcombine.high %v2799_v4, %v2807_v5  ;;  %v2822_v13 = vld [vmem:[#allocation14 + $0x940] sm:$0xff]  ;;  %v2815_v14 = vld [vmem:[#allocation14 + $0x908] sm:$0xff] }
 0x5b1   :  { %v2486_v28 = vadd.f32 %v2482_v18, %v2478_v16  ;;  %v2488_v26 = vadd.f32 %v2484_v25, %v2480_v17  ;;  %v9613_v27 = vpop.f32.mrb[29].mxu0  ;;  %v9615_v29 = vpop.f32.mrb[29].mxu1  ;;  %v2823_v11 = vld [vmem:[#allocation14 + $0x948] sm:$0xff]  ;;  %v7751_v16 = vcombine.low %v2798_v2, %v2806_v50  ;;  %v7753_v18 = vcombine.low %v2799_v4, %v2807_v5 }
 0x5b2   :  { %v2487_v43 = vadd.f32 %v2483_v21, %v2479_v19  ;;  %v2489_v30 = vadd.f32 %v2485_v20, %v2481_v22  ;;  %v7768_v17 = vcombine.high %v2814_v52, %v2822_v13  ;;  %v7770_v25 = vcombine.high %v2815_v14, %v2823_v11  ;;  %v2830_v19 = vld [vmem:[#allocation14 + $0x980] sm:$0xff]  ;;  %v2831_v22 = vld [vmem:[#allocation14 + $0x988] sm:$0xff] }
 0x5b3   :  { %v2494_v32 = vadd.f32 %v2490_v41, %v2486_v28  ;;  %v9621_v33 = vadd.f32 %v2492_v54, %v2488_v26  ;;  %v2838_v21 = vld [vmem:[#allocation14 + $0x9c0] sm:$0xff]  ;;  %v2839_v20 = vld [vmem:[#allocation14 + $0x9c8] sm:$0xff]  ;;  %v7767_v48 = vcombine.low %v2814_v52, %v2822_v13  ;;  %v7769_v1 = vcombine.low %v2815_v14, %v2823_v11 }
 0x5b4   :  { %v2495_v63 = vadd.f32 %v2491_v56, %v2487_v43  ;;  %v2497_v34 = vadd.f32 %v2493_v31, %v2489_v30  ;;  %v9623_v35 = vpop.f32.mrb[30].mxu0  ;;  %v7784_v51 = vcombine.high %v2830_v19, %v2838_v21  ;;  %v7786_v55 = vcombine.high %v2831_v22, %v2839_v20  ;;  %v2847_v28 = vld [vmem:[#allocation14 + $0xa08] sm:$0xff]  ;;  %v2862_v30 = vld [vmem:[#allocation14 + $0xa80] sm:$0xff] }
 0x5b5   :  { %v2502_v7 = vmin.f32 %v2494_v32, 0.0  ;;  %v8199_v36 = vpop.f32.mrb[31].mxu0  ;;  %vm2498_vm12 = vcmp.gt.f32.partialorder %v2494_v32, 0.0  ;;  %v2855_v41 = vld [vmem:[#allocation14 + $0xa48] sm:$0xff]  ;;  %v7783_v26 = vcombine.low %v2830_v19, %v2838_v21  ;;  %v7785_v54 = vcombine.low %v2831_v22, %v2839_v20  ;;  %v2870_v31 = vld [vmem:[#allocation14 + $0xac0] sm:$0xff] }
 0x5b6   :  { %v2503_v37 = vmin.f32 %v2495_v63, 0.0  ;;  %v2505_v38 = vmin.f32 %v2497_v34, 0.0  ;;  %vm2499_vm13 = vcmp.gt.f32.partialorder %v2495_v63, 0.0  ;;  %vm2501_vm14 = vcmp.gt.f32.partialorder %v2497_v34, 0.0  ;;  %v2903_v2 = vld [vmem:[#allocation14 + $0xbc8] sm:$0xff]  ;;  %v2918_v52 = vld [vmem:[#allocation14 + $0xc40] sm:$0xff] }
 0x5b7   :  { %v2506_v39 = vmul.f32 1.442695, %v2502_v7  ;;  %v7802_v56 = vcombine.high %v2847_v28, %v2855_v41  ;;  %v7801_v7 = vcombine.low %v2847_v28, %v2855_v41  ;;  %v7816_v36 = vcombine.high %v2862_v30, %v2870_v31  ;;  %v2935_v19 = vld [vmem:[#allocation14 + $0xcc8] sm:$0xff] }
 0x5b8   :  { %v2508_v40 = vmul.f32 1.442695, %v2503_v37  ;;  %v2512_v42 = vmul.f32 1.442695, %v2505_v38  ;;  %v2878_v38 = vld [vmem:[#allocation14 + $0xb00] sm:$0xff]  ;;  %v2504_v41 = vmin.f32 %v9621_v33, 0.0 }
 0x5b9   :  { %8811 = vpow2.f32 %v2506_v39  ;;  %v2886_v39 = vld [vmem:[#allocation14 + $0xb40] sm:$0xff]  ;;  %vm2500_vm15 = vcmp.gt.f32.partialorder %v9621_v33, 0.0 }
 0x5ba   :  { %8813 = vpow2.f32 %v2508_v40  ;;  %v2879_v40 = vld [vmem:[#allocation14 + $0xb08] sm:$0xff] }
 0x5bb   :  { %8815 = vpow2.f32 %v2512_v42  ;;  %v2887_v42 = vld [vmem:[#allocation14 + $0xb48] sm:$0xff] }
 0x5bc   :  { %v7833_v50 = vcombine.low %v2879_v40, %v2887_v42 }
 0x5c3   :  { %v8812_v0 = vpop.eup %8811 }
 0x5c4   :  { %v7475_v44 = vadd.f32 -1.0, %v8812_v0  ;;  %v8814_v10 = vpop.eup %8813  ;;  %v7815_v0 = vcombine.low %v2862_v30, %v2870_v31  ;;  %v2959_v30 = vld [vmem:[#allocation14 + $0xd88] sm:$0xff] }
 0x5c5   :  { %v8816_v45 = vpop.eup %8815  ;;  %v7476_v53 = vadd.f32 -1.0, %v8814_v10  ;;  %v7832_v10 = vcombine.high %v2878_v38, %v2886_v39  ;;  %v2967_v31 = vld [vmem:[#allocation14 + $0xdc8] sm:$0xff] }
 0x5c6   :  { %v2518_v59 = vsel %vm2498_vm12, %v2494_v32, %v7475_v44  ;;  %v7478_v47 = vadd.f32 -1.0, %v8816_v45  ;;  %v2863_v32 = vld [vmem:[#allocation14 + $0xa88] sm:$0xff]  ;;  %v7834_v45 = vcombine.high %v2879_v40, %v2887_v42 }
 0x5c7   :  { %v2519_v3 = vsel %vm2499_vm13, %v2495_v63, %v7476_v53  ;;  %v9627_v46 = vpack.c.bf16 %v2518_v59, %v2518_v59  ;;  %v2871_v63 = vld [vmem:[#allocation14 + $0xac8] sm:$0xff]  ;;  %v2894_v53 = vld [vmem:[#allocation14 + $0xb80] sm:$0xff] }
 0x5c8   :  { %v9625_v49 = vpack.c.bf16 %v2519_v3, %v2519_v3  ;;  %v2521_v6 = vsel %vm2501_vm14, %v2497_v34, %v7478_v47  ;;  %v7818_v37 = vcombine.high %v2863_v32, %v2871_v63  ;;  %v7817_v44 = vcombine.low %v2863_v32, %v2871_v63  ;;  %v2902_v59 = vld [vmem:[#allocation14 + $0xbc0] sm:$0xff]  ;;  %v2895_v47 = vld [vmem:[#allocation14 + $0xb88] sm:$0xff] }
 0x5c9   :  { %v9631_v15 = vpack.c.bf16 %v2521_v6, %v2521_v6  ;;  %v7831_v3 = vcombine.low %v2878_v38, %v2886_v39  ;;  %v7848_v4 = vcombine.high %v2894_v53, %v2902_v59  ;;  %v7850_v5 = vcombine.high %v2895_v47, %v2903_v2  ;;  %v2910_v6 = vld [vmem:[#allocation14 + $0xc00] sm:$0xff]  ;;  %v2975_v39 = vld [vmem:[#allocation14 + $0xe08] sm:$0xff] }
 0x5ca   :  { %5630 = vmatprep.mubr.bf16.mxu1 %v9625_v49  ;;  %5712 = vmatprep.mubr.bf16.mxu0 %v9625_v49  ;;  %v7847_v13 = vcombine.low %v2894_v53, %v2902_v59  ;;  %v7849_v14 = vcombine.low %v2895_v47, %v2903_v2  ;;  %v7864_v11 = vcombine.high %v2910_v6, %v2918_v52  ;;  %v2982_v38 = vld [vmem:[#allocation14 + $0xe40] sm:$0xff]  ;;  %v2983_v40 = vld [vmem:[#allocation14 + $0xe48] sm:$0xff] }
 0x5cb   :  { %5631 = vmatmul.mubr.bf16.vlgmr.msra.gmra.mrb[32].mxu1 %v9627_v46  ;;  %5713 = vmatmul.mubr.bf16.vlgmr.msra.gmra.mrb[32].mxu0 %v9627_v46  ;;  %v7863_v21 = vcombine.low %v2910_v6, %v2918_v52  ;;  %v2998_v53 = vld [vmem:[#allocation14 + $0xec0] sm:$0xff]  ;;  %v2991_v59 = vld [vmem:[#allocation14 + $0xe88] sm:$0xff] }
 0x5cc   :  { %5640 = vmatpush1.bf16.msra.mxu1 %v7735_v57  ;;  %5722 = vmatpush1.bf16.msra.mxu0 %v7737_v58  ;;  %v2846_v57 = vld [vmem:[#allocation14 + $0xa00] sm:$0xff]  ;;  %v2999_v47 = vld [vmem:[#allocation14 + $0xec8] sm:$0xff] }
 0x5cd   :  { %5671 = vmatprep.mubr.bf16.mxu1 %v9631_v15  ;;  %5753 = vmatprep.mubr.bf16.mxu0 %v9631_v15  ;;  %v2854_v58 = vld [vmem:[#allocation14 + $0xa40] sm:$0xff]  ;;  %v3007_v52 = vld [vmem:[#allocation14 + $0xf08] sm:$0xff] }
 0x5ce   :  { %5641 = vmatprep.subr.bf16.mxu1 %v7752_v9  ;;  %5723 = vmatprep.subr.bf16.mxu0 %v7754_v8  ;;  %v7800_v43 = vcombine.high %v2846_v57, %v2854_v58  ;;  %v7799_v34 = vcombine.low %v2846_v57, %v2854_v58  ;;  %v2911_v9 = vld [vmem:[#allocation14 + $0xc08] sm:$0xff]  ;;  %v3014_v6 = vld [vmem:[#allocation14 + $0xf40] sm:$0xff] }
 0x5cf   :  { %v2919_v8 = vld [vmem:[#allocation14 + $0xc48] sm:$0xff] }
 0x5d0   :  { %5642 = vmatpush1.bf16.msra.mxu1 %v7751_v16  ;;  %5724 = vmatpush1.bf16.msra.mxu0 %v7753_v18  ;;  %v7866_v16 = vcombine.high %v2911_v9, %v2919_v8  ;;  %v2926_v18 = vld [vmem:[#allocation14 + $0xc80] sm:$0xff]  ;;  %v7865_v22 = vcombine.low %v2911_v9, %v2919_v8  ;;  %v2951_v57 = vld [vmem:[#allocation14 + $0xd48] sm:$0xff] }
 0x5d1   :  { %5643 = vmatprep.subr.bf16.mxu1 %v7768_v17  ;;  %5725 = vmatprep.subr.bf16.mxu0 %v7770_v25  ;;  %v2934_v17 = vld [vmem:[#allocation14 + $0xcc0] sm:$0xff]  ;;  %v2927_v25 = vld [vmem:[#allocation14 + $0xc88] sm:$0xff] }
 0x5d2   :  { %v7880_v20 = vcombine.high %v2926_v18, %v2934_v17  ;;  %v7879_v58 = vcombine.low %v2926_v18, %v2934_v17  ;;  %v7881_v28 = vcombine.low %v2927_v25, %v2935_v19  ;;  %v3015_v9 = vld [vmem:[#allocation14 + $0xf48] sm:$0xff]  ;;  %v3030_v18 = vld [vmem:[#allocation14 + $0xfc0] sm:$0xff] }
 0x5d3   :  { %v3023_v17 = vld [vmem:[#allocation14 + $0xf88] sm:$0xff] }
 0x5d4   :  { %5644 = vmatpush1.bf16.msra.mxu1 %v7767_v48  ;;  %5726 = vmatpush1.bf16.msra.mxu0 %v7769_v1  ;;  %v7882_v48 = vcombine.high %v2927_v25, %v2935_v19  ;;  %v2942_v1 = vld [vmem:[#allocation14 + $0xd00] sm:$0xff]  ;;  %v3031_v25 = vld [vmem:[#allocation14 + $0xfc8] sm:$0xff] }
 0x5d5   :  { %5645 = vmatprep.subr.bf16.mxu1 %v7784_v51  ;;  %5727 = vmatprep.subr.bf16.mxu0 %v7786_v55  ;;  %v2950_v51 = vld [vmem:[#allocation14 + $0xd40] sm:$0xff]  ;;  %v2943_v55 = vld [vmem:[#allocation14 + $0xd08] sm:$0xff] }
 0x5d6   :  { %v7895_v32 = vcombine.low %v2942_v1, %v2950_v51  ;;  %v7897_v63 = vcombine.low %v2943_v55, %v2951_v57 }
 0x5d8   :  { %5646 = vmatpush1.bf16.msra.mxu1 %v7783_v26  ;;  %5728 = vmatpush1.bf16.msra.mxu0 %v7785_v54  ;;  %v7896_v26 = vcombine.high %v2942_v1, %v2950_v51  ;;  %v7898_v54 = vcombine.high %v2943_v55, %v2951_v57  ;;  %v2528_v1 = vld [vmem:[#allocation14 + $0x10] sm:$0xff]  ;;  %v2529_v57 = vld [vmem:[#allocation14 + $0x18] sm:$0xff] }
 0x5d9   :  { %5647 = vmatprep.subr.bf16.mxu1 %v7800_v43  ;;  %5729 = vmatprep.subr.bf16.mxu0 %v7802_v56  ;;  %v2958_v43 = vld [vmem:[#allocation14 + $0xd80] sm:$0xff]  ;;  %v2536_v55 = vld [vmem:[#allocation14 + $0x50] sm:$0xff] }
 0x5da   :  { %v2966_v56 = vld [vmem:[#allocation14 + $0xdc0] sm:$0xff] }
 0x5db   :  { %v7911_v42 = vcombine.low %v2958_v43, %v2966_v56 }
 0x5dc   :  { %5648 = vmatpush1.bf16.msra.mxu1 %v7799_v34  ;;  %5730 = vmatpush1.bf16.msra.mxu0 %v7801_v7  ;;  %v2510_v34 = vmul.f32 1.442695, %v2504_v41  ;;  %v7912_v7 = vcombine.high %v2958_v43, %v2966_v56  ;;  %v7977_v41 = vcombine.low %v3023_v17, %v3031_v25  ;;  %v2544_v56 = vld [vmem:[#allocation14 + $0x90] sm:$0xff] }
 0x5dd   :  { %5649 = vmatprep.subr.bf16.mxu1 %v7816_v36  ;;  %5731 = vmatprep.subr.bf16.mxu0 %v7818_v37  ;;  %v7914_v36 = vcombine.high %v2959_v30, %v2967_v31  ;;  %v2974_v37 = vld [vmem:[#allocation14 + $0xe00] sm:$0xff] }
 0x5de   :  { %8817 = vpow2.f32 %v2510_v34  ;;  %v7927_v2 = vcombine.low %v2974_v37, %v2982_v38 }
 0x5e0   :  { %5650 = vmatpush1.bf16.msra.mxu1 %v7815_v0  ;;  %5732 = vmatpush1.bf16.msra.mxu0 %v7817_v44  ;;  %v7913_v0 = vcombine.low %v2959_v30, %v2967_v31  ;;  %v7928_v44 = vcombine.high %v2974_v37, %v2982_v38  ;;  %v2552_v30 = vld [vmem:[#allocation14 + $0xd0] sm:$0xff]  ;;  %v2545_v31 = vld [vmem:[#allocation14 + $0x98] sm:$0xff] }
 0x5e1   :  { %5651 = vmatprep.subr.bf16.mxu1 %v7832_v10  ;;  %5733 = vmatprep.subr.bf16.mxu0 %v7834_v45  ;;  %v7930_v10 = vcombine.high %v2975_v39, %v2983_v40  ;;  %v2990_v45 = vld [vmem:[#allocation14 + $0xe80] sm:$0xff]  ;;  %v2560_v38 = vld [vmem:[#allocation14 + $0x110] sm:$0xff] }
 0x5e2   :  { %v7943_v8 = vcombine.low %v2990_v45, %v2998_v53 }
 0x5e4   :  { %5652 = vmatpush1.bf16.msra.mxu1 %v7831_v3  ;;  %5734 = vmatpush1.bf16.msra.mxu0 %v7833_v50  ;;  %v7929_v3 = vcombine.low %v2975_v39, %v2983_v40  ;;  %v7944_v50 = vcombine.high %v2990_v45, %v2998_v53  ;;  %v2568_v39 = vld [vmem:[#allocation14 + $0x150] sm:$0xff]  ;;  %v2569_v40 = vld [vmem:[#allocation14 + $0x158] sm:$0xff] }
 0x5e5   :  { %5653 = vmatprep.subr.bf16.mxu1 %v7848_v4  ;;  %5735 = vmatprep.subr.bf16.mxu0 %v7850_v5  ;;  %v7946_v4 = vcombine.high %v2991_v59, %v2999_v47  ;;  %v3006_v5 = vld [vmem:[#allocation14 + $0xf00] sm:$0xff]  ;;  %v2576_v45 = vld [vmem:[#allocation14 + $0x190] sm:$0xff] }
 0x5e6   :  { %v2584_v53 = vld [vmem:[#allocation14 + $0x1d0] sm:$0xff] }
 0x5e8   :  { %5654 = vmatpush1.bf16.msra.mxu1 %v7847_v13  ;;  %5736 = vmatpush1.bf16.msra.mxu0 %v7849_v14  ;;  %v7945_v13 = vcombine.low %v2991_v59, %v2999_v47  ;;  %v7960_v14 = vcombine.high %v3006_v5, %v3014_v6  ;;  %v8818_v19 = vpop.eup %8817  ;;  %v2577_v59 = vld [vmem:[#allocation14 + $0x198] sm:$0xff] }
 0x5e9   :  { %5655 = vmatprep.subr.bf16.mxu1 %v7864_v11  ;;  %5737 = vmatprep.subr.bf16.mxu0 %v7866_v16  ;;  %v7962_v11 = vcombine.high %v3007_v52, %v3015_v9  ;;  %v3022_v16 = vld [vmem:[#allocation14 + $0xf80] sm:$0xff]  ;;  %v7477_v51 = vadd.f32 -1.0, %v8818_v19  ;;  %v2585_v47 = vld [vmem:[#allocation14 + $0x1d8] sm:$0xff] }
 0x5eb   :  { %v2520_v43 = vsel %vm2500_vm15, %v9621_v33, %v7477_v51  ;;  %v2561_v33 = vld [vmem:[#allocation14 + $0x118] sm:$0xff] }
 0x5ec   :  { %5656 = vmatpush1.bf16.msra.mxu1 %v7863_v21  ;;  %5738 = vmatpush1.bf16.msra.mxu0 %v7865_v22  ;;  %v7959_v21 = vcombine.low %v3006_v5, %v3014_v6  ;;  %v7961_v22 = vcombine.low %v3007_v52, %v3015_v9  ;;  %v9646_v34 = vpack.c.bf16 %v2520_v43, %v2520_v43  ;;  %v2592_v5 = vld [vmem:[#allocation14 + $0x210] sm:$0xff]  ;;  %v2593_v52 = vld [vmem:[#allocation14 + $0x218] sm:$0xff] }
 0x5ed   :  { %5657 = vmatprep.subr.bf16.mxu1 %v7880_v20  ;;  %5739 = vmatprep.subr.bf16.mxu0 %v7882_v48  ;;  %v7976_v20 = vcombine.high %v3022_v16, %v3030_v18  ;;  %v7978_v48 = vcombine.high %v3023_v17, %v3031_v25  ;;  %v2600_v6 = vld [vmem:[#allocation14 + $0x250] sm:$0xff]  ;;  %v2601_v9 = vld [vmem:[#allocation14 + $0x258] sm:$0xff] }
 0x5ee   :  { %v2609_v17 = vld [vmem:[#allocation14 + $0x298] sm:$0xff]  ;;  %v7547_v19 = vcombine.low %v2592_v5, %v2600_v6 }
 0x5ef   :  { %v2617_v25 = vld [vmem:[#allocation14 + $0x2d8] sm:$0xff] }
 0x5f0   :  { %5658 = vmatpush1.bf16.msra.mxu1 %v7879_v58  ;;  %5740 = vmatpush1.bf16.msra.mxu0 %v7881_v28  ;;  %v2537_v58 = vld [vmem:[#allocation14 + $0x58] sm:$0xff]  ;;  %v7975_v28 = vcombine.low %v3022_v16, %v3030_v18  ;;  %v2608_v16 = vld [vmem:[#allocation14 + $0x290] sm:$0xff] }
 0x5f1   :  { %5659 = vmatprep.subr.bf16.mxu1 %v7896_v26  ;;  %5741 = vmatprep.subr.bf16.mxu0 %v7898_v54  ;;  %v7484_v26 = vcombine.high %v2528_v1, %v2536_v55  ;;  %v7486_v54 = vcombine.high %v2529_v57, %v2537_v58  ;;  %v2616_v18 = vld [vmem:[#allocation14 + $0x2d0] sm:$0xff]  ;;  %v2625_v51 = vld [vmem:[#allocation14 + $0x318] sm:$0xff] }
 0x5f2   :  { %v2641_v43 = vld [vmem:[#allocation14 + $0x398] sm:$0xff] }
 0x5f4   :  { %5660 = vmatpush1.bf16.msra.mxu1 %v7895_v32  ;;  %5742 = vmatpush1.bf16.msra.mxu0 %v7897_v63  ;;  %v2553_v32 = vld [vmem:[#allocation14 + $0xd8] sm:$0xff]  ;;  %v7483_v63 = vcombine.low %v2528_v1, %v2536_v55  ;;  %v2632_v1 = vld [vmem:[#allocation14 + $0x350] sm:$0xff] }
 0x5f5   :  { %5661 = vmatprep.subr.bf16.mxu1 %v7912_v7  ;;  %5743 = vmatprep.subr.bf16.mxu0 %v7914_v36  ;;  %v7485_v7 = vcombine.low %v2529_v57, %v2537_v58  ;;  %v7500_v36 = vcombine.high %v2544_v56, %v2552_v30  ;;  %v7502_v37 = vcombine.high %v2545_v31, %v2553_v32  ;;  %v2633_v55 = vld [vmem:[#allocation14 + $0x358] sm:$0xff] }
 0x5f6   :  { %v7563_v57 = vcombine.low %v2608_v16, %v2616_v18  ;;  %v7565_v58 = vcombine.low %v2609_v17, %v2617_v25 }
 0x5f8   :  { %5662 = vmatpush1.bf16.msra.mxu1 %v7911_v42  ;;  %5744 = vmatpush1.bf16.msra.mxu0 %v7913_v0  ;;  %v7499_v42 = vcombine.low %v2544_v56, %v2552_v30  ;;  %v7501_v0 = vcombine.low %v2545_v31, %v2553_v32  ;;  %v2649_v56 = vld [vmem:[#allocation14 + $0x3d8] sm:$0xff]  ;;  %v7581_v31 = vcombine.low %v2625_v51, %v2633_v55 }
 0x5f9   :  { %5663 = vmatprep.subr.bf16.mxu1 %v7928_v44  ;;  %5745 = vmatprep.subr.bf16.mxu0 %v7930_v10  ;;  %v7516_v44 = vcombine.high %v2560_v38, %v2568_v39  ;;  %v7518_v10 = vcombine.high %v2561_v33, %v2569_v40 }
 0x5fc   :  { %5664 = vmatpush1.bf16.msra.mxu1 %v7927_v2  ;;  %5746 = vmatpush1.bf16.msra.mxu0 %v7929_v3  ;;  %v7515_v2 = vcombine.low %v2560_v38, %v2568_v39  ;;  %v7517_v3 = vcombine.low %v2561_v33, %v2569_v40  ;;  %v2665_v38 = vld [vmem:[#allocation14 + $0x458] sm:$0xff]  ;;  %v7597_v33 = vcombine.low %v2641_v43, %v2649_v56 }
 0x5fd   :  { %5665 = vmatprep.subr.bf16.mxu1 %v7944_v50  ;;  %5747 = vmatprep.subr.bf16.mxu0 %v7946_v4  ;;  %v7532_v50 = vcombine.high %v2576_v45, %v2584_v53  ;;  %v7534_v4 = vcombine.high %v2577_v59, %v2585_v47 }
 0x600   :  { %5666 = vmatpush1.bf16.msra.mxu1 %v7943_v8  ;;  %5748 = vmatpush1.bf16.msra.mxu0 %v7945_v13  ;;  %v7531_v8 = vcombine.low %v2576_v45, %v2584_v53  ;;  %v7533_v13 = vcombine.low %v2577_v59, %v2585_v47  ;;  %v2681_v45 = vld [vmem:[#allocation14 + $0x4d8] sm:$0xff] }
 0x601   :  { %5667 = vmatprep.subr.bf16.mxu1 %v7960_v14  ;;  %5749 = vmatprep.subr.bf16.mxu0 %v7962_v11  ;;  %v7548_v14 = vcombine.high %v2592_v5, %v2600_v6  ;;  %v7550_v11 = vcombine.high %v2593_v52, %v2601_v9  ;;  %v2697_v5 = vld [vmem:[#allocation14 + $0x558] sm:$0xff] }
 0x604   :  { %5668 = vmatpush1.bf16.msra.mxu1 %v7959_v21  ;;  %5750 = vmatpush1.bf16.msra.mxu0 %v7961_v22  ;;  %v7549_v21 = vcombine.low %v2593_v52, %v2601_v9  ;;  %v7564_v22 = vcombine.high %v2608_v16, %v2616_v18  ;;  %v2713_v16 = vld [vmem:[#allocation14 + $0x5d8] sm:$0xff] }
 0x605   :  { %5669 = vmatprep.subr.bf16.mxu1 %v7976_v20  ;;  %5751 = vmatprep.subr.bf16.mxu0 %v7978_v48  ;;  %v7566_v20 = vcombine.high %v2609_v17, %v2617_v25  ;;  %v2624_v48 = vld [vmem:[#allocation14 + $0x310] sm:$0xff] }
 0x606   :  { %v7579_v30 = vcombine.low %v2624_v48, %v2632_v1 }
 0x608   :  { %5670 = vmatpush1.bf16.msra.mxu1 %v7975_v28  ;;  %5752 = vmatpush1.bf16.msra.mxu0 %v7977_v41  ;;  %v7580_v28 = vcombine.high %v2624_v48, %v2632_v1  ;;  %v7582_v41 = vcombine.high %v2625_v51, %v2633_v55  ;;  %v2729_v48 = vld [vmem:[#allocation14 + $0x658] sm:$0xff] }
 0x609   :  { %5762 = vmatprep.subr.bf16.mxu1 %v7484_v26  ;;  %5844 = vmatprep.subr.bf16.mxu0 %v7486_v54  ;;  %v2640_v26 = vld [vmem:[#allocation14 + $0x390] sm:$0xff] }
 0x60a   :  { %v2648_v54 = vld [vmem:[#allocation14 + $0x3d0] sm:$0xff] }
 0x60b   :  { %5672 = vmatmul.mubr.bf16.vlgmr.msra.gmra.mrb[32].mxu1 %v9646_v34  ;;  %5754 = vmatmul.mubr.bf16.vlgmr.msra.gmra.mrb[32].mxu0 %v9646_v34  ;;  %v7596_v32 = vcombine.high %v2640_v26, %v2648_v54  ;;  %v7595_v39 = vcombine.low %v2640_v26, %v2648_v54  ;;  %v2745_v26 = vld [vmem:[#allocation14 + $0x6d8] sm:$0xff] }
 0x60c   :  { %5763 = vmatpush1.bf16.msra.mxu1 %v7483_v63  ;;  %5794 = vmatprep.mubr.bf16.mxu1 %v9625_v49  ;;  %v7598_v63 = vcombine.high %v2641_v43, %v2649_v56 }
 0x60d   :  { %5845 = vmatpush1.bf16.msra.mxu0 %v7485_v7  ;;  %5876 = vmatprep.mubr.bf16.mxu0 %v9625_v49  ;;  %v2656_v7 = vld [vmem:[#allocation14 + $0x410] sm:$0xff] }
 0x60e   :  { %5764 = vmatprep.subr.bf16.mxu1 %v7500_v36  ;;  %5846 = vmatprep.subr.bf16.mxu0 %v7502_v37  ;;  %v2664_v36 = vld [vmem:[#allocation14 + $0x450] sm:$0xff]  ;;  %v2657_v37 = vld [vmem:[#allocation14 + $0x418] sm:$0xff] }
 0x60f   :  { %v7612_v40 = vcombine.high %v2656_v7, %v2664_v36  ;;  %v7611_v53 = vcombine.low %v2656_v7, %v2664_v36  ;;  %v7613_v59 = vcombine.low %v2657_v37, %v2665_v38  ;;  %v2761_v7 = vld [vmem:[#allocation14 + $0x758] sm:$0xff] }
 0x610   :  { %5765 = vmatpush1.bf16.msra.mxu1 %v7499_v42  ;;  %v7614_v42 = vcombine.high %v2657_v37, %v2665_v38 }
 0x611   :  { %5847 = vmatpush1.bf16.msra.mxu0 %v7501_v0  ;;  %5766 = vmatprep.subr.bf16.mxu1 %v7516_v44  ;;  %v2672_v0 = vld [vmem:[#allocation14 + $0x490] sm:$0xff] }
 0x612   :  { %5848 = vmatprep.subr.bf16.mxu0 %v7518_v10  ;;  %v2680_v44 = vld [vmem:[#allocation14 + $0x4d0] sm:$0xff]  ;;  %v2673_v10 = vld [vmem:[#allocation14 + $0x498] sm:$0xff] }
 0x613   :  { %v7628_v47 = vcombine.high %v2672_v0, %v2680_v44  ;;  %v7627_v6 = vcombine.low %v2672_v0, %v2680_v44  ;;  %v7629_v52 = vcombine.low %v2673_v10, %v2681_v45  ;;  %v2777_v0 = vld [vmem:[#allocation14 + $0x7d8] sm:$0xff] }
 0x614   :  { %5767 = vmatpush1.bf16.msra.mxu1 %v7515_v2  ;;  %v7630_v2 = vcombine.high %v2673_v10, %v2681_v45 }
 0x615   :  { %5849 = vmatpush1.bf16.msra.mxu0 %v7517_v3  ;;  %5768 = vmatprep.subr.bf16.mxu1 %v7532_v50  ;;  %v2688_v3 = vld [vmem:[#allocation14 + $0x510] sm:$0xff] }
 0x616   :  { %5850 = vmatprep.subr.bf16.mxu0 %v7534_v4  ;;  %v2696_v50 = vld [vmem:[#allocation14 + $0x550] sm:$0xff]  ;;  %v2689_v4 = vld [vmem:[#allocation14 + $0x518] sm:$0xff] }
 0x617   :  { %v7644_v9 = vcombine.high %v2688_v3, %v2696_v50  ;;  %v7643_v18 = vcombine.low %v2688_v3, %v2696_v50  ;;  %v7645_v17 = vcombine.low %v2689_v4, %v2697_v5  ;;  %v2793_v3 = vld [vmem:[#allocation14 + $0x858] sm:$0xff] }
 0x618   :  { %5769 = vmatpush1.bf16.msra.mxu1 %v7531_v8  ;;  %v7646_v8 = vcombine.high %v2689_v4, %v2697_v5 }
 0x619   :  { %5851 = vmatpush1.bf16.msra.mxu0 %v7533_v13  ;;  %5770 = vmatprep.subr.bf16.mxu1 %v7548_v14  ;;  %v2704_v13 = vld [vmem:[#allocation14 + $0x590] sm:$0xff] }
 0x61a   :  { %5852 = vmatprep.subr.bf16.mxu0 %v7550_v11  ;;  %v2712_v14 = vld [vmem:[#allocation14 + $0x5d0] sm:$0xff]  ;;  %v2705_v11 = vld [vmem:[#allocation14 + $0x598] sm:$0xff] }
 0x61b   :  { %v7660_v25 = vcombine.high %v2704_v13, %v2712_v14  ;;  %v7659_v1 = vcombine.low %v2704_v13, %v2712_v14  ;;  %v7661_v51 = vcombine.low %v2705_v11, %v2713_v16  ;;  %v2801_v13 = vld [vmem:[#allocation14 + $0x898] sm:$0xff] }
 0x61c   :  { %5771 = vmatpush1.bf16.msra.mxu1 %v7547_v19  ;;  %v7662_v19 = vcombine.high %v2705_v11, %v2713_v16  ;;  %v2809_v14 = vld [vmem:[#allocation14 + $0x8d8] sm:$0xff] }
 0x61d   :  { %5853 = vmatpush1.bf16.msra.mxu0 %v7549_v21  ;;  %5772 = vmatprep.subr.bf16.mxu1 %v7564_v22  ;;  %v2720_v21 = vld [vmem:[#allocation14 + $0x610] sm:$0xff] }
 0x61e   :  { %5854 = vmatprep.subr.bf16.mxu0 %v7566_v20  ;;  %v2728_v22 = vld [vmem:[#allocation14 + $0x650] sm:$0xff]  ;;  %v2721_v20 = vld [vmem:[#allocation14 + $0x618] sm:$0xff] }
 0x61f   :  { %v7676_v55 = vcombine.high %v2720_v21, %v2728_v22  ;;  %v7675_v54 = vcombine.low %v2720_v21, %v2728_v22  ;;  %v7677_v43 = vcombine.low %v2721_v20, %v2729_v48  ;;  %v2825_v21 = vld [vmem:[#allocation14 + $0x958] sm:$0xff] }
 0x620   :  { %5773 = vmatpush1.bf16.msra.mxu1 %v7563_v57  ;;  %v7678_v57 = vcombine.high %v2721_v20, %v2729_v48  ;;  %v7757_v20 = vcombine.low %v2801_v13, %v2809_v14 }
 0x621   :  { %5855 = vmatpush1.bf16.msra.mxu0 %v7565_v58  ;;  %5774 = vmatprep.subr.bf16.mxu1 %v7580_v28  ;;  %v2736_v58 = vld [vmem:[#allocation14 + $0x690] sm:$0xff] }
 0x622   :  { %5856 = vmatprep.subr.bf16.mxu0 %v7582_v41  ;;  %v2744_v28 = vld [vmem:[#allocation14 + $0x6d0] sm:$0xff]  ;;  %v2737_v41 = vld [vmem:[#allocation14 + $0x698] sm:$0xff] }
 0x623   :  { %v7692_v56 = vcombine.high %v2736_v58, %v2744_v28  ;;  %v7691_v36 = vcombine.low %v2736_v58, %v2744_v28  ;;  %v7693_v37 = vcombine.low %v2737_v41, %v2745_v26  ;;  %v2841_v58 = vld [vmem:[#allocation14 + $0x9d8] sm:$0xff] }
 0x624   :  { %5775 = vmatpush1.bf16.msra.mxu1 %v7579_v30  ;;  %v7694_v30 = vcombine.high %v2737_v41, %v2745_v26 }
 0x625   :  { %5857 = vmatpush1.bf16.msra.mxu0 %v7581_v31  ;;  %5776 = vmatprep.subr.bf16.mxu1 %v7596_v32  ;;  %v2752_v31 = vld [vmem:[#allocation14 + $0x710] sm:$0xff] }
 0x626   :  { %5858 = vmatprep.subr.bf16.mxu0 %v7598_v63  ;;  %v2760_v32 = vld [vmem:[#allocation14 + $0x750] sm:$0xff]  ;;  %v2753_v63 = vld [vmem:[#allocation14 + $0x718] sm:$0xff] }
 0x627   :  { %v7708_v38 = vcombine.high %v2752_v31, %v2760_v32  ;;  %v7707_v44 = vcombine.low %v2752_v31, %v2760_v32  ;;  %v7709_v10 = vcombine.low %v2753_v63, %v2761_v7  ;;  %v2857_v31 = vld [vmem:[#allocation14 + $0xa58] sm:$0xff] }
 0x628   :  { %5777 = vmatpush1.bf16.msra.mxu1 %v7595_v39  ;;  %v7710_v39 = vcombine.high %v2753_v63, %v2761_v7 }
 0x629   :  { %5859 = vmatpush1.bf16.msra.mxu0 %v7597_v33  ;;  %5778 = vmatprep.subr.bf16.mxu1 %v7612_v40  ;;  %v2768_v33 = vld [vmem:[#allocation14 + $0x790] sm:$0xff] }
 0x62a   :  { %5860 = vmatprep.subr.bf16.mxu0 %v7614_v42  ;;  %v2776_v40 = vld [vmem:[#allocation14 + $0x7d0] sm:$0xff]  ;;  %v2769_v42 = vld [vmem:[#allocation14 + $0x798] sm:$0xff] }
 0x62b   :  { %v7724_v45 = vcombine.high %v2768_v33, %v2776_v40  ;;  %v7723_v50 = vcombine.low %v2768_v33, %v2776_v40  ;;  %v7725_v4 = vcombine.low %v2769_v42, %v2777_v0  ;;  %v2873_v33 = vld [vmem:[#allocation14 + $0xad8] sm:$0xff] }
 0x62c   :  { %5779 = vmatpush1.bf16.msra.mxu1 %v7611_v53  ;;  %v7726_v53 = vcombine.high %v2769_v42, %v2777_v0 }
 0x62d   :  { %5861 = vmatpush1.bf16.msra.mxu0 %v7613_v59  ;;  %5780 = vmatprep.subr.bf16.mxu1 %v7628_v47  ;;  %v2784_v59 = vld [vmem:[#allocation14 + $0x810] sm:$0xff] }
 0x62e   :  { %5862 = vmatprep.subr.bf16.mxu0 %v7630_v2  ;;  %v2792_v47 = vld [vmem:[#allocation14 + $0x850] sm:$0xff]  ;;  %v2785_v2 = vld [vmem:[#allocation14 + $0x818] sm:$0xff] }
 0x62f   :  { %v7740_v5 = vcombine.high %v2784_v59, %v2792_v47  ;;  %v7741_v11 = vcombine.low %v2785_v2, %v2793_v3 }
 0x630   :  { %5781 = vmatpush1.bf16.msra.mxu1 %v7627_v6  ;;  %v7742_v6 = vcombine.high %v2785_v2, %v2793_v3 }
 0x631   :  { %5863 = vmatpush1.bf16.msra.mxu0 %v7629_v52  ;;  %5782 = vmatprep.subr.bf16.mxu1 %v7644_v9  ;;  %v2800_v52 = vld [vmem:[#allocation14 + $0x890] sm:$0xff] }
 0x632   :  { %5864 = vmatprep.subr.bf16.mxu0 %v7646_v8  ;;  %v2808_v9 = vld [vmem:[#allocation14 + $0x8d0] sm:$0xff]  ;;  %v7739_v8 = vcombine.low %v2784_v59, %v2792_v47  ;;  %v2889_v59 = vld [vmem:[#allocation14 + $0xb58] sm:$0xff] }
 0x633   :  { %v7756_v16 = vcombine.high %v2800_v52, %v2808_v9  ;;  %v7755_v22 = vcombine.low %v2800_v52, %v2808_v9  ;;  %v2905_v52 = vld [vmem:[#allocation14 + $0xbd8] sm:$0xff] }
 0x634   :  { %5783 = vmatpush1.bf16.msra.mxu1 %v7643_v18  ;;  %v2816_v18 = vld [vmem:[#allocation14 + $0x910] sm:$0xff] }
 0x635   :  { %5865 = vmatpush1.bf16.msra.mxu0 %v7645_v17  ;;  %5784 = vmatprep.subr.bf16.mxu1 %v7660_v25  ;;  %v2824_v17 = vld [vmem:[#allocation14 + $0x950] sm:$0xff]  ;;  %v7758_v25 = vcombine.high %v2801_v13, %v2809_v14 }
 0x636   :  { %5866 = vmatprep.subr.bf16.mxu0 %v7662_v19  ;;  %v2817_v19 = vld [vmem:[#allocation14 + $0x918] sm:$0xff]  ;;  %v7772_v48 = vcombine.high %v2816_v18, %v2824_v17  ;;  %v7771_v28 = vcombine.low %v2816_v18, %v2824_v17 }
 0x637   :  { %v7773_v41 = vcombine.low %v2817_v19, %v2825_v21  ;;  %v2913_v18 = vld [vmem:[#allocation14 + $0xc18] sm:$0xff] }
 0x638   :  { %5785 = vmatpush1.bf16.msra.mxu1 %v7659_v1  ;;  %v7774_v1 = vcombine.high %v2817_v19, %v2825_v21  ;;  %v2921_v17 = vld [vmem:[#allocation14 + $0xc58] sm:$0xff] }
 0x639   :  { %5867 = vmatpush1.bf16.msra.mxu0 %v7661_v51  ;;  %5786 = vmatprep.subr.bf16.mxu1 %v7676_v55  ;;  %v2832_v51 = vld [vmem:[#allocation14 + $0x990] sm:$0xff] }
 0x63a   :  { %5868 = vmatprep.subr.bf16.mxu0 %v7678_v57  ;;  %v2840_v55 = vld [vmem:[#allocation14 + $0x9d0] sm:$0xff]  ;;  %v2833_v57 = vld [vmem:[#allocation14 + $0x998] sm:$0xff] }
 0x63b   :  { %v7788_v26 = vcombine.high %v2832_v51, %v2840_v55  ;;  %v7787_v32 = vcombine.low %v2832_v51, %v2840_v55  ;;  %v7789_v63 = vcombine.low %v2833_v57, %v2841_v58  ;;  %v2937_v51 = vld [vmem:[#allocation14 + $0xcd8] sm:$0xff] }
 0x63c   :  { %5787 = vmatpush1.bf16.msra.mxu1 %v7675_v54  ;;  %v7790_v54 = vcombine.high %v2833_v57, %v2841_v58  ;;  %v7869_v57 = vcombine.low %v2913_v18, %v2921_v17 }
 0x63d   :  { %5869 = vmatpush1.bf16.msra.mxu0 %v7677_v43  ;;  %5788 = vmatprep.subr.bf16.mxu1 %v7692_v56  ;;  %v2848_v43 = vld [vmem:[#allocation14 + $0xa10] sm:$0xff] }
 0x63e   :  { %5870 = vmatprep.subr.bf16.mxu0 %v7694_v30  ;;  %v2856_v56 = vld [vmem:[#allocation14 + $0xa50] sm:$0xff]  ;;  %v2849_v30 = vld [vmem:[#allocation14 + $0xa18] sm:$0xff] }
 0x63f   :  { %v7804_v7 = vcombine.high %v2848_v43, %v2856_v56  ;;  %v7803_v40 = vcombine.low %v2848_v43, %v2856_v56  ;;  %v7805_v42 = vcombine.low %v2849_v30, %v2857_v31  ;;  %v2953_v43 = vld [vmem:[#allocation14 + $0xd58] sm:$0xff] }
 0x640   :  { %5789 = vmatpush1.bf16.msra.mxu1 %v7691_v36  ;;  %v7806_v36 = vcombine.high %v2849_v30, %v2857_v31 }
 0x641   :  { %5871 = vmatpush1.bf16.msra.mxu0 %v7693_v37  ;;  %5790 = vmatprep.subr.bf16.mxu1 %v7708_v38  ;;  %v2864_v37 = vld [vmem:[#allocation14 + $0xa90] sm:$0xff] }
 0x642   :  { %5872 = vmatprep.subr.bf16.mxu0 %v7710_v39  ;;  %v2872_v38 = vld [vmem:[#allocation14 + $0xad0] sm:$0xff]  ;;  %v2865_v39 = vld [vmem:[#allocation14 + $0xa98] sm:$0xff] }
 0x643   :  { %v7820_v0 = vcombine.high %v2864_v37, %v2872_v38  ;;  %v7819_v47 = vcombine.low %v2864_v37, %v2872_v38  ;;  %v7821_v2 = vcombine.low %v2865_v39, %v2873_v33  ;;  %v2969_v37 = vld [vmem:[#allocation14 + $0xdd8] sm:$0xff] }
 0x644   :  { %5791 = vmatpush1.bf16.msra.mxu1 %v7707_v44  ;;  %v7822_v44 = vcombine.high %v2865_v39, %v2873_v33 }
 0x645   :  { %5873 = vmatpush1.bf16.msra.mxu0 %v7709_v10  ;;  %5792 = vmatprep.subr.bf16.mxu1 %v7724_v45  ;;  %v2880_v10 = vld [vmem:[#allocation14 + $0xb10] sm:$0xff] }
 0x646   :  { %5874 = vmatprep.subr.bf16.mxu0 %v7726_v53  ;;  %v2888_v45 = vld [vmem:[#allocation14 + $0xb50] sm:$0xff]  ;;  %v2881_v53 = vld [vmem:[#allocation14 + $0xb18] sm:$0xff] }
 0x647   :  { %v7836_v3 = vcombine.high %v2880_v10, %v2888_v45  ;;  %v7835_v9 = vcombine.low %v2880_v10, %v2888_v45  ;;  %v2985_v10 = vld [vmem:[#allocation14 + $0xe58] sm:$0xff] }
 0x648   :  { %5793 = vmatpush1.bf16.msra.mxu1 %v7723_v50  ;;  %v7838_v50 = vcombine.high %v2881_v53, %v2889_v59 }
 0x649   :  { %5875 = vmatpush1.bf16.msra.mxu0 %v7725_v4  ;;  %5803 = vmatprep.subr.bf16.mxu1 %v7740_v5  ;;  %v2896_v4 = vld [vmem:[#allocation14 + $0xb90] sm:$0xff] }
 0x64a   :  { %5885 = vmatprep.subr.bf16.mxu0 %v7742_v6  ;;  %v2904_v5 = vld [vmem:[#allocation14 + $0xbd0] sm:$0xff]  ;;  %v2897_v6 = vld [vmem:[#allocation14 + $0xb98] sm:$0xff] }
 0x64b   :  { %5795 = vmatmul.mubr.bf16.vlgmr.msra.gmra.mrb[36].mxu1 %v9627_v46  ;;  %v7852_v13 = vcombine.high %v2896_v4, %v2904_v5  ;;  %v7854_v14 = vcombine.high %v2897_v6, %v2905_v52  ;;  %v7853_v19 = vcombine.low %v2897_v6, %v2905_v52 }
 0x64c   :  { %5877 = vmatmul.mubr.bf16.vlgmr.msra.gmra.mrb[36].mxu0 %v9627_v46  ;;  %5804 = vmatpush1.bf16.msra.mxu1 %v7739_v8  ;;  %v7837_v8 = vcombine.low %v2881_v53, %v2889_v59 }
 0x64d   :  { %5835 = vmatprep.mubr.bf16.mxu1 %v9631_v15  ;;  %5886 = vmatpush1.bf16.msra.mxu0 %v7741_v11  ;;  %v2912_v11 = vld [vmem:[#allocation14 + $0xc10] sm:$0xff] }
 0x64e   :  { %5917 = vmatprep.mubr.bf16.mxu0 %v9631_v15  ;;  %5805 = vmatprep.subr.bf16.mxu1 %v7756_v16  ;;  %v2920_v16 = vld [vmem:[#allocation14 + $0xc50] sm:$0xff] }
 0x64f   :  { %5887 = vmatprep.subr.bf16.mxu0 %v7758_v25  ;;  %v7851_v25 = vcombine.low %v2896_v4, %v2904_v5  ;;  %v7868_v21 = vcombine.high %v2912_v11, %v2920_v16  ;;  %v7867_v55 = vcombine.low %v2912_v11, %v2920_v16  ;;  %v3001_v4 = vld [vmem:[#allocation14 + $0xed8] sm:$0xff] }
 0x650   :  { %5806 = vmatpush1.bf16.msra.mxu1 %v7755_v22  ;;  %v7870_v22 = vcombine.high %v2913_v18, %v2921_v17  ;;  %v3017_v11 = vld [vmem:[#allocation14 + $0xf58] sm:$0xff] }
 0x651   :  { %5888 = vmatpush1.bf16.msra.mxu0 %v7757_v20  ;;  %5807 = vmatprep.subr.bf16.mxu1 %v7772_v48  ;;  %v2928_v20 = vld [vmem:[#allocation14 + $0xc90] sm:$0xff] }
 0x652   :  { %5889 = vmatprep.subr.bf16.mxu0 %v7774_v1  ;;  %v2936_v48 = vld [vmem:[#allocation14 + $0xcd0] sm:$0xff]  ;;  %v2929_v1 = vld [vmem:[#allocation14 + $0xc98] sm:$0xff] }
 0x653   :  { %v7884_v58 = vcombine.high %v2928_v20, %v2936_v48  ;;  %v7883_v56 = vcombine.low %v2928_v20, %v2936_v48  ;;  %v7885_v30 = vcombine.low %v2929_v1, %v2937_v51  ;;  %v3033_v20 = vld [vmem:[#allocation14 + $0xfd8] sm:$0xff] }
 0x654   :  { %5808 = vmatpush1.bf16.msra.mxu1 %v7771_v28  ;;  %v7886_v28 = vcombine.high %v2929_v1, %v2937_v51 }
 0x655   :  { %5890 = vmatpush1.bf16.msra.mxu0 %v7773_v41  ;;  %5809 = vmatprep.subr.bf16.mxu1 %v7788_v26  ;;  %v2944_v41 = vld [vmem:[#allocation14 + $0xd10] sm:$0xff] }
 0x656   :  { %5891 = vmatprep.subr.bf16.mxu0 %v7790_v54  ;;  %v2952_v26 = vld [vmem:[#allocation14 + $0xd50] sm:$0xff]  ;;  %v2945_v54 = vld [vmem:[#allocation14 + $0xd18] sm:$0xff] }
 0x657   :  { %v7900_v31 = vcombine.high %v2944_v41, %v2952_v26  ;;  %v7899_v38 = vcombine.low %v2944_v41, %v2952_v26  ;;  %v7901_v39 = vcombine.low %v2945_v54, %v2953_v43  ;;  %v2539_v41 = vld [vmem:[#allocation14 + $0x68] sm:$0xff] }
 0x658   :  { %5810 = vmatpush1.bf16.msra.mxu1 %v7787_v32  ;;  %v7902_v32 = vcombine.high %v2945_v54, %v2953_v43 }
 0x659   :  { %5892 = vmatpush1.bf16.msra.mxu0 %v7789_v63  ;;  %5811 = vmatprep.subr.bf16.mxu1 %v7804_v7  ;;  %v2960_v63 = vld [vmem:[#allocation14 + $0xd90] sm:$0xff] }
 0x65a   :  { %5893 = vmatprep.subr.bf16.mxu0 %v7806_v36  ;;  %v2968_v7 = vld [vmem:[#allocation14 + $0xdd0] sm:$0xff]  ;;  %v2961_v36 = vld [vmem:[#allocation14 + $0xd98] sm:$0xff] }
 0x65b   :  { %v7916_v33 = vcombine.high %v2960_v63, %v2968_v7  ;;  %v7915_v45 = vcombine.low %v2960_v63, %v2968_v7  ;;  %v7917_v53 = vcombine.low %v2961_v36, %v2969_v37  ;;  %v2547_v63 = vld [vmem:[#allocation14 + $0xa8] sm:$0xff] }
 0x65c   :  { %5812 = vmatpush1.bf16.msra.mxu1 %v7803_v40  ;;  %v7918_v40 = vcombine.high %v2961_v36, %v2969_v37  ;;  %v2555_v7 = vld [vmem:[#allocation14 + $0xe8] sm:$0xff] }
 0x65d   :  { %5894 = vmatpush1.bf16.msra.mxu0 %v7805_v42  ;;  %5813 = vmatprep.subr.bf16.mxu1 %v7820_v0  ;;  %v2976_v42 = vld [vmem:[#allocation14 + $0xe10] sm:$0xff] }
 0x65e   :  { %5895 = vmatprep.subr.bf16.mxu0 %v7822_v44  ;;  %v2984_v0 = vld [vmem:[#allocation14 + $0xe50] sm:$0xff]  ;;  %v2977_v44 = vld [vmem:[#allocation14 + $0xe18] sm:$0xff] }
 0x65f   :  { %v7932_v59 = vcombine.high %v2976_v42, %v2984_v0  ;;  %v7931_v5 = vcombine.low %v2976_v42, %v2984_v0  ;;  %v7933_v6 = vcombine.low %v2977_v44, %v2985_v10  ;;  %v2571_v42 = vld [vmem:[#allocation14 + $0x168] sm:$0xff] }
 0x660   :  { %5814 = vmatpush1.bf16.msra.mxu1 %v7819_v47  ;;  %v7934_v47 = vcombine.high %v2977_v44, %v2985_v10  ;;  %v7505_v44 = vcombine.low %v2547_v63, %v2555_v7 }
 0x661   :  { %5896 = vmatpush1.bf16.msra.mxu0 %v7821_v2  ;;  %5815 = vmatprep.subr.bf16.mxu1 %v7836_v3  ;;  %v2992_v2 = vld [vmem:[#allocation14 + $0xe90] sm:$0xff] }
 0x662   :  { %5897 = vmatprep.subr.bf16.mxu0 %v7838_v50  ;;  %v3000_v3 = vld [vmem:[#allocation14 + $0xed0] sm:$0xff]  ;;  %v2993_v50 = vld [vmem:[#allocation14 + $0xe98] sm:$0xff] }
 0x663   :  { %v7948_v52 = vcombine.high %v2992_v2, %v3000_v3  ;;  %v7947_v16 = vcombine.low %v2992_v2, %v3000_v3  ;;  %v7949_v18 = vcombine.low %v2993_v50, %v3001_v4  ;;  %v2587_v2 = vld [vmem:[#allocation14 + $0x1e8] sm:$0xff] }
 0x664   :  { %5816 = vmatpush1.bf16.msra.mxu1 %v7835_v9  ;;  %v7950_v9 = vcombine.high %v2993_v50, %v3001_v4 }
 0x665   :  { %5898 = vmatpush1.bf16.msra.mxu0 %v7837_v8  ;;  %5817 = vmatprep.subr.bf16.mxu1 %v7852_v13  ;;  %v3008_v8 = vld [vmem:[#allocation14 + $0xf10] sm:$0xff] }
 0x666   :  { %5899 = vmatprep.subr.bf16.mxu0 %v7854_v14  ;;  %v3016_v13 = vld [vmem:[#allocation14 + $0xf50] sm:$0xff]  ;;  %v3009_v14 = vld [vmem:[#allocation14 + $0xf18] sm:$0xff] }
 0x667   :  { %v7964_v17 = vcombine.high %v3008_v8, %v3016_v13  ;;  %v7963_v48 = vcombine.low %v3008_v8, %v3016_v13  ;;  %v7965_v1 = vcombine.low %v3009_v14, %v3017_v11  ;;  %v2603_v8 = vld [vmem:[#allocation14 + $0x268] sm:$0xff] }
 0x668   :  { %5818 = vmatpush1.bf16.msra.mxu1 %v7851_v25  ;;  %v7966_v25 = vcombine.high %v3009_v14, %v3017_v11 }
 0x669   :  { %5900 = vmatpush1.bf16.msra.mxu0 %v7853_v19  ;;  %5819 = vmatprep.subr.bf16.mxu1 %v7868_v21  ;;  %v3024_v19 = vld [vmem:[#allocation14 + $0xf90] sm:$0xff] }
 0x66a   :  { %5901 = vmatprep.subr.bf16.mxu0 %v7870_v22  ;;  %v3032_v21 = vld [vmem:[#allocation14 + $0xfd0] sm:$0xff]  ;;  %v3025_v22 = vld [vmem:[#allocation14 + $0xf98] sm:$0xff] }
 0x66b   :  { %v7980_v51 = vcombine.high %v3024_v19, %v3032_v21  ;;  %v7979_v26 = vcombine.low %v3024_v19, %v3032_v21  ;;  %v7981_v54 = vcombine.low %v3025_v22, %v3033_v20  ;;  %v2619_v19 = vld [vmem:[#allocation14 + $0x2e8] sm:$0xff] }
 0x66c   :  { %5820 = vmatpush1.bf16.msra.mxu1 %v7867_v55  ;;  %v7982_v55 = vcombine.high %v3025_v22, %v3033_v20 }
 0x66d   :  { %5902 = vmatpush1.bf16.msra.mxu0 %v7869_v57  ;;  %5821 = vmatprep.subr.bf16.mxu1 %v7884_v58  ;;  %v2530_v57 = vld [vmem:[#allocation14 + $0x20] sm:$0xff] }
 0x66e   :  { %5903 = vmatprep.subr.bf16.mxu0 %v7886_v28  ;;  %v2538_v58 = vld [vmem:[#allocation14 + $0x60] sm:$0xff]  ;;  %v2531_v28 = vld [vmem:[#allocation14 + $0x28] sm:$0xff] }
 0x66f   :  { %v7488_v43 = vcombine.high %v2530_v57, %v2538_v58  ;;  %v7489_v36 = vcombine.low %v2531_v28, %v2539_v41 }
 0x670   :  { %5822 = vmatpush1.bf16.msra.mxu1 %v7883_v56  ;;  %v7490_v56 = vcombine.high %v2531_v28, %v2539_v41 }
 0x671   :  { %5904 = vmatpush1.bf16.msra.mxu0 %v7885_v30  ;;  %5823 = vmatprep.subr.bf16.mxu1 %v7900_v31  ;;  %v2546_v30 = vld [vmem:[#allocation14 + $0xa0] sm:$0xff] }
 0x672   :  { %5905 = vmatprep.subr.bf16.mxu0 %v7902_v32  ;;  %v2554_v31 = vld [vmem:[#allocation14 + $0xe0] sm:$0xff]  ;;  %v7487_v32 = vcombine.low %v2530_v57, %v2538_v58  ;;  %v2635_v57 = vld [vmem:[#allocation14 + $0x368] sm:$0xff] }
 0x673   :  { %v7504_v37 = vcombine.high %v2546_v30, %v2554_v31  ;;  %v7503_v0 = vcombine.low %v2546_v30, %v2554_v31  ;;  %v2651_v30 = vld [vmem:[#allocation14 + $0x3e8] sm:$0xff] }
 0x674   :  { %5824 = vmatpush1.bf16.msra.mxu1 %v7899_v38  ;;  %v2562_v38 = vld [vmem:[#allocation14 + $0x120] sm:$0xff] }
 0x675   :  { %5906 = vmatpush1.bf16.msra.mxu0 %v7901_v39  ;;  %5825 = vmatprep.subr.bf16.mxu1 %v7916_v33  ;;  %v2570_v39 = vld [vmem:[#allocation14 + $0x160] sm:$0xff]  ;;  %v7506_v33 = vcombine.high %v2547_v63, %v2555_v7 }
 0x676   :  { %5907 = vmatprep.subr.bf16.mxu0 %v7918_v40  ;;  %v2563_v40 = vld [vmem:[#allocation14 + $0x128] sm:$0xff]  ;;  %v7520_v10 = vcombine.high %v2562_v38, %v2570_v39  ;;  %v7519_v3 = vcombine.low %v2562_v38, %v2570_v39 }
 0x677   :  { %v7521_v50 = vcombine.low %v2563_v40, %v2571_v42  ;;  %v2659_v38 = vld [vmem:[#allocation14 + $0x428] sm:$0xff] }
 0x678   :  { %5826 = vmatpush1.bf16.msra.mxu1 %v7915_v45  ;;  %v7522_v45 = vcombine.high %v2563_v40, %v2571_v42  ;;  %v2667_v39 = vld [vmem:[#allocation14 + $0x468] sm:$0xff] }
 0x679   :  { %5908 = vmatpush1.bf16.msra.mxu0 %v7917_v53  ;;  %5827 = vmatprep.subr.bf16.mxu1 %v7932_v59  ;;  %v2578_v53 = vld [vmem:[#allocation14 + $0x1a0] sm:$0xff] }
 0x67a   :  { %5909 = vmatprep.subr.bf16.mxu0 %v7934_v47  ;;  %v2586_v59 = vld [vmem:[#allocation14 + $0x1e0] sm:$0xff]  ;;  %v2579_v47 = vld [vmem:[#allocation14 + $0x1a8] sm:$0xff] }
 0x67b   :  { %v7536_v4 = vcombine.high %v2578_v53, %v2586_v59  ;;  %v7535_v13 = vcombine.low %v2578_v53, %v2586_v59  ;;  %v7537_v14 = vcombine.low %v2579_v47, %v2587_v2  ;;  %v2683_v53 = vld [vmem:[#allocation14 + $0x4e8] sm:$0xff] }
 0x67c   :  { %5828 = vmatpush1.bf16.msra.mxu1 %v7931_v5  ;;  %v7538_v5 = vcombine.high %v2579_v47, %v2587_v2  ;;  %v7617_v47 = vcombine.low %v2659_v38, %v2667_v39 }
 0x67d   :  { %5910 = vmatpush1.bf16.msra.mxu0 %v7933_v6  ;;  %5829 = vmatprep.subr.bf16.mxu1 %v7948_v52  ;;  %v2594_v6 = vld [vmem:[#allocation14 + $0x220] sm:$0xff] }
 0x67e   :  { %5911 = vmatprep.subr.bf16.mxu0 %v7950_v9  ;;  %v2602_v52 = vld [vmem:[#allocation14 + $0x260] sm:$0xff]  ;;  %v2595_v9 = vld [vmem:[#allocation14 + $0x228] sm:$0xff] }
 0x67f   :  { %v7552_v11 = vcombine.high %v2594_v6, %v2602_v52  ;;  %v7551_v21 = vcombine.low %v2594_v6, %v2602_v52  ;;  %v7553_v22 = vcombine.low %v2595_v9, %v2603_v8  ;;  %v2699_v6 = vld [vmem:[#allocation14 + $0x568] sm:$0xff] }
 0x680   :  { %5830 = vmatpush1.bf16.msra.mxu1 %v7947_v16  ;;  %v7554_v16 = vcombine.high %v2595_v9, %v2603_v8 }
 0x681   :  { %5912 = vmatpush1.bf16.msra.mxu0 %v7949_v18  ;;  %5831 = vmatprep.subr.bf16.mxu1 %v7964_v17  ;;  %v2610_v18 = vld [vmem:[#allocation14 + $0x2a0] sm:$0xff] }
 0x682   :  { %5913 = vmatprep.subr.bf16.mxu0 %v7966_v25  ;;  %v2618_v17 = vld [vmem:[#allocation14 + $0x2e0] sm:$0xff]  ;;  %v2611_v25 = vld [vmem:[#allocation14 + $0x2a8] sm:$0xff] }
 0x683   :  { %v7568_v20 = vcombine.high %v2610_v18, %v2618_v17  ;;  %v7567_v58 = vcombine.low %v2610_v18, %v2618_v17  ;;  %v7569_v28 = vcombine.low %v2611_v25, %v2619_v19  ;;  %v2715_v18 = vld [vmem:[#allocation14 + $0x5e8] sm:$0xff] }
 0x684   :  { %5832 = vmatpush1.bf16.msra.mxu1 %v7963_v48  ;;  %v7570_v48 = vcombine.high %v2611_v25, %v2619_v19 }
 0x685   :  { %5914 = vmatpush1.bf16.msra.mxu0 %v7965_v1  ;;  %5833 = vmatprep.subr.bf16.mxu1 %v7980_v51  ;;  %v2626_v1 = vld [vmem:[#allocation14 + $0x320] sm:$0xff] }
 0x686   :  { %5915 = vmatprep.subr.bf16.mxu0 %v7982_v55  ;;  %v2634_v51 = vld [vmem:[#allocation14 + $0x360] sm:$0xff]  ;;  %v2627_v55 = vld [vmem:[#allocation14 + $0x328] sm:$0xff] }
 0x687   :  { %v7584_v41 = vcombine.high %v2626_v1, %v2634_v51  ;;  %v7583_v31 = vcombine.low %v2626_v1, %v2634_v51  ;;  %v2731_v1 = vld [vmem:[#allocation14 + $0x668] sm:$0xff] }
 0x688   :  { %5834 = vmatpush1.bf16.msra.mxu1 %v7979_v26  ;;  %v7586_v26 = vcombine.high %v2627_v55, %v2635_v57 }
 0x689   :  { %5916 = vmatpush1.bf16.msra.mxu0 %v7981_v54  ;;  %5926 = vmatprep.subr.bf16.mxu1 %v7488_v43  ;;  %v2642_v54 = vld [vmem:[#allocation14 + $0x3a0] sm:$0xff] }
 0x68a   :  { %6008 = vmatprep.subr.bf16.mxu0 %v7490_v56  ;;  %v2650_v43 = vld [vmem:[#allocation14 + $0x3e0] sm:$0xff]  ;;  %v2643_v56 = vld [vmem:[#allocation14 + $0x3a8] sm:$0xff] }
 0x68b   :  { %5836 = vmatmul.mubr.bf16.vlgmr.msra.gmra.mrb[36].mxu1 %v9646_v34  ;;  %v7600_v63 = vcombine.high %v2642_v54, %v2650_v43  ;;  %v7602_v7 = vcombine.high %v2643_v56, %v2651_v30  ;;  %v7601_v40 = vcombine.low %v2643_v56, %v2651_v30 }
 0x68c   :  { %5918 = vmatmul.mubr.bf16.vlgmr.msra.gmra.mrb[36].mxu0 %v9646_v34  ;;  %5927 = vmatpush1.bf16.msra.mxu1 %v7487_v32  ;;  %v7585_v32 = vcombine.low %v2627_v55, %v2635_v57 }
 0x68d   :  { %5958 = vmatprep.mubr.bf16.mxu1 %v9625_v49  ;;  %6009 = vmatpush1.bf16.msra.mxu0 %v7489_v36  ;;  %v2658_v36 = vld [vmem:[#allocation14 + $0x420] sm:$0xff] }
 0x68e   :  { %6040 = vmatprep.mubr.bf16.mxu0 %v9625_v49  ;;  %5928 = vmatprep.subr.bf16.mxu1 %v7504_v37  ;;  %v2666_v37 = vld [vmem:[#allocation14 + $0x460] sm:$0xff] }
 0x68f   :  { %6010 = vmatprep.subr.bf16.mxu0 %v7506_v33  ;;  %v7599_v33 = vcombine.low %v2642_v54, %v2650_v43  ;;  %v7616_v42 = vcombine.high %v2658_v36, %v2666_v37  ;;  %v7615_v59 = vcombine.low %v2658_v36, %v2666_v37  ;;  %v2747_v54 = vld [vmem:[#allocation14 + $0x6e8] sm:$0xff] }
 0x690   :  { %5929 = vmatpush1.bf16.msra.mxu1 %v7503_v0  ;;  %v7618_v0 = vcombine.high %v2659_v38, %v2667_v39  ;;  %v2763_v36 = vld [vmem:[#allocation14 + $0x768] sm:$0xff] }
 0x691   :  { %6011 = vmatpush1.bf16.msra.mxu0 %v7505_v44  ;;  %5930 = vmatprep.subr.bf16.mxu1 %v7520_v10  ;;  %v2674_v44 = vld [vmem:[#allocation14 + $0x4a0] sm:$0xff] }
 0x692   :  { %6012 = vmatprep.subr.bf16.mxu0 %v7522_v45  ;;  %v2682_v10 = vld [vmem:[#allocation14 + $0x4e0] sm:$0xff]  ;;  %v2675_v45 = vld [vmem:[#allocation14 + $0x4a8] sm:$0xff] }
 0x693   :  { %v7632_v2 = vcombine.high %v2674_v44, %v2682_v10  ;;  %v7631_v52 = vcombine.low %v2674_v44, %v2682_v10  ;;  %v7633_v9 = vcombine.low %v2675_v45, %v2683_v53  ;;  %v2779_v44 = vld [vmem:[#allocation14 + $0x7e8] sm:$0xff] }
 0x694   :  { %5931 = vmatpush1.bf16.msra.mxu1 %v7519_v3  ;;  %v7634_v3 = vcombine.high %v2675_v45, %v2683_v53 }
 0x695   :  { %6013 = vmatpush1.bf16.msra.mxu0 %v7521_v50  ;;  %5932 = vmatprep.subr.bf16.mxu1 %v7536_v4  ;;  %v2690_v50 = vld [vmem:[#allocation14 + $0x520] sm:$0xff] }
 0x696   :  { %6014 = vmatprep.subr.bf16.mxu0 %v7538_v5  ;;  %v2698_v4 = vld [vmem:[#allocation14 + $0x560] sm:$0xff]  ;;  %v2691_v5 = vld [vmem:[#allocation14 + $0x528] sm:$0xff] }
 0x697   :  { %v7648_v8 = vcombine.high %v2690_v50, %v2698_v4  ;;  %v7647_v17 = vcombine.low %v2690_v50, %v2698_v4  ;;  %v7649_v25 = vcombine.low %v2691_v5, %v2699_v6  ;;  %v2795_v50 = vld [vmem:[#allocation14 + $0x868] sm:$0xff] }
 0x698   :  { %5933 = vmatpush1.bf16.msra.mxu1 %v7535_v13  ;;  %v7650_v13 = vcombine.high %v2691_v5, %v2699_v6 }
 0x699   :  { %6015 = vmatpush1.bf16.msra.mxu0 %v7537_v14  ;;  %5934 = vmatprep.subr.bf16.mxu1 %v7552_v11  ;;  %v2706_v14 = vld [vmem:[#allocation14 + $0x5a0] sm:$0xff] }
 0x69a   :  { %6016 = vmatprep.subr.bf16.mxu0 %v7554_v16  ;;  %v2714_v11 = vld [vmem:[#allocation14 + $0x5e0] sm:$0xff]  ;;  %v2707_v16 = vld [vmem:[#allocation14 + $0x5a8] sm:$0xff] }
 0x69b   :  { %v7664_v19 = vcombine.high %v2706_v14, %v2714_v11  ;;  %v7663_v51 = vcombine.low %v2706_v14, %v2714_v11  ;;  %v7665_v55 = vcombine.low %v2707_v16, %v2715_v18  ;;  %v2803_v14 = vld [vmem:[#allocation14 + $0x8a8] sm:$0xff] }
 0x69c   :  { %5935 = vmatpush1.bf16.msra.mxu1 %v7551_v21  ;;  %v7666_v21 = vcombine.high %v2707_v16, %v2715_v18  ;;  %v2811_v11 = vld [vmem:[#allocation14 + $0x8e8] sm:$0xff] }
 0x69d   :  { %6017 = vmatpush1.bf16.msra.mxu0 %v7553_v22  ;;  %5936 = vmatprep.subr.bf16.mxu1 %v7568_v20  ;;  %v2722_v22 = vld [vmem:[#allocation14 + $0x620] sm:$0xff] }
 0x69e   :  { %6018 = vmatprep.subr.bf16.mxu0 %v7570_v48  ;;  %v2730_v20 = vld [vmem:[#allocation14 + $0x660] sm:$0xff]  ;;  %v2723_v48 = vld [vmem:[#allocation14 + $0x628] sm:$0xff] }
 0x69f   :  { %v7680_v57 = vcombine.high %v2722_v22, %v2730_v20  ;;  %v7679_v43 = vcombine.low %v2722_v22, %v2730_v20  ;;  %v7681_v56 = vcombine.low %v2723_v48, %v2731_v1  ;;  %v2827_v22 = vld [vmem:[#allocation14 + $0x968] sm:$0xff] }
 0x6a0   :  { %5937 = vmatpush1.bf16.msra.mxu1 %v7567_v58  ;;  %v7682_v58 = vcombine.high %v2723_v48, %v2731_v1  ;;  %v7761_v48 = vcombine.low %v2803_v14, %v2811_v11 }
 0x6a1   :  { %6019 = vmatpush1.bf16.msra.mxu0 %v7569_v28  ;;  %5938 = vmatprep.subr.bf16.mxu1 %v7584_v41  ;;  %v2738_v28 = vld [vmem:[#allocation14 + $0x6a0] sm:$0xff] }
 0x6a2   :  { %6020 = vmatprep.subr.bf16.mxu0 %v7586_v26  ;;  %v2746_v41 = vld [vmem:[#allocation14 + $0x6e0] sm:$0xff]  ;;  %v2739_v26 = vld [vmem:[#allocation14 + $0x6a8] sm:$0xff] }
 0x6a3   :  { %v7696_v30 = vcombine.high %v2738_v28, %v2746_v41  ;;  %v7695_v37 = vcombine.low %v2738_v28, %v2746_v41  ;;  %v7697_v38 = vcombine.low %v2739_v26, %v2747_v54  ;;  %v2843_v28 = vld [vmem:[#allocation14 + $0x9e8] sm:$0xff] }
 0x6a4   :  { %5939 = vmatpush1.bf16.msra.mxu1 %v7583_v31  ;;  %v7698_v31 = vcombine.high %v2739_v26, %v2747_v54 }
 0x6a5   :  { %6021 = vmatpush1.bf16.msra.mxu0 %v7585_v32  ;;  %5940 = vmatprep.subr.bf16.mxu1 %v7600_v63  ;;  %v2754_v32 = vld [vmem:[#allocation14 + $0x720] sm:$0xff] }
 0x6a6   :  { %6022 = vmatprep.subr.bf16.mxu0 %v7602_v7  ;;  %v2762_v63 = vld [vmem:[#allocation14 + $0x760] sm:$0xff]  ;;  %v2755_v7 = vld [vmem:[#allocation14 + $0x728] sm:$0xff] }
 0x6a7   :  { %v7712_v39 = vcombine.high %v2754_v32, %v2762_v63  ;;  %v7711_v10 = vcombine.low %v2754_v32, %v2762_v63  ;;  %v7713_v45 = vcombine.low %v2755_v7, %v2763_v36  ;;  %v2859_v32 = vld [vmem:[#allocation14 + $0xa68] sm:$0xff] }
 0x6a8   :  { %5941 = vmatpush1.bf16.msra.mxu1 %v7599_v33  ;;  %v7714_v33 = vcombine.high %v2755_v7, %v2763_v36 }
 0x6a9   :  { %6023 = vmatpush1.bf16.msra.mxu0 %v7601_v40  ;;  %5942 = vmatprep.subr.bf16.mxu1 %v7616_v42  ;;  %v2770_v40 = vld [vmem:[#allocation14 + $0x7a0] sm:$0xff] }
 0x6aa   :  { %6024 = vmatprep.subr.bf16.mxu0 %v7618_v0  ;;  %v2778_v42 = vld [vmem:[#allocation14 + $0x7e0] sm:$0xff]  ;;  %v2771_v0 = vld [vmem:[#allocation14 + $0x7a8] sm:$0xff] }
 0x6ab   :  { %v7728_v53 = vcombine.high %v2770_v40, %v2778_v42  ;;  %v7727_v4 = vcombine.low %v2770_v40, %v2778_v42  ;;  %v7729_v5 = vcombine.low %v2771_v0, %v2779_v44  ;;  %v2875_v40 = vld [vmem:[#allocation14 + $0xae8] sm:$0xff] }
 0x6ac   :  { %5943 = vmatpush1.bf16.msra.mxu1 %v7615_v59  ;;  %v7730_v59 = vcombine.high %v2771_v0, %v2779_v44 }
 0x6ad   :  { %6025 = vmatpush1.bf16.msra.mxu0 %v7617_v47  ;;  %5944 = vmatprep.subr.bf16.mxu1 %v7632_v2  ;;  %v2786_v47 = vld [vmem:[#allocation14 + $0x820] sm:$0xff] }
 0x6ae   :  { %6026 = vmatprep.subr.bf16.mxu0 %v7634_v3  ;;  %v2794_v2 = vld [vmem:[#allocation14 + $0x860] sm:$0xff]  ;;  %v2787_v3 = vld [vmem:[#allocation14 + $0x828] sm:$0xff] }
 0x6af   :  { %v7744_v6 = vcombine.high %v2786_v47, %v2794_v2  ;;  %v7745_v16 = vcombine.low %v2787_v3, %v2795_v50 }
 0x6b0   :  { %5945 = vmatpush1.bf16.msra.mxu1 %v7631_v52  ;;  %v7746_v52 = vcombine.high %v2787_v3, %v2795_v50 }
 0x6b1   :  { %6027 = vmatpush1.bf16.msra.mxu0 %v7633_v9  ;;  %5946 = vmatprep.subr.bf16.mxu1 %v7648_v8  ;;  %v2802_v9 = vld [vmem:[#allocation14 + $0x8a0] sm:$0xff] }
 0x6b2   :  { %6028 = vmatprep.subr.bf16.mxu0 %v7650_v13  ;;  %v2810_v8 = vld [vmem:[#allocation14 + $0x8e0] sm:$0xff]  ;;  %v7743_v13 = vcombine.low %v2786_v47, %v2794_v2  ;;  %v2891_v47 = vld [vmem:[#allocation14 + $0xb68] sm:$0xff] }
 0x6b3   :  { %v7760_v18 = vcombine.high %v2802_v9, %v2810_v8  ;;  %v7759_v20 = vcombine.low %v2802_v9, %v2810_v8  ;;  %v2906_v9 = vld [vmem:[#allocation14 + $0xbe0] sm:$0xff] }
 0x6b4   :  { %5947 = vmatpush1.bf16.msra.mxu1 %v7647_v17  ;;  %v2818_v17 = vld [vmem:[#allocation14 + $0x920] sm:$0xff] }
 0x6b5   :  { %6029 = vmatpush1.bf16.msra.mxu0 %v7649_v25  ;;  %5948 = vmatprep.subr.bf16.mxu1 %v7664_v19  ;;  %v2826_v25 = vld [vmem:[#allocation14 + $0x960] sm:$0xff]  ;;  %v7762_v19 = vcombine.high %v2803_v14, %v2811_v11 }
 0x6b6   :  { %6030 = vmatprep.subr.bf16.mxu0 %v7666_v21  ;;  %v2819_v21 = vld [vmem:[#allocation14 + $0x928] sm:$0xff]  ;;  %v7776_v1 = vcombine.high %v2818_v17, %v2826_v25  ;;  %v7775_v41 = vcombine.low %v2818_v17, %v2826_v25 }
 0x6b7   :  { %v7777_v26 = vcombine.low %v2819_v21, %v2827_v22 }
 0x6b8   :  { %5949 = vmatpush1.bf16.msra.mxu1 %v7663_v51  ;;  %v7778_v51 = vcombine.high %v2819_v21, %v2827_v22 }
 0x6b9   :  { %6031 = vmatpush1.bf16.msra.mxu0 %v7665_v55  ;;  %5950 = vmatprep.subr.bf16.mxu1 %v7680_v57  ;;  %v2834_v55 = vld [vmem:[#allocation14 + $0x9a0] sm:$0xff] }
 0x6ba   :  { %6032 = vmatprep.subr.bf16.mxu0 %v7682_v58  ;;  %v2842_v57 = vld [vmem:[#allocation14 + $0x9e0] sm:$0xff]  ;;  %v2835_v58 = vld [vmem:[#allocation14 + $0x9a8] sm:$0xff] }
 0x6bb   :  { %v7792_v54 = vcombine.high %v2834_v55, %v2842_v57  ;;  %v7791_v63 = vcombine.low %v2834_v55, %v2842_v57  ;;  %v7793_v7 = vcombine.low %v2835_v58, %v2843_v28 }
 0x6bc   :  { %5951 = vmatpush1.bf16.msra.mxu1 %v7679_v43  ;;  %v7794_v43 = vcombine.high %v2835_v58, %v2843_v28 }
 0x6bd   :  { %6033 = vmatpush1.bf16.msra.mxu0 %v7681_v56  ;;  %5952 = vmatprep.subr.bf16.mxu1 %v7696_v30  ;;  %v2850_v56 = vld [vmem:[#allocation14 + $0xa20] sm:$0xff] }
 0x6be   :  { %6034 = vmatprep.subr.bf16.mxu0 %v7698_v31  ;;  %v2858_v30 = vld [vmem:[#allocation14 + $0xa60] sm:$0xff]  ;;  %v2851_v31 = vld [vmem:[#allocation14 + $0xa28] sm:$0xff] }
 0x6bf   :  { %v7808_v36 = vcombine.high %v2850_v56, %v2858_v30  ;;  %v7807_v42 = vcombine.low %v2850_v56, %v2858_v30  ;;  %v7809_v0 = vcombine.low %v2851_v31, %v2859_v32 }
 0x6c0   :  { %5953 = vmatpush1.bf16.msra.mxu1 %v7695_v37  ;;  %v7810_v37 = vcombine.high %v2851_v31, %v2859_v32  ;;  %v2930_v32 = vld [vmem:[#allocation14 + $0xca0] sm:$0xff] }
 0x6c1   :  { %6035 = vmatpush1.bf16.msra.mxu0 %v7697_v38  ;;  %5954 = vmatprep.subr.bf16.mxu1 %v7712_v39  ;;  %v2866_v38 = vld [vmem:[#allocation14 + $0xaa0] sm:$0xff] }
 0x6c2   :  { %6036 = vmatprep.subr.bf16.mxu0 %v7714_v33  ;;  %v2874_v39 = vld [vmem:[#allocation14 + $0xae0] sm:$0xff]  ;;  %v2867_v33 = vld [vmem:[#allocation14 + $0xaa8] sm:$0xff] }
 0x6c3   :  { %v7824_v44 = vcombine.high %v2866_v38, %v2874_v39  ;;  %v7823_v2 = vcombine.low %v2866_v38, %v2874_v39  ;;  %v7825_v3 = vcombine.low %v2867_v33, %v2875_v40  ;;  %v2946_v39 = vld [vmem:[#allocation14 + $0xd20] sm:$0xff] }
 0x6c4   :  { %5955 = vmatpush1.bf16.msra.mxu1 %v7711_v10  ;;  %v7826_v10 = vcombine.high %v2867_v33, %v2875_v40  ;;  %v2954_v33 = vld [vmem:[#allocation14 + $0xd60] sm:$0xff]  ;;  %v2947_v40 = vld [vmem:[#allocation14 + $0xd28] sm:$0xff] }
 0x6c5   :  { %6037 = vmatpush1.bf16.msra.mxu0 %v7713_v45  ;;  %5956 = vmatprep.subr.bf16.mxu1 %v7728_v53  ;;  %v2882_v45 = vld [vmem:[#allocation14 + $0xb20] sm:$0xff] }
 0x6c6   :  { %6038 = vmatprep.subr.bf16.mxu0 %v7730_v59  ;;  %v2890_v53 = vld [vmem:[#allocation14 + $0xb60] sm:$0xff]  ;;  %v2883_v59 = vld [vmem:[#allocation14 + $0xb28] sm:$0xff] }
 0x6c7   :  { %v7840_v50 = vcombine.high %v2882_v45, %v2890_v53  ;;  %v7839_v22 = vcombine.low %v2882_v45, %v2890_v53  ;;  %v2962_v53 = vld [vmem:[#allocation14 + $0xda0] sm:$0xff] }
 0x6c8   :  { %5957 = vmatpush1.bf16.msra.mxu1 %v7727_v4 }
 0x6c9   :  { %6039 = vmatpush1.bf16.msra.mxu0 %v7729_v5  ;;  %5967 = vmatprep.subr.bf16.mxu1 %v7744_v6  ;;  %v7842_v6 = vcombine.high %v2883_v59, %v2891_v47 }
 0x6ca   :  { %6049 = vmatprep.subr.bf16.mxu0 %v7746_v52  ;;  %v2898_v52 = vld [vmem:[#allocation14 + $0xba0] sm:$0xff] }
 0x6cb   :  { %5959 = vmatmul.mubr.bf16.vlgmr.msra.gmra.mrb[40].mxu1 %v9627_v46  ;;  %v7856_v57 = vcombine.high %v2898_v52, %v2906_v9 }
 0x6cc   :  { %6041 = vmatmul.mubr.bf16.vlgmr.msra.gmra.mrb[40].mxu0 %v9627_v46  ;;  %5968 = vmatpush1.bf16.msra.mxu1 %v7743_v13 }
 0x6cd   :  { %5999 = vmatprep.mubr.bf16.mxu1 %v9631_v15  ;;  %6050 = vmatpush1.bf16.msra.mxu0 %v7745_v16  ;;  %v2899_v16 = vld [vmem:[#allocation14 + $0xba8] sm:$0xff] }
 0x6ce   :  { %6081 = vmatprep.mubr.bf16.mxu0 %v9631_v15  ;;  %5969 = vmatprep.subr.bf16.mxu1 %v7760_v18  ;;  %v2907_v18 = vld [vmem:[#allocation14 + $0xbe8] sm:$0xff] }
 0x6cf   :  { %6051 = vmatprep.subr.bf16.mxu0 %v7762_v19  ;;  %v7857_v56 = vcombine.low %v2899_v16, %v2907_v18 }
 0x6d0   :  { %5970 = vmatpush1.bf16.msra.mxu1 %v7759_v20  ;;  %v7841_v20 = vcombine.low %v2883_v59, %v2891_v47  ;;  %v2970_v59 = vld [vmem:[#allocation14 + $0xde0] sm:$0xff]  ;;  %v2963_v47 = vld [vmem:[#allocation14 + $0xda8] sm:$0xff] }
 0x6d1   :  { %6052 = vmatpush1.bf16.msra.mxu0 %v7761_v48  ;;  %5971 = vmatprep.subr.bf16.mxu1 %v7776_v1 }
 0x6d2   :  { %6053 = vmatprep.subr.bf16.mxu0 %v7778_v51 }
 0x6d4   :  { %5972 = vmatpush1.bf16.msra.mxu1 %v7775_v41  ;;  %v7858_v41 = vcombine.high %v2899_v16, %v2907_v18  ;;  %v2994_v18 = vld [vmem:[#allocation14 + $0xea0] sm:$0xff] }
 0x6d5   :  { %6054 = vmatpush1.bf16.msra.mxu0 %v7777_v26  ;;  %5973 = vmatprep.subr.bf16.mxu1 %v7792_v54  ;;  %v2914_v26 = vld [vmem:[#allocation14 + $0xc20] sm:$0xff] }
 0x6d6   :  { %6055 = vmatprep.subr.bf16.mxu0 %v7794_v43  ;;  %v2922_v54 = vld [vmem:[#allocation14 + $0xc60] sm:$0xff]  ;;  %v2923_v43 = vld [vmem:[#allocation14 + $0xc68] sm:$0xff] }
 0x6d7   :  { %v7872_v30 = vcombine.high %v2914_v26, %v2922_v54 }
 0x6d8   :  { %5974 = vmatpush1.bf16.msra.mxu1 %v7791_v63  ;;  %v2931_v63 = vld [vmem:[#allocation14 + $0xca8] sm:$0xff] }
 0x6d9   :  { %6056 = vmatpush1.bf16.msra.mxu0 %v7793_v7  ;;  %5975 = vmatprep.subr.bf16.mxu1 %v7808_v36  ;;  %v2939_v7 = vld [vmem:[#allocation14 + $0xce8] sm:$0xff] }
 0x6da   :  { %6057 = vmatprep.subr.bf16.mxu0 %v7810_v37  ;;  %v7890_v38 = vcombine.high %v2931_v63, %v2939_v7 }
 0x6dc   :  { %5976 = vmatpush1.bf16.msra.mxu1 %v7807_v42  ;;  %v2955_v42 = vld [vmem:[#allocation14 + $0xd68] sm:$0xff] }
 0x6dd   :  { %6058 = vmatpush1.bf16.msra.mxu0 %v7809_v0  ;;  %5977 = vmatprep.subr.bf16.mxu1 %v7824_v44  ;;  %v7889_v44 = vcombine.low %v2931_v63, %v2939_v7  ;;  %v7906_v45 = vcombine.high %v2947_v40, %v2955_v42 }
 0x6de   :  { %v5673_v4 = vpop.f32.mrb[32].mxu1  ;;  %v5755_v5 = vpop.f32.mrb[32].mxu0  ;;  %6059 = vmatprep.subr.bf16.mxu0 %v7826_v10  ;;  %v7904_v10 = vcombine.high %v2946_v39, %v2954_v33 }
 0x6df   :  { %v6254_v8 = vmul.f32 %v5673_v4, %v9573_v60  ;;  %v6256_v13 = vmul.f32 %v5755_v5, %v9573_v60  ;;  %v5675_v14 = vpop.f32.mrb[33].mxu1  ;;  %v5757_v11 = vpop.f32.mrb[33].mxu0  ;;  %v7920_v4 = vcombine.high %v2962_v53, %v2970_v59 }
 0x6e0   :  { %v6255_v17 = vmul.f32 %v5675_v14, %v9573_v60  ;;  %v6257_v25 = vmul.f32 %v5757_v11, %v9573_v60  ;;  %v5677_v19 = vpop.f32.mrb[34].mxu1  ;;  %v5759_v21 = vpop.f32.mrb[34].mxu0  ;;  %5978 = vmatpush1.bf16.msra.mxu1 %v7823_v2  ;;  %v2971_v2 = vld [vmem:[#allocation14 + $0xde8] sm:$0xff] }
 0x6e1   :  { %v9669_v48 = vadd.f32 %v6254_v8, %v9605_v23  ;;  %v9672_v1 = vadd.f32 %v6256_v13, %v9607_v24  ;;  %6060 = vmatpush1.bf16.msra.mxu0 %v7825_v3  ;;  %v5678_v51 = vpop.f32.mrb[35].mxu1  ;;  %v5760_v55 = vpop.f32.mrb[35].mxu0  ;;  %5979 = vmatprep.subr.bf16.mxu1 %v7840_v50  ;;  %v2915_v23 = vld [vmem:[#allocation14 + $0xc28] sm:$0xff]  ;;  %v7855_v24 = vcombine.low %v2898_v52, %v2906_v9  ;;  %v2986_v52 = vld [vmem:[#allocation14 + $0xe60] sm:$0xff] }
 0x6e2   :  { %v9675_v58 = vadd.f32 %v6255_v17, %v9613_v27  ;;  %v9678_v28 = vadd.f32 %v6257_v25, %v9615_v29  ;;  %6061 = vmatprep.subr.bf16.mxu0 %v7842_v6  ;;  %v7874_v31 = vcombine.high %v2915_v23, %v2923_v43  ;;  %v2938_v27 = vld [vmem:[#allocation14 + $0xce0] sm:$0xff]  ;;  %v7871_v29 = vcombine.low %v2914_v26, %v2922_v54  ;;  %v2979_v9 = vld [vmem:[#allocation14 + $0xe28] sm:$0xff] }
 0x6e3   :  { %v7873_v36 = vcombine.low %v2915_v23, %v2923_v43  ;;  %v7888_v37 = vcombine.high %v2930_v32, %v2938_v27  ;;  %v7887_v0 = vcombine.low %v2930_v32, %v2938_v27  ;;  %v7903_v3 = vcombine.low %v2946_v39, %v2954_v33  ;;  %v2978_v6 = vld [vmem:[#allocation14 + $0xe20] sm:$0xff]  ;;  %v2987_v8 = vld [vmem:[#allocation14 + $0xe68] sm:$0xff]  ;;  %v2541_v39 = vld [vmem:[#allocation14 + $0x78] sm:$0xff] }
 0x6e4   :  { %5980 = vmatpush1.bf16.msra.mxu1 %v7839_v22  ;;  %v7905_v50 = vcombine.low %v2947_v40, %v2955_v42  ;;  %v7922_v5 = vcombine.high %v2963_v47, %v2971_v2  ;;  %v7919_v13 = vcombine.low %v2962_v53, %v2970_v59  ;;  %v7921_v14 = vcombine.low %v2963_v47, %v2971_v2  ;;  %v3002_v17 = vld [vmem:[#allocation14 + $0xee0] sm:$0xff]  ;;  %v2995_v25 = vld [vmem:[#allocation14 + $0xea8] sm:$0xff]  ;;  %v2549_v53 = vld [vmem:[#allocation14 + $0xb8] sm:$0xff] }
 0x6e5   :  { %6062 = vmatpush1.bf16.msra.mxu0 %v7841_v20  ;;  %5981 = vmatprep.subr.bf16.mxu1 %v7856_v57  ;;  %v7936_v11 = vcombine.high %v2978_v6, %v2986_v52  ;;  %v7938_v16 = vcombine.high %v2979_v9, %v2987_v8  ;;  %v3003_v19 = vld [vmem:[#allocation14 + $0xee8] sm:$0xff]  ;;  %v7935_v21 = vcombine.low %v2978_v6, %v2986_v52  ;;  %v3010_v55 = vld [vmem:[#allocation14 + $0xf20] sm:$0xff]  ;;  %v2557_v59 = vld [vmem:[#allocation14 + $0xf8] sm:$0xff] }
 0x6e6   :  { %6063 = vmatprep.subr.bf16.mxu0 %v7858_v41  ;;  %v7937_v22 = vcombine.low %v2979_v9, %v2987_v8  ;;  %v7952_v20 = vcombine.high %v2994_v18, %v3002_v17  ;;  %v7954_v51 = vcombine.high %v2995_v25, %v3003_v19  ;;  %v3018_v57 = vld [vmem:[#allocation14 + $0xf60] sm:$0xff]  ;;  %v3011_v41 = vld [vmem:[#allocation14 + $0xf28] sm:$0xff]  ;;  %v7951_v54 = vcombine.low %v2994_v18, %v3002_v17  ;;  %v2573_v6 = vld [vmem:[#allocation14 + $0x178] sm:$0xff] }
 0x6e7   :  { %v3019_v26 = vld [vmem:[#allocation14 + $0xf68] sm:$0xff]  ;;  %v7953_v23 = vcombine.low %v2995_v25, %v3003_v19  ;;  %v7968_v43 = vcombine.high %v3010_v55, %v3018_v57  ;;  %v7967_v27 = vcombine.low %v3010_v55, %v3018_v57  ;;  %v7509_v9 = vcombine.low %v2549_v53, %v2557_v59  ;;  %v2589_v18 = vld [vmem:[#allocation14 + $0x1f8] sm:$0xff] }
 0x6e8   :  { %5982 = vmatpush1.bf16.msra.mxu1 %v7855_v24  ;;  %v7970_v24 = vcombine.high %v3011_v41, %v3019_v26  ;;  %v3035_v32 = vld [vmem:[#allocation14 + $0xfe8] sm:$0xff]  ;;  %v7969_v63 = vcombine.low %v3011_v41, %v3019_v26  ;;  %v2605_v55 = vld [vmem:[#allocation14 + $0x278] sm:$0xff] }
 0x6e9   :  { %6064 = vmatpush1.bf16.msra.mxu0 %v7857_v56  ;;  %5983 = vmatprep.subr.bf16.mxu1 %v7872_v30  ;;  %v3026_v56 = vld [vmem:[#allocation14 + $0xfa0] sm:$0xff] }
 0x6ea   :  { %6065 = vmatprep.subr.bf16.mxu0 %v7874_v31  ;;  %v3034_v30 = vld [vmem:[#allocation14 + $0xfe0] sm:$0xff]  ;;  %v3027_v31 = vld [vmem:[#allocation14 + $0xfa8] sm:$0xff] }
 0x6eb   :  { %v7984_v7 = vcombine.high %v3026_v56, %v3034_v30  ;;  %v7983_v33 = vcombine.low %v3026_v56, %v3034_v30  ;;  %v7985_v40 = vcombine.low %v3027_v31, %v3035_v32 }
 0x6ec   :  { %5984 = vmatpush1.bf16.msra.mxu1 %v7871_v29  ;;  %v7986_v29 = vcombine.high %v3027_v31, %v3035_v32 }
 0x6ed   :  { %6066 = vmatpush1.bf16.msra.mxu0 %v7873_v36  ;;  %5985 = vmatprep.subr.bf16.mxu1 %v7888_v37  ;;  %v2532_v36 = vld [vmem:[#allocation14 + $0x30] sm:$0xff] }
 0x6ee   :  { %6067 = vmatprep.subr.bf16.mxu0 %v7890_v38  ;;  %v2540_v37 = vld [vmem:[#allocation14 + $0x70] sm:$0xff]  ;;  %v2533_v38 = vld [vmem:[#allocation14 + $0x38] sm:$0xff] }
 0x6ef   :  { %v7492_v42 = vcombine.high %v2532_v36, %v2540_v37  ;;  %v7493_v47 = vcombine.low %v2533_v38, %v2541_v39 }
 0x6f0   :  { %5986 = vmatpush1.bf16.msra.mxu1 %v7887_v0  ;;  %v7494_v0 = vcombine.high %v2533_v38, %v2541_v39 }
 0x6f1   :  { %6068 = vmatpush1.bf16.msra.mxu0 %v7889_v44  ;;  %5987 = vmatprep.subr.bf16.mxu1 %v7904_v10  ;;  %v2548_v44 = vld [vmem:[#allocation14 + $0xb0] sm:$0xff] }
 0x6f2   :  { %6069 = vmatprep.subr.bf16.mxu0 %v7906_v45  ;;  %v2556_v10 = vld [vmem:[#allocation14 + $0xf0] sm:$0xff]  ;;  %v7491_v45 = vcombine.low %v2532_v36, %v2540_v37 }
 0x6f3   :  { %v7508_v2 = vcombine.high %v2548_v44, %v2556_v10  ;;  %v7507_v52 = vcombine.low %v2548_v44, %v2556_v10 }
 0x6f4   :  { %5988 = vmatpush1.bf16.msra.mxu1 %v7903_v3  ;;  %v2564_v3 = vld [vmem:[#allocation14 + $0x130] sm:$0xff] }
 0x6f5   :  { %6070 = vmatpush1.bf16.msra.mxu0 %v7905_v50  ;;  %5989 = vmatprep.subr.bf16.mxu1 %v7920_v4  ;;  %v2572_v50 = vld [vmem:[#allocation14 + $0x170] sm:$0xff]  ;;  %v7510_v4 = vcombine.high %v2549_v53, %v2557_v59 }
 0x6f6   :  { %6071 = vmatprep.subr.bf16.mxu0 %v7922_v5  ;;  %v2565_v5 = vld [vmem:[#allocation14 + $0x138] sm:$0xff]  ;;  %v7524_v8 = vcombine.high %v2564_v3, %v2572_v50  ;;  %v7523_v17 = vcombine.low %v2564_v3, %v2572_v50  ;;  %v2660_v59 = vld [vmem:[#allocation14 + $0x430] sm:$0xff] }
 0x6f7   :  { %v7525_v25 = vcombine.low %v2565_v5, %v2573_v6  ;;  %v2669_v3 = vld [vmem:[#allocation14 + $0x478] sm:$0xff] }
 0x6f8   :  { %5990 = vmatpush1.bf16.msra.mxu1 %v7919_v13  ;;  %v7526_v13 = vcombine.high %v2565_v5, %v2573_v6 }
 0x6f9   :  { %6072 = vmatpush1.bf16.msra.mxu0 %v7921_v14  ;;  %5991 = vmatprep.subr.bf16.mxu1 %v7936_v11  ;;  %v2580_v14 = vld [vmem:[#allocation14 + $0x1b0] sm:$0xff] }
 0x6fa   :  { %6073 = vmatprep.subr.bf16.mxu0 %v7938_v16  ;;  %v2588_v11 = vld [vmem:[#allocation14 + $0x1f0] sm:$0xff]  ;;  %v2581_v16 = vld [vmem:[#allocation14 + $0x1b8] sm:$0xff] }
 0x6fb   :  { %v7540_v19 = vcombine.high %v2580_v14, %v2588_v11  ;;  %v7541_v57 = vcombine.low %v2581_v16, %v2589_v18 }
 0x6fc   :  { %5992 = vmatpush1.bf16.msra.mxu1 %v7935_v21  ;;  %v7542_v21 = vcombine.high %v2581_v16, %v2589_v18 }
 0x6fd   :  { %6074 = vmatpush1.bf16.msra.mxu0 %v7937_v22  ;;  %5993 = vmatprep.subr.bf16.mxu1 %v7952_v20  ;;  %v2596_v22 = vld [vmem:[#allocation14 + $0x230] sm:$0xff] }
 0x6fe   :  { %6075 = vmatprep.subr.bf16.mxu0 %v7954_v51  ;;  %v2604_v20 = vld [vmem:[#allocation14 + $0x270] sm:$0xff]  ;;  %v2597_v51 = vld [vmem:[#allocation14 + $0x238] sm:$0xff] }
 0x6ff   :  { %v7556_v41 = vcombine.high %v2596_v22, %v2604_v20  ;;  %v7558_v26 = vcombine.high %v2597_v51, %v2605_v55  ;;  %v7555_v56 = vcombine.low %v2596_v22, %v2604_v20  ;;  %v7557_v30 = vcombine.low %v2597_v51, %v2605_v55 }
 0x700   :  { %5994 = vmatpush1.bf16.msra.mxu1 %v7951_v54  ;;  %v2612_v54 = vld [vmem:[#allocation14 + $0x2b0] sm:$0xff] }
 0x701   :  { %6076 = vmatpush1.bf16.msra.mxu0 %v7953_v23  ;;  %5995 = vmatprep.subr.bf16.mxu1 %v7968_v43  ;;  %v2620_v23 = vld [vmem:[#allocation14 + $0x2f0] sm:$0xff]  ;;  %v2613_v43 = vld [vmem:[#allocation14 + $0x2b8] sm:$0xff] }
 0x702   :  { %6077 = vmatprep.subr.bf16.mxu0 %v7970_v24  ;;  %v2621_v24 = vld [vmem:[#allocation14 + $0x2f8] sm:$0xff]  ;;  %v7572_v31 = vcombine.high %v2612_v54, %v2620_v23  ;;  %v7571_v36 = vcombine.low %v2612_v54, %v2620_v23 }
 0x703   :  { %v7574_v32 = vcombine.high %v2613_v43, %v2621_v24  ;;  %v7573_v37 = vcombine.low %v2613_v43, %v2621_v24 }
 0x704   :  { %5996 = vmatpush1.bf16.msra.mxu1 %v7967_v27  ;;  %v2628_v27 = vld [vmem:[#allocation14 + $0x330] sm:$0xff] }
 0x705   :  { %6078 = vmatpush1.bf16.msra.mxu0 %v7969_v63  ;;  %5997 = vmatprep.subr.bf16.mxu1 %v7984_v7  ;;  %v2636_v63 = vld [vmem:[#allocation14 + $0x370] sm:$0xff]  ;;  %v2629_v7 = vld [vmem:[#allocation14 + $0x338] sm:$0xff] }
 0x706   :  { %6079 = vmatprep.subr.bf16.mxu0 %v7986_v29  ;;  %v2637_v29 = vld [vmem:[#allocation14 + $0x378] sm:$0xff]  ;;  %v7588_v38 = vcombine.high %v2628_v27, %v2636_v63  ;;  %v7587_v44 = vcombine.low %v2628_v27, %v2636_v63 }
 0x707   :  { %v7590_v39 = vcombine.high %v2629_v7, %v2637_v29  ;;  %v7589_v10 = vcombine.low %v2629_v7, %v2637_v29 }
 0x708   :  { %5998 = vmatpush1.bf16.msra.mxu1 %v7983_v33  ;;  %v2644_v33 = vld [vmem:[#allocation14 + $0x3b0] sm:$0xff] }
 0x709   :  { %6080 = vmatpush1.bf16.msra.mxu0 %v7985_v40  ;;  %6090 = vmatprep.subr.bf16.mxu1 %v7492_v42  ;;  %v2652_v40 = vld [vmem:[#allocation14 + $0x3f0] sm:$0xff]  ;;  %v2645_v42 = vld [vmem:[#allocation14 + $0x3b8] sm:$0xff] }
 0x70a   :  { %6172 = vmatprep.subr.bf16.mxu0 %v7494_v0  ;;  %v2653_v0 = vld [vmem:[#allocation14 + $0x3f8] sm:$0xff]  ;;  %v7603_v50 = vcombine.low %v2644_v33, %v2652_v40 }
 0x70b   :  { %6000 = vmatmul.mubr.bf16.vlgmr.msra.gmra.mrb[40].mxu1 %v9646_v34  ;;  %v7606_v53 = vcombine.high %v2645_v42, %v2653_v0 }
 0x70c   :  { %6082 = vmatmul.mubr.bf16.vlgmr.msra.gmra.mrb[40].mxu0 %v9646_v34  ;;  %6091 = vmatpush1.bf16.msra.mxu1 %v7491_v45  ;;  %v7604_v45 = vcombine.high %v2644_v33, %v2652_v40 }
 0x70d   :  { %6122 = vmatprep.mubr.bf16.mxu1 %v9625_v49  ;;  %6173 = vmatpush1.bf16.msra.mxu0 %v7493_v47  ;;  %v2668_v47 = vld [vmem:[#allocation14 + $0x470] sm:$0xff] }
 0x70e   :  { %6204 = vmatprep.mubr.bf16.mxu0 %v9625_v49  ;;  %6092 = vmatprep.subr.bf16.mxu1 %v7508_v2  ;;  %v7539_v49 = vcombine.low %v2580_v14, %v2588_v11  ;;  %v2661_v2 = vld [vmem:[#allocation14 + $0x438] sm:$0xff]  ;;  %v7620_v5 = vcombine.high %v2660_v59, %v2668_v47  ;;  %v7619_v14 = vcombine.low %v2660_v59, %v2668_v47 }
 0x70f   :  { %6174 = vmatprep.subr.bf16.mxu0 %v7510_v4  ;;  %v7605_v4 = vcombine.low %v2645_v42, %v2653_v0  ;;  %v7622_v6 = vcombine.high %v2661_v2, %v2669_v3  ;;  %v7621_v11 = vcombine.low %v2661_v2, %v2669_v3 }
 0x710   :  { %6093 = vmatpush1.bf16.msra.mxu1 %v7507_v52  ;;  %v2676_v52 = vld [vmem:[#allocation14 + $0x4b0] sm:$0xff] }
 0x711   :  { %6175 = vmatpush1.bf16.msra.mxu0 %v7509_v9  ;;  %6094 = vmatprep.subr.bf16.mxu1 %v7524_v8  ;;  %v2684_v9 = vld [vmem:[#allocation14 + $0x4f0] sm:$0xff]  ;;  %v2677_v8 = vld [vmem:[#allocation14 + $0x4b8] sm:$0xff] }
 0x712   :  { %6176 = vmatprep.subr.bf16.mxu0 %v7526_v13  ;;  %v2685_v13 = vld [vmem:[#allocation14 + $0x4f8] sm:$0xff]  ;;  %v7636_v16 = vcombine.high %v2676_v52, %v2684_v9  ;;  %v7635_v22 = vcombine.low %v2676_v52, %v2684_v9 }
 0x713   :  { %v7638_v18 = vcombine.high %v2677_v8, %v2685_v13  ;;  %v7637_v20 = vcombine.low %v2677_v8, %v2685_v13 }
 0x714   :  { %6095 = vmatpush1.bf16.msra.mxu1 %v7523_v17  ;;  %v2692_v17 = vld [vmem:[#allocation14 + $0x530] sm:$0xff] }
 0x715   :  { %6177 = vmatpush1.bf16.msra.mxu0 %v7525_v25  ;;  %6096 = vmatprep.subr.bf16.mxu1 %v7540_v19  ;;  %v2700_v25 = vld [vmem:[#allocation14 + $0x570] sm:$0xff]  ;;  %v2693_v19 = vld [vmem:[#allocation14 + $0x538] sm:$0xff] }
 0x716   :  { %6178 = vmatprep.subr.bf16.mxu0 %v7542_v21  ;;  %v2701_v21 = vld [vmem:[#allocation14 + $0x578] sm:$0xff]  ;;  %v7652_v51 = vcombine.high %v2692_v17, %v2700_v25  ;;  %v7651_v54 = vcombine.low %v2692_v17, %v2700_v25 }
 0x717   :  { %v7654_v55 = vcombine.high %v2693_v19, %v2701_v21  ;;  %v7653_v23 = vcombine.low %v2693_v19, %v2701_v21 }
 0x718   :  { %6097 = vmatpush1.bf16.msra.mxu1 %v7539_v49  ;;  %v2708_v49 = vld [vmem:[#allocation14 + $0x5b0] sm:$0xff] }
 0x719   :  { %6179 = vmatpush1.bf16.msra.mxu0 %v7541_v57  ;;  %6098 = vmatprep.subr.bf16.mxu1 %v7556_v41  ;;  %v2716_v57 = vld [vmem:[#allocation14 + $0x5f0] sm:$0xff]  ;;  %v2709_v41 = vld [vmem:[#allocation14 + $0x5b8] sm:$0xff] }
 0x71a   :  { %6180 = vmatprep.subr.bf16.mxu0 %v7558_v26  ;;  %v2717_v26 = vld [vmem:[#allocation14 + $0x5f8] sm:$0xff]  ;;  %v7668_v43 = vcombine.high %v2708_v49, %v2716_v57  ;;  %v7667_v27 = vcombine.low %v2708_v49, %v2716_v57 }
 0x71b   :  { %v7670_v24 = vcombine.high %v2709_v41, %v2717_v26  ;;  %v7669_v63 = vcombine.low %v2709_v41, %v2717_v26  ;;  %v2813_v49 = vld [vmem:[#allocation14 + $0x8f8] sm:$0xff]  ;;  %v2820_v26 = vld [vmem:[#allocation14 + $0x930] sm:$0xff] }
 0x71c   :  { %6099 = vmatpush1.bf16.msra.mxu1 %v7555_v56  ;;  %v2724_v56 = vld [vmem:[#allocation14 + $0x630] sm:$0xff] }
 0x71d   :  { %6181 = vmatpush1.bf16.msra.mxu0 %v7557_v30  ;;  %6100 = vmatprep.subr.bf16.mxu1 %v7572_v31  ;;  %v2732_v30 = vld [vmem:[#allocation14 + $0x670] sm:$0xff]  ;;  %v2725_v31 = vld [vmem:[#allocation14 + $0x638] sm:$0xff] }
 0x71e   :  { %6182 = vmatprep.subr.bf16.mxu0 %v7574_v32  ;;  %v2733_v32 = vld [vmem:[#allocation14 + $0x678] sm:$0xff]  ;;  %v7684_v7 = vcombine.high %v2724_v56, %v2732_v30  ;;  %v7683_v33 = vcombine.low %v2724_v56, %v2732_v30 }
 0x71f   :  { %v7686_v29 = vcombine.high %v2725_v31, %v2733_v32  ;;  %v7685_v40 = vcombine.low %v2725_v31, %v2733_v32 }
 0x720   :  { %6101 = vmatpush1.bf16.msra.mxu1 %v7571_v36  ;;  %v2740_v36 = vld [vmem:[#allocation14 + $0x6b0] sm:$0xff] }
 0x721   :  { %6183 = vmatpush1.bf16.msra.mxu0 %v7573_v37  ;;  %6102 = vmatprep.subr.bf16.mxu1 %v7588_v38  ;;  %v2748_v37 = vld [vmem:[#allocation14 + $0x6f0] sm:$0xff]  ;;  %v2741_v38 = vld [vmem:[#allocation14 + $0x6b8] sm:$0xff] }
 0x722   :  { %6184 = vmatprep.subr.bf16.mxu0 %v7590_v39  ;;  %v2749_v39 = vld [vmem:[#allocation14 + $0x6f8] sm:$0xff]  ;;  %v7700_v42 = vcombine.high %v2740_v36, %v2748_v37  ;;  %v7699_v59 = vcombine.low %v2740_v36, %v2748_v37 }
 0x723   :  { %v7702_v0 = vcombine.high %v2741_v38, %v2749_v39  ;;  %v7701_v47 = vcombine.low %v2741_v38, %v2749_v39  ;;  %v2852_v39 = vld [vmem:[#allocation14 + $0xa30] sm:$0xff] }
 0x724   :  { %6103 = vmatpush1.bf16.msra.mxu1 %v7587_v44  ;;  %v2756_v44 = vld [vmem:[#allocation14 + $0x730] sm:$0xff] }
 0x725   :  { %6185 = vmatpush1.bf16.msra.mxu0 %v7589_v10  ;;  %6104 = vmatprep.subr.bf16.mxu1 %v7604_v45  ;;  %v2764_v10 = vld [vmem:[#allocation14 + $0x770] sm:$0xff]  ;;  %v2757_v45 = vld [vmem:[#allocation14 + $0x738] sm:$0xff] }
 0x726   :  { %6186 = vmatprep.subr.bf16.mxu0 %v7606_v53  ;;  %v2765_v53 = vld [vmem:[#allocation14 + $0x778] sm:$0xff]  ;;  %v7716_v2 = vcombine.high %v2756_v44, %v2764_v10  ;;  %v7715_v52 = vcombine.low %v2756_v44, %v2764_v10 }
 0x727   :  { %v7718_v3 = vcombine.high %v2757_v45, %v2765_v53  ;;  %v7717_v9 = vcombine.low %v2757_v45, %v2765_v53  ;;  %v2868_v45 = vld [vmem:[#allocation14 + $0xab0] sm:$0xff] }
 0x728   :  { %6105 = vmatpush1.bf16.msra.mxu1 %v7603_v50  ;;  %v2772_v50 = vld [vmem:[#allocation14 + $0x7b0] sm:$0xff] }
 0x729   :  { %6187 = vmatpush1.bf16.msra.mxu0 %v7605_v4  ;;  %6106 = vmatprep.subr.bf16.mxu1 %v7620_v5  ;;  %v2780_v4 = vld [vmem:[#allocation14 + $0x7f0] sm:$0xff]  ;;  %v2773_v5 = vld [vmem:[#allocation14 + $0x7b8] sm:$0xff] }
 0x72a   :  { %6188 = vmatprep.subr.bf16.mxu0 %v7622_v6  ;;  %v2781_v6 = vld [vmem:[#allocation14 + $0x7f8] sm:$0xff]  ;;  %v7732_v8 = vcombine.high %v2772_v50, %v2780_v4  ;;  %v7731_v17 = vcombine.low %v2772_v50, %v2780_v4  ;;  %v2876_v53 = vld [vmem:[#allocation14 + $0xaf0] sm:$0xff] }
 0x72b   :  { %v7734_v13 = vcombine.high %v2773_v5, %v2781_v6  ;;  %v7733_v25 = vcombine.low %v2773_v5, %v2781_v6  ;;  %v7828_v50 = vcombine.high %v2868_v45, %v2876_v53  ;;  %v2884_v5 = vld [vmem:[#allocation14 + $0xb30] sm:$0xff] }
 0x72c   :  { %6107 = vmatpush1.bf16.msra.mxu1 %v7619_v14  ;;  %v2788_v14 = vld [vmem:[#allocation14 + $0x830] sm:$0xff] }
 0x72d   :  { %6189 = vmatpush1.bf16.msra.mxu0 %v7621_v11  ;;  %6108 = vmatprep.subr.bf16.mxu1 %v7636_v16  ;;  %v2796_v11 = vld [vmem:[#allocation14 + $0x870] sm:$0xff]  ;;  %v2789_v16 = vld [vmem:[#allocation14 + $0x838] sm:$0xff] }
 0x72e   :  { %6190 = vmatprep.subr.bf16.mxu0 %v7638_v18  ;;  %v2797_v18 = vld [vmem:[#allocation14 + $0x878] sm:$0xff]  ;;  %v7748_v19 = vcombine.high %v2788_v14, %v2796_v11  ;;  %v2892_v6 = vld [vmem:[#allocation14 + $0xb70] sm:$0xff] }
 0x72f   :  { %v7750_v21 = vcombine.high %v2789_v16, %v2797_v18  ;;  %v7749_v57 = vcombine.low %v2789_v16, %v2797_v18  ;;  %v2900_v18 = vld [vmem:[#allocation14 + $0xbb0] sm:$0xff] }
 0x730   :  { %6109 = vmatpush1.bf16.msra.mxu1 %v7635_v22  ;;  %v2804_v22 = vld [vmem:[#allocation14 + $0x8b0] sm:$0xff] }
 0x731   :  { %6191 = vmatpush1.bf16.msra.mxu0 %v7637_v20  ;;  %6110 = vmatprep.subr.bf16.mxu1 %v7652_v51  ;;  %v2812_v20 = vld [vmem:[#allocation14 + $0x8f0] sm:$0xff]  ;;  %v7747_v51 = vcombine.low %v2788_v14, %v2796_v11  ;;  %v7844_v14 = vcombine.high %v2884_v5, %v2892_v6 }
 0x732   :  { %6192 = vmatprep.subr.bf16.mxu0 %v7654_v55  ;;  %v2805_v55 = vld [vmem:[#allocation14 + $0x8b8] sm:$0xff]  ;;  %v7764_v41 = vcombine.high %v2804_v22, %v2812_v20  ;;  %v7763_v56 = vcombine.low %v2804_v22, %v2812_v20 }
 0x733   :  { %v7765_v30 = vcombine.low %v2805_v55, %v2813_v49  ;;  %v2901_v22 = vld [vmem:[#allocation14 + $0xbb8] sm:$0xff] }
 0x734   :  { %6111 = vmatpush1.bf16.msra.mxu1 %v7651_v54  ;;  %v2828_v54 = vld [vmem:[#allocation14 + $0x970] sm:$0xff]  ;;  %v2909_v20 = vld [vmem:[#allocation14 + $0xbf8] sm:$0xff] }
 0x735   :  { %6193 = vmatpush1.bf16.msra.mxu0 %v7653_v23  ;;  %6112 = vmatprep.subr.bf16.mxu1 %v7668_v43  ;;  %v7766_v23 = vcombine.high %v2805_v55, %v2813_v49  ;;  %v2821_v43 = vld [vmem:[#allocation14 + $0x938] sm:$0xff]  ;;  %v7780_v31 = vcombine.high %v2820_v26, %v2828_v54  ;;  %v7779_v36 = vcombine.low %v2820_v26, %v2828_v54 }
 0x736   :  { %6194 = vmatprep.subr.bf16.mxu0 %v7670_v24  ;;  %v2829_v24 = vld [vmem:[#allocation14 + $0x978] sm:$0xff] }
 0x737   :  { %v7782_v32 = vcombine.high %v2821_v43, %v2829_v24 }
 0x738   :  { %6113 = vmatpush1.bf16.msra.mxu1 %v7667_v27  ;;  %v2836_v27 = vld [vmem:[#allocation14 + $0x9b0] sm:$0xff] }
 0x739   :  { %6195 = vmatpush1.bf16.msra.mxu0 %v7669_v63  ;;  %6114 = vmatprep.subr.bf16.mxu1 %v7684_v7  ;;  %v2844_v63 = vld [vmem:[#allocation14 + $0x9f0] sm:$0xff]  ;;  %v2837_v7 = vld [vmem:[#allocation14 + $0x9b8] sm:$0xff] }
 0x73a   :  { %6196 = vmatprep.subr.bf16.mxu0 %v7686_v29  ;;  %v2845_v29 = vld [vmem:[#allocation14 + $0x9f8] sm:$0xff]  ;;  %v7796_v37 = vcombine.high %v2836_v27, %v2844_v63 }
 0x73b   :  { %v7798_v38 = vcombine.high %v2837_v7, %v2845_v29 }
 0x73c   :  { %6115 = vmatpush1.bf16.msra.mxu1 %v7683_v33  ;;  %v2860_v33 = vld [vmem:[#allocation14 + $0xa70] sm:$0xff] }
 0x73d   :  { %6197 = vmatpush1.bf16.msra.mxu0 %v7685_v40  ;;  %6116 = vmatprep.subr.bf16.mxu1 %v7700_v42  ;;  %v2853_v40 = vld [vmem:[#allocation14 + $0xa38] sm:$0xff]  ;;  %v7812_v44 = vcombine.high %v2852_v39, %v2860_v33 }
 0x73e   :  { %6198 = vmatprep.subr.bf16.mxu0 %v7702_v0  ;;  %v2861_v42 = vld [vmem:[#allocation14 + $0xa78] sm:$0xff]  ;;  %v7797_v0 = vcombine.low %v2837_v7, %v2845_v29  ;;  %v2924_v7 = vld [vmem:[#allocation14 + $0xc70] sm:$0xff] }
 0x73f   :  { %v7814_v10 = vcombine.high %v2853_v40, %v2861_v42  ;;  %v2917_v29 = vld [vmem:[#allocation14 + $0xc38] sm:$0xff] }
 0x740   :  { %6117 = vmatpush1.bf16.msra.mxu1 %v7699_v59  ;;  %v2869_v59 = vld [vmem:[#allocation14 + $0xab8] sm:$0xff] }
 0x741   :  { %6199 = vmatpush1.bf16.msra.mxu0 %v7701_v47  ;;  %6118 = vmatprep.subr.bf16.mxu1 %v7716_v2  ;;  %v2877_v47 = vld [vmem:[#allocation14 + $0xaf8] sm:$0xff]  ;;  %v7811_v2 = vcombine.low %v2852_v39, %v2860_v33  ;;  %v2940_v39 = vld [vmem:[#allocation14 + $0xcf0] sm:$0xff] }
 0x742   :  { %6200 = vmatprep.subr.bf16.mxu0 %v7718_v3  ;;  %v7813_v3 = vcombine.low %v2853_v40, %v2861_v42  ;;  %v7830_v4 = vcombine.high %v2869_v59, %v2877_v47  ;;  %v2933_v33 = vld [vmem:[#allocation14 + $0xcb8] sm:$0xff] }
 0x743   :  { %v2941_v40 = vld [vmem:[#allocation14 + $0xcf8] sm:$0xff] }
 0x744   :  { %6119 = vmatpush1.bf16.msra.mxu1 %v7715_v52  ;;  %v2885_v52 = vld [vmem:[#allocation14 + $0xb38] sm:$0xff] }
 0x745   :  { %6201 = vmatpush1.bf16.msra.mxu0 %v7717_v9  ;;  %6120 = vmatprep.subr.bf16.mxu1 %v7732_v8  ;;  %v2893_v9 = vld [vmem:[#allocation14 + $0xb78] sm:$0xff]  ;;  %v7827_v8 = vcombine.low %v2868_v45, %v2876_v53 }
 0x746   :  { %6202 = vmatprep.subr.bf16.mxu0 %v7734_v13  ;;  %v7829_v13 = vcombine.low %v2869_v59, %v2877_v47  ;;  %v7846_v16 = vcombine.high %v2885_v52, %v2893_v9  ;;  %v7845_v26 = vcombine.low %v2885_v52, %v2893_v9  ;;  %v2949_v45 = vld [vmem:[#allocation14 + $0xd38] sm:$0xff]  ;;  %v7893_v47 = vcombine.low %v2933_v33, %v2941_v40 }
 0x747   :  { %v2957_v53 = vld [vmem:[#allocation14 + $0xd78] sm:$0xff] }
 0x748   :  { %6121 = vmatpush1.bf16.msra.mxu1 %v7731_v17  ;;  %v2908_v17 = vld [vmem:[#allocation14 + $0xbf0] sm:$0xff]  ;;  %v7909_v9 = vcombine.low %v2949_v45, %v2957_v53 }
 0x749   :  { %6203 = vmatpush1.bf16.msra.mxu0 %v7733_v25  ;;  %6131 = vmatprep.subr.bf16.mxu1 %v7748_v19 }
 0x74a   :  { %6213 = vmatprep.subr.bf16.mxu0 %v7750_v21 }
 0x74b   :  { %6123 = vmatmul.mubr.bf16.vlgmr.msra.gmra.mrb[44].mxu1 %v9627_v46 }
 0x74c   :  { %6205 = vmatmul.mubr.bf16.vlgmr.msra.gmra.mrb[44].mxu0 %v9627_v46  ;;  %6132 = vmatpush1.bf16.msra.mxu1 %v7747_v51  ;;  %v7781_v46 = vcombine.low %v2821_v43, %v2829_v24 }
 0x74d   :  { %6163 = vmatprep.mubr.bf16.mxu1 %v9631_v15  ;;  %6214 = vmatpush1.bf16.msra.mxu0 %v7749_v57 }
 0x74e   :  { %6245 = vmatprep.mubr.bf16.mxu0 %v9631_v15  ;;  %6133 = vmatprep.subr.bf16.mxu1 %v7764_v41  ;;  %v7795_v15 = vcombine.low %v2836_v27, %v2844_v63  ;;  %v7843_v41 = vcombine.low %v2884_v5, %v2892_v6  ;;  %v7862_v27 = vcombine.high %v2901_v22, %v2909_v20  ;;  %v2916_v63 = vld [vmem:[#allocation14 + $0xc30] sm:$0xff]  ;;  %v2965_v5 = vld [vmem:[#allocation14 + $0xdb8] sm:$0xff] }
 0x74f   :  { %6215 = vmatprep.subr.bf16.mxu0 %v7766_v23  ;;  %v7875_v42 = vcombine.low %v2916_v63, %v2924_v7  ;;  %v2973_v6 = vld [vmem:[#allocation14 + $0xdf8] sm:$0xff] }
 0x750   :  { %6134 = vmatpush1.bf16.msra.mxu1 %v7763_v56  ;;  %v7860_v56 = vcombine.high %v2900_v18, %v2908_v17 }
 0x751   :  { %6216 = vmatpush1.bf16.msra.mxu0 %v7765_v30  ;;  %6135 = vmatprep.subr.bf16.mxu1 %v7780_v31 }
 0x752   :  { %6217 = vmatprep.subr.bf16.mxu0 %v7782_v32 }
 0x754   :  { %6136 = vmatpush1.bf16.msra.mxu1 %v7779_v36  ;;  %v2925_v36 = vld [vmem:[#allocation14 + $0xc78] sm:$0xff] }
 0x755   :  { %6218 = vmatpush1.bf16.msra.mxu0 %v7781_v46  ;;  %6137 = vmatprep.subr.bf16.mxu1 %v7796_v37  ;;  %v7859_v46 = vcombine.low %v2900_v18, %v2908_v17  ;;  %v7861_v37 = vcombine.low %v2901_v22, %v2909_v20  ;;  %v2989_v18 = vld [vmem:[#allocation14 + $0xe78] sm:$0xff]  ;;  %v2996_v22 = vld [vmem:[#allocation14 + $0xeb0] sm:$0xff] }
 0x756   :  { %6219 = vmatprep.subr.bf16.mxu0 %v7798_v38  ;;  %v7878_v38 = vcombine.high %v2917_v29, %v2925_v36  ;;  %v3004_v20 = vld [vmem:[#allocation14 + $0xef0] sm:$0xff] }
 0x758   :  { %6138 = vmatpush1.bf16.msra.mxu1 %v7795_v15 }
 0x759   :  { %6220 = vmatpush1.bf16.msra.mxu0 %v7797_v0  ;;  %6139 = vmatprep.subr.bf16.mxu1 %v7812_v44  ;;  %v7894_v0 = vcombine.high %v2933_v33, %v2941_v40  ;;  %v2948_v44 = vld [vmem:[#allocation14 + $0xd30] sm:$0xff] }
 0x75a   :  { %6221 = vmatprep.subr.bf16.mxu0 %v7814_v10  ;;  %v2956_v10 = vld [vmem:[#allocation14 + $0xd70] sm:$0xff] }
 0x75b   :  { %v7907_v52 = vcombine.low %v2948_v44, %v2956_v10 }
 0x75c   :  { %6140 = vmatpush1.bf16.msra.mxu1 %v7811_v2  ;;  %v7908_v2 = vcombine.high %v2948_v44, %v2956_v10  ;;  %v8607_v44 = vld [vmem:[#allocation16 + $0x24] ss:$16 sps:$4 sm:$0xff]   ;;  %v8610_v10 = vld [vmem:[#allocation16 + $0x2c] ss:$16 sps:$4 sm:$0xff]  }
 0x75d   :  { %6222 = vmatpush1.bf16.msra.mxu0 %v7813_v3  ;;  %6141 = vmatprep.subr.bf16.mxu1 %v7828_v50  ;;  %v7910_v3 = vcombine.high %v2949_v45, %v2957_v53  ;;  %v2964_v50 = vld [vmem:[#allocation14 + $0xdb0] sm:$0xff]  ;;  %v8608_v53 = vld [vmem:[#allocation16 + $0x28] ss:$16 sps:$4 sm:$0xff]  }
 0x75e   :  { %v5837_v11 = vpop.f32.mrb[36].mxu1  ;;  %6223 = vmatprep.subr.bf16.mxu0 %v7830_v4  ;;  %v2972_v4 = vld [vmem:[#allocation14 + $0xdf0] sm:$0xff] }
 0x75f   :  { %v6262_v25 = vmul.f32 %v5837_v11, %v9575_v61  ;;  %v5919_v19 = vpop.f32.mrb[36].mxu0  ;;  %v5839_v21 = vpop.f32.mrb[37].mxu1  ;;  %v2988_v11 = vld [vmem:[#allocation14 + $0xe70] sm:$0xff]  ;;  %v7923_v17 = vcombine.low %v2964_v50, %v2972_v4 }
 0x760   :  { %v6264_v51 = vmul.f32 %v5919_v19, %v9575_v61  ;;  %v6263_v55 = vmul.f32 %v5839_v21, %v9575_v61  ;;  %v5921_v49 = vpop.f32.mrb[37].mxu0  ;;  %v5841_v57 = vpop.f32.mrb[38].mxu1  ;;  %6142 = vmatpush1.bf16.msra.mxu1 %v7827_v8  ;;  %v7924_v8 = vcombine.high %v2964_v50, %v2972_v4  ;;  %v8605_v45 = vld [vmem:[#allocation16 + $0x20] ss:$16 sps:$4 sm:$0xff]   ;;  %v8619_v50 = vld [vmem:[#allocation16 + $0x64] ss:$16 sps:$4 sm:$0xff]  }
 0x761   :  { %v9692_v54 = vadd.f32 %v6262_v25, %v9669_v48  ;;  %v6265_v23 = vmul.f32 %v5921_v49, %v9575_v61  ;;  %v5923_v43 = vpop.f32.mrb[38].mxu0  ;;  %6224 = vmatpush1.bf16.msra.mxu0 %v7829_v13  ;;  %v5842_v24 = vpop.f32.mrb[39].mxu1  ;;  %6143 = vmatprep.subr.bf16.mxu1 %v7844_v14  ;;  %v7926_v13 = vcombine.high %v2965_v5, %v2973_v6  ;;  %v2980_v14 = vld [vmem:[#allocation14 + $0xe30] sm:$0xff]  ;;  %v8622_v4 = vld [vmem:[#allocation16 + $0x6c] ss:$16 sps:$4 sm:$0xff]  }
 0x762   :  { %v9696_v30 = vadd.f32 %v6264_v51, %v9672_v1  ;;  %v9699_v31 = vadd.f32 %v6263_v55, %v9675_v58  ;;  %v5924_v32 = vpop.f32.mrb[39].mxu0  ;;  %6225 = vmatprep.subr.bf16.mxu0 %v7846_v16  ;;  %v7876_v1 = vcombine.high %v2916_v63, %v2924_v7  ;;  %v2932_v58 = vld [vmem:[#allocation14 + $0xcb0] sm:$0xff]  ;;  %v2981_v16 = vld [vmem:[#allocation14 + $0xe38] sm:$0xff]  ;;  %v7925_v25 = vcombine.low %v2965_v5, %v2973_v6 }
 0x763   :  { %v9702_v48 = vadd.f32 %v6265_v23, %v9678_v28  ;;  %v7877_v28 = vcombine.low %v2917_v29, %v2925_v36  ;;  %v7892_v15 = vcombine.high %v2932_v58, %v2940_v39  ;;  %v7891_v59 = vcombine.low %v2932_v58, %v2940_v39  ;;  %v2997_v51 = vld [vmem:[#allocation14 + $0xeb8] sm:$0xff]  ;;  %v3012_v23 = vld [vmem:[#allocation14 + $0xf30] sm:$0xff] }
 0x764   :  { %6144 = vmatpush1.bf16.msra.mxu1 %v7843_v41  ;;  %v7940_v19 = vcombine.high %v2980_v14, %v2988_v11  ;;  %v7942_v21 = vcombine.high %v2981_v16, %v2989_v18  ;;  %v3005_v55 = vld [vmem:[#allocation14 + $0xef8] sm:$0xff]  ;;  %v7939_v49 = vcombine.low %v2980_v14, %v2988_v11  ;;  %v7941_v57 = vcombine.low %v2981_v16, %v2989_v18  ;;  %v3020_v43 = vld [vmem:[#allocation14 + $0xf70] sm:$0xff] }
 0x765   :  { %6226 = vmatpush1.bf16.msra.mxu0 %v7845_v26  ;;  %6145 = vmatprep.subr.bf16.mxu1 %v7860_v56  ;;  %v7956_v41 = vcombine.high %v2996_v22, %v3004_v20  ;;  %v7958_v26 = vcombine.high %v2997_v51, %v3005_v55  ;;  %v3013_v24 = vld [vmem:[#allocation14 + $0xf38] sm:$0xff]  ;;  %v7955_v32 = vcombine.low %v2996_v22, %v3004_v20  ;;  %v3028_v29 = vld [vmem:[#allocation14 + $0xfb0] sm:$0xff] }
 0x766   :  { %6227 = vmatprep.subr.bf16.mxu0 %v7862_v27  ;;  %v3021_v56 = vld [vmem:[#allocation14 + $0xf78] sm:$0xff]  ;;  %v7957_v27 = vcombine.low %v2997_v51, %v3005_v55  ;;  %v7972_v63 = vcombine.high %v3012_v23, %v3020_v43  ;;  %v3036_v36 = vld [vmem:[#allocation14 + $0xff0] sm:$0xff] }
 0x767   :  { %v7974_v7 = vcombine.high %v3013_v24, %v3021_v56  ;;  %v7988_v58 = vcombine.high %v3028_v29, %v3036_v36  ;;  %v7987_v33 = vcombine.low %v3028_v29, %v3036_v36  ;;  %v8617_v5 = vld [vmem:[#allocation16 + $0x60] ss:$16 sps:$4 sm:$0xff]   ;;  %v8625_v6 = vld [vmem:[#allocation16 + $0x84] ss:$16 sps:$4 sm:$0xff]   ;;  %v8634_v14 = vld [vmem:[#allocation16 + $0xac] ss:$16 sps:$4 sm:$0xff]  }
 0x768   :  { %6146 = vmatpush1.bf16.msra.mxu1 %v7859_v46  ;;  %v3029_v46 = vld [vmem:[#allocation14 + $0xfb8] sm:$0xff]  ;;  %v8629_v11 = vld [vmem:[#allocation16 + $0xa0] ss:$16 sps:$4 sm:$0xff]   ;;  %v8637_v18 = vld [vmem:[#allocation16 + $0xc4] ss:$16 sps:$4 sm:$0xff]  }
 0x769   :  { %6228 = vmatpush1.bf16.msra.mxu0 %v7861_v37  ;;  %6147 = vmatprep.subr.bf16.mxu1 %v7876_v1  ;;  %v3037_v37 = vld [vmem:[#allocation14 + $0xff8] sm:$0xff]  ;;  %v7971_v1 = vcombine.low %v3012_v23, %v3020_v43  ;;  %v8641_v20 = vld [vmem:[#allocation16 + $0xe0] ss:$16 sps:$4 sm:$0xff]   ;;  %v8649_v55 = vld [vmem:[#allocation16 + $0x104] ss:$16 sps:$4 sm:$0xff]  }
 0x76a   :  { %6229 = vmatprep.subr.bf16.mxu0 %v7878_v38  ;;  %v7973_v38 = vcombine.low %v3013_v24, %v3021_v56  ;;  %v7990_v39 = vcombine.high %v3029_v46, %v3037_v37  ;;  %v7989_v40 = vcombine.low %v3029_v46, %v3037_v37  ;;  %v8632_v16 = vld [vmem:[#allocation16 + $0xa8] ss:$16 sps:$4 sm:$0xff]   ;;  %v8646_v22 = vld [vmem:[#allocation16 + $0xec] ss:$16 sps:$4 sm:$0xff]   ;;  %v8653_v43 = vld [vmem:[#allocation16 + $0x120] ss:$16 sps:$4 sm:$0xff]  }
 0x76b   :  { %v8644_v51 = vld [vmem:[#allocation16 + $0xe8] ss:$16 sps:$4 sm:$0xff]   ;;  %v8658_v23 = vld [vmem:[#allocation16 + $0x12c] ss:$16 sps:$4 sm:$0xff]   ;;  %v8661_v37 = vld [vmem:[#allocation16 + $0x144] ss:$16 sps:$4 sm:$0xff]  }
 0x76c   :  { %6148 = vmatpush1.bf16.msra.mxu1 %v7875_v42  ;;  %v8601_v42 = vld [vmem:[#allocation16 + $0x4] ss:$16 sps:$4 sm:$0xff]   ;;  %v8656_v24 = vld [vmem:[#allocation16 + $0x128] ss:$16 sps:$4 sm:$0xff]  }
 0x76d   :  { %6230 = vmatpush1.bf16.msra.mxu0 %v7877_v28  ;;  %6149 = vmatprep.subr.bf16.mxu1 %v7892_v15  ;;  %v8604_v28 = vld [vmem:[#allocation16 + $0xc] ss:$16 sps:$4 sm:$0xff]   ;;  %v8599_v15 = vld [vmem:[#allocation16] ss:$16 sps:$4 sm:$0xff]  }
 0x76e   :  { %6231 = vmatprep.subr.bf16.mxu0 %v7894_v0  ;;  %v8602_v0 = vld [vmem:[#allocation16 + $0x8] ss:$16 sps:$4 sm:$0xff]  }
 0x770   :  { %6150 = vmatpush1.bf16.msra.mxu1 %v7891_v59  ;;  %v8613_v59 = vld [vmem:[#allocation16 + $0x44] ss:$16 sps:$4 sm:$0xff]  }
 0x771   :  { %6232 = vmatpush1.bf16.msra.mxu0 %v7893_v47  ;;  %6151 = vmatprep.subr.bf16.mxu1 %v7908_v2  ;;  %v8616_v47 = vld [vmem:[#allocation16 + $0x4c] ss:$16 sps:$4 sm:$0xff]   ;;  %v8611_v2 = vld [vmem:[#allocation16 + $0x40] ss:$16 sps:$4 sm:$0xff]  }
 0x772   :  { %6233 = vmatprep.subr.bf16.mxu0 %v7910_v3  ;;  %v8614_v3 = vld [vmem:[#allocation16 + $0x48] ss:$16 sps:$4 sm:$0xff]  }
 0x774   :  { %6152 = vmatpush1.bf16.msra.mxu1 %v7907_v52  ;;  %v8628_v52 = vld [vmem:[#allocation16 + $0x8c] ss:$16 sps:$4 sm:$0xff]  }
 0x775   :  { %6234 = vmatpush1.bf16.msra.mxu0 %v7909_v9  ;;  %6153 = vmatprep.subr.bf16.mxu1 %v7924_v8  ;;  %v8623_v9 = vld [vmem:[#allocation16 + $0x80] ss:$16 sps:$4 sm:$0xff]   ;;  %v8626_v8 = vld [vmem:[#allocation16 + $0x88] ss:$16 sps:$4 sm:$0xff]  }
 0x776   :  { %6235 = vmatprep.subr.bf16.mxu0 %v7926_v13  ;;  %v8631_v13 = vld [vmem:[#allocation16 + $0xa4] ss:$16 sps:$4 sm:$0xff]  }
 0x778   :  { %6154 = vmatpush1.bf16.msra.mxu1 %v7923_v17  ;;  %v8640_v17 = vld [vmem:[#allocation16 + $0xcc] ss:$16 sps:$4 sm:$0xff]  }
 0x779   :  { %6236 = vmatpush1.bf16.msra.mxu0 %v7925_v25  ;;  %6155 = vmatprep.subr.bf16.mxu1 %v7940_v19  ;;  %v8635_v25 = vld [vmem:[#allocation16 + $0xc0] ss:$16 sps:$4 sm:$0xff]   ;;  %v8638_v19 = vld [vmem:[#allocation16 + $0xc8] ss:$16 sps:$4 sm:$0xff]  }
 0x77a   :  { %6237 = vmatprep.subr.bf16.mxu0 %v7942_v21  ;;  %v8643_v21 = vld [vmem:[#allocation16 + $0xe4] ss:$16 sps:$4 sm:$0xff]  }
 0x77c   :  { %6156 = vmatpush1.bf16.msra.mxu1 %v7939_v49  ;;  %v8652_v49 = vld [vmem:[#allocation16 + $0x10c] ss:$16 sps:$4 sm:$0xff]  }
 0x77d   :  { %6238 = vmatpush1.bf16.msra.mxu0 %v7941_v57  ;;  %6157 = vmatprep.subr.bf16.mxu1 %v7956_v41  ;;  %v8647_v57 = vld [vmem:[#allocation16 + $0x100] ss:$16 sps:$4 sm:$0xff]   ;;  %v8650_v41 = vld [vmem:[#allocation16 + $0x108] ss:$16 sps:$4 sm:$0xff]  }
 0x77e   :  { %6239 = vmatprep.subr.bf16.mxu0 %v7958_v26  ;;  %v8655_v26 = vld [vmem:[#allocation16 + $0x124] ss:$16 sps:$4 sm:$0xff]  }
 0x780   :  { %6158 = vmatpush1.bf16.msra.mxu1 %v7955_v32 }
 0x781   :  { %6240 = vmatpush1.bf16.msra.mxu0 %v7957_v27  ;;  %6159 = vmatprep.subr.bf16.mxu1 %v7972_v63 }
 0x782   :  { %6241 = vmatprep.subr.bf16.mxu0 %v7974_v7 }
 0x784   :  { %6160 = vmatpush1.bf16.msra.mxu1 %v7971_v1  ;;  %v8664_v1 = vld [vmem:[#allocation16 + $0x14c] ss:$16 sps:$4 sm:$0xff]  }
 0x785   :  { %6242 = vmatpush1.bf16.msra.mxu0 %v7973_v38  ;;  %6161 = vmatprep.subr.bf16.mxu1 %v7988_v58 }
 0x786   :  { %6243 = vmatprep.subr.bf16.mxu0 %v7990_v39 }
 0x788   :  { %6162 = vmatpush1.bf16.msra.mxu1 %v7987_v33 }
 0x789   :  { %6244 = vmatpush1.bf16.msra.mxu0 %v7989_v40  ;;  %7082 = vmatprep.subr.bf16.mxu1 %v8601_v42  ;;  %v8659_v40 = vld [vmem:[#allocation16 + $0x140] ss:$16 sps:$4 sm:$0xff]   ;;  %v8662_v42 = vld [vmem:[#allocation16 + $0x148] ss:$16 sps:$4 sm:$0xff]  }
 0x78a   :  { %7164 = vmatprep.subr.bf16.mxu0 %v8604_v28 }
 0x78b   :  { %6164 = vmatmul.mubr.bf16.vlgmr.msra.gmra.mrb[44].mxu1 %v9646_v34 }
 0x78c   :  { %6246 = vmatmul.mubr.bf16.vlgmr.msra.gmra.mrb[44].mxu0 %v9646_v34  ;;  %7083 = vmatpush1.bf16.msra.mxu1 %v8599_v15  ;;  %v8620_v34 = vld [vmem:[#allocation16 + $0x68] ss:$16 sps:$4 sm:$0xff]  }
 0x78d   :  { %7165 = vmatpush1.bf16.msra.mxu0 %v8602_v0  ;;  %7084 = vmatprep.subr.bf16.mxu1 %v8607_v44 }
 0x78e   :  { %7166 = vmatprep.subr.bf16.mxu0 %v8610_v10  ;;  %v8670_v10 = vld [vmem:[#allocation16 + $0x16c] ss:$16 sps:$4 sm:$0xff]  }
 0x790   :  { %7085 = vmatpush1.bf16.msra.mxu1 %v8605_v45  ;;  %v8665_v45 = vld [vmem:[#allocation16 + $0x160] ss:$16 sps:$4 sm:$0xff]  }
 0x791   :  { %7167 = vmatpush1.bf16.msra.mxu0 %v8608_v53  ;;  %7086 = vmatprep.subr.bf16.mxu1 %v8613_v59  ;;  %v8668_v53 = vld [vmem:[#allocation16 + $0x168] ss:$16 sps:$4 sm:$0xff]   ;;  %v8676_v59 = vld [vmem:[#allocation16 + $0x18c] ss:$16 sps:$4 sm:$0xff]  }
 0x792   :  { %7168 = vmatprep.subr.bf16.mxu0 %v8616_v47  ;;  %v8674_v47 = vld [vmem:[#allocation16 + $0x188] ss:$16 sps:$4 sm:$0xff]  }
 0x794   :  { %7087 = vmatpush1.bf16.msra.mxu1 %v8611_v2  ;;  %v8682_v2 = vld [vmem:[#allocation16 + $0x1ac] ss:$16 sps:$4 sm:$0xff]  }
 0x795   :  { %7169 = vmatpush1.bf16.msra.mxu0 %v8614_v3  ;;  %7088 = vmatprep.subr.bf16.mxu1 %v8619_v50  ;;  %v8677_v3 = vld [vmem:[#allocation16 + $0x1a0] ss:$16 sps:$4 sm:$0xff]   ;;  %v8680_v50 = vld [vmem:[#allocation16 + $0x1a8] ss:$16 sps:$4 sm:$0xff]  }
 0x796   :  { %7170 = vmatprep.subr.bf16.mxu0 %v8622_v4  ;;  %v8685_v4 = vld [vmem:[#allocation16 + $0x1c4] ss:$16 sps:$4 sm:$0xff]  }
 0x798   :  { %7089 = vmatpush1.bf16.msra.mxu1 %v8617_v5  ;;  %v8688_v5 = vld [vmem:[#allocation16 + $0x1cc] ss:$16 sps:$4 sm:$0xff]  }
 0x799   :  { %7171 = vmatpush1.bf16.msra.mxu0 %v8620_v34  ;;  %7090 = vmatprep.subr.bf16.mxu1 %v8625_v6  ;;  %v8683_v34 = vld [vmem:[#allocation16 + $0x1c0] ss:$16 sps:$4 sm:$0xff]   ;;  %v8686_v6 = vld [vmem:[#allocation16 + $0x1c8] ss:$16 sps:$4 sm:$0xff]  }
 0x79a   :  { %7172 = vmatprep.subr.bf16.mxu0 %v8628_v52  ;;  %v8691_v52 = vld [vmem:[#allocation16 + $0x1e4] ss:$16 sps:$4 sm:$0xff]  }
 0x79c   :  { %7091 = vmatpush1.bf16.msra.mxu1 %v8623_v9  ;;  %v8694_v9 = vld [vmem:[#allocation16 + $0x1ec] ss:$16 sps:$4 sm:$0xff]  }
 0x79d   :  { %7173 = vmatpush1.bf16.msra.mxu0 %v8626_v8  ;;  %7092 = vmatprep.subr.bf16.mxu1 %v8631_v13  ;;  %v8689_v8 = vld [vmem:[#allocation16 + $0x1e0] ss:$16 sps:$4 sm:$0xff]   ;;  %v8692_v13 = vld [vmem:[#allocation16 + $0x1e8] ss:$16 sps:$4 sm:$0xff]  }
 0x79e   :  { %7174 = vmatprep.subr.bf16.mxu0 %v8634_v14  ;;  %v8697_v14 = vld [vmem:[#allocation16 + $0x204] ss:$16 sps:$4 sm:$0xff]  }
 0x7a0   :  { %7093 = vmatpush1.bf16.msra.mxu1 %v8629_v11  ;;  %v8700_v11 = vld [vmem:[#allocation16 + $0x20c] ss:$16 sps:$4 sm:$0xff]  }
 0x7a1   :  { %7175 = vmatpush1.bf16.msra.mxu0 %v8632_v16  ;;  %7094 = vmatprep.subr.bf16.mxu1 %v8637_v18 }
 0x7a2   :  { %7176 = vmatprep.subr.bf16.mxu0 %v8640_v17 }
 0x7a4   :  { %7095 = vmatpush1.bf16.msra.mxu1 %v8635_v25 }
 0x7a5   :  { %7177 = vmatpush1.bf16.msra.mxu0 %v8638_v19  ;;  %7096 = vmatprep.subr.bf16.mxu1 %v8643_v21 }
 0x7a6   :  { %7178 = vmatprep.subr.bf16.mxu0 %v8646_v22 }
 0x7a8   :  { %7097 = vmatpush1.bf16.msra.mxu1 %v8641_v20 }
 0x7a9   :  { %7179 = vmatpush1.bf16.msra.mxu0 %v8644_v51  ;;  %7098 = vmatprep.subr.bf16.mxu1 %v8649_v55 }
 0x7aa   :  { %7180 = vmatprep.subr.bf16.mxu0 %v8652_v49 }
 0x7ac   :  { %7099 = vmatpush1.bf16.msra.mxu1 %v8647_v57 }
 0x7ad   :  { %7181 = vmatpush1.bf16.msra.mxu0 %v8650_v41  ;;  %7100 = vmatprep.subr.bf16.mxu1 %v8655_v26 }
 0x7ae   :  { %7182 = vmatprep.subr.bf16.mxu0 %v8658_v23 }
 0x7b0   :  { %7101 = vmatpush1.bf16.msra.mxu1 %v8653_v43 }
 0x7b1   :  { %7183 = vmatpush1.bf16.msra.mxu0 %v8656_v24  ;;  %7102 = vmatprep.subr.bf16.mxu1 %v8661_v37 }
 0x7b2   :  { %7184 = vmatprep.subr.bf16.mxu0 %v8664_v1 }
 0x7b4   :  { %7103 = vmatpush1.bf16.msra.mxu1 %v8659_v40  ;;  %v8695_v40 = vld [vmem:[#allocation16 + $0x200] ss:$16 sps:$4 sm:$0xff]  }
 0x7b5   :  { %7185 = vmatpush1.bf16.msra.mxu0 %v8662_v42  ;;  %v8698_v42 = vld [vmem:[#allocation16 + $0x208] ss:$16 sps:$4 sm:$0xff]  }
 0x7b6   :  { %7186 = vmatprep.subr.bf16.mxu0 %v8670_v10  ;;  %v8701_v10 = vld [vmem:[#allocation16 + $0x220] ss:$16 sps:$4 sm:$0xff]  }
 0x7b9   :  { %7187 = vmatpush1.bf16.msra.mxu0 %v8668_v53  ;;  %v8709_v53 = vld [vmem:[#allocation16 + $0x244] ss:$16 sps:$4 sm:$0xff]  }
 0x7ba   :  { %7188 = vmatprep.subr.bf16.mxu0 %v8676_v59  ;;  %v8707_v59 = vld [vmem:[#allocation16 + $0x240] ss:$16 sps:$4 sm:$0xff]  }
 0x7bd   :  { %7189 = vmatpush1.bf16.msra.mxu0 %v8674_v47  ;;  %v8715_v47 = vld [vmem:[#allocation16 + $0x264] ss:$16 sps:$4 sm:$0xff]  }
 0x7be   :  { %7190 = vmatprep.subr.bf16.mxu0 %v8682_v2  ;;  %v8713_v2 = vld [vmem:[#allocation16 + $0x260] ss:$16 sps:$4 sm:$0xff]  }
 0x7c1   :  { %7191 = vmatpush1.bf16.msra.mxu0 %v8680_v50  ;;  %v8721_v50 = vld [vmem:[#allocation16 + $0x284] ss:$16 sps:$4 sm:$0xff]  }
 0x7c2   :  { %7192 = vmatprep.subr.bf16.mxu0 %v8688_v5  ;;  %v8719_v5 = vld [vmem:[#allocation16 + $0x280] ss:$16 sps:$4 sm:$0xff]  }
 0x7c5   :  { %7193 = vmatpush1.bf16.msra.mxu0 %v8686_v6  ;;  %v8727_v6 = vld [vmem:[#allocation16 + $0x2a4] ss:$16 sps:$4 sm:$0xff]  }
 0x7c6   :  { %7194 = vmatprep.subr.bf16.mxu0 %v8694_v9  ;;  %v8725_v9 = vld [vmem:[#allocation16 + $0x2a0] ss:$16 sps:$4 sm:$0xff]  }
 0x7c9   :  { %7195 = vmatpush1.bf16.msra.mxu0 %v8692_v13  ;;  %v8733_v13 = vld [vmem:[#allocation16 + $0x2c4] ss:$16 sps:$4 sm:$0xff]  }
 0x7ca   :  { %7205 = vmatprep.subr.bf16.mxu0 %v8700_v11  ;;  %v8731_v11 = vld [vmem:[#allocation16 + $0x2c0] ss:$16 sps:$4 sm:$0xff]  }
 0x7de   :  { %v6001_v56 = vpop.f32.mrb[40].mxu1 }
 0x7df   :  { %v6270_v32 = vmul.f32 %v6001_v56, %v9577_v62  ;;  %v6083_v27 = vpop.f32.mrb[40].mxu0  ;;  %v6003_v63 = vpop.f32.mrb[41].mxu1 }
 0x7e0   :  { %v6272_v7 = vmul.f32 %v6083_v27, %v9577_v62  ;;  %v6271_v29 = vmul.f32 %v6003_v63, %v9577_v62  ;;  %v6085_v36 = vpop.f32.mrb[41].mxu0  ;;  %v6005_v46 = vpop.f32.mrb[42].mxu1 }
 0x7e1   :  { %v9710_v38 = vadd.f32 %v6270_v32, %v9692_v54  ;;  %v6273_v58 = vmul.f32 %v6085_v36, %v9577_v62  ;;  %v6087_v39 = vpop.f32.mrb[42].mxu0  ;;  %v6006_v33 = vpop.f32.mrb[43].mxu1  ;;  %v8667_v54 = vld [vmem:[#allocation16 + $0x164] ss:$16 sps:$4 sm:$0xff]  }
 0x7e2   :  { %v9714_v28 = vadd.f32 %v6272_v7, %v9696_v30  ;;  %v9717_v15 = vadd.f32 %v6271_v29, %v9699_v31  ;;  %v6088_v0 = vpop.f32.mrb[43].mxu0  ;;  %7104 = vmatprep.subr.bf16.mxu1 %v8667_v54  ;;  %v8673_v30 = vld [vmem:[#allocation16 + $0x184] ss:$16 sps:$4 sm:$0xff]   ;;  %v8671_v31 = vld [vmem:[#allocation16 + $0x180] ss:$16 sps:$4 sm:$0xff]  }
 0x7e3   :  { %v9720_v44 = vadd.f32 %v6273_v58, %v9702_v48  ;;  %7105 = vmatpush1.bf16.msra.mxu1 %v8665_v45  ;;  %v8679_v48 = vld [vmem:[#allocation16 + $0x1a4] ss:$16 sps:$4 sm:$0xff]   ;;  %v8704_v45 = vld [vmem:[#allocation16 + $0x228] ss:$16 sps:$4 sm:$0xff]  }
 0x7e4   :  { %7106 = vmatprep.subr.bf16.mxu1 %v8673_v30  ;;  %v8703_v0 = vld [vmem:[#allocation16 + $0x224] ss:$16 sps:$4 sm:$0xff]   ;;  %v8712_v30 = vld [vmem:[#allocation16 + $0x24c] ss:$16 sps:$4 sm:$0xff]  }
 0x7e7   :  { %7107 = vmatpush1.bf16.msra.mxu1 %v8671_v31  ;;  %v8710_v31 = vld [vmem:[#allocation16 + $0x248] ss:$16 sps:$4 sm:$0xff]  }
 0x7e8   :  { %7108 = vmatprep.subr.bf16.mxu1 %v8679_v48  ;;  %v8718_v48 = vld [vmem:[#allocation16 + $0x26c] ss:$16 sps:$4 sm:$0xff]  }
 0x7eb   :  { %7109 = vmatpush1.bf16.msra.mxu1 %v8677_v3  ;;  %v8716_v3 = vld [vmem:[#allocation16 + $0x268] ss:$16 sps:$4 sm:$0xff]  }
 0x7ec   :  { %7110 = vmatprep.subr.bf16.mxu1 %v8685_v4  ;;  %v8724_v4 = vld [vmem:[#allocation16 + $0x28c] ss:$16 sps:$4 sm:$0xff]  }
 0x7ef   :  { %7111 = vmatpush1.bf16.msra.mxu1 %v8683_v34  ;;  %v8722_v34 = vld [vmem:[#allocation16 + $0x288] ss:$16 sps:$4 sm:$0xff]  }
 0x7f0   :  { %7112 = vmatprep.subr.bf16.mxu1 %v8691_v52  ;;  %v8730_v52 = vld [vmem:[#allocation16 + $0x2ac] ss:$16 sps:$4 sm:$0xff]  }
 0x7f3   :  { %7113 = vmatpush1.bf16.msra.mxu1 %v8689_v8  ;;  %v8728_v8 = vld [vmem:[#allocation16 + $0x2a8] ss:$16 sps:$4 sm:$0xff]  }
 0x7f4   :  { %7123 = vmatprep.subr.bf16.mxu1 %v8697_v14  ;;  %v8736_v14 = vld [vmem:[#allocation16 + $0x2cc] ss:$16 sps:$4 sm:$0xff]  }
 0x85e   :  { %v6165_v16 = vpop.f32.mrb[44].mxu1 }
 0x85f   :  { %v6278_v18 = vmul.f32 %v6165_v16, %v9591_v12  ;;  %v6247_v17 = vpop.f32.mrb[44].mxu0  ;;  %v6167_v25 = vpop.f32.mrb[45].mxu1  ;;  %v8734_v16 = vld [vmem:[#allocation16 + $0x2c8] ss:$16 sps:$4 sm:$0xff]  }
 0x860   :  { %v6280_v19 = vmul.f32 %v6247_v17, %v9591_v12  ;;  %v6279_v21 = vmul.f32 %v6167_v25, %v9591_v12  ;;  %v6249_v22 = vpop.f32.mrb[45].mxu0  ;;  %v6169_v20 = vpop.f32.mrb[46].mxu1  ;;  %v8742_v17 = vld [vmem:[#allocation16 + $0x2ec] ss:$16 sps:$4 sm:$0xff]   ;;  %v8737_v25 = vld [vmem:[#allocation16 + $0x2e0] ss:$16 sps:$4 sm:$0xff]  }
 0x861   :  { %v6282_v51 = vadd.f32 %v6278_v18, %v9710_v38  ;;  %v6281_v55 = vmul.f32 %v6249_v22, %v9591_v12  ;;  %v6251_v49 = vpop.f32.mrb[46].mxu0  ;;  %v6170_v57 = vpop.f32.mrb[47].mxu1  ;;  %v8739_v18 = vld [vmem:[#allocation16 + $0x2e4] ss:$16 sps:$4 sm:$0xff]   ;;  %v8748_v22 = vld [vmem:[#allocation16 + $0x30c] ss:$16 sps:$4 sm:$0xff]  }
 0x862   :  { %v9728_v41 = vadd.f32 %v6280_v19, %v9714_v28  ;;  %v6283_v26 = vadd.f32 %v6279_v21, %v9717_v15  ;;  %v6252_v23 = vpop.f32.mrb[47].mxu0  ;;  %v8740_v19 = vld [vmem:[#allocation16 + $0x2e8] ss:$16 sps:$4 sm:$0xff]   ;;  %v8745_v21 = vld [vmem:[#allocation16 + $0x304] ss:$16 sps:$4 sm:$0xff]  }
 0x863   :  { %v6290_v43 = vmin.f32 %v6282_v51, 0.0  ;;  %v6285_v24 = vadd.f32 %v6281_v55, %v9720_v44  ;;  %vm6286_vm0 = vcmp.gt.f32.partialorder %v6282_v51, 0.0  ;;  %v8706_v44 = vld [vmem:[#allocation16 + $0x22c] ss:$16 sps:$4 sm:$0xff]   ;;  %v8743_v20 = vld [vmem:[#allocation16 + $0x300] ss:$16 sps:$4 sm:$0xff]  }
 0x864   :  { %v6291_v56 = vmin.f32 %v6283_v26, 0.0  ;;  %vm6287_vm1 = vcmp.gt.f32.partialorder %v6283_v26, 0.0  ;;  %v8751_v55 = vld [vmem:[#allocation16 + $0x324] ss:$16 sps:$4 sm:$0xff]   ;;  %v8754_v49 = vld [vmem:[#allocation16 + $0x32c] ss:$16 sps:$4 sm:$0xff]  }
 0x865   :  { %v6294_v32 = vmul.f32 1.442695, %v6290_v43  ;;  %v6293_v27 = vmin.f32 %v6285_v24, 0.0  ;;  %vm6289_vm2 = vcmp.gt.f32.partialorder %v6285_v24, 0.0  ;;  %v8749_v57 = vld [vmem:[#allocation16 + $0x320] ss:$16 sps:$4 sm:$0xff]  }
 0x866   :  { %v6296_v63 = vmul.f32 1.442695, %v6291_v56  ;;  %v6292_v23 = vmin.f32 %v9728_v41, 0.0  ;;  %v8757_v43 = vld [vmem:[#allocation16 + $0x344] ss:$16 sps:$4 sm:$0xff]   ;;  %vm6288_vm3 = vcmp.gt.f32.partialorder %v9728_v41, 0.0 }
 0x867   :  { %8819 = vpow2.f32 %v6294_v32  ;;  %v6300_v7 = vmul.f32 1.442695, %v6293_v27  ;;  %v8755_v56 = vld [vmem:[#allocation16 + $0x340] ss:$16 sps:$4 sm:$0xff]   ;;  %v8758_v32 = vld [vmem:[#allocation16 + $0x348] ss:$16 sps:$4 sm:$0xff]  }
 0x868   :  { %8821 = vpow2.f32 %v6296_v63  ;;  %v6298_v27 = vmul.f32 1.442695, %v6292_v23  ;;  %v8763_v63 = vld [vmem:[#allocation16 + $0x364] ss:$16 sps:$4 sm:$0xff]  }
 0x869   :  { %8823 = vpow2.f32 %v6300_v7  ;;  %v8766_v7 = vld [vmem:[#allocation16 + $0x36c] ss:$16 sps:$4 sm:$0xff]  }
 0x86a   :  { %8825 = vpow2.f32 %v6298_v27 }
 0x871   :  { %v8820_v29 = vpop.eup %8819 }
 0x872   :  { %v7991_v36 = vadd.f32 -1.0, %v8820_v29  ;;  %v8822_v46 = vpop.eup %8821  ;;  %v8761_v29 = vld [vmem:[#allocation16 + $0x360] ss:$16 sps:$4 sm:$0xff]  }
 0x873   :  { %v8824_v37 = vpop.eup %8823  ;;  %v7992_v1 = vadd.f32 -1.0, %v8822_v46  ;;  %v8769_v46 = vld [vmem:[#allocation16 + $0x384] ss:$16 sps:$4 sm:$0xff]  }
 0x874   :  { %v6306_v38 = vsel %vm6286_vm0, %v6282_v51, %v7991_v36  ;;  %v7994_v58 = vadd.f32 -1.0, %v8824_v37  ;;  %v8746_v51 = vld [vmem:[#allocation16 + $0x308] ss:$16 sps:$4 sm:$0xff]   ;;  %v8772_v37 = vld [vmem:[#allocation16 + $0x38c] ss:$16 sps:$4 sm:$0xff]  }
 0x875   :  { %v6307_v39 = vsel %vm6287_vm1, %v6283_v26, %v7992_v1  ;;  %v6310_v15 = vpack.c.bf16 %v6306_v38, %v6306_v38  ;;  %v8752_v26 = vld [vmem:[#allocation16 + $0x328] ss:$16 sps:$4 sm:$0xff]   ;;  %v8767_v1 = vld [vmem:[#allocation16 + $0x380] ss:$16 sps:$4 sm:$0xff]  }
 0x876   :  { %v6311_v33 = vpack.c.bf16 %v6307_v39, %v6307_v39  ;;  %v6309_v28 = vsel %vm6289_vm2, %v6285_v24, %v7994_v58  ;;  %v8760_v24 = vld [vmem:[#allocation16 + $0x34c] ss:$16 sps:$4 sm:$0xff]   ;;  %v8764_v36 = vld [vmem:[#allocation16 + $0x368] ss:$16 sps:$4 sm:$0xff]   ;;  %v8775_v58 = vld [vmem:[#allocation16 + $0x3a4] ss:$16 sps:$4 sm:$0xff]  }
 0x877   :  { %v6313_v54 = vpack.c.bf16 %v6309_v28, %v6309_v28  ;;  %v8770_v38 = vld [vmem:[#allocation16 + $0x388] ss:$16 sps:$4 sm:$0xff]   ;;  %v8778_v39 = vld [vmem:[#allocation16 + $0x3ac] ss:$16 sps:$4 sm:$0xff]  }
 0x878   :  { %7114 = vmatprep.mubr.bf16.mxu1 %v6311_v33  ;;  %7196 = vmatprep.mubr.bf16.mxu0 %v6311_v33  ;;  %v8773_v33 = vld [vmem:[#allocation16 + $0x3a0] ss:$16 sps:$4 sm:$0xff]   ;;  %v8784_v28 = vld [vmem:[#allocation16 + $0x3cc] ss:$16 sps:$4 sm:$0xff]  }
 0x879   :  { %7115 = vmatmul.mubr.bf16.vlgmr.msra.gmra.mrb[48].mxu1 %v6310_v15  ;;  %7197 = vmatmul.mubr.bf16.vlgmr.msra.gmra.mrb[48].mxu0 %v6310_v15  ;;  %v8826_v15 = vpop.eup %8825 }
 0x87a   :  { %7124 = vmatpush1.bf16.msra.mxu1 %v8695_v40  ;;  %7206 = vmatpush1.bf16.msra.mxu0 %v8698_v42  ;;  %v8776_v40 = vld [vmem:[#allocation16 + $0x3a8] ss:$16 sps:$4 sm:$0xff]   ;;  %v8781_v42 = vld [vmem:[#allocation16 + $0x3c4] ss:$16 sps:$4 sm:$0xff]  }
 0x87b   :  { %7155 = vmatprep.mubr.bf16.mxu1 %v6313_v54  ;;  %7237 = vmatprep.mubr.bf16.mxu0 %v6313_v54  ;;  %v8787_v54 = vld [vmem:[#allocation16 + $0x3e4] ss:$16 sps:$4 sm:$0xff]  }
 0x87c   :  { %7125 = vmatprep.subr.bf16.mxu1 %v8703_v0  ;;  %7207 = vmatprep.subr.bf16.mxu0 %v8706_v44  ;;  %v8779_v0 = vld [vmem:[#allocation16 + $0x3c0] ss:$16 sps:$4 sm:$0xff]   ;;  %v8782_v44 = vld [vmem:[#allocation16 + $0x3c8] ss:$16 sps:$4 sm:$0xff]  }
 0x87e   :  { %7126 = vmatpush1.bf16.msra.mxu1 %v8701_v10  ;;  %7208 = vmatpush1.bf16.msra.mxu0 %v8704_v45  ;;  %v8790_v10 = vld [vmem:[#allocation16 + $0x3ec] ss:$16 sps:$4 sm:$0xff]   ;;  %v7993_v45 = vadd.f32 -1.0, %v8826_v15 }
 0x87f   :  { %7127 = vmatprep.subr.bf16.mxu1 %v8709_v53  ;;  %7209 = vmatprep.subr.bf16.mxu0 %v8712_v30  ;;  %v8785_v53 = vld [vmem:[#allocation16 + $0x3e0] ss:$16 sps:$4 sm:$0xff]   ;;  %v8788_v30 = vld [vmem:[#allocation16 + $0x3e8] ss:$16 sps:$4 sm:$0xff]  }
 0x882   :  { %7128 = vmatpush1.bf16.msra.mxu1 %v8707_v59  ;;  %7210 = vmatpush1.bf16.msra.mxu0 %v8710_v31  ;;  %v6308_v59 = vsel %vm6288_vm3, %v9728_v41, %v7993_v45 }
 0x883   :  { %7129 = vmatprep.subr.bf16.mxu1 %v8715_v47  ;;  %7211 = vmatprep.subr.bf16.mxu0 %v8718_v48  ;;  %v6312_v31 = vpack.c.bf16 %v6308_v59, %v6308_v59 }
 0x886   :  { %7130 = vmatpush1.bf16.msra.mxu1 %v8713_v2  ;;  %7212 = vmatpush1.bf16.msra.mxu0 %v8716_v3 }
 0x887   :  { %7131 = vmatprep.subr.bf16.mxu1 %v8721_v50  ;;  %7213 = vmatprep.subr.bf16.mxu0 %v8724_v4 }
 0x88a   :  { %7132 = vmatpush1.bf16.msra.mxu1 %v8719_v5  ;;  %7214 = vmatpush1.bf16.msra.mxu0 %v8722_v34 }
 0x88b   :  { %7133 = vmatprep.subr.bf16.mxu1 %v8727_v6  ;;  %7215 = vmatprep.subr.bf16.mxu0 %v8730_v52 }
 0x88e   :  { %7134 = vmatpush1.bf16.msra.mxu1 %v8725_v9  ;;  %7216 = vmatpush1.bf16.msra.mxu0 %v8728_v8 }
 0x88f   :  { %7135 = vmatprep.subr.bf16.mxu1 %v8733_v13  ;;  %7217 = vmatprep.subr.bf16.mxu0 %v8736_v14 }
 0x892   :  { %7136 = vmatpush1.bf16.msra.mxu1 %v8731_v11  ;;  %7218 = vmatpush1.bf16.msra.mxu0 %v8734_v16 }
 0x893   :  { %7137 = vmatprep.subr.bf16.mxu1 %v8739_v18  ;;  %7219 = vmatprep.subr.bf16.mxu0 %v8742_v17 }
 0x896   :  { %7138 = vmatpush1.bf16.msra.mxu1 %v8737_v25  ;;  %7220 = vmatpush1.bf16.msra.mxu0 %v8740_v19 }
 0x897   :  { %7139 = vmatprep.subr.bf16.mxu1 %v8745_v21  ;;  %7221 = vmatprep.subr.bf16.mxu0 %v8748_v22 }
 0x89a   :  { %7140 = vmatpush1.bf16.msra.mxu1 %v8743_v20  ;;  %7222 = vmatpush1.bf16.msra.mxu0 %v8746_v51 }
 0x89b   :  { %7141 = vmatprep.subr.bf16.mxu1 %v8751_v55  ;;  %7223 = vmatprep.subr.bf16.mxu0 %v8754_v49 }
 0x89e   :  { %7142 = vmatpush1.bf16.msra.mxu1 %v8749_v57  ;;  %7224 = vmatpush1.bf16.msra.mxu0 %v8752_v26 }
 0x89f   :  { %7143 = vmatprep.subr.bf16.mxu1 %v8757_v43  ;;  %7225 = vmatprep.subr.bf16.mxu0 %v8760_v24 }
 0x8a2   :  { %7144 = vmatpush1.bf16.msra.mxu1 %v8755_v56  ;;  %7226 = vmatpush1.bf16.msra.mxu0 %v8758_v32 }
 0x8a3   :  { %7145 = vmatprep.subr.bf16.mxu1 %v8763_v63  ;;  %7227 = vmatprep.subr.bf16.mxu0 %v8766_v7 }
 0x8a6   :  { %7146 = vmatpush1.bf16.msra.mxu1 %v8761_v29  ;;  %7228 = vmatpush1.bf16.msra.mxu0 %v8764_v36 }
 0x8a7   :  { %7147 = vmatprep.subr.bf16.mxu1 %v8769_v46  ;;  %7229 = vmatprep.subr.bf16.mxu0 %v8772_v37 }
 0x8aa   :  { %7148 = vmatpush1.bf16.msra.mxu1 %v8767_v1  ;;  %7230 = vmatpush1.bf16.msra.mxu0 %v8770_v38 }
 0x8ab   :  { %7149 = vmatprep.subr.bf16.mxu1 %v8775_v58  ;;  %7231 = vmatprep.subr.bf16.mxu0 %v8778_v39 }
 0x8ae   :  { %7150 = vmatpush1.bf16.msra.mxu1 %v8773_v33  ;;  %7232 = vmatpush1.bf16.msra.mxu0 %v8776_v40 }
 0x8af   :  { %7151 = vmatprep.subr.bf16.mxu1 %v8781_v42  ;;  %7233 = vmatprep.subr.bf16.mxu0 %v8784_v28 }
 0x8b2   :  { %7152 = vmatpush1.bf16.msra.mxu1 %v8779_v0  ;;  %7234 = vmatpush1.bf16.msra.mxu0 %v8782_v44 }
 0x8b3   :  { %7153 = vmatprep.subr.bf16.mxu1 %v8787_v54  ;;  %7235 = vmatprep.subr.bf16.mxu0 %v8790_v10 }
 0x8b6   :  { %7154 = vmatpush1.bf16.msra.mxu1 %v8785_v53  ;;  %7236 = vmatpush1.bf16.msra.mxu0 %v8788_v30 }
 0x8b9   :  { %7156 = vmatmul.mubr.bf16.vlgmr.msra.gmra.mrb[48].mxu1 %v6312_v31  ;;  %7238 = vmatmul.mubr.bf16.vlgmr.msra.gmra.mrb[48].mxu0 %v6312_v31 }
 0x98c   :  { %v7157_v47 = vpop.f32.mrb[48].mxu1  ;;  %v7239_v48 = vpop.f32.mrb[48].mxu0 }
 0x98d   :  { %v7246_v2 = vmul.f32 %v7157_v47, %v9573_v60  ;;  %v7159_v3 = vpop.f32.mrb[49].mxu1  ;;  %v7241_v50 = vpop.f32.mrb[49].mxu0  ;;  %v7250_v41 = vmul.f32 %v7239_v48, %v9577_v62 }
 0x98e   :  { %v7248_v4 = vmul.f32 %v7159_v3, %v9575_v61  ;;  %v7161_v5 = vpop.f32.mrb[50].mxu1  ;;  %v7243_v34 = vpop.f32.mrb[50].mxu0  ;;  %v7252_v14 = vmul.f32 %v7241_v50, %v9591_v12 }
 0x98f   :  { %v7247_v6 = vadd.f32 %v7246_v2, %v9623_v35  ;;  %v7162_v52 = vpop.f32.mrb[51].mxu1  ;;  %v7244_v9 = vpop.f32.mrb[51].mxu0 }
 0x991   :  { %v7249_v8 = vadd.f32 %v7248_v4, %v7247_v6 }
 0x993   :  { %v7251_v13 = vadd.f32 %v7250_v41, %v7249_v8 }
 0x995   :  { %v7253_v11 = vadd.f32 %v7252_v14, %v7251_v13 }
 0x997   :  { %7254 = vst [vmem:[#allocation17] sm:$0xff] %v7253_v11 }
 0x998   :  { %9036 = shalt.err (!%p9033_p6)
}
 0x999   :  { %s9037_s0 = scalar_lea.hbm %s9762_s10, 128 }
 0x99a   :  { %p9038_p7 = scmp.ne.s32.totalorder %s9762_s10, %s9037_s0  ;;  %p9041_p8 = scmp.lt.u32.totalorder %s9037_s0, %s9762_s10 }
 0x99c   :  { %p9043_p9 = pnand %p9041_p8, %p9038_p7 }
 0x99e   :  { %9046 = shalt.err (!%p9043_p9)
}
 0x99f   :  { %7264 = dma.vmem_to_hbm [thread:$0]  %s7262_s21, 128, %s9762_s10, [#allocation4]  }
 0x9a0   :  { %9057 = dma.done.wait [#allocation4], 128  }
 0x9a1   :  { %9058 = vsyncadd [#allocation4], 4294967168 }
 0x9a2   :  { %7268 = vsyncpa [#allocation3], 1 }
 0x9a3   :  { %7269 = vsyncpa [#allocation6], 1 }
 0x9a4   :  { %7270 = vsyncpa [#allocation9], 1 }
 0x9a5   :  { %7271 = vsyncpa [#allocation12], 1 }
 0x9a6   :  { %7272 = vsyncpa [#allocation15], 1 }
 0x9a7   :  { %7273 = vsyncpa [#allocation4], 1 }

</bundles_post_ra>
